<compile_context>
chip_gen: v5e
topology: v5e:2x2
jax: 0.10.0
libtpu: 0.0.40
codegen_flags: <defaults>
</compile_context>

<pallas_src>
import functools
import math

import jax
import jax.numpy as jnp
from jax.experimental import pallas as pl
from jax.experimental.pallas import tpu as pltpu


def _rup(x, m):
    return ((x + m - 1) // m) * m


_ROUND_MAGIC = float(1.5 * 2 ** 23)     # fp32 round-half-to-even trick
_LOG2_INV = 1.0 / math.log(2.0)
_MM_VMEM_LIMIT = 48 * 1024 * 1024       # explicit scoped-VMEM budget


# ----------------------------- Pallas kernels ------------------------------

def _matmul_fused_kernel(a_ref, b_ref, bias_ref, *rest, epilogue):
    """(tm,K) @ (K,N) + bias with f32 accumulation and a fused epilogue:
         'bias'  : y = x
         'round' : y = round_half_even(x)               (quantizer, conv3)
         'clip'  : y = clip(x, 0, 1)                    (recon clamp, deconv3)
         'gdn'   : y = x * rsqrt(x^2 @ gammaT + beta)   (forward GDN)
         'igdn'  : y = x * sqrt (x^2 @ gammaT + beta)   (inverse GDN)
    """
    if epilogue in ("gdn", "igdn"):
        gamma_ref, beta_ref, o_ref = rest
    else:
        (o_ref,) = rest

    x = jnp.dot(a_ref[...], b_ref[...],
                preferred_element_type=jnp.float32) + bias_ref[...]

    if epilogue == "bias":
        o_ref[...] = x
    elif epilogue == "round":
        # round-half-to-even (matches torch.round); exact for |x| < 2**22.
        o_ref[...] = (x + _ROUND_MAGIC) - _ROUND_MAGIC
    elif epilogue == "clip":
        o_ref[...] = jnp.clip(x, 0.0, 1.0)
    elif epilogue == "gdn":
        n2 = jnp.dot(x * x, gamma_ref[...],
                     preferred_element_type=jnp.float32) + beta_ref[...]
        o_ref[...] = x * jax.lax.rsqrt(n2)      # EUP rsqrt, no f32 divide
    elif epilogue == "igdn":
        n2 = jnp.dot(x * x, gamma_ref[...],
                     preferred_element_type=jnp.float32) + beta_ref[...]
        o_ref[...] = x * jnp.sqrt(n2)
    else:
        raise ValueError(epilogue)


def _mse_kernel(r_ref, x_ref, o_ref, acc_ref, *, inv_count):
    """Row-block-tiled mean-squared-error reduction."""
    @pl.when(pl.program_id(0) == 0)
    def _init():
        acc_ref[...] = jnp.zeros_like(acc_ref)

    d = r_ref[...] - x_ref[...]
    acc_ref[...] += jnp.sum(d * d, keepdims=True)

    @pl.when(pl.program_id(0) == pl.num_programs(0) - 1)
    def _fin():
        o_ref[...] = acc_ref[...] * inv_count


def _bits_kernel(z_ref, h_ref, b_ref, a_ref, o_ref, acc_ref, *,
                 n_valid, block_rows):
    """Factorized bit estimator (4 Bitparm layers), lane-dense, row-tiled sum."""
    @pl.when(pl.program_id(0) == 0)
    def _init():
        acc_ref[...] = jnp.zeros_like(acc_ref)

    z = z_ref[...]
    sp_h = jnp.log(1.0 + jnp.exp(h_ref[...]))     # softplus, (4, lanes)
    bs = b_ref[...]                               # (4, lanes)
    ta = jnp.tanh(a_ref[...])                     # (3, lanes)

    def cdf(x):
        for i in range(3):
            x = x * sp_h[i:i + 1, :] + bs[i:i + 1, :]
            x = x + jnp.tanh(x) * ta[i:i + 1, :]
        x = x * sp_h[3:4, :] + bs[3:4, :]
        return 1.0 / (1.0 + jnp.exp(-x))          # sigmoid

    prob = cdf(z + 0.5) - cdf(z - 0.5)
    bits = jnp.clip(-jnp.log(prob + 1e-10) * _LOG2_INV, 0.0, 50.0)

    lanes = z.shape[1]
    row0 = pl.program_id(0) * block_rows
    ridx = jax.lax.broadcasted_iota(jnp.int32, z.shape, 0) + row0
    lidx = jax.lax.broadcasted_iota(jnp.int32, z.shape, 1)
    valid = (ridx * lanes + lidx) < n_valid
    acc_ref[...] += jnp.sum(jnp.where(valid, bits, 0.0), keepdims=True)

    @pl.when(pl.program_id(0) == pl.num_programs(0) - 1)
    def _fin():
        o_ref[...] = acc_ref[...]


# --------------------------- Pallas call wrappers ---------------------------

def pallas_matmul_fused(a, b, bias, *, epilogue="bias", gamma=None, beta=None,
                        tm_max=512):
    """Row-tiled matmul with fused epilogue.

    K and N are single full-extent blocks (the reduction dim of every layer in
    this net fits VMEM), so only M is padded/tiled.  Inputs are fed as bf16,
    accumulation and epilogue run in f32."""
    M, K = a.shape
    Kb, N = b.shape
    assert K == Kb
    tm = min(tm_max, _rup(M, 16))
    Mp = _rup(M, tm)

    a_bf = a.astype(jnp.bfloat16)
    if Mp != M:
        a_bf = jnp.pad(a_bf, ((0, Mp - M), (0, 0)))
    b_bf = b.astype(jnp.bfloat16)
    bias2d = bias.astype(jnp.float32).reshape(1, N)

    in_specs = [pl.BlockSpec((tm, K), lambda i: (i, 0)),
                pl.BlockSpec((K, N), lambda i: (0, 0)),
                pl.BlockSpec((1, N), lambda i: (0, 0))]
    operands = [a_bf, b_bf, bias2d]
    if epilogue in ("gdn", "igdn"):
        in_specs += [pl.BlockSpec((N, N), lambda i: (0, 0)),
                     pl.BlockSpec((1, N), lambda i: (0, 0))]
        operands += [gamma.astype(jnp.float32),
                     beta.astype(jnp.float32).reshape(1, N)]

    out = pl.pallas_call(
        functools.partial(_matmul_fused_kernel, epilogue=epilogue),
        out_shape=jax.ShapeDtypeStruct((Mp, N), jnp.float32),
        grid_spec=pltpu.PrefetchScalarGridSpec(
            num_scalar_prefetch=0,
            grid=(Mp // tm,),
            in_specs=in_specs,
            out_specs=pl.BlockSpec((tm, N), lambda i: (i, 0)),
        ),
        compiler_params=pltpu.CompilerParams(
            dimension_semantics=("parallel",),
            vmem_limit_bytes=_MM_VMEM_LIMIT),
    )(*operands)
    return out if Mp == M else out[:M]


def pallas_mse(recon, target, block_rows=512):
    n = int(recon.size)
    lanes = 128
    rows = -(-n // lanes)
    br = min(block_rows, _rup(rows, 8))
    rows_p = _rup(rows, br)
    tot = rows_p * lanes
    r2 = jnp.pad(recon.reshape(-1).astype(jnp.float32),
                 (0, tot - n)).reshape(rows_p, lanes)
    t2 = jnp.pad(target.reshape(-1).astype(jnp.float32),
                 (0, tot - n)).reshape(rows_p, lanes)
    out = pl.pallas_call(
        functools.partial(_mse_kernel, inv_count=1.0 / float(n)),
        out_shape=jax.ShapeDtypeStruct((1, 1), jnp.float32),
        grid_spec=pltpu.PrefetchScalarGridSpec(
            num_scalar_prefetch=0,
            grid=(rows_p // br,),
            in_specs=[pl.BlockSpec((br, lanes), lambda i: (i, 0)),
                      pl.BlockSpec((br, lanes), lambda i: (i, 0))],
            out_specs=pl.BlockSpec((1, 1), lambda i: (0, 0)),
            scratch_shapes=[pltpu.VMEM((1, 1), jnp.float32)],
        ),
        compiler_params=pltpu.CompilerParams(
            dimension_semantics=("arbitrary",)),
    )(r2, t2)
    return out[0, 0]


def pallas_total_bits(z, h, b, a, block_rows=512):
    """Total bits of the quantized latent z (last dim = channels)."""
    C = z.shape[-1]
    n = int(z.size)
    if 128 % C == 0:                 # lane-dense packing: rep channels per row
        lanes, rep = 128, 128 // C
    else:
        lanes, rep = C, 1
    rows = -(-n // lanes)
    br = min(block_rows, _rup(rows, 8))
    rows_p = _rup(rows, br)
    tot = rows_p * lanes
    zp = jnp.pad(z.reshape(-1).astype(jnp.float32),
                 (0, tot - n)).reshape(rows_p, lanes)
    h_t = jnp.tile(h.astype(jnp.float32), (1, rep))
    b_t = jnp.tile(b.astype(jnp.float32), (1, rep))
    a_t = jnp.tile(a.astype(jnp.float32), (1, rep))
    out = pl.pallas_call(
        functools.partial(_bits_kernel, n_valid=n, block_rows=br),
        out_shape=jax.ShapeDtypeStruct((1, 1), jnp.float32),
        grid_spec=pltpu.PrefetchScalarGridSpec(
            num_scalar_prefetch=0,
            grid=(rows_p // br,),
            in_specs=[pl.BlockSpec((br, lanes), lambda i: (i, 0)),
                      pl.BlockSpec((4, lanes), lambda i: (0, 0)),
                      pl.BlockSpec((4, lanes), lambda i: (0, 0)),
                      pl.BlockSpec((3, lanes), lambda i: (0, 0))],
            out_specs=pl.BlockSpec((1, 1), lambda i: (0, 0)),
            scratch_shapes=[pltpu.VMEM((1, 1), jnp.float32)],
        ),
        compiler_params=pltpu.CompilerParams(
            dimension_semantics=("arbitrary",)),
    )(zp, h_t, b_t, a_t)
    return out[0, 0]


# --------------------------- conv glue (im2col) -----------------------------
# TODO(synk): im2col patches are still materialized by XLA; streaming the
#             windows from inside the kernel (kh/kw grid axes) is not done.

def _im2col(x_nhwc, kh, kw, stride, pad):
    if pad:
        x_nhwc = jnp.pad(x_nhwc, ((0, 0), (pad, pad), (pad, pad), (0, 0)))
    B, H, W, C = x_nhwc.shape
    Ho = (H - kh) // stride + 1
    Wo = (W - kw) // stride + 1
    cols = []
    for i in range(kh):
        for j in range(kw):
            cols.append(x_nhwc[:, i:i + stride * (Ho - 1) + 1:stride,
                               j:j + stride * (Wo - 1) + 1:stride, :])
    patches = jnp.stack(cols, axis=3)          # (B, Ho, Wo, kh*kw, C)
    return patches.reshape(B * Ho * Wo, kh * kw * C), (B, Ho, Wo)


def conv2d(x_nhwc, w_oihw, bias, stride, pad, *, epilogue="bias",
           gamma=None, beta=None):
    cout, cin, kh, kw = w_oihw.shape
    patches, (B, Ho, Wo) = _im2col(x_nhwc.astype(jnp.bfloat16),
                                   kh, kw, stride, pad)
    wmat = jnp.transpose(w_oihw, (2, 3, 1, 0)).reshape(kh * kw * cin, cout)
    out = pallas_matmul_fused(patches, wmat, bias, epilogue=epilogue,
                              gamma=gamma, beta=beta)
    return out.reshape(B, Ho, Wo, cout)


def conv_transpose2d(x_nhwc, w_iohw, bias, stride, pad, out_pad, *,
                     epilogue="bias", gamma=None, beta=None):
    """ConvTranspose2d via sub-pixel phase decomposition: stride^2 small
    stride-1 convs on the un-upsampled input, outputs interleaved."""
    cin, cout, kh, kw = w_iohw.shape
    B, H, W, _ = x_nhwc.shape
    s = stride
    Ho = (H - 1) * s - 2 * pad + kh + out_pad
    Wo = (W - 1) * s - 2 * pad + kw + out_pad
    out = jnp.zeros((B, Ho, Wo, cout), jnp.float32)

    for ry in range(s):
        kys = list(range(ry, kh, s))
        My = len(kys)
        if My == 0:
            continue
        qy_min = -((ry - pad) // s)                 # ceil((pad - ry) / s)
        qy_max = (Ho - 1 + pad - ry) // s
        nqy = qy_max - qy_min + 1
        if nqy <= 0:
            continue
        ply = max(0, (My - 1) - qy_min)
        pry = max(0, qy_max - (H - 1))
        base_y = qy_min - (My - 1) + ply
        oy0 = qy_min * s + ry - pad
        for rx in range(s):
            kxs = list(range(rx, kw, s))
            Mx = len(kxs)
            if Mx == 0:
                continue
            qx_min = -((rx - pad) // s)
            qx_max = (Wo - 1 + pad - rx) // s
            nqx = qx_max - qx_min + 1
            if nqx <= 0:
                continue
            plx = max(0, (Mx - 1) - qx_min)
            prx = max(0, qx_max - (W - 1))
            base_x = qx_min - (Mx - 1) + plx
            ox0 = qx_min * s + rx - pad

            xp = jnp.pad(x_nhwc, ((0, 0), (ply, pry), (plx, prx), (0, 0)))
            xs = xp[:, base_y:base_y + nqy + My - 1,
                    base_x:base_x + nqx + Mx - 1, :]
            # flipped phase sub-kernel, reshaped to dense-conv layout
            w_sub = w_iohw[:, :, kys[::-1], :][:, :, :, kxs[::-1]]  # (ci,co,My,Mx)
            w_eff = jnp.transpose(w_sub, (1, 0, 2, 3))              # (co,ci,My,Mx)
            ph = conv2d(xs, w_eff, bias, stride=1, pad=0,
                        epilogue=epilogue, gamma=gamma, beta=beta)
            out = out.at[:, oy0:oy0 + nqy * s:s,
                         ox0:ox0 + nqx * s:s, :].set(ph)
    return out


# ------------------------------- parameters ---------------------------------

def _gdn_params(n):
    # GDN reparameterized init -> effective beta / gamma (LowerBound + square
    # reparameterization is parameter setup, folded here in glue).
    reparam_offset = 2.0 ** -18
    pedestal = reparam_offset ** 2
    beta_bound = (1e-6 + pedestal) ** 0.5
    gamma_bound = reparam_offset
    beta_raw = jnp.sqrt(jnp.ones((n,), jnp.float32) + pedestal)
    gamma_raw = jnp.sqrt(0.1 * jnp.eye(n, dtype=jnp.float32) + pedestal)
    beta_eff = jnp.maximum(beta_raw, beta_bound) ** 2 - pedestal
    gamma_eff = jnp.maximum(gamma_raw, gamma_bound) ** 2 - pedestal
    return gamma_eff.T, beta_eff     # kernel computes x^2 @ gamma^T + beta


def init_params(key, n):
    ks = jax.random.split(key, 9)

    def conv_w(k, shape):    # (Cout, Cin, kh, kw)
        fan_in = shape[1] * shape[2] * shape[3]
        return jax.random.normal(k, shape, jnp.float32) / math.sqrt(fan_in)

    def deconv_w(k, shape):  # (Cin, Cout, kh, kw)
        fan_in = shape[0] * shape[2] * shape[3]
        return jax.random.normal(k, shape, jnp.float32) / math.sqrt(fan_in)

    p = dict(
        conv1_w=conv_w(ks[0], (n, 3, 9, 9)),  conv1_b=jnp.full((n,), 0.01, jnp.float32),
        conv2_w=conv_w(ks[1], (n, n, 5, 5)),  conv2_b=jnp.full((n,), 0.01, jnp.float32),
        conv3_w=conv_w(ks[2], (n, n, 5, 5)),  conv3_b=jnp.zeros((n,), jnp.float32),  # bias=False
        deconv1_w=deconv_w(ks[3], (n, n, 5, 5)), deconv1_b=jnp.full((n,), 0.01, jnp.float32),
        deconv2_w=deconv_w(ks[4], (n, n, 5, 5)), deconv2_b=jnp.full((n,), 0.01, jnp.float32),
        deconv3_w=deconv_w(ks[5], (n, 3, 9, 9)), deconv3_b=jnp.full((3,), 0.01, jnp.float32),
        be_h=0.01 * jax.random.normal(ks[6], (4, n), jnp.float32),
        be_b=0.01 * jax.random.normal(ks[7], (4, n), jnp.float32),
        be_a=0.01 * jax.random.normal(ks[8], (3, n), jnp.float32),
    )
    # independent GDN / IGDN parameters per layer (matches the PyTorch module)
    for name in ("gdn1", "gdn2", "igdn1", "igdn2"):
        gt, be = _gdn_params(n)
        p[name + "_gamma_t"] = gt
        p[name + "_beta"] = be
    return p


# --------------------------------- forward ----------------------------------

def image_compressor_forward(params, input_image, w_pad=0, h_pad=0):
    B = input_image.shape[0]
    H, W = input_image.shape[2], input_image.shape[3]
    x = jnp.transpose(input_image, (0, 2, 3, 1)).astype(jnp.float32)  # NCHW->NHWC

    # ---- Encoder (Analysis_net_17): conv + fused GDN epilogues ----
    f = conv2d(x, params["conv1_w"], params["conv1_b"], stride=4, pad=4,
               epilogue="gdn", gamma=params["gdn1_gamma_t"],
               beta=params["gdn1_beta"])
    f = conv2d(f, params["conv2_w"], params["conv2_b"], stride=2, pad=2,
               epilogue="gdn", gamma=params["gdn2_gamma_t"],
               beta=params["gdn2_beta"])
    # conv3 with the quantizer (torch.round, eval mode) fused into the epilogue
    compressed = conv2d(f, params["conv3_w"], params["conv3_b"],
                        stride=2, pad=2, epilogue="round")      # (B,Hf,Wf,C)

    # ---- Decoder (Synthesis_net_17): phase deconvs + fused IGDN / clip ----
    d = conv_transpose2d(compressed, params["deconv1_w"], params["deconv1_b"],
                         stride=2, pad=2, out_pad=1,
                         epilogue="igdn", gamma=params["igdn1_gamma_t"],
                         beta=params["igdn1_beta"])
    d = conv_transpose2d(d, params["deconv2_w"], params["deconv2_b"],
                         stride=2, pad=2, out_pad=1,
                         epilogue="igdn", gamma=params["igdn2_gamma_t"],
                         beta=params["igdn2_beta"])
    clipped = conv_transpose2d(d, params["deconv3_w"], params["deconv3_b"],
                               stride=4, pad=4, out_pad=3,
                               epilogue="clip")                 # (B,H,W,3) in [0,1]

    clipped_nchw = jnp.transpose(clipped, (0, 3, 1, 2))

    w0, h0 = input_image.shape[-2], input_image.shape[-1]       # matches reference
    clipped_recon_image = clipped_nchw[:, :, w_pad // 2:w_pad // 2 + w0,
                                       h_pad // 2:h_pad // 2 + h0]
    clipped_input_image = input_image[:, :, w_pad // 2:w_pad // 2 + w0,
                                      h_pad // 2:h_pad // 2 + h0]
    mse_loss = pallas_mse(clipped_recon_image, clipped_input_image)

    # ---- Bit estimation over the quantized feature ----
    total_bits = pallas_total_bits(compressed, params["be_h"],
                                   params["be_b"], params["be_a"])
    bpp_feature = total_bits / (B * H * W)

    return clipped_recon_image, mse_loss, bpp_feature


# ----------------------------------- main ------------------------------------

if __name__ == "__main__":
    out_channel_N = 128        # module default; keeps all latent slabs lane-dense
    key = jax.random.PRNGKey(0)
    params = init_params(key, out_channel_N)

    x = jax.random.uniform(jax.random.fold_in(key, 123), (2, 3, 32, 32),
                           dtype=jnp.float32)

    fwd = jax.jit(image_compressor_forward)
    recon, mse, bpp = jax.block_until_ready(fwd(params, x))

    assert recon.shape == (2, 3, 32, 32)
    assert bool(jnp.isfinite(mse)) and bool(jnp.isfinite(bpp))
    assert float(jnp.min(recon)) >= 0.0 and float(jnp.max(recon)) <= 1.0
    print("KERNEL_OK")
</pallas_src>

<mosaic_0001>
module attributes {stable_mosaic.version = 11 : i64} {
  func.func @_matmul_fused_kernel(%arg0: i32, %arg1: memref<128x243xbf16, #tpu.memory_space<vmem>>, %arg2: memref<243x128xbf16, #tpu.memory_space<vmem>>, %arg3: memref<1x128xf32, #tpu.memory_space<vmem>>, %arg4: memref<128x128xf32, #tpu.memory_space<vmem>>, %arg5: memref<1x128xf32, #tpu.memory_space<vmem>>, %arg6: memref<128x128xf32, #tpu.memory_space<vmem>>) attributes {dimension_semantics = [#tpu.dimension_semantics<parallel>], iteration_bounds = array<i64: 1>, scalar_prefetch = 0 : i64, scratch_operands = 0 : i64, tpu.core_type = #tpu.core_type<tc>, window_params = [{transform_indices = @transform_0, window_bounds = array<i64: 128, 243>}, {pipeline_mode = #tpu.pipeline_mode<synchronous>, transform_indices = @transform_1, window_bounds = array<i64: 243, 128>}, {pipeline_mode = #tpu.pipeline_mode<synchronous>, transform_indices = @transform_2, window_bounds = array<i64: 1, 128>}, {pipeline_mode = #tpu.pipeline_mode<synchronous>, transform_indices = @transform_3, window_bounds = array<i64: 128, 128>}, {pipeline_mode = #tpu.pipeline_mode<synchronous>, transform_indices = @transform_4, window_bounds = array<i64: 1, 128>}, {transform_indices = @transform_5, window_bounds = array<i64: 128, 128>}]} {
    %c0 = arith.constant 0 : index
    %c0_0 = arith.constant 0 : index
    %0 = vector.load %arg1[%c0, %c0_0] : memref<128x243xbf16, #tpu.memory_space<vmem>>, vector<128x243xbf16>
    %c0_1 = arith.constant 0 : index
    %c0_2 = arith.constant 0 : index
    %1 = vector.load %arg2[%c0_1, %c0_2] : memref<243x128xbf16, #tpu.memory_space<vmem>>, vector<243x128xbf16>
    %cst = arith.constant dense<0.000000e+00> : vector<128x128xf32>
    %2 = tpu.matmul %0, %1, %cst {dimension_numbers = #tpu.dot_dimension_numbers<[1], [0], [0], [1], [0, 0, 1, 1], [], []>} : vector<128x243xbf16>, vector<243x128xbf16>, vector<128x128xf32> -> vector<128x128xf32>
    %c0_3 = arith.constant 0 : index
    %c0_4 = arith.constant 0 : index
    %3 = vector.load %arg3[%c0_3, %c0_4] : memref<1x128xf32, #tpu.memory_space<vmem>>, vector<1x128xf32>
    %4 = vector.broadcast %3 : vector<1x128xf32> to vector<128x128xf32>
    %5 = arith.addf %2, %4 : vector<128x128xf32>
    %6 = arith.mulf %5, %5 : vector<128x128xf32>
    %c0_5 = arith.constant 0 : index
    %c0_6 = arith.constant 0 : index
    %7 = vector.load %arg4[%c0_5, %c0_6] : memref<128x128xf32, #tpu.memory_space<vmem>>, vector<128x128xf32>
    %cst_7 = arith.constant dense<0.000000e+00> : vector<128x128xf32>
    %8 = tpu.matmul %6, %7, %cst_7 {dimension_numbers = #tpu.dot_dimension_numbers<[1], [0], [0], [1], [0, 0, 1, 1], [], []>} : vector<128x128xf32>, vector<128x128xf32>, vector<128x128xf32> -> vector<128x128xf32>
    %c0_8 = arith.constant 0 : index
    %c0_9 = arith.constant 0 : index
    %9 = vector.load %arg5[%c0_8, %c0_9] : memref<1x128xf32, #tpu.memory_space<vmem>>, vector<1x128xf32>
    %10 = vector.broadcast %9 : vector<1x128xf32> to vector<128x128xf32>
    %11 = arith.addf %8, %10 : vector<128x128xf32>
    %12 = math.rsqrt %11 : vector<128x128xf32>
    %13 = arith.mulf %5, %12 : vector<128x128xf32>
    %c0_10 = arith.constant 0 : index
    %c0_11 = arith.constant 0 : index
    %14 = vector.load %arg6[%c0_10, %c0_11] : memref<128x128xf32, #tpu.memory_space<vmem>>, vector<128x128xf32>
    tpu.vector_store %arg6[%c0_10, %c0_11], %13 {strides = array<i32>} : memref<128x128xf32, #tpu.memory_space<vmem>>, vector<128x128xf32>,
    return
  }
  func.func @transform_0(%arg0: i32) -> (i32, i32) {
    %c0_i32 = arith.constant 0 : i32
    %c0_i32_0 = arith.constant 0 : i32
    return %arg0, %c0_i32 : i32, i32
  }
  func.func @transform_1(%arg0: i32) -> (i32, i32) {
    %c0_i32 = arith.constant 0 : i32
    %c0_i32_0 = arith.constant 0 : i32
    %c0_i32_1 = arith.constant 0 : i32
    return %c0_i32, %c0_i32_0 : i32, i32
  }
  func.func @transform_2(%arg0: i32) -> (i32, i32) {
    %c0_i32 = arith.constant 0 : i32
    %c0_i32_0 = arith.constant 0 : i32
    %c0_i32_1 = arith.constant 0 : i32
    return %c0_i32, %c0_i32_0 : i32, i32
  }
  func.func @transform_3(%arg0: i32) -> (i32, i32) {
    %c0_i32 = arith.constant 0 : i32
    %c0_i32_0 = arith.constant 0 : i32
    %c0_i32_1 = arith.constant 0 : i32
    return %c0_i32, %c0_i32_0 : i32, i32
  }
  func.func @transform_4(%arg0: i32) -> (i32, i32) {
    %c0_i32 = arith.constant 0 : i32
    %c0_i32_0 = arith.constant 0 : i32
    %c0_i32_1 = arith.constant 0 : i32
    return %c0_i32, %c0_i32_0 : i32, i32
  }
  func.func @transform_5(%arg0: i32) -> (i32, i32) {
    %c0_i32 = arith.constant 0 : i32
    %c0_i32_0 = arith.constant 0 : i32
    return %arg0, %c0_i32 : i32, i32
  }
}

module attributes {stable_mosaic.version = 11 : i64} {
  func.func @_matmul_fused_kernel(%arg0: i32, %arg1: memref<32x3200xbf16, #tpu.memory_space<vmem>>, %arg2: memref<3200x128xbf16, #tpu.memory_space<vmem>>, %arg3: memref<1x128xf32, #tpu.memory_space<vmem>>, %arg4: memref<128x128xf32, #tpu.memory_space<vmem>>, %arg5: memref<1x128xf32, #tpu.memory_space<vmem>>, %arg6: memref<32x128xf32, #tpu.memory_space<vmem>>) attributes {dimension_semantics = [#tpu.dimension_semantics<parallel>], iteration_bounds = array<i64: 1>, scalar_prefetch = 0 : i64, scratch_operands = 0 : i64, tpu.core_type = #tpu.core_type<tc>, window_params = [{transform_indices = @transform_0, window_bounds = array<i64: 32, 3200>}, {pipeline_mode = #tpu.pipeline_mode<synchronous>, transform_indices = @transform_1, window_bounds = array<i64: 3200, 128>}, {pipeline_mode = #tpu.pipeline_mode<synchronous>, transform_indices = @transform_2, window_bounds = array<i64: 1, 128>}, {pipeline_mode = #tpu.pipeline_mode<synchronous>, transform_indices = @transform_3, window_bounds = array<i64: 128, 128>}, {pipeline_mode = #tpu.pipeline_mode<synchronous>, transform_indices = @transform_4, window_bounds = array<i64: 1, 128>}, {transform_indices = @transform_5, window_bounds = array<i64: 32, 128>}]} {
    %c0 = arith.constant 0 : index
    %c0_0 = arith.constant 0 : index
    %0 = vector.load %arg1[%c0, %c0_0] : memref<32x3200xbf16, #tpu.memory_space<vmem>>, vector<32x3200xbf16>
    %c0_1 = arith.constant 0 : index
    %c0_2 = arith.constant 0 : index
    %1 = vector.load %arg2[%c0_1, %c0_2] : memref<3200x128xbf16, #tpu.memory_space<vmem>>, vector<3200x128xbf16>
    %cst = arith.constant dense<0.000000e+00> : vector<32x128xf32>
    %2 = tpu.matmul %0, %1, %cst {dimension_numbers = #tpu.dot_dimension_numbers<[1], [0], [0], [1], [0, 0, 1, 1], [], []>} : vector<32x3200xbf16>, vector<3200x128xbf16>, vector<32x128xf32> -> vector<32x128xf32>
    %c0_3 = arith.constant 0 : index
    %c0_4 = arith.constant 0 : index
    %3 = vector.load %arg3[%c0_3, %c0_4] : memref<1x128xf32, #tpu.memory_space<vmem>>, vector<1x128xf32>
    %4 = vector.broadcast %3 : vector<1x128xf32> to vector<32x128xf32>
    %5 = arith.addf %2, %4 : vector<32x128xf32>
    %6 = arith.mulf %5, %5 : vector<32x128xf32>
    %c0_5 = arith.constant 0 : index
    %c0_6 = arith.constant 0 : index
    %7 = vector.load %arg4[%c0_5, %c0_6] : memref<128x128xf32, #tpu.memory_space<vmem>>, vector<128x128xf32>
    %cst_7 = arith.constant dense<0.000000e+00> : vector<32x128xf32>
    %8 = tpu.matmul %6, %7, %cst_7 {dimension_numbers = #tpu.dot_dimension_numbers<[1], [0], [0], [1], [0, 0, 1, 1], [], []>} : vector<32x128xf32>, vector<128x128xf32>, vector<32x128xf32> -> vector<32x128xf32>
    %c0_8 = arith.constant 0 : index
    %c0_9 = arith.constant 0 : index
    %9 = vector.load %arg5[%c0_8, %c0_9] : memref<1x128xf32, #tpu.memory_space<vmem>>, vector<1x128xf32>
    %10 = vector.broadcast %9 : vector<1x128xf32> to vector<32x128xf32>
    %11 = arith.addf %8, %10 : vector<32x128xf32>
    %12 = math.rsqrt %11 : vector<32x128xf32>
    %13 = arith.mulf %5, %12 : vector<32x128xf32>
    %c0_10 = arith.constant 0 : index
    %c0_11 = arith.constant 0 : index
    %14 = vector.load %arg6[%c0_10, %c0_11] : memref<32x128xf32, #tpu.memory_space<vmem>>, vector<32x128xf32>
    tpu.vector_store %arg6[%c0_10, %c0_11], %13 {strides = array<i32>} : memref<32x128xf32, #tpu.memory_space<vmem>>, vector<32x128xf32>,
    return
  }
  func.func @transform_0(%arg0: i32) -> (i32, i32) {
    %c0_i32 = arith.constant 0 : i32
    %c0_i32_0 = arith.constant 0 : i32
    return %arg0, %c0_i32 : i32, i32
  }
  func.func @transform_1(%arg0: i32) -> (i32, i32) {
    %c0_i32 = arith.constant 0 : i32
    %c0_i32_0 = arith.constant 0 : i32
    %c0_i32_1 = arith.constant 0 : i32
    return %c0_i32, %c0_i32_0 : i32, i32
  }
  func.func @transform_2(%arg0: i32) -> (i32, i32) {
    %c0_i32 = arith.constant 0 : i32
    %c0_i32_0 = arith.constant 0 : i32
    %c0_i32_1 = arith.constant 0 : i32
    return %c0_i32, %c0_i32_0 : i32, i32
  }
  func.func @transform_3(%arg0: i32) -> (i32, i32) {
    %c0_i32 = arith.constant 0 : i32
    %c0_i32_0 = arith.constant 0 : i32
    %c0_i32_1 = arith.constant 0 : i32
    return %c0_i32, %c0_i32_0 : i32, i32
  }
  func.func @transform_4(%arg0: i32) -> (i32, i32) {
    %c0_i32 = arith.constant 0 : i32
    %c0_i32_0 = arith.constant 0 : i32
    %c0_i32_1 = arith.constant 0 : i32
    return %c0_i32, %c0_i32_0 : i32, i32
  }
  func.func @transform_5(%arg0: i32) -> (i32, i32) {
    %c0_i32 = arith.constant 0 : i32
    %c0_i32_0 = arith.constant 0 : i32
    return %arg0, %c0_i32 : i32, i32
  }
}

module attributes {stable_mosaic.version = 11 : i64} {
  func.func @_matmul_fused_kernel(%arg0: i32, %arg1: memref<16x3200xbf16, #tpu.memory_space<vmem>>, %arg2: memref<3200x128xbf16, #tpu.memory_space<vmem>>, %arg3: memref<1x128xf32, #tpu.memory_space<vmem>>, %arg4: memref<16x128xf32, #tpu.memory_space<vmem>>) attributes {dimension_semantics = [#tpu.dimension_semantics<parallel>], iteration_bounds = array<i64: 1>, scalar_prefetch = 0 : i64, scratch_operands = 0 : i64, tpu.core_type = #tpu.core_type<tc>, window_params = [{transform_indices = @transform_0, window_bounds = array<i64: 16, 3200>}, {pipeline_mode = #tpu.pipeline_mode<synchronous>, transform_indices = @transform_1, window_bounds = array<i64: 3200, 128>}, {pipeline_mode = #tpu.pipeline_mode<synchronous>, transform_indices = @transform_2, window_bounds = array<i64: 1, 128>}, {transform_indices = @transform_3, window_bounds = array<i64: 16, 128>}]} {
    %c0 = arith.constant 0 : index
    %c0_0 = arith.constant 0 : index
    %0 = vector.load %arg1[%c0, %c0_0] : memref<16x3200xbf16, #tpu.memory_space<vmem>>, vector<16x3200xbf16>
    %c0_1 = arith.constant 0 : index
    %c0_2 = arith.constant 0 : index
    %1 = vector.load %arg2[%c0_1, %c0_2] : memref<3200x128xbf16, #tpu.memory_space<vmem>>, vector<3200x128xbf16>
    %cst = arith.constant dense<0.000000e+00> : vector<16x128xf32>
    %2 = tpu.matmul %0, %1, %cst {dimension_numbers = #tpu.dot_dimension_numbers<[1], [0], [0], [1], [0, 0, 1, 1], [], []>} : vector<16x3200xbf16>, vector<3200x128xbf16>, vector<16x128xf32> -> vector<16x128xf32>
    %c0_3 = arith.constant 0 : index
    %c0_4 = arith.constant 0 : index
    %3 = vector.load %arg3[%c0_3, %c0_4] : memref<1x128xf32, #tpu.memory_space<vmem>>, vector<1x128xf32>
    %4 = vector.broadcast %3 : vector<1x128xf32> to vector<16x128xf32>
    %5 = arith.addf %2, %4 : vector<16x128xf32>
    %cst_5 = arith.constant 0x4B400000 : f32
    %6 = vector.broadcast %cst_5 : f32 to vector<16x128xf32>
    %7 = arith.addf %5, %6 : vector<16x128xf32>
    %cst_6 = arith.constant 0x4B400000 : f32
    %8 = vector.broadcast %cst_6 : f32 to vector<16x128xf32>
    %9 = arith.subf %7, %8 : vector<16x128xf32>
    %c0_7 = arith.constant 0 : index
    %c0_8 = arith.constant 0 : index
    %10 = vector.load %arg4[%c0_7, %c0_8] : memref<16x128xf32, #tpu.memory_space<vmem>>, vector<16x128xf32>
    tpu.vector_store %arg4[%c0_7, %c0_8], %9 {strides = array<i32>} : memref<16x128xf32, #tpu.memory_space<vmem>>, vector<16x128xf32>,
    return
  }
  func.func @transform_0(%arg0: i32) -> (i32, i32) {
    %c0_i32 = arith.constant 0 : i32
    %c0_i32_0 = arith.constant 0 : i32
    return %arg0, %c0_i32 : i32, i32
  }
  func.func @transform_1(%arg0: i32) -> (i32, i32) {
    %c0_i32 = arith.constant 0 : i32
    %c0_i32_0 = arith.constant 0 : i32
    %c0_i32_1 = arith.constant 0 : i32
    return %c0_i32, %c0_i32_0 : i32, i32
  }
  func.func @transform_2(%arg0: i32) -> (i32, i32) {
    %c0_i32 = arith.constant 0 : i32
    %c0_i32_0 = arith.constant 0 : i32
    %c0_i32_1 = arith.constant 0 : i32
    return %c0_i32, %c0_i32_0 : i32, i32
  }
  func.func @transform_3(%arg0: i32) -> (i32, i32) {
    %c0_i32 = arith.constant 0 : i32
    %c0_i32_0 = arith.constant 0 : i32
    return %arg0, %c0_i32 : i32, i32
  }
}

module attributes {stable_mosaic.version = 11 : i64} {
  func.func @_matmul_fused_kernel(%arg0: i32, %arg1: memref<16x512xbf16, #tpu.memory_space<vmem>>, %arg2: memref<512x128xbf16, #tpu.memory_space<vmem>>, %arg3: memref<1x128xf32, #tpu.memory_space<vmem>>, %arg4: memref<128x128xf32, #tpu.memory_space<vmem>>, %arg5: memref<1x128xf32, #tpu.memory_space<vmem>>, %arg6: memref<16x128xf32, #tpu.memory_space<vmem>>) attributes {dimension_semantics = [#tpu.dimension_semantics<parallel>], iteration_bounds = array<i64: 1>, scalar_prefetch = 0 : i64, scratch_operands = 0 : i64, tpu.core_type = #tpu.core_type<tc>, window_params = [{transform_indices = @transform_0, window_bounds = array<i64: 16, 512>}, {pipeline_mode = #tpu.pipeline_mode<synchronous>, transform_indices = @transform_1, window_bounds = array<i64: 512, 128>}, {pipeline_mode = #tpu.pipeline_mode<synchronous>, transform_indices = @transform_2, window_bounds = array<i64: 1, 128>}, {pipeline_mode = #tpu.pipeline_mode<synchronous>, transform_indices = @transform_3, window_bounds = array<i64: 128, 128>}, {pipeline_mode = #tpu.pipeline_mode<synchronous>, transform_indices = @transform_4, window_bounds = array<i64: 1, 128>}, {transform_indices = @transform_5, window_bounds = array<i64: 16, 128>}]} {
    %c0 = arith.constant 0 : index
    %c0_0 = arith.constant 0 : index
    %0 = vector.load %arg1[%c0, %c0_0] : memref<16x512xbf16, #tpu.memory_space<vmem>>, vector<16x512xbf16>
    %c0_1 = arith.constant 0 : index
    %c0_2 = arith.constant 0 : index
    %1 = vector.load %arg2[%c0_1, %c0_2] : memref<512x128xbf16, #tpu.memory_space<vmem>>, vector<512x128xbf16>
    %cst = arith.constant dense<0.000000e+00> : vector<16x128xf32>
    %2 = tpu.matmul %0, %1, %cst {dimension_numbers = #tpu.dot_dimension_numbers<[1], [0], [0], [1], [0, 0, 1, 1], [], []>} : vector<16x512xbf16>, vector<512x128xbf16>, vector<16x128xf32> -> vector<16x128xf32>
    %c0_3 = arith.constant 0 : index
    %c0_4 = arith.constant 0 : index
    %3 = vector.load %arg3[%c0_3, %c0_4] : memref<1x128xf32, #tpu.memory_space<vmem>>, vector<1x128xf32>
    %4 = vector.broadcast %3 : vector<1x128xf32> to vector<16x128xf32>
    %5 = arith.addf %2, %4 : vector<16x128xf32>
    %6 = arith.mulf %5, %5 : vector<16x128xf32>
    %c0_5 = arith.constant 0 : index
    %c0_6 = arith.constant 0 : index
    %7 = vector.load %arg4[%c0_5, %c0_6] : memref<128x128xf32, #tpu.memory_space<vmem>>, vector<128x128xf32>
    %cst_7 = arith.constant dense<0.000000e+00> : vector<16x128xf32>
    %8 = tpu.matmul %6, %7, %cst_7 {dimension_numbers = #tpu.dot_dimension_numbers<[1], [0], [0], [1], [0, 0, 1, 1], [], []>} : vector<16x128xf32>, vector<128x128xf32>, vector<16x128xf32> -> vector<16x128xf32>
    %c0_8 = arith.constant 0 : index
    %c0_9 = arith.constant 0 : index
    %9 = vector.load %arg5[%c0_8, %c0_9] : memref<1x128xf32, #tpu.memory_space<vmem>>, vector<1x128xf32>
    %10 = vector.broadcast %9 : vector<1x128xf32> to vector<16x128xf32>
    %11 = arith.addf %8, %10 : vector<16x128xf32>
    %12 = math.sqrt %11 : vector<16x128xf32>
    %13 = arith.mulf %5, %12 : vector<16x128xf32>
    %c0_10 = arith.constant 0 : index
    %c0_11 = arith.constant 0 : index
    %14 = vector.load %arg6[%c0_10, %c0_11] : memref<16x128xf32, #tpu.memory_space<vmem>>, vector<16x128xf32>
    tpu.vector_store %arg6[%c0_10, %c0_11], %13 {strides = array<i32>} : memref<16x128xf32, #tpu.memory_space<vmem>>, vector<16x128xf32>,
    return
  }
  func.func @transform_0(%arg0: i32) -> (i32, i32) {
    %c0_i32 = arith.constant 0 : i32
    %c0_i32_0 = arith.constant 0 : i32
    return %arg0, %c0_i32 : i32, i32
  }
  func.func @transform_1(%arg0: i32) -> (i32, i32) {
    %c0_i32 = arith.constant 0 : i32
    %c0_i32_0 = arith.constant 0 : i32
    %c0_i32_1 = arith.constant 0 : i32
    return %c0_i32, %c0_i32_0 : i32, i32
  }
  func.func @transform_2(%arg0: i32) -> (i32, i32) {
    %c0_i32 = arith.constant 0 : i32
    %c0_i32_0 = arith.constant 0 : i32
    %c0_i32_1 = arith.constant 0 : i32
    return %c0_i32, %c0_i32_0 : i32, i32
  }
  func.func @transform_3(%arg0: i32) -> (i32, i32) {
    %c0_i32 = arith.constant 0 : i32
    %c0_i32_0 = arith.constant 0 : i32
    %c0_i32_1 = arith.constant 0 : i32
    return %c0_i32, %c0_i32_0 : i32, i32
  }
  func.func @transform_4(%arg0: i32) -> (i32, i32) {
    %c0_i32 = arith.constant 0 : i32
    %c0_i32_0 = arith.constant 0 : i32
    %c0_i32_1 = arith.constant 0 : i32
    return %c0_i32, %c0_i32_0 : i32, i32
  }
  func.func @transform_5(%arg0: i32) -> (i32, i32) {
    %c0_i32 = arith.constant 0 : i32
    %c0_i32_0 = arith.constant 0 : i32
    return %arg0, %c0_i32 : i32, i32
  }
}

module attributes {stable_mosaic.version = 11 : i64} {
  func.func @_matmul_fused_kernel(%arg0: i32, %arg1: memref<16x1152xbf16, #tpu.memory_space<vmem>>, %arg2: memref<1152x128xbf16, #tpu.memory_space<vmem>>, %arg3: memref<1x128xf32, #tpu.memory_space<vmem>>, %arg4: memref<128x128xf32, #tpu.memory_space<vmem>>, %arg5: memref<1x128xf32, #tpu.memory_space<vmem>>, %arg6: memref<16x128xf32, #tpu.memory_space<vmem>>) attributes {dimension_semantics = [#tpu.dimension_semantics<parallel>], iteration_bounds = array<i64: 1>, scalar_prefetch = 0 : i64, scratch_operands = 0 : i64, tpu.core_type = #tpu.core_type<tc>, window_params = [{transform_indices = @transform_0, window_bounds = array<i64: 16, 1152>}, {pipeline_mode = #tpu.pipeline_mode<synchronous>, transform_indices = @transform_1, window_bounds = array<i64: 1152, 128>}, {pipeline_mode = #tpu.pipeline_mode<synchronous>, transform_indices = @transform_2, window_bounds = array<i64: 1, 128>}, {pipeline_mode = #tpu.pipeline_mode<synchronous>, transform_indices = @transform_3, window_bounds = array<i64: 128, 128>}, {pipeline_mode = #tpu.pipeline_mode<synchronous>, transform_indices = @transform_4, window_bounds = array<i64: 1, 128>}, {transform_indices = @transform_5, window_bounds = array<i64: 16, 128>}]} {
    %c0 = arith.constant 0 : index
    %c0_0 = arith.constant 0 : index
    %0 = vector.load %arg1[%c0, %c0_0] : memref<16x1152xbf16, #tpu.memory_space<vmem>>, vector<16x1152xbf16>
    %c0_1 = arith.constant 0 : index
    %c0_2 = arith.constant 0 : index
    %1 = vector.load %arg2[%c0_1, %c0_2] : memref<1152x128xbf16, #tpu.memory_space<vmem>>, vector<1152x128xbf16>
    %cst = arith.constant dense<0.000000e+00> : vector<16x128xf32>
    %2 = tpu.matmul %0, %1, %cst {dimension_numbers = #tpu.dot_dimension_numbers<[1], [0], [0], [1], [0, 0, 1, 1], [], []>} : vector<16x1152xbf16>, vector<1152x128xbf16>, vector<16x128xf32> -> vector<16x128xf32>
    %c0_3 = arith.constant 0 : index
    %c0_4 = arith.constant 0 : index
    %3 = vector.load %arg3[%c0_3, %c0_4] : memref<1x128xf32, #tpu.memory_space<vmem>>, vector<1x128xf32>
    %4 = vector.broadcast %3 : vector<1x128xf32> to vector<16x128xf32>
    %5 = arith.addf %2, %4 : vector<16x128xf32>
    %6 = arith.mulf %5, %5 : vector<16x128xf32>
    %c0_5 = arith.constant 0 : index
    %c0_6 = arith.constant 0 : index
    %7 = vector.load %arg4[%c0_5, %c0_6] : memref<128x128xf32, #tpu.memory_space<vmem>>, vector<128x128xf32>
    %cst_7 = arith.constant dense<0.000000e+00> : vector<16x128xf32>
    %8 = tpu.matmul %6, %7, %cst_7 {dimension_numbers = #tpu.dot_dimension_numbers<[1], [0], [0], [1], [0, 0, 1, 1], [], []>} : vector<16x128xf32>, vector<128x128xf32>, vector<16x128xf32> -> vector<16x128xf32>
    %c0_8 = arith.constant 0 : index
    %c0_9 = arith.constant 0 : index
    %9 = vector.load %arg5[%c0_8, %c0_9] : memref<1x128xf32, #tpu.memory_space<vmem>>, vector<1x128xf32>
    %10 = vector.broadcast %9 : vector<1x128xf32> to vector<16x128xf32>
    %11 = arith.addf %8, %10 : vector<16x128xf32>
    %12 = math.sqrt %11 : vector<16x128xf32>
    %13 = arith.mulf %5, %12 : vector<16x128xf32>
    %c0_10 = arith.constant 0 : index
    %c0_11 = arith.constant 0 : index
    %14 = vector.load %arg6[%c0_10, %c0_11] : memref<16x128xf32, #tpu.memory_space<vmem>>, vector<16x128xf32>
    tpu.vector_store %arg6[%c0_10, %c0_11], %13 {strides = array<i32>} : memref<16x128xf32, #tpu.memory_space<vmem>>, vector<16x128xf32>,
    return
  }
  func.func @transform_0(%arg0: i32) -> (i32, i32) {
    %c0_i32 = arith.constant 0 : i32
    %c0_i32_0 = arith.constant 0 : i32
    return %arg0, %c0_i32 : i32, i32
  }
  func.func @transform_1(%arg0: i32) -> (i32, i32) {
    %c0_i32 = arith.constant 0 : i32
    %c0_i32_0 = arith.constant 0 : i32
    %c0_i32_1 = arith.constant 0 : i32
    return %c0_i32, %c0_i32_0 : i32, i32
  }
  func.func @transform_2(%arg0: i32) -> (i32, i32) {
    %c0_i32 = arith.constant 0 : i32
    %c0_i32_0 = arith.constant 0 : i32
    %c0_i32_1 = arith.constant 0 : i32
    return %c0_i32, %c0_i32_0 : i32, i32
  }
  func.func @transform_3(%arg0: i32) -> (i32, i32) {
    %c0_i32 = arith.constant 0 : i32
    %c0_i32_0 = arith.constant 0 : i32
    %c0_i32_1 = arith.constant 0 : i32
    return %c0_i32, %c0_i32_0 : i32, i32
  }
  func.func @transform_4(%arg0: i32) -> (i32, i32) {
    %c0_i32 = arith.constant 0 : i32
    %c0_i32_0 = arith.constant 0 : i32
    %c0_i32_1 = arith.constant 0 : i32
    return %c0_i32, %c0_i32_0 : i32, i32
  }
  func.func @transform_5(%arg0: i32) -> (i32, i32) {
    %c0_i32 = arith.constant 0 : i32
    %c0_i32_0 = arith.constant 0 : i32
    return %arg0, %c0_i32 : i32, i32
  }
}

module attributes {stable_mosaic.version = 11 : i64} {
  func.func @_matmul_fused_kernel(%arg0: i32, %arg1: memref<16x768xbf16, #tpu.memory_space<vmem>>, %arg2: memref<768x128xbf16, #tpu.memory_space<vmem>>, %arg3: memref<1x128xf32, #tpu.memory_space<vmem>>, %arg4: memref<128x128xf32, #tpu.memory_space<vmem>>, %arg5: memref<1x128xf32, #tpu.memory_space<vmem>>, %arg6: memref<16x128xf32, #tpu.memory_space<vmem>>) attributes {dimension_semantics = [#tpu.dimension_semantics<parallel>], iteration_bounds = array<i64: 1>, scalar_prefetch = 0 : i64, scratch_operands = 0 : i64, tpu.core_type = #tpu.core_type<tc>, window_params = [{transform_indices = @transform_0, window_bounds = array<i64: 16, 768>}, {pipeline_mode = #tpu.pipeline_mode<synchronous>, transform_indices = @transform_1, window_bounds = array<i64: 768, 128>}, {pipeline_mode = #tpu.pipeline_mode<synchronous>, transform_indices = @transform_2, window_bounds = array<i64: 1, 128>}, {pipeline_mode = #tpu.pipeline_mode<synchronous>, transform_indices = @transform_3, window_bounds = array<i64: 128, 128>}, {pipeline_mode = #tpu.pipeline_mode<synchronous>, transform_indices = @transform_4, window_bounds = array<i64: 1, 128>}, {transform_indices = @transform_5, window_bounds = array<i64: 16, 128>}]} {
    %c0 = arith.constant 0 : index
    %c0_0 = arith.constant 0 : index
    %0 = vector.load %arg1[%c0, %c0_0] : memref<16x768xbf16, #tpu.memory_space<vmem>>, vector<16x768xbf16>
    %c0_1 = arith.constant 0 : index
    %c0_2 = arith.constant 0 : index
    %1 = vector.load %arg2[%c0_1, %c0_2] : memref<768x128xbf16, #tpu.memory_space<vmem>>, vector<768x128xbf16>
    %cst = arith.constant dense<0.000000e+00> : vector<16x128xf32>
    %2 = tpu.matmul %0, %1, %cst {dimension_numbers = #tpu.dot_dimension_numbers<[1], [0], [0], [1], [0, 0, 1, 1], [], []>} : vector<16x768xbf16>, vector<768x128xbf16>, vector<16x128xf32> -> vector<16x128xf32>
    %c0_3 = arith.constant 0 : index
    %c0_4 = arith.constant 0 : index
    %3 = vector.load %arg3[%c0_3, %c0_4] : memref<1x128xf32, #tpu.memory_space<vmem>>, vector<1x128xf32>
    %4 = vector.broadcast %3 : vector<1x128xf32> to vector<16x128xf32>
    %5 = arith.addf %2, %4 : vector<16x128xf32>
    %6 = arith.mulf %5, %5 : vector<16x128xf32>
    %c0_5 = arith.constant 0 : index
    %c0_6 = arith.constant 0 : index
    %7 = vector.load %arg4[%c0_5, %c0_6] : memref<128x128xf32, #tpu.memory_space<vmem>>, vector<128x128xf32>
    %cst_7 = arith.constant dense<0.000000e+00> : vector<16x128xf32>
    %8 = tpu.matmul %6, %7, %cst_7 {dimension_numbers = #tpu.dot_dimension_numbers<[1], [0], [0], [1], [0, 0, 1, 1], [], []>} : vector<16x128xf32>, vector<128x128xf32>, vector<16x128xf32> -> vector<16x128xf32>
    %c0_8 = arith.constant 0 : index
    %c0_9 = arith.constant 0 : index
    %9 = vector.load %arg5[%c0_8, %c0_9] : memref<1x128xf32, #tpu.memory_space<vmem>>, vector<1x128xf32>
    %10 = vector.broadcast %9 : vector<1x128xf32> to vector<16x128xf32>
    %11 = arith.addf %8, %10 : vector<16x128xf32>
    %12 = math.sqrt %11 : vector<16x128xf32>
    %13 = arith.mulf %5, %12 : vector<16x128xf32>
    %c0_10 = arith.constant 0 : index
    %c0_11 = arith.constant 0 : index
    %14 = vector.load %arg6[%c0_10, %c0_11] : memref<16x128xf32, #tpu.memory_space<vmem>>, vector<16x128xf32>
    tpu.vector_store %arg6[%c0_10, %c0_11], %13 {strides = array<i32>} : memref<16x128xf32, #tpu.memory_space<vmem>>, vector<16x128xf32>,
    return
  }
  func.func @transform_0(%arg0: i32) -> (i32, i32) {
    %c0_i32 = arith.constant 0 : i32
    %c0_i32_0 = arith.constant 0 : i32
    return %arg0, %c0_i32 : i32, i32
  }
  func.func @transform_1(%arg0: i32) -> (i32, i32) {
    %c0_i32 = arith.constant 0 : i32
    %c0_i32_0 = arith.constant 0 : i32
    %c0_i32_1 = arith.constant 0 : i32
    return %c0_i32, %c0_i32_0 : i32, i32
  }
  func.func @transform_2(%arg0: i32) -> (i32, i32) {
    %c0_i32 = arith.constant 0 : i32
    %c0_i32_0 = arith.constant 0 : i32
    %c0_i32_1 = arith.constant 0 : i32
    return %c0_i32, %c0_i32_0 : i32, i32
  }
  func.func @transform_3(%arg0: i32) -> (i32, i32) {
    %c0_i32 = arith.constant 0 : i32
    %c0_i32_0 = arith.constant 0 : i32
    %c0_i32_1 = arith.constant 0 : i32
    return %c0_i32, %c0_i32_0 : i32, i32
  }
  func.func @transform_4(%arg0: i32) -> (i32, i32) {
    %c0_i32 = arith.constant 0 : i32
    %c0_i32_0 = arith.constant 0 : i32
    %c0_i32_1 = arith.constant 0 : i32
    return %c0_i32, %c0_i32_0 : i32, i32
  }
  func.func @transform_5(%arg0: i32) -> (i32, i32) {
    %c0_i32 = arith.constant 0 : i32
    %c0_i32_0 = arith.constant 0 : i32
    return %arg0, %c0_i32 : i32, i32
  }
}

module attributes {stable_mosaic.version = 11 : i64} {
  func.func @_matmul_fused_kernel(%arg0: i32, %arg1: memref<32x512xbf16, #tpu.memory_space<vmem>>, %arg2: memref<512x128xbf16, #tpu.memory_space<vmem>>, %arg3: memref<1x128xf32, #tpu.memory_space<vmem>>, %arg4: memref<128x128xf32, #tpu.memory_space<vmem>>, %arg5: memref<1x128xf32, #tpu.memory_space<vmem>>, %arg6: memref<32x128xf32, #tpu.memory_space<vmem>>) attributes {dimension_semantics = [#tpu.dimension_semantics<parallel>], iteration_bounds = array<i64: 1>, scalar_prefetch = 0 : i64, scratch_operands = 0 : i64, tpu.core_type = #tpu.core_type<tc>, window_params = [{transform_indices = @transform_0, window_bounds = array<i64: 32, 512>}, {pipeline_mode = #tpu.pipeline_mode<synchronous>, transform_indices = @transform_1, window_bounds = array<i64: 512, 128>}, {pipeline_mode = #tpu.pipeline_mode<synchronous>, transform_indices = @transform_2, window_bounds = array<i64: 1, 128>}, {pipeline_mode = #tpu.pipeline_mode<synchronous>, transform_indices = @transform_3, window_bounds = array<i64: 128, 128>}, {pipeline_mode = #tpu.pipeline_mode<synchronous>, transform_indices = @transform_4, window_bounds = array<i64: 1, 128>}, {transform_indices = @transform_5, window_bounds = array<i64: 32, 128>}]} {
    %c0 = arith.constant 0 : index
    %c0_0 = arith.constant 0 : index
    %0 = vector.load %arg1[%c0, %c0_0] : memref<32x512xbf16, #tpu.memory_space<vmem>>, vector<32x512xbf16>
    %c0_1 = arith.constant 0 : index
    %c0_2 = arith.constant 0 : index
    %1 = vector.load %arg2[%c0_1, %c0_2] : memref<512x128xbf16, #tpu.memory_space<vmem>>, vector<512x128xbf16>
    %cst = arith.constant dense<0.000000e+00> : vector<32x128xf32>
    %2 = tpu.matmul %0, %1, %cst {dimension_numbers = #tpu.dot_dimension_numbers<[1], [0], [0], [1], [0, 0, 1, 1], [], []>} : vector<32x512xbf16>, vector<512x128xbf16>, vector<32x128xf32> -> vector<32x128xf32>
    %c0_3 = arith.constant 0 : index
    %c0_4 = arith.constant 0 : index
    %3 = vector.load %arg3[%c0_3, %c0_4] : memref<1x128xf32, #tpu.memory_space<vmem>>, vector<1x128xf32>
    %4 = vector.broadcast %3 : vector<1x128xf32> to vector<32x128xf32>
    %5 = arith.addf %2, %4 : vector<32x128xf32>
    %6 = arith.mulf %5, %5 : vector<32x128xf32>
    %c0_5 = arith.constant 0 : index
    %c0_6 = arith.constant 0 : index
    %7 = vector.load %arg4[%c0_5, %c0_6] : memref<128x128xf32, #tpu.memory_space<vmem>>, vector<128x128xf32>
    %cst_7 = arith.constant dense<0.000000e+00> : vector<32x128xf32>
    %8 = tpu.matmul %6, %7, %cst_7 {dimension_numbers = #tpu.dot_dimension_numbers<[1], [0], [0], [1], [0, 0, 1, 1], [], []>} : vector<32x128xf32>, vector<128x128xf32>, vector<32x128xf32> -> vector<32x128xf32>
    %c0_8 = arith.constant 0 : index
    %c0_9 = arith.constant 0 : index
    %9 = vector.load %arg5[%c0_8, %c0_9] : memref<1x128xf32, #tpu.memory_space<vmem>>, vector<1x128xf32>
    %10 = vector.broadcast %9 : vector<1x128xf32> to vector<32x128xf32>
    %11 = arith.addf %8, %10 : vector<32x128xf32>
    %12 = math.sqrt %11 : vector<32x128xf32>
    %13 = arith.mulf %5, %12 : vector<32x128xf32>
    %c0_10 = arith.constant 0 : index
    %c0_11 = arith.constant 0 : index
    %14 = vector.load %arg6[%c0_10, %c0_11] : memref<32x128xf32, #tpu.memory_space<vmem>>, vector<32x128xf32>
    tpu.vector_store %arg6[%c0_10, %c0_11], %13 {strides = array<i32>} : memref<32x128xf32, #tpu.memory_space<vmem>>, vector<32x128xf32>,
    return
  }
  func.func @transform_0(%arg0: i32) -> (i32, i32) {
    %c0_i32 = arith.constant 0 : i32
    %c0_i32_0 = arith.constant 0 : i32
    return %arg0, %c0_i32 : i32, i32
  }
  func.func @transform_1(%arg0: i32) -> (i32, i32) {
    %c0_i32 = arith.constant 0 : i32
    %c0_i32_0 = arith.constant 0 : i32
    %c0_i32_1 = arith.constant 0 : i32
    return %c0_i32, %c0_i32_0 : i32, i32
  }
  func.func @transform_2(%arg0: i32) -> (i32, i32) {
    %c0_i32 = arith.constant 0 : i32
    %c0_i32_0 = arith.constant 0 : i32
    %c0_i32_1 = arith.constant 0 : i32
    return %c0_i32, %c0_i32_0 : i32, i32
  }
  func.func @transform_3(%arg0: i32) -> (i32, i32) {
    %c0_i32 = arith.constant 0 : i32
    %c0_i32_0 = arith.constant 0 : i32
    %c0_i32_1 = arith.constant 0 : i32
    return %c0_i32, %c0_i32_0 : i32, i32
  }
  func.func @transform_4(%arg0: i32) -> (i32, i32) {
    %c0_i32 = arith.constant 0 : i32
    %c0_i32_0 = arith.constant 0 : i32
    %c0_i32_1 = arith.constant 0 : i32
    return %c0_i32, %c0_i32_0 : i32, i32
  }
  func.func @transform_5(%arg0: i32) -> (i32, i32) {
    %c0_i32 = arith.constant 0 : i32
    %c0_i32_0 = arith.constant 0 : i32
    return %arg0, %c0_i32 : i32, i32
  }
}

module attributes {stable_mosaic.version = 11 : i64} {
  func.func @_matmul_fused_kernel(%arg0: i32, %arg1: memref<32x1152xbf16, #tpu.memory_space<vmem>>, %arg2: memref<1152x128xbf16, #tpu.memory_space<vmem>>, %arg3: memref<1x128xf32, #tpu.memory_space<vmem>>, %arg4: memref<128x128xf32, #tpu.memory_space<vmem>>, %arg5: memref<1x128xf32, #tpu.memory_space<vmem>>, %arg6: memref<32x128xf32, #tpu.memory_space<vmem>>) attributes {dimension_semantics = [#tpu.dimension_semantics<parallel>], iteration_bounds = array<i64: 1>, scalar_prefetch = 0 : i64, scratch_operands = 0 : i64, tpu.core_type = #tpu.core_type<tc>, window_params = [{transform_indices = @transform_0, window_bounds = array<i64: 32, 1152>}, {pipeline_mode = #tpu.pipeline_mode<synchronous>, transform_indices = @transform_1, window_bounds = array<i64: 1152, 128>}, {pipeline_mode = #tpu.pipeline_mode<synchronous>, transform_indices = @transform_2, window_bounds = array<i64: 1, 128>}, {pipeline_mode = #tpu.pipeline_mode<synchronous>, transform_indices = @transform_3, window_bounds = array<i64: 128, 128>}, {pipeline_mode = #tpu.pipeline_mode<synchronous>, transform_indices = @transform_4, window_bounds = array<i64: 1, 128>}, {transform_indices = @transform_5, window_bounds = array<i64: 32, 128>}]} {
    %c0 = arith.constant 0 : index
    %c0_0 = arith.constant 0 : index
    %0 = vector.load %arg1[%c0, %c0_0] : memref<32x1152xbf16, #tpu.memory_space<vmem>>, vector<32x1152xbf16>
    %c0_1 = arith.constant 0 : index
    %c0_2 = arith.constant 0 : index
    %1 = vector.load %arg2[%c0_1, %c0_2] : memref<1152x128xbf16, #tpu.memory_space<vmem>>, vector<1152x128xbf16>
    %cst = arith.constant dense<0.000000e+00> : vector<32x128xf32>
    %2 = tpu.matmul %0, %1, %cst {dimension_numbers = #tpu.dot_dimension_numbers<[1], [0], [0], [1], [0, 0, 1, 1], [], []>} : vector<32x1152xbf16>, vector<1152x128xbf16>, vector<32x128xf32> -> vector<32x128xf32>
    %c0_3 = arith.constant 0 : index
    %c0_4 = arith.constant 0 : index
    %3 = vector.load %arg3[%c0_3, %c0_4] : memref<1x128xf32, #tpu.memory_space<vmem>>, vector<1x128xf32>
    %4 = vector.broadcast %3 : vector<1x128xf32> to vector<32x128xf32>
    %5 = arith.addf %2, %4 : vector<32x128xf32>
    %6 = arith.mulf %5, %5 : vector<32x128xf32>
    %c0_5 = arith.constant 0 : index
    %c0_6 = arith.constant 0 : index
    %7 = vector.load %arg4[%c0_5, %c0_6] : memref<128x128xf32, #tpu.memory_space<vmem>>, vector<128x128xf32>
    %cst_7 = arith.constant dense<0.000000e+00> : vector<32x128xf32>
    %8 = tpu.matmul %6, %7, %cst_7 {dimension_numbers = #tpu.dot_dimension_numbers<[1], [0], [0], [1], [0, 0, 1, 1], [], []>} : vector<32x128xf32>, vector<128x128xf32>, vector<32x128xf32> -> vector<32x128xf32>
    %c0_8 = arith.constant 0 : index
    %c0_9 = arith.constant 0 : index
    %9 = vector.load %arg5[%c0_8, %c0_9] : memref<1x128xf32, #tpu.memory_space<vmem>>, vector<1x128xf32>
    %10 = vector.broadcast %9 : vector<1x128xf32> to vector<32x128xf32>
    %11 = arith.addf %8, %10 : vector<32x128xf32>
    %12 = math.sqrt %11 : vector<32x128xf32>
    %13 = arith.mulf %5, %12 : vector<32x128xf32>
    %c0_10 = arith.constant 0 : index
    %c0_11 = arith.constant 0 : index
    %14 = vector.load %arg6[%c0_10, %c0_11] : memref<32x128xf32, #tpu.memory_space<vmem>>, vector<32x128xf32>
    tpu.vector_store %arg6[%c0_10, %c0_11], %13 {strides = array<i32>} : memref<32x128xf32, #tpu.memory_space<vmem>>, vector<32x128xf32>,
    return
  }
  func.func @transform_0(%arg0: i32) -> (i32, i32) {
    %c0_i32 = arith.constant 0 : i32
    %c0_i32_0 = arith.constant 0 : i32
    return %arg0, %c0_i32 : i32, i32
  }
  func.func @transform_1(%arg0: i32) -> (i32, i32) {
    %c0_i32 = arith.constant 0 : i32
    %c0_i32_0 = arith.constant 0 : i32
    %c0_i32_1 = arith.constant 0 : i32
    return %c0_i32, %c0_i32_0 : i32, i32
  }
  func.func @transform_2(%arg0: i32) -> (i32, i32) {
    %c0_i32 = arith.constant 0 : i32
    %c0_i32_0 = arith.constant 0 : i32
    %c0_i32_1 = arith.constant 0 : i32
    return %c0_i32, %c0_i32_0 : i32, i32
  }
  func.func @transform_3(%arg0: i32) -> (i32, i32) {
    %c0_i32 = arith.constant 0 : i32
    %c0_i32_0 = arith.constant 0 : i32
    %c0_i32_1 = arith.constant 0 : i32
    return %c0_i32, %c0_i32_0 : i32, i32
  }
  func.func @transform_4(%arg0: i32) -> (i32, i32) {
    %c0_i32 = arith.constant 0 : i32
    %c0_i32_0 = arith.constant 0 : i32
    %c0_i32_1 = arith.constant 0 : i32
    return %c0_i32, %c0_i32_0 : i32, i32
  }
  func.func @transform_5(%arg0: i32) -> (i32, i32) {
    %c0_i32 = arith.constant 0 : i32
    %c0_i32_0 = arith.constant 0 : i32
    return %arg0, %c0_i32 : i32, i32
  }
}

module attributes {stable_mosaic.version = 11 : i64} {
  func.func @_matmul_fused_kernel(%arg0: i32, %arg1: memref<32x768xbf16, #tpu.memory_space<vmem>>, %arg2: memref<768x128xbf16, #tpu.memory_space<vmem>>, %arg3: memref<1x128xf32, #tpu.memory_space<vmem>>, %arg4: memref<128x128xf32, #tpu.memory_space<vmem>>, %arg5: memref<1x128xf32, #tpu.memory_space<vmem>>, %arg6: memref<32x128xf32, #tpu.memory_space<vmem>>) attributes {dimension_semantics = [#tpu.dimension_semantics<parallel>], iteration_bounds = array<i64: 1>, scalar_prefetch = 0 : i64, scratch_operands = 0 : i64, tpu.core_type = #tpu.core_type<tc>, window_params = [{transform_indices = @transform_0, window_bounds = array<i64: 32, 768>}, {pipeline_mode = #tpu.pipeline_mode<synchronous>, transform_indices = @transform_1, window_bounds = array<i64: 768, 128>}, {pipeline_mode = #tpu.pipeline_mode<synchronous>, transform_indices = @transform_2, window_bounds = array<i64: 1, 128>}, {pipeline_mode = #tpu.pipeline_mode<synchronous>, transform_indices = @transform_3, window_bounds = array<i64: 128, 128>}, {pipeline_mode = #tpu.pipeline_mode<synchronous>, transform_indices = @transform_4, window_bounds = array<i64: 1, 128>}, {transform_indices = @transform_5, window_bounds = array<i64: 32, 128>}]} {
    %c0 = arith.constant 0 : index
    %c0_0 = arith.constant 0 : index
    %0 = vector.load %arg1[%c0, %c0_0] : memref<32x768xbf16, #tpu.memory_space<vmem>>, vector<32x768xbf16>
    %c0_1 = arith.constant 0 : index
    %c0_2 = arith.constant 0 : index
    %1 = vector.load %arg2[%c0_1, %c0_2] : memref<768x128xbf16, #tpu.memory_space<vmem>>, vector<768x128xbf16>
    %cst = arith.constant dense<0.000000e+00> : vector<32x128xf32>
    %2 = tpu.matmul %0, %1, %cst {dimension_numbers = #tpu.dot_dimension_numbers<[1], [0], [0], [1], [0, 0, 1, 1], [], []>} : vector<32x768xbf16>, vector<768x128xbf16>, vector<32x128xf32> -> vector<32x128xf32>
    %c0_3 = arith.constant 0 : index
    %c0_4 = arith.constant 0 : index
    %3 = vector.load %arg3[%c0_3, %c0_4] : memref<1x128xf32, #tpu.memory_space<vmem>>, vector<1x128xf32>
    %4 = vector.broadcast %3 : vector<1x128xf32> to vector<32x128xf32>
    %5 = arith.addf %2, %4 : vector<32x128xf32>
    %6 = arith.mulf %5, %5 : vector<32x128xf32>
    %c0_5 = arith.constant 0 : index
    %c0_6 = arith.constant 0 : index
    %7 = vector.load %arg4[%c0_5, %c0_6] : memref<128x128xf32, #tpu.memory_space<vmem>>, vector<128x128xf32>
    %cst_7 = arith.constant dense<0.000000e+00> : vector<32x128xf32>
    %8 = tpu.matmul %6, %7, %cst_7 {dimension_numbers = #tpu.dot_dimension_numbers<[1], [0], [0], [1], [0, 0, 1, 1], [], []>} : vector<32x128xf32>, vector<128x128xf32>, vector<32x128xf32> -> vector<32x128xf32>
    %c0_8 = arith.constant 0 : index
    %c0_9 = arith.constant 0 : index
    %9 = vector.load %arg5[%c0_8, %c0_9] : memref<1x128xf32, #tpu.memory_space<vmem>>, vector<1x128xf32>
    %10 = vector.broadcast %9 : vector<1x128xf32> to vector<32x128xf32>
    %11 = arith.addf %8, %10 : vector<32x128xf32>
    %12 = math.sqrt %11 : vector<32x128xf32>
    %13 = arith.mulf %5, %12 : vector<32x128xf32>
    %c0_10 = arith.constant 0 : index
    %c0_11 = arith.constant 0 : index
    %14 = vector.load %arg6[%c0_10, %c0_11] : memref<32x128xf32, #tpu.memory_space<vmem>>, vector<32x128xf32>
    tpu.vector_store %arg6[%c0_10, %c0_11], %13 {strides = array<i32>} : memref<32x128xf32, #tpu.memory_space<vmem>>, vector<32x128xf32>,
    return
  }
  func.func @transform_0(%arg0: i32) -> (i32, i32) {
    %c0_i32 = arith.constant 0 : i32
    %c0_i32_0 = arith.constant 0 : i32
    return %arg0, %c0_i32 : i32, i32
  }
  func.func @transform_1(%arg0: i32) -> (i32, i32) {
    %c0_i32 = arith.constant 0 : i32
    %c0_i32_0 = arith.constant 0 : i32
    %c0_i32_1 = arith.constant 0 : i32
    return %c0_i32, %c0_i32_0 : i32, i32
  }
  func.func @transform_2(%arg0: i32) -> (i32, i32) {
    %c0_i32 = arith.constant 0 : i32
    %c0_i32_0 = arith.constant 0 : i32
    %c0_i32_1 = arith.constant 0 : i32
    return %c0_i32, %c0_i32_0 : i32, i32
  }
  func.func @transform_3(%arg0: i32) -> (i32, i32) {
    %c0_i32 = arith.constant 0 : i32
    %c0_i32_0 = arith.constant 0 : i32
    %c0_i32_1 = arith.constant 0 : i32
    return %c0_i32, %c0_i32_0 : i32, i32
  }
  func.func @transform_4(%arg0: i32) -> (i32, i32) {
    %c0_i32 = arith.constant 0 : i32
    %c0_i32_0 = arith.constant 0 : i32
    %c0_i32_1 = arith.constant 0 : i32
    return %c0_i32, %c0_i32_0 : i32, i32
  }
  func.func @transform_5(%arg0: i32) -> (i32, i32) {
    %c0_i32 = arith.constant 0 : i32
    %c0_i32_0 = arith.constant 0 : i32
    return %arg0, %c0_i32 : i32, i32
  }
}

module attributes {stable_mosaic.version = 11 : i64} {
  func.func @_matmul_fused_kernel(%arg0: i32, %arg1: memref<128x512xbf16, #tpu.memory_space<vmem>>, %arg2: memref<512x3xbf16, #tpu.memory_space<vmem>>, %arg3: memref<1x3xf32, #tpu.memory_space<vmem>>, %arg4: memref<128x3xf32, #tpu.memory_space<vmem>>) attributes {dimension_semantics = [#tpu.dimension_semantics<parallel>], iteration_bounds = array<i64: 1>, scalar_prefetch = 0 : i64, scratch_operands = 0 : i64, tpu.core_type = #tpu.core_type<tc>, window_params = [{transform_indices = @transform_0, window_bounds = array<i64: 128, 512>}, {pipeline_mode = #tpu.pipeline_mode<synchronous>, transform_indices = @transform_1, window_bounds = array<i64: 512, 3>}, {pipeline_mode = #tpu.pipeline_mode<synchronous>, transform_indices = @transform_2, window_bounds = array<i64: 1, 3>}, {transform_indices = @transform_3, window_bounds = array<i64: 128, 3>}]} {
    %c0 = arith.constant 0 : index
    %c0_0 = arith.constant 0 : index
    %0 = vector.load %arg1[%c0, %c0_0] : memref<128x512xbf16, #tpu.memory_space<vmem>>, vector<128x512xbf16>
    %c0_1 = arith.constant 0 : index
    %c0_2 = arith.constant 0 : index
    %1 = vector.load %arg2[%c0_1, %c0_2] : memref<512x3xbf16, #tpu.memory_space<vmem>>, vector<512x3xbf16>
    %cst = arith.constant dense<0.000000e+00> : vector<128x3xf32>
    %2 = tpu.matmul %0, %1, %cst {dimension_numbers = #tpu.dot_dimension_numbers<[1], [0], [0], [1], [0, 0, 1, 1], [], []>} : vector<128x512xbf16>, vector<512x3xbf16>, vector<128x3xf32> -> vector<128x3xf32>
    %c0_3 = arith.constant 0 : index
    %c0_4 = arith.constant 0 : index
    %3 = vector.load %arg3[%c0_3, %c0_4] : memref<1x3xf32, #tpu.memory_space<vmem>>, vector<1x3xf32>
    %4 = vector.broadcast %3 : vector<1x3xf32> to vector<128x3xf32>
    %5 = arith.addf %2, %4 : vector<128x3xf32>
    %cst_5 = arith.constant 0.000000e+00 : f32
    %cst_6 = arith.constant 1.000000e+00 : f32
    %6 = vector.broadcast %cst_5 : f32 to vector<128x3xf32>
    %7 = arith.maximumf %6, %5 : vector<128x3xf32>
    %8 = vector.broadcast %cst_6 : f32 to vector<128x3xf32>
    %9 = arith.minimumf %8, %7 : vector<128x3xf32>
    %c0_7 = arith.constant 0 : index
    %c0_8 = arith.constant 0 : index
    %10 = vector.load %arg4[%c0_7, %c0_8] : memref<128x3xf32, #tpu.memory_space<vmem>>, vector<128x3xf32>
    tpu.vector_store %arg4[%c0_7, %c0_8], %9 {strides = array<i32>} : memref<128x3xf32, #tpu.memory_space<vmem>>, vector<128x3xf32>,
    return
  }
  func.func @transform_0(%arg0: i32) -> (i32, i32) {
    %c0_i32 = arith.constant 0 : i32
    %c0_i32_0 = arith.constant 0 : i32
    return %arg0, %c0_i32 : i32, i32
  }
  func.func @transform_1(%arg0: i32) -> (i32, i32) {
    %c0_i32 = arith.constant 0 : i32
    %c0_i32_0 = arith.constant 0 : i32
    %c0_i32_1 = arith.constant 0 : i32
    return %c0_i32, %c0_i32_0 : i32, i32
  }
  func.func @transform_2(%arg0: i32) -> (i32, i32) {
    %c0_i32 = arith.constant 0 : i32
    %c0_i32_0 = arith.constant 0 : i32
    %c0_i32_1 = arith.constant 0 : i32
    return %c0_i32, %c0_i32_0 : i32, i32
  }
  func.func @transform_3(%arg0: i32) -> (i32, i32) {
    %c0_i32 = arith.constant 0 : i32
    %c0_i32_0 = arith.constant 0 : i32
    return %arg0, %c0_i32 : i32, i32
  }
}

module attributes {stable_mosaic.version = 11 : i64} {
  func.func @_matmul_fused_kernel(%arg0: i32, %arg1: memref<128x1152xbf16, #tpu.memory_space<vmem>>, %arg2: memref<1152x3xbf16, #tpu.memory_space<vmem>>, %arg3: memref<1x3xf32, #tpu.memory_space<vmem>>, %arg4: memref<128x3xf32, #tpu.memory_space<vmem>>) attributes {dimension_semantics = [#tpu.dimension_semantics<parallel>], iteration_bounds = array<i64: 1>, scalar_prefetch = 0 : i64, scratch_operands = 0 : i64, tpu.core_type = #tpu.core_type<tc>, window_params = [{transform_indices = @transform_0, window_bounds = array<i64: 128, 1152>}, {pipeline_mode = #tpu.pipeline_mode<synchronous>, transform_indices = @transform_1, window_bounds = array<i64: 1152, 3>}, {pipeline_mode = #tpu.pipeline_mode<synchronous>, transform_indices = @transform_2, window_bounds = array<i64: 1, 3>}, {transform_indices = @transform_3, window_bounds = array<i64: 128, 3>}]} {
    %c0 = arith.constant 0 : index
    %c0_0 = arith.constant 0 : index
    %0 = vector.load %arg1[%c0, %c0_0] : memref<128x1152xbf16, #tpu.memory_space<vmem>>, vector<128x1152xbf16>
    %c0_1 = arith.constant 0 : index
    %c0_2 = arith.constant 0 : index
    %1 = vector.load %arg2[%c0_1, %c0_2] : memref<1152x3xbf16, #tpu.memory_space<vmem>>, vector<1152x3xbf16>
    %cst = arith.constant dense<0.000000e+00> : vector<128x3xf32>
    %2 = tpu.matmul %0, %1, %cst {dimension_numbers = #tpu.dot_dimension_numbers<[1], [0], [0], [1], [0, 0, 1, 1], [], []>} : vector<128x1152xbf16>, vector<1152x3xbf16>, vector<128x3xf32> -> vector<128x3xf32>
    %c0_3 = arith.constant 0 : index
    %c0_4 = arith.constant 0 : index
    %3 = vector.load %arg3[%c0_3, %c0_4] : memref<1x3xf32, #tpu.memory_space<vmem>>, vector<1x3xf32>
    %4 = vector.broadcast %3 : vector<1x3xf32> to vector<128x3xf32>
    %5 = arith.addf %2, %4 : vector<128x3xf32>
    %cst_5 = arith.constant 0.000000e+00 : f32
    %cst_6 = arith.constant 1.000000e+00 : f32
    %6 = vector.broadcast %cst_5 : f32 to vector<128x3xf32>
    %7 = arith.maximumf %6, %5 : vector<128x3xf32>
    %8 = vector.broadcast %cst_6 : f32 to vector<128x3xf32>
    %9 = arith.minimumf %8, %7 : vector<128x3xf32>
    %c0_7 = arith.constant 0 : index
    %c0_8 = arith.constant 0 : index
    %10 = vector.load %arg4[%c0_7, %c0_8] : memref<128x3xf32, #tpu.memory_space<vmem>>, vector<128x3xf32>
    tpu.vector_store %arg4[%c0_7, %c0_8], %9 {strides = array<i32>} : memref<128x3xf32, #tpu.memory_space<vmem>>, vector<128x3xf32>,
    return
  }
  func.func @transform_0(%arg0: i32) -> (i32, i32) {
    %c0_i32 = arith.constant 0 : i32
    %c0_i32_0 = arith.constant 0 : i32
    return %arg0, %c0_i32 : i32, i32
  }
  func.func @transform_1(%arg0: i32) -> (i32, i32) {
    %c0_i32 = arith.constant 0 : i32
    %c0_i32_0 = arith.constant 0 : i32
    %c0_i32_1 = arith.constant 0 : i32
    return %c0_i32, %c0_i32_0 : i32, i32
  }
  func.func @transform_2(%arg0: i32) -> (i32, i32) {
    %c0_i32 = arith.constant 0 : i32
    %c0_i32_0 = arith.constant 0 : i32
    %c0_i32_1 = arith.constant 0 : i32
    return %c0_i32, %c0_i32_0 : i32, i32
  }
  func.func @transform_3(%arg0: i32) -> (i32, i32) {
    %c0_i32 = arith.constant 0 : i32
    %c0_i32_0 = arith.constant 0 : i32
    return %arg0, %c0_i32 : i32, i32
  }
}

module attributes {stable_mosaic.version = 11 : i64} {
  func.func @_matmul_fused_kernel(%arg0: i32, %arg1: memref<128x768xbf16, #tpu.memory_space<vmem>>, %arg2: memref<768x3xbf16, #tpu.memory_space<vmem>>, %arg3: memref<1x3xf32, #tpu.memory_space<vmem>>, %arg4: memref<128x3xf32, #tpu.memory_space<vmem>>) attributes {dimension_semantics = [#tpu.dimension_semantics<parallel>], iteration_bounds = array<i64: 1>, scalar_prefetch = 0 : i64, scratch_operands = 0 : i64, tpu.core_type = #tpu.core_type<tc>, window_params = [{transform_indices = @transform_0, window_bounds = array<i64: 128, 768>}, {pipeline_mode = #tpu.pipeline_mode<synchronous>, transform_indices = @transform_1, window_bounds = array<i64: 768, 3>}, {pipeline_mode = #tpu.pipeline_mode<synchronous>, transform_indices = @transform_2, window_bounds = array<i64: 1, 3>}, {transform_indices = @transform_3, window_bounds = array<i64: 128, 3>}]} {
    %c0 = arith.constant 0 : index
    %c0_0 = arith.constant 0 : index
    %0 = vector.load %arg1[%c0, %c0_0] : memref<128x768xbf16, #tpu.memory_space<vmem>>, vector<128x768xbf16>
    %c0_1 = arith.constant 0 : index
    %c0_2 = arith.constant 0 : index
    %1 = vector.load %arg2[%c0_1, %c0_2] : memref<768x3xbf16, #tpu.memory_space<vmem>>, vector<768x3xbf16>
    %cst = arith.constant dense<0.000000e+00> : vector<128x3xf32>
    %2 = tpu.matmul %0, %1, %cst {dimension_numbers = #tpu.dot_dimension_numbers<[1], [0], [0], [1], [0, 0, 1, 1], [], []>} : vector<128x768xbf16>, vector<768x3xbf16>, vector<128x3xf32> -> vector<128x3xf32>
    %c0_3 = arith.constant 0 : index
    %c0_4 = arith.constant 0 : index
    %3 = vector.load %arg3[%c0_3, %c0_4] : memref<1x3xf32, #tpu.memory_space<vmem>>, vector<1x3xf32>
    %4 = vector.broadcast %3 : vector<1x3xf32> to vector<128x3xf32>
    %5 = arith.addf %2, %4 : vector<128x3xf32>
    %cst_5 = arith.constant 0.000000e+00 : f32
    %cst_6 = arith.constant 1.000000e+00 : f32
    %6 = vector.broadcast %cst_5 : f32 to vector<128x3xf32>
    %7 = arith.maximumf %6, %5 : vector<128x3xf32>
    %8 = vector.broadcast %cst_6 : f32 to vector<128x3xf32>
    %9 = arith.minimumf %8, %7 : vector<128x3xf32>
    %c0_7 = arith.constant 0 : index
    %c0_8 = arith.constant 0 : index
    %10 = vector.load %arg4[%c0_7, %c0_8] : memref<128x3xf32, #tpu.memory_space<vmem>>, vector<128x3xf32>
    tpu.vector_store %arg4[%c0_7, %c0_8], %9 {strides = array<i32>} : memref<128x3xf32, #tpu.memory_space<vmem>>, vector<128x3xf32>,
    return
  }
  func.func @transform_0(%arg0: i32) -> (i32, i32) {
    %c0_i32 = arith.constant 0 : i32
    %c0_i32_0 = arith.constant 0 : i32
    return %arg0, %c0_i32 : i32, i32
  }
  func.func @transform_1(%arg0: i32) -> (i32, i32) {
    %c0_i32 = arith.constant 0 : i32
    %c0_i32_0 = arith.constant 0 : i32
    %c0_i32_1 = arith.constant 0 : i32
    return %c0_i32, %c0_i32_0 : i32, i32
  }
  func.func @transform_2(%arg0: i32) -> (i32, i32) {
    %c0_i32 = arith.constant 0 : i32
    %c0_i32_0 = arith.constant 0 : i32
    %c0_i32_1 = arith.constant 0 : i32
    return %c0_i32, %c0_i32_0 : i32, i32
  }
  func.func @transform_3(%arg0: i32) -> (i32, i32) {
    %c0_i32 = arith.constant 0 : i32
    %c0_i32_0 = arith.constant 0 : i32
    return %arg0, %c0_i32 : i32, i32
  }
}

module attributes {stable_mosaic.version = 11 : i64} {
  func.func @_mse_kernel(%arg0: i32, %arg1: memref<48x128xf32, #tpu.memory_space<vmem>>, %arg2: memref<48x128xf32, #tpu.memory_space<vmem>>, %arg3: memref<1x1xf32, #tpu.memory_space<vmem>>, %arg4: memref<1x1xf32, #tpu.memory_space<vmem>>) attributes {dimension_semantics = [#tpu.dimension_semantics<arbitrary>], iteration_bounds = array<i64: 1>, scalar_prefetch = 0 : i64, scratch_operands = 1 : i64, tpu.core_type = #tpu.core_type<tc>, window_params = [{transform_indices = @transform_0, window_bounds = array<i64: 48, 128>}, {transform_indices = @transform_1, window_bounds = array<i64: 48, 128>}, {pipeline_mode = #tpu.pipeline_mode<synchronous>, transform_indices = @transform_2, window_bounds = array<i64: 1, 1>}]} {
    %c0_i32 = arith.constant 0 : i32
    %0 = arith.cmpi eq, %arg0, %c0_i32 : i32
    %1 = arith.extui %0 : i1 to i32
    %c0_i32_0 = arith.constant 0 : i32
    %2 = arith.cmpi ne, %1, %c0_i32_0 : i32
    scf.if %2 {
      %cst_10 = arith.constant 0.000000e+00 : f32
      %18 = vector.broadcast %cst_10 : f32 to vector<1x1xf32>
      %c0_11 = arith.constant 0 : index
      %c0_12 = arith.constant 0 : index
      %19 = vector.load %arg4[%c0_11, %c0_12] : memref<1x1xf32, #tpu.memory_space<vmem>>, vector<1x1xf32>
      tpu.vector_store %arg4[%c0_11, %c0_12], %18 {strides = array<i32>} : memref<1x1xf32, #tpu.memory_space<vmem>>, vector<1x1xf32>,
    } else {
    }
    %c0 = arith.constant 0 : index
    %c0_1 = arith.constant 0 : index
    %3 = vector.load %arg1[%c0, %c0_1] : memref<48x128xf32, #tpu.memory_space<vmem>>, vector<48x128xf32>
    %c0_2 = arith.constant 0 : index
    %c0_3 = arith.constant 0 : index
    %4 = vector.load %arg2[%c0_2, %c0_3] : memref<48x128xf32, #tpu.memory_space<vmem>>, vector<48x128xf32>
    %5 = arith.subf %3, %4 : vector<48x128xf32>
    %c0_4 = arith.constant 0 : index
    %c0_5 = arith.constant 0 : index
    %6 = vector.load %arg4[%c0_4, %c0_5] : memref<1x1xf32, #tpu.memory_space<vmem>>, vector<1x1xf32>
    %7 = arith.mulf %5, %5 : vector<48x128xf32>
    %8 = vector.shape_cast %7 : vector<48x128xf32> to vector<1x48x128xf32>
    %cst = arith.constant dense<0.000000e+00> : vector<1xf32>
    %9 = vector.multi_reduction <add>, %8, %cst [1, 2] : vector<1x48x128xf32> to vector<1xf32>
    %10 = vector.shape_cast %9 : vector<1xf32> to vector<1x1x1xf32>
    %11 = vector.extract %10[0, 0, 0] : f32 from vector<1x1x1xf32>
    %12 = vector.broadcast %11 : f32 to vector<1x1xf32>
    %13 = arith.addf %6, %12 : vector<1x1xf32>
    %c0_6 = arith.constant 0 : index
    %c0_7 = arith.constant 0 : index
    %14 = vector.load %arg4[%c0_6, %c0_7] : memref<1x1xf32, #tpu.memory_space<vmem>>, vector<1x1xf32>
    tpu.vector_store %arg4[%c0_6, %c0_7], %13 {strides = array<i32>} : memref<1x1xf32, #tpu.memory_space<vmem>>, vector<1x1xf32>,
    %c0_i32_8 = arith.constant 0 : i32
    %15 = arith.cmpi eq, %arg0, %c0_i32_8 : i32
    %16 = arith.extui %15 : i1 to i32
    %c0_i32_9 = arith.constant 0 : i32
    %17 = arith.cmpi ne, %16, %c0_i32_9 : i32
    scf.if %17 {
      %c0_10 = arith.constant 0 : index
      %c0_11 = arith.constant 0 : index
      %18 = vector.load %arg4[%c0_10, %c0_11] : memref<1x1xf32, #tpu.memory_space<vmem>>, vector<1x1xf32>
      %cst_12 = arith.constant 1.62760422E-4 : f32
      %19 = vector.broadcast %cst_12 : f32 to vector<1x1xf32>
      %20 = arith.mulf %18, %19 : vector<1x1xf32>
      %c0_13 = arith.constant 0 : index
      %c0_14 = arith.constant 0 : index
      %21 = vector.load %arg3[%c0_13, %c0_14] : memref<1x1xf32, #tpu.memory_space<vmem>>, vector<1x1xf32>
      tpu.vector_store %arg3[%c0_13, %c0_14], %20 {strides = array<i32>} : memref<1x1xf32, #tpu.memory_space<vmem>>, vector<1x1xf32>,
    } else {
    }
    return
  }
  func.func @transform_0(%arg0: i32) -> (i32, i32) {
    %c0_i32 = arith.constant 0 : i32
    %c0_i32_0 = arith.constant 0 : i32
    return %arg0, %c0_i32 : i32, i32
  }
  func.func @transform_1(%arg0: i32) -> (i32, i32) {
    %c0_i32 = arith.constant 0 : i32
    %c0_i32_0 = arith.constant 0 : i32
    return %arg0, %c0_i32 : i32, i32
  }
  func.func @transform_2(%arg0: i32) -> (i32, i32) {
    %c0_i32 = arith.constant 0 : i32
    %c0_i32_0 = arith.constant 0 : i32
    %c0_i32_1 = arith.constant 0 : i32
    return %c0_i32, %c0_i32_0 : i32, i32
  }
}

module attributes {stable_mosaic.version = 11 : i64} {
  func.func @_bits_kernel(%arg0: i32, %arg1: memref<8x128xf32, #tpu.memory_space<vmem>>, %arg2: memref<4x128xf32, #tpu.memory_space<vmem>>, %arg3: memref<4x128xf32, #tpu.memory_space<vmem>>, %arg4: memref<3x128xf32, #tpu.memory_space<vmem>>, %arg5: memref<1x1xf32, #tpu.memory_space<vmem>>, %arg6: memref<1x1xf32, #tpu.memory_space<vmem>>) attributes {dimension_semantics = [#tpu.dimension_semantics<arbitrary>], iteration_bounds = array<i64: 1>, scalar_prefetch = 0 : i64, scratch_operands = 1 : i64, tpu.core_type = #tpu.core_type<tc>, window_params = [{transform_indices = @transform_0, window_bounds = array<i64: 8, 128>}, {pipeline_mode = #tpu.pipeline_mode<synchronous>, transform_indices = @transform_1, window_bounds = array<i64: 4, 128>}, {pipeline_mode = #tpu.pipeline_mode<synchronous>, transform_indices = @transform_2, window_bounds = array<i64: 4, 128>}, {pipeline_mode = #tpu.pipeline_mode<synchronous>, transform_indices = @transform_3, window_bounds = array<i64: 3, 128>}, {pipeline_mode = #tpu.pipeline_mode<synchronous>, transform_indices = @transform_4, window_bounds = array<i64: 1, 1>}]} {
    %c0_i32 = arith.constant 0 : i32
    %0 = arith.cmpi eq, %arg0, %c0_i32 : i32
    %1 = arith.extui %0 : i1 to i32
    %c0_i32_0 = arith.constant 0 : i32
    %2 = arith.cmpi ne, %1, %c0_i32_0 : i32
    scf.if %2 {
      %cst_29 = arith.constant 0.000000e+00 : f32
      %143 = vector.broadcast %cst_29 : f32 to vector<1x1xf32>
      %c0_30 = arith.constant 0 : index
      %c0_31 = arith.constant 0 : index
      %144 = vector.load %arg6[%c0_30, %c0_31] : memref<1x1xf32, #tpu.memory_space<vmem>>, vector<1x1xf32>
      tpu.vector_store %arg6[%c0_30, %c0_31], %143 {strides = array<i32>} : memref<1x1xf32, #tpu.memory_space<vmem>>, vector<1x1xf32>,
    } else {
    }
    %c0 = arith.constant 0 : index
    %c0_1 = arith.constant 0 : index
    %3 = vector.load %arg1[%c0, %c0_1] : memref<8x128xf32, #tpu.memory_space<vmem>>, vector<8x128xf32>
    %c0_2 = arith.constant 0 : index
    %c0_3 = arith.constant 0 : index
    %4 = vector.load %arg2[%c0_2, %c0_3] : memref<4x128xf32, #tpu.memory_space<vmem>>, vector<4x128xf32>
    %5 = math.exp %4 : vector<4x128xf32>
    %cst = arith.constant 1.000000e+00 : f32
    %6 = vector.broadcast %cst : f32 to vector<4x128xf32>
    %7 = arith.addf %6, %5 : vector<4x128xf32>
    %8 = math.log %7 : vector<4x128xf32>
    %c0_4 = arith.constant 0 : index
    %c0_5 = arith.constant 0 : index
    %9 = vector.load %arg3[%c0_4, %c0_5] : memref<4x128xf32, #tpu.memory_space<vmem>>, vector<4x128xf32>
    %c0_6 = arith.constant 0 : index
    %c0_7 = arith.constant 0 : index
    %10 = vector.load %arg4[%c0_6, %c0_7] : memref<3x128xf32, #tpu.memory_space<vmem>>, vector<3x128xf32>
    %11 = math.tanh %10 : vector<3x128xf32>
    %cst_8 = arith.constant 5.000000e-01 : f32
    %12 = vector.broadcast %cst_8 : f32 to vector<8x128xf32>
    %13 = arith.addf %3, %12 : vector<8x128xf32>
    %14 = vector.extract_strided_slice %8 {offsets = [0, 0], sizes = [1, 128], strides = [1, 1]} : vector<4x128xf32> to vector<1x128xf32>
    %15 = vector.broadcast %14 : vector<1x128xf32> to vector<8x128xf32>
    %16 = arith.mulf %13, %15 : vector<8x128xf32>
    %17 = vector.extract_strided_slice %9 {offsets = [0, 0], sizes = [1, 128], strides = [1, 1]} : vector<4x128xf32> to vector<1x128xf32>
    %18 = vector.broadcast %17 : vector<1x128xf32> to vector<8x128xf32>
    %19 = arith.addf %16, %18 : vector<8x128xf32>
    %20 = math.tanh %19 : vector<8x128xf32>
    %21 = vector.extract_strided_slice %11 {offsets = [0, 0], sizes = [1, 128], strides = [1, 1]} : vector<3x128xf32> to vector<1x128xf32>
    %22 = vector.broadcast %21 : vector<1x128xf32> to vector<8x128xf32>
    %23 = arith.mulf %20, %22 : vector<8x128xf32>
    %24 = arith.addf %19, %23 : vector<8x128xf32>
    %25 = vector.extract_strided_slice %8 {offsets = [1, 0], sizes = [1, 128], strides = [1, 1]} : vector<4x128xf32> to vector<1x128xf32>
    %26 = vector.broadcast %25 : vector<1x128xf32> to vector<8x128xf32>
    %27 = arith.mulf %24, %26 : vector<8x128xf32>
    %28 = vector.extract_strided_slice %9 {offsets = [1, 0], sizes = [1, 128], strides = [1, 1]} : vector<4x128xf32> to vector<1x128xf32>
    %29 = vector.broadcast %28 : vector<1x128xf32> to vector<8x128xf32>
    %30 = arith.addf %27, %29 : vector<8x128xf32>
    %31 = math.tanh %30 : vector<8x128xf32>
    %32 = vector.extract_strided_slice %11 {offsets = [1, 0], sizes = [1, 128], strides = [1, 1]} : vector<3x128xf32> to vector<1x128xf32>
    %33 = vector.broadcast %32 : vector<1x128xf32> to vector<8x128xf32>
    %34 = arith.mulf %31, %33 : vector<8x128xf32>
    %35 = arith.addf %30, %34 : vector<8x128xf32>
    %36 = vector.extract_strided_slice %8 {offsets = [2, 0], sizes = [1, 128], strides = [1, 1]} : vector<4x128xf32> to vector<1x128xf32>
    %37 = vector.broadcast %36 : vector<1x128xf32> to vector<8x128xf32>
    %38 = arith.mulf %35, %37 : vector<8x128xf32>
    %39 = vector.extract_strided_slice %9 {offsets = [2, 0], sizes = [1, 128], strides = [1, 1]} : vector<4x128xf32> to vector<1x128xf32>
    %40 = vector.broadcast %39 : vector<1x128xf32> to vector<8x128xf32>
    %41 = arith.addf %38, %40 : vector<8x128xf32>
    %42 = math.tanh %41 : vector<8x128xf32>
    %43 = vector.extract_strided_slice %11 {offsets = [2, 0], sizes = [1, 128], strides = [1, 1]} : vector<3x128xf32> to vector<1x128xf32>
    %44 = vector.broadcast %43 : vector<1x128xf32> to vector<8x128xf32>
    %45 = arith.mulf %42, %44 : vector<8x128xf32>
    %46 = arith.addf %41, %45 : vector<8x128xf32>
    %47 = vector.extract_strided_slice %8 {offsets = [3, 0], sizes = [1, 128], strides = [1, 1]} : vector<4x128xf32> to vector<1x128xf32>
    %48 = vector.broadcast %47 : vector<1x128xf32> to vector<8x128xf32>
    %49 = arith.mulf %46, %48 : vector<8x128xf32>
    %50 = vector.extract_strided_slice %9 {offsets = [3, 0], sizes = [1, 128], strides = [1, 1]} : vector<4x128xf32> to vector<1x128xf32>
    %51 = vector.broadcast %50 : vector<1x128xf32> to vector<8x128xf32>
    %52 = arith.addf %49, %51 : vector<8x128xf32>
    %cst_9 = arith.constant 0.000000e+00 : f32
    %53 = vector.broadcast %cst_9 : f32 to vector<8x128xf32>
    %54 = arith.subf %53, %52 : vector<8x128xf32>
    %55 = math.exp %54 : vector<8x128xf32>
    %cst_10 = arith.constant 1.000000e+00 : f32
    %56 = vector.broadcast %cst_10 : f32 to vector<8x128xf32>
    %57 = arith.addf %56, %55 : vector<8x128xf32>
    %cst_11 = arith.constant 1.000000e+00 : f32
    %58 = vector.broadcast %cst_11 : f32 to vector<8x128xf32>
    %59 = arith.divf %58, %57 : vector<8x128xf32>
    %cst_12 = arith.constant 5.000000e-01 : f32
    %60 = vector.broadcast %cst_12 : f32 to vector<8x128xf32>
    %61 = arith.subf %3, %60 : vector<8x128xf32>
    %62 = vector.extract_strided_slice %8 {offsets = [0, 0], sizes = [1, 128], strides = [1, 1]} : vector<4x128xf32> to vector<1x128xf32>
    %63 = vector.broadcast %62 : vector<1x128xf32> to vector<8x128xf32>
    %64 = arith.mulf %61, %63 : vector<8x128xf32>
    %65 = vector.extract_strided_slice %9 {offsets = [0, 0], sizes = [1, 128], strides = [1, 1]} : vector<4x128xf32> to vector<1x128xf32>
    %66 = vector.broadcast %65 : vector<1x128xf32> to vector<8x128xf32>
    %67 = arith.addf %64, %66 : vector<8x128xf32>
    %68 = math.tanh %67 : vector<8x128xf32>
    %69 = vector.extract_strided_slice %11 {offsets = [0, 0], sizes = [1, 128], strides = [1, 1]} : vector<3x128xf32> to vector<1x128xf32>
    %70 = vector.broadcast %69 : vector<1x128xf32> to vector<8x128xf32>
    %71 = arith.mulf %68, %70 : vector<8x128xf32>
    %72 = arith.addf %67, %71 : vector<8x128xf32>
    %73 = vector.extract_strided_slice %8 {offsets = [1, 0], sizes = [1, 128], strides = [1, 1]} : vector<4x128xf32> to vector<1x128xf32>
    %74 = vector.broadcast %73 : vector<1x128xf32> to vector<8x128xf32>
    %75 = arith.mulf %72, %74 : vector<8x128xf32>
    %76 = vector.extract_strided_slice %9 {offsets = [1, 0], sizes = [1, 128], strides = [1, 1]} : vector<4x128xf32> to vector<1x128xf32>
    %77 = vector.broadcast %76 : vector<1x128xf32> to vector<8x128xf32>
    %78 = arith.addf %75, %77 : vector<8x128xf32>
    %79 = math.tanh %78 : vector<8x128xf32>
    %80 = vector.extract_strided_slice %11 {offsets = [1, 0], sizes = [1, 128], strides = [1, 1]} : vector<3x128xf32> to vector<1x128xf32>
    %81 = vector.broadcast %80 : vector<1x128xf32> to vector<8x128xf32>
    %82 = arith.mulf %79, %81 : vector<8x128xf32>
    %83 = arith.addf %78, %82 : vector<8x128xf32>
    %84 = vector.extract_strided_slice %8 {offsets = [2, 0], sizes = [1, 128], strides = [1, 1]} : vector<4x128xf32> to vector<1x128xf32>
    %85 = vector.broadcast %84 : vector<1x128xf32> to vector<8x128xf32>
    %86 = arith.mulf %83, %85 : vector<8x128xf32>
    %87 = vector.extract_strided_slice %9 {offsets = [2, 0], sizes = [1, 128], strides = [1, 1]} : vector<4x128xf32> to vector<1x128xf32>
    %88 = vector.broadcast %87 : vector<1x128xf32> to vector<8x128xf32>
    %89 = arith.addf %86, %88 : vector<8x128xf32>
    %90 = math.tanh %89 : vector<8x128xf32>
    %91 = vector.extract_strided_slice %11 {offsets = [2, 0], sizes = [1, 128], strides = [1, 1]} : vector<3x128xf32> to vector<1x128xf32>
    %92 = vector.broadcast %91 : vector<1x128xf32> to vector<8x128xf32>
    %93 = arith.mulf %90, %92 : vector<8x128xf32>
    %94 = arith.addf %89, %93 : vector<8x128xf32>
    %95 = vector.extract_strided_slice %8 {offsets = [3, 0], sizes = [1, 128], strides = [1, 1]} : vector<4x128xf32> to vector<1x128xf32>
    %96 = vector.broadcast %95 : vector<1x128xf32> to vector<8x128xf32>
    %97 = arith.mulf %94, %96 : vector<8x128xf32>
    %98 = vector.extract_strided_slice %9 {offsets = [3, 0], sizes = [1, 128], strides = [1, 1]} : vector<4x128xf32> to vector<1x128xf32>
    %99 = vector.broadcast %98 : vector<1x128xf32> to vector<8x128xf32>
    %100 = arith.addf %97, %99 : vector<8x128xf32>
    %cst_13 = arith.constant 0.000000e+00 : f32
    %101 = vector.broadcast %cst_13 : f32 to vector<8x128xf32>
    %102 = arith.subf %101, %100 : vector<8x128xf32>
    %103 = math.exp %102 : vector<8x128xf32>
    %cst_14 = arith.constant 1.000000e+00 : f32
    %104 = vector.broadcast %cst_14 : f32 to vector<8x128xf32>
    %105 = arith.addf %104, %103 : vector<8x128xf32>
    %cst_15 = arith.constant 1.000000e+00 : f32
    %106 = vector.broadcast %cst_15 : f32 to vector<8x128xf32>
    %107 = arith.divf %106, %105 : vector<8x128xf32>
    %108 = arith.subf %59, %107 : vector<8x128xf32>
    %cst_16 = arith.constant 1.000000e-10 : f32
    %109 = vector.broadcast %cst_16 : f32 to vector<8x128xf32>
    %110 = arith.addf %108, %109 : vector<8x128xf32>
    %111 = math.log %110 : vector<8x128xf32>
    %cst_17 = arith.constant 0.000000e+00 : f32
    %112 = vector.broadcast %cst_17 : f32 to vector<8x128xf32>
    %113 = arith.subf %112, %111 : vector<8x128xf32>
    %cst_18 = arith.constant 1.44269502 : f32
    %114 = vector.broadcast %cst_18 : f32 to vector<8x128xf32>
    %115 = arith.mulf %113, %114 : vector<8x128xf32>
    %cst_19 = arith.constant 0.000000e+00 : f32
    %cst_20 = arith.constant 5.000000e+01 : f32
    %116 = vector.broadcast %cst_19 : f32 to vector<8x128xf32>
    %117 = arith.maximumf %116, %115 : vector<8x128xf32>
    %118 = vector.broadcast %cst_20 : f32 to vector<8x128xf32>
    %119 = arith.minimumf %118, %117 : vector<8x128xf32>
    %c8_i32 = arith.constant 8 : i32
    %120 = arith.muli %arg0, %c8_i32 : i32
    %121 = tpu.iota {dimensions = array<i32: 0>} : vector<8x128xi32>
    %122 = vector.broadcast %120 : i32 to vector<8x128xi32>
    %123 = arith.addi %121, %122 : vector<8x128xi32>
    %124 = tpu.iota {dimensions = array<i32: 1>} : vector<8x128xi32>
    %c128_i32 = arith.constant 128 : i32
    %125 = vector.broadcast %c128_i32 : i32 to vector<8x128xi32>
    %126 = arith.muli %123, %125 : vector<8x128xi32>
    %127 = arith.addi %126, %124 : vector<8x128xi32>
    %c1024_i32 = arith.constant 1024 : i32
    %128 = vector.broadcast %c1024_i32 : i32 to vector<8x128xi32>
    %129 = arith.cmpi slt, %127, %128 : vector<8x128xi32>
    %c0_21 = arith.constant 0 : index
    %c0_22 = arith.constant 0 : index
    %130 = vector.load %arg6[%c0_21, %c0_22] : memref<1x1xf32, #tpu.memory_space<vmem>>, vector<1x1xf32>
    %cst_23 = arith.constant 0.000000e+00 : f32
    %131 = vector.broadcast %cst_23 : f32 to vector<8x128xf32>
    %132 = arith.select %129, %119, %131 : vector<8x128xi1>, vector<8x128xf32>
    %133 = vector.shape_cast %132 : vector<8x128xf32> to vector<1x8x128xf32>
    %cst_24 = arith.constant dense<0.000000e+00> : vector<1xf32>
    %134 = vector.multi_reduction <add>, %133, %cst_24 [1, 2] : vector<1x8x128xf32> to vector<1xf32>
    %135 = vector.shape_cast %134 : vector<1xf32> to vector<1x1x1xf32>
    %136 = vector.extract %135[0, 0, 0] : f32 from vector<1x1x1xf32>
    %137 = vector.broadcast %136 : f32 to vector<1x1xf32>
    %138 = arith.addf %130, %137 : vector<1x1xf32>
    %c0_25 = arith.constant 0 : index
    %c0_26 = arith.constant 0 : index
    %139 = vector.load %arg6[%c0_25, %c0_26] : memref<1x1xf32, #tpu.memory_space<vmem>>, vector<1x1xf32>
    tpu.vector_store %arg6[%c0_25, %c0_26], %138 {strides = array<i32>} : memref<1x1xf32, #tpu.memory_space<vmem>>, vector<1x1xf32>,
    %c0_i32_27 = arith.constant 0 : i32
    %140 = arith.cmpi eq, %arg0, %c0_i32_27 : i32
    %141 = arith.extui %140 : i1 to i32
    %c0_i32_28 = arith.constant 0 : i32
    %142 = arith.cmpi ne, %141, %c0_i32_28 : i32
    scf.if %142 {
      %c0_29 = arith.constant 0 : index
      %c0_30 = arith.constant 0 : index
      %143 = vector.load %arg6[%c0_29, %c0_30] : memref<1x1xf32, #tpu.memory_space<vmem>>, vector<1x1xf32>
      %c0_31 = arith.constant 0 : index
      %c0_32 = arith.constant 0 : index
      %144 = vector.load %arg5[%c0_31, %c0_32] : memref<1x1xf32, #tpu.memory_space<vmem>>, vector<1x1xf32>
      tpu.vector_store %arg5[%c0_31, %c0_32], %143 {strides = array<i32>} : memref<1x1xf32, #tpu.memory_space<vmem>>, vector<1x1xf32>,
    } else {
    }
    return
  }
  func.func @transform_0(%arg0: i32) -> (i32, i32) {
    %c0_i32 = arith.constant 0 : i32
    %c0_i32_0 = arith.constant 0 : i32
    return %arg0, %c0_i32 : i32, i32
  }
  func.func @transform_1(%arg0: i32) -> (i32, i32) {
    %c0_i32 = arith.constant 0 : i32
    %c0_i32_0 = arith.constant 0 : i32
    %c0_i32_1 = arith.constant 0 : i32
    return %c0_i32, %c0_i32_0 : i32, i32
  }
  func.func @transform_2(%arg0: i32) -> (i32, i32) {
    %c0_i32 = arith.constant 0 : i32
    %c0_i32_0 = arith.constant 0 : i32
    %c0_i32_1 = arith.constant 0 : i32
    return %c0_i32, %c0_i32_0 : i32, i32
  }
  func.func @transform_3(%arg0: i32) -> (i32, i32) {
    %c0_i32 = arith.constant 0 : i32
    %c0_i32_0 = arith.constant 0 : i32
    %c0_i32_1 = arith.constant 0 : i32
    return %c0_i32, %c0_i32_0 : i32, i32
  }
  func.func @transform_4(%arg0: i32) -> (i32, i32) {
    %c0_i32 = arith.constant 0 : i32
    %c0_i32_0 = arith.constant 0 : i32
    %c0_i32_1 = arith.constant 0 : i32
    return %c0_i32, %c0_i32_0 : i32, i32
  }
}

</mosaic_0001>

<bundles_post_ra>
// kernel: image_compressor_forward.29
= control target key start
LH: loop header
LB: loop body
LE: loop exit
PB: predicated region body
PF: predicated region fallthrough
CT: control target
= control target key end

     0   :  { %vm261_vm0 = vcmask 1040384   ;;  %vm262_vm1 = vcmask 1041408   ;;  %v893_v2 = vmov 65535   ;;  %vm236_vm2 = vcmask 941056   ;;  %s1304_s1 = inlined_call_operand.vmem [shape: bf16[243,128], index: 1, kind: input, shape index: {}]   ;;  %s1305_s2 = inlined_call_operand.vmem [shape: f32[1,128], index: 2, kind: input, shape index: {}]   ;;  %s1306_s0 = inlined_call_operand.vmem [shape: bf16[128,243], index: 0, kind: input, shape index: {}]   ;;  %s1307_s3 = inlined_call_operand.vmem [shape: f32[128,128], index: 3, kind: input, shape index: {}]   ;;  %s1308_s4 = inlined_call_operand.vmem [shape: f32[1,128], index: 4, kind: input, shape index: {}]   ;;  %s1309_s5 = inlined_call_operand.vmem [shape: f32[128,128], index: 5, kind: output, shape index: {}]  }
   0x1   :  { %v818_v0 = vld [vmem:[%s1304_s1 + $0x38] sm:$0xff]  ;;  %v263_v3 = vsel %vm261_vm0, 4294967295, %v893_v2  ;;  %v817_v5 = vld [vmem:[%s1304_s1 + $0x30] sm:$0xff]  ;;  %v816_v9 = vld [vmem:[%s1304_s1 + $0x28] sm:$0xff] }
   0x2   :  { %v66_v1 = vld [vmem:[%s1304_s1 + $0x78] sm:$0x3]  ;;  %268 = vmatpush.bf16.msra.mxu0 %v818_v0  ;;  %826 = vmatpush.bf16.msra.mxu3 %v818_v0  ;;  %v264_v6 = vsel %vm262_vm1, %v263_v3, 0  ;;  %v825_v10 = vld [vmem:[%s1304_s1 + $0x70] sm:$0xff]  ;;  %v815_v11 = vld [vmem:[%s1304_s1 + $0x20] sm:$0xff] }
   0x3   :  { %v204_v4 = vunpack.c.l.b16 %v66_v1  ;;  %v824_v12 = vld [vmem:[%s1304_s1 + $0x68] sm:$0xff]  ;;  %v814_v13 = vld [vmem:[%s1304_s1 + $0x18] sm:$0xff]  ;;  %v823_v14 = vld [vmem:[%s1304_s1 + $0x60] sm:$0xff] }
   0x4   :  { %v813_v15 = vld [vmem:[%s1304_s1 + $0x10] sm:$0xff]  ;;  %v822_v16 = vld [vmem:[%s1304_s1 + $0x58] sm:$0xff]  ;;  %v812_v17 = vld [vmem:[%s1304_s1 + $0x8] sm:$0xff] }
   0x5   :  { %v220_v7 = vpack.c.b16 %v204_v4, %v204_v4  ;;  %v821_v18 = vld [vmem:[%s1304_s1 + $0x50] sm:$0xff]  ;;  %v811_v19 = vld [vmem:[%s1304_s1] sm:$0xff]  ;;  %v796_v21 = vld [vmem:[%s1306_s0 + $0x4] sm:$0xf0] }
   0x6   :  { %269 = vmatpush.bf16.msra.mxu0 %v817_v5  ;;  %827 = vmatpush.bf16.msra.mxu3 %v817_v5  ;;  %v665_v20 = vld [vmem:[%s1306_s0] sm:$0xf]  ;;  %v808_v23 = vld [vmem:[%s1306_s0 + $0x64] sm:$0xf0]  ;;  %v795_v28 = vld [vmem:[%s1306_s0 + $0x4] sm:$0xf] }
   0x7   :  { %v266_v8 = vand.u32 %v264_v6, %v220_v7  ;;  %v713_v22 = vld [vmem:[%s1306_s0 + $0x60] sm:$0xf]  ;;  %v820_v24 = vld [vmem:[%s1304_s1 + $0x48] sm:$0xff]  ;;  %v666_v25 = vor.u32 %v796_v21, %v665_v20  ;;  %v673_v31 = vld [vmem:[%s1306_s0 + $0x10] sm:$0xf] }
   0x8   :  { %v714_v26 = vor.u32 %v808_v23, %v713_v22  ;;  %v819_v27 = vld [vmem:[%s1304_s1 + $0x40] sm:$0xff]  ;;  %v667_v29 = vld [vmem:[%s1306_s0 + $0x8] sm:$0xf0]  ;;  %v798_v32 = vld [vmem:[%s1306_s0 + $0x14] sm:$0xf0] }
   0x9   :  { %317 = vmatpush.bf16.msra.mxu1 %v266_v8  ;;  %v670_v30 = vor.u32 %v795_v28, %v667_v29  ;;  %v721_v33 = vld [vmem:[%s1306_s0 + $0x70] sm:$0xf]  ;;  %v810_v34 = vld [vmem:[%s1306_s0 + $0x74] sm:$0xf0]  ;;  %v674_v35 = vor.u32 %v798_v32, %v673_v31  ;;  %v797_v37 = vld [vmem:[%s1306_s0 + $0x14] sm:$0xf] }
   0xa   :  { %270 = vmatpush.bf16.msra.mxu0 %v816_v9  ;;  %828 = vmatpush.bf16.msra.mxu3 %v816_v9  ;;  %v722_v36 = vor.u32 %v810_v34, %v721_v33  ;;  %v675_v38 = vld [vmem:[%s1306_s0 + $0x18] sm:$0xf0]  ;;  %v681_v40 = vld [vmem:[%s1306_s0 + $0x20] sm:$0xf]  ;;  %v800_v41 = vld [vmem:[%s1306_s0 + $0x24] sm:$0xf0] }
   0xb   :  { %v678_v39 = vor.u32 %v797_v37, %v675_v38  ;;  %v807_v42 = vld [vmem:[%s1306_s0 + $0x64] sm:$0xf]  ;;  %v715_v43 = vld [vmem:[%s1306_s0 + $0x68] sm:$0xf0]  ;;  %v682_v44 = vor.u32 %v800_v41, %v681_v40  ;;  %v689_v49 = vld [vmem:[%s1306_s0 + $0x30] sm:$0xf] }
   0xc   :  { %v718_v45 = vor.u32 %v807_v42, %v715_v43  ;;  %v799_v46 = vld [vmem:[%s1306_s0 + $0x24] sm:$0xf]  ;;  %v683_v47 = vld [vmem:[%s1306_s0 + $0x28] sm:$0xf0]  ;;  %v802_v50 = vld [vmem:[%s1306_s0 + $0x34] sm:$0xf0] }
   0xd   :  { %318 = vmatpush.bf16.msra.mxu1 %v825_v10  ;;  %v686_v48 = vor.u32 %v799_v46, %v683_v47  ;;  %v809_v51 = vld [vmem:[%s1306_s0 + $0x74] sm:$0xf]  ;;  %v723_v52 = vld [vmem:[%s1306_s0 + $0x78] sm:$0xf0]  ;;  %v690_v53 = vor.u32 %v802_v50, %v689_v49  ;;  %v395_v60 = vld [vmem:[%s1307_s3 + $0x68] sm:$0xff] }
   0xe   :  { %271 = vmatpush.bf16.msra.mxu0 %v815_v11  ;;  %829 = vmatpush.bf16.msra.mxu3 %v815_v11  ;;  %v726_v54 = vor.u32 %v809_v51, %v723_v52  ;;  %v801_v55 = vld [vmem:[%s1306_s0 + $0x34] sm:$0xf]  ;;  %v691_v56 = vld [vmem:[%s1306_s0 + $0x38] sm:$0xf0]  ;;  %v697_v61 = vld [vmem:[%s1306_s0 + $0x40] sm:$0xf] }
   0xf   :  { %v694_v57 = vor.u32 %v801_v55, %v691_v56  ;;  %v397_v58 = vld [vmem:[%s1307_s3 + $0x78] sm:$0xff]  ;;  %v396_v59 = vld [vmem:[%s1307_s3 + $0x70] sm:$0xff]  ;;  %v804_v62 = vld [vmem:[%s1306_s0 + $0x44] sm:$0xf0] }
  0x10   :  { %402 = vmatpush.msra.mxu2 %v397_v58  ;;  %v394_v63 = vld [vmem:[%s1307_s3 + $0x60] sm:$0xff]  ;;  %v393_v0 = vld [vmem:[%s1307_s3 + $0x58] sm:$0xff]  ;;  %v698_v1 = vor.u32 %v804_v62, %v697_v61  ;;  %v392_v2 = vld [vmem:[%s1307_s3 + $0x50] sm:$0xff] }
  0x11   :  { %319 = vmatpush.bf16.msra.mxu1 %v824_v12  ;;  %v803_v3 = vld [vmem:[%s1306_s0 + $0x44] sm:$0xf]  ;;  %v699_v4 = vld [vmem:[%s1306_s0 + $0x48] sm:$0xf0]  ;;  %v388_v9 = vld [vmem:[%s1307_s3 + $0x30] sm:$0xff] }
  0x12   :  { %272 = vmatpush.bf16.msra.mxu0 %v814_v13  ;;  %830 = vmatpush.bf16.msra.mxu3 %v814_v13  ;;  %v391_v5 = vld [vmem:[%s1307_s3 + $0x48] sm:$0xff]  ;;  %v702_v6 = vor.u32 %v803_v3, %v699_v4  ;;  %v390_v7 = vld [vmem:[%s1307_s3 + $0x40] sm:$0xff]  ;;  %v705_v11 = vld [vmem:[%s1306_s0 + $0x50] sm:$0xf] }
  0x13   :  { %403 = vmatpush.msra.mxu2 %v396_v59  ;;  %v383_v20 = vld [vmem:[%s1307_s3 + $0x8] sm:$0xff]  ;;  %v382_v21 = vld [vmem:[%s1307_s3] sm:$0xff] }
  0x14   :  { %v1127_v22 = vld [vmem:[%s1305_s2] ss:$0 sm:$0xff] }
  0x15   :  { %320 = vmatpush.bf16.msra.mxu1 %v823_v14  ;;  %404 = vmatpush.msra.mxu2 %v395_v60 }
  0x16   :  { %273 = vmatpush.bf16.msra.mxu0 %v813_v15  ;;  %831 = vmatpush.bf16.msra.mxu3 %v813_v15  ;;  %v707_v15 = vld [vmem:[%s1306_s0 + $0x58] sm:$0xf0] }
  0x17   :  { %405 = vmatpush.msra.mxu2 %v394_v63 }
  0x19   :  { %321 = vmatpush.bf16.msra.mxu1 %v822_v16  ;;  %406 = vmatpush.msra.mxu2 %v393_v0 }
  0x1a   :  { %274 = vmatpush.bf16.msra.mxu0 %v812_v17  ;;  %832 = vmatpush.bf16.msra.mxu3 %v812_v17  ;;  %v386_v17 = vld [vmem:[%s1307_s3 + $0x20] sm:$0xff] }
  0x1b   :  { %407 = vmatpush.msra.mxu2 %v392_v2 }
  0x1d   :  { %322 = vmatpush.bf16.msra.mxu1 %v821_v18  ;;  %408 = vmatpush.msra.mxu2 %v391_v5 }
  0x1e   :  { %275 = vmatpush.bf16.msra.mxu0 %v811_v19  ;;  %833 = vmatpush.bf16.msra.mxu3 %v811_v19  ;;  %v384_v19 = vld [vmem:[%s1307_s3 + $0x10] sm:$0xff] }
  0x1f   :  { %409 = vmatpush.msra.mxu2 %v390_v7 }
  0x21   :  { %323 = vmatpush.bf16.msra.mxu1 %v820_v24  ;;  %276 = vmatmul.bf16.vlgmr.msra.gmra.mxu0 %v666_v25 }
  0x22   :  { %834 = vmatpush.bf16.msrb.mxu3 %v266_v8  ;;  %v389_v8 = vld [vmem:[%s1307_s3 + $0x38] sm:$0xff] }
  0x23   :  { %306 = vmatmul.bf16.vlgmr.msra.gmra.mxu3 %v714_v26  ;;  %410 = vmatpush.msra.mxu2 %v389_v8 }
  0x25   :  { %324 = vmatpush.bf16.msra.mxu1 %v819_v27  ;;  %411 = vmatpush.msra.mxu2 %v388_v9 }
  0x26   :  { %835 = vmatpush.bf16.msrb.mxu3 %v825_v10  ;;  %v387_v10 = vld [vmem:[%s1307_s3 + $0x28] sm:$0xff] }
  0x27   :  { %412 = vmatpush.msra.mxu2 %v387_v10 }
  0x28   :  { %787 = vmatmul.msk.bf16.vlgmr.msra.gmra.mxu1 %vm236_vm2, %v670_v30 }
  0x29   :  { %413 = vmatpush.msra.mxu2 %v386_v17 }
  0x2a   :  { %836 = vmatpush.bf16.msrb.mxu3 %v824_v12  ;;  %v806_v12 = vld [vmem:[%s1306_s0 + $0x54] sm:$0xf0] }
  0x2b   :  { %v706_v13 = vor.u32 %v806_v12, %v705_v11 }
  0x2e   :  { %837 = vmatpush.bf16.msrb.mxu3 %v823_v14  ;;  %v805_v14 = vld [vmem:[%s1306_s0 + $0x54] sm:$0xf] }
  0x31   :  { %281 = vmatmul.bf16.gmra.mxu0 %v674_v35 }
  0x32   :  { %838 = vmatpush.bf16.msrb.mxu3 %v822_v16  ;;  %v710_v16 = vor.u32 %v805_v14, %v707_v15 }
  0x33   :  { %311 = vmatmul.bf16.gmra.mxu3 %v722_v36 }
  0x36   :  { %839 = vmatpush.bf16.msrb.mxu3 %v821_v18  ;;  %v385_v18 = vld [vmem:[%s1307_s3 + $0x18] sm:$0xff] }
  0x37   :  { %414 = vmatpush.msra.mxu2 %v385_v18 }
  0x38   :  { %788 = vmatmul.msk.bf16.gmra.mxu1 %vm236_vm2, %v678_v39 }
  0x39   :  { %415 = vmatpush.msra.mxu2 %v384_v19 }
  0x3a   :  { %840 = vmatpush.bf16.msrb.mxu3 %v820_v24 }
  0x3b   :  { %416 = vmatpush.msra.mxu2 %v383_v20 }
  0x3d   :  { %417 = vmatpush.msra.mxu2 %v382_v21 }
  0x3e   :  { %841 = vmatpush.bf16.msrb.mxu3 %v819_v27 }
  0x41   :  { %286 = vmatmul.bf16.gmra.mxu0 %v682_v44 }
  0x42   :  { %842 = vmatpush.msra.mxu3 %v397_v58 }
  0x43   :  { %793 = vmatmul.msk.bf16.vlgmr.msrb.gmra.mxu3 %vm236_vm2, %v718_v45 }
  0x44   :  { %843 = vmatpush.msra.mxu3 %v396_v59 }
  0x46   :  { %844 = vmatpush.msra.mxu3 %v395_v60 }
  0x48   :  { %789 = vmatmul.msk.bf16.gmra.mxu1 %vm236_vm2, %v686_v48  ;;  %845 = vmatpush.msra.mxu3 %v394_v63 }
  0x4a   :  { %846 = vmatpush.msra.mxu3 %v393_v0 }
  0x4c   :  { %847 = vmatpush.msra.mxu3 %v392_v2 }
  0x4e   :  { %848 = vmatpush.msra.mxu3 %v391_v5 }
  0x50   :  { %849 = vmatpush.msra.mxu3 %v390_v7 }
  0x51   :  { %291 = vmatmul.bf16.gmra.mxu0 %v690_v53 }
  0x52   :  { %850 = vmatpush.msra.mxu3 %v389_v8 }
  0x53   :  { %794 = vmatmul.msk.bf16.gmra.mxu3 %vm236_vm2, %v726_v54 }
  0x54   :  { %851 = vmatpush.msra.mxu3 %v388_v9 }
  0x56   :  { %852 = vmatpush.msra.mxu3 %v387_v10 }
  0x58   :  { %790 = vmatmul.msk.bf16.gmra.mxu1 %vm236_vm2, %v694_v57  ;;  %853 = vmatpush.msra.mxu3 %v386_v17 }
  0x5a   :  { %854 = vmatpush.msra.mxu3 %v385_v18 }
  0x5c   :  { %855 = vmatpush.msra.mxu3 %v384_v19 }
  0x5e   :  { %856 = vmatpush.msra.mxu3 %v383_v20 }
  0x60   :  { %857 = vmatpush.msra.mxu3 %v382_v21 }
  0x61   :  { %296 = vmatmul.bf16.gmra.mxu0 %v698_v1 }
  0x68   :  { %791 = vmatmul.msk.bf16.gmra.mxu1 %vm236_vm2, %v702_v6 }
  0x71   :  { %301 = vmatmul.bf16.gmra.mxu0 %v706_v13 }
  0x78   :  { %792 = vmatmul.msk.bf16.gmra.mxu1 %vm236_vm2, %v710_v16 }
  0x9e   :  { %v277_v23 = vpop.f32.mrf.mxu0 }
  0x9f   :  { %v278_v24 = vadd.f32 %v1127_v22, %v277_v23 }
  0xa5   :  { %v326_v25 = vpop.f32.mrf.mxu1 }
  0xa6   :  { %v1130_v26 = vadd.f32 %v326_v25, %v278_v24  ;;  %v307_v27 = vpop.f32.mrf.mxu3  ;;  %v279_v28 = vpop.f32.mrf.mxu0 }
  0xa7   :  { %v280_v30 = vadd.f32 %v1127_v22, %v279_v28  ;;  %v308_v49 = vadd.f32 %v1127_v22, %v307_v27 }
  0xa8   :  { %v366_v29 = vmul.f32 %v1130_v26, %v1130_v26 }
  0xaa   :  { %418 = vmatmul.f32.vlgmr.msra.gmra.mxu2 %v366_v29 }
  0xad   :  { %v328_v31 = vpop.f32.mrf.mxu1 }
  0xae   :  { %v1135_v32 = vadd.f32 %v328_v31, %v280_v30  ;;  %v309_v33 = vpop.f32.mrf.mxu3  ;;  %v282_v34 = vpop.f32.mrf.mxu0 }
  0xaf   :  { %v283_v36 = vadd.f32 %v1127_v22, %v282_v34  ;;  %v310_v58 = vadd.f32 %v1127_v22, %v309_v33 }
  0xb0   :  { %v367_v35 = vmul.f32 %v1135_v32, %v1135_v32 }
  0xb2   :  { %421 = vmatmul.f32.gmra.mxu2 %v367_v35 }
  0xb5   :  { %v331_v37 = vpop.f32.mrf.mxu1 }
  0xb6   :  { %v1140_v38 = vadd.f32 %v331_v37, %v283_v36  ;;  %v312_v39 = vpop.f32.mrf.mxu3  ;;  %v284_v40 = vpop.f32.mrf.mxu0 }
  0xb7   :  { %v285_v42 = vadd.f32 %v1127_v22, %v284_v40  ;;  %v313_v3 = vadd.f32 %v1127_v22, %v312_v39 }
  0xb8   :  { %v368_v41 = vmul.f32 %v1140_v38, %v1140_v38 }
  0xba   :  { %424 = vmatmul.f32.gmra.mxu2 %v368_v41 }
  0xbd   :  { %v333_v43 = vpop.f32.mrf.mxu1 }
  0xbe   :  { %v1145_v44 = vadd.f32 %v333_v43, %v285_v42  ;;  %v314_v45 = vpop.f32.mrf.mxu3  ;;  %v287_v46 = vpop.f32.mrf.mxu0  ;;  %v1212_v43 = vld [vmem:[%s1308_s4] ss:$0 sm:$0xff] }
  0xbf   :  { %v288_v48 = vadd.f32 %v1127_v22, %v287_v46  ;;  %v315_v12 = vadd.f32 %v1127_v22, %v314_v45 }
  0xc0   :  { %v369_v47 = vmul.f32 %v1145_v44, %v1145_v44 }
  0xc2   :  { %427 = vmatmul.f32.gmra.mxu2 %v369_v47 }
  0xc5   :  { %v336_v50 = vpop.f32.mrf.mxu1 }
  0xc6   :  { %v1151_v51 = vadd.f32 %v336_v50, %v288_v48  ;;  %v356_v52 = vpop.f32.mrf.mxu3  ;;  %v289_v54 = vpop.f32.mrf.mxu0 }
  0xc7   :  { %v1153_v53 = vadd.f32 %v356_v52, %v308_v49  ;;  %v290_v57 = vadd.f32 %v1127_v22, %v289_v54 }
  0xc8   :  { %v370_v55 = vmul.f32 %v1151_v51, %v1151_v51 }
  0xc9   :  { %v378_v56 = vmul.f32 %v1153_v53, %v1153_v53 }
  0xca   :  { %430 = vmatmul.f32.gmra.mxu2 %v370_v55 }
  0xcb   :  { %454 = vmatmul.f32.vlgmr.msra.gmra.mxu3 %v378_v56 }
  0xcd   :  { %v338_v59 = vpop.f32.mrf.mxu1 }
  0xce   :  { %v1161_v60 = vadd.f32 %v338_v59, %v290_v57  ;;  %v358_v61 = vpop.f32.mrf.mxu3  ;;  %v292_v63 = vpop.f32.mrf.mxu0 }
  0xcf   :  { %v1163_v62 = vadd.f32 %v358_v61, %v310_v58  ;;  %v293_v2 = vadd.f32 %v1127_v22, %v292_v63 }
  0xd0   :  { %v371_v0 = vmul.f32 %v1161_v60, %v1161_v60 }
  0xd1   :  { %v379_v1 = vmul.f32 %v1163_v62, %v1163_v62 }
  0xd2   :  { %433 = vmatmul.f32.gmra.mxu2 %v371_v0 }
  0xd3   :  { %457 = vmatmul.f32.gmra.mxu3 %v379_v1 }
  0xd5   :  { %v341_v4 = vpop.f32.mrf.mxu1 }
  0xd6   :  { %v1171_v5 = vadd.f32 %v341_v4, %v293_v2  ;;  %v361_v6 = vpop.f32.mrf.mxu3  ;;  %v294_v8 = vpop.f32.mrf.mxu0 }
  0xd7   :  { %v1173_v7 = vadd.f32 %v361_v6, %v313_v3  ;;  %v295_v11 = vadd.f32 %v1127_v22, %v294_v8 }
  0xd8   :  { %v372_v9 = vmul.f32 %v1171_v5, %v1171_v5 }
  0xd9   :  { %v380_v10 = vmul.f32 %v1173_v7, %v1173_v7 }
  0xda   :  { %436 = vmatmul.f32.gmra.mxu2 %v372_v9 }
  0xdb   :  { %460 = vmatmul.f32.gmra.mxu3 %v380_v10 }
  0xdd   :  { %v343_v13 = vpop.f32.mrf.mxu1 }
  0xde   :  { %v1181_v14 = vadd.f32 %v343_v13, %v295_v11  ;;  %v363_v15 = vpop.f32.mrf.mxu3  ;;  %v297_v17 = vpop.f32.mrf.mxu0 }
  0xdf   :  { %v1183_v16 = vadd.f32 %v363_v15, %v315_v12  ;;  %v298_v20 = vadd.f32 %v1127_v22, %v297_v17 }
  0xe0   :  { %v373_v18 = vmul.f32 %v1181_v14, %v1181_v14 }
  0xe1   :  { %v381_v19 = vmul.f32 %v1183_v16, %v1183_v16 }
  0xe2   :  { %439 = vmatmul.f32.gmra.mxu2 %v373_v18 }
  0xe3   :  { %463 = vmatmul.f32.gmra.mxu3 %v381_v19 }
  0xe5   :  { %v346_v21 = vpop.f32.mrf.mxu1 }
  0xe6   :  { %v1190_v23 = vadd.f32 %v346_v21, %v298_v20  ;;  %v299_v24 = vpop.f32.mrf.mxu0 }
  0xe7   :  { %v300_v27 = vadd.f32 %v1127_v22, %v299_v24 }
  0xe8   :  { %v374_v25 = vmul.f32 %v1190_v23, %v1190_v23 }
  0xea   :  { %442 = vmatmul.f32.gmra.mxu2 %v374_v25 }
  0xed   :  { %v348_v28 = vpop.f32.mrf.mxu1 }
  0xee   :  { %v1195_v29 = vadd.f32 %v348_v28, %v300_v27  ;;  %v302_v30 = vpop.f32.mrf.mxu0 }
  0xef   :  { %v303_v33 = vadd.f32 %v1127_v22, %v302_v30 }
  0xf0   :  { %v375_v31 = vmul.f32 %v1195_v29, %v1195_v29 }
  0xf2   :  { %445 = vmatmul.f32.gmra.mxu2 %v375_v31 }
  0xf5   :  { %v351_v34 = vpop.f32.mrf.mxu1 }
  0xf6   :  { %v1200_v35 = vadd.f32 %v351_v34, %v303_v33  ;;  %v304_v37 = vpop.f32.mrf.mxu0 }
  0xf7   :  { %v305_v39 = vadd.f32 %v1127_v22, %v304_v37 }
  0xf8   :  { %v376_v36 = vmul.f32 %v1200_v35, %v1200_v35 }
  0xfa   :  { %448 = vmatmul.f32.gmra.mxu2 %v376_v36 }
  0xfd   :  { %v353_v40 = vpop.f32.mrf.mxu1 }
  0xfe   :  { %v1205_v41 = vadd.f32 %v353_v40, %v305_v39 }
 0x100   :  { %v377_v42 = vmul.f32 %v1205_v41, %v1205_v41 }
 0x102   :  { %451 = vmatmul.f32.gmra.mxu2 %v377_v42 }
 0x12d   :  { %v419_v45 = vpop.f32.mrf.mxu2 }
 0x12e   :  { %v420_v46 = vadd.f32 %v1212_v43, %v419_v45 }
 0x130   :  { %861 = vrsqrt.f32 %v420_v46  ;;  %vm473_vm4 = vweird.f32 %v420_v46 }
 0x135   :  { %v422_v47 = vpop.f32.mrf.mxu2 }
 0x136   :  { %v862_v48 = vpop.eup %861  ;;  %v423_v22 = vadd.f32 %v1212_v43, %v422_v47 }
 0x137   :  { %v468_v49 = vmul.f32 %v862_v48, %v420_v46  ;;  %vm474_vm3 = vweird.f32 %v862_v48 }
 0x138   :  { %863 = vrsqrt.f32 %v423_v22  ;;  %vm475_vm5 = vmor %vm473_vm4, %vm474_vm3  ;;  %vm483_vm7 = vweird.f32 %v423_v22 }
 0x139   :  { %v469_v50 = vmul.f32 %v862_v48, %v468_v49 }
 0x13b   :  { %v470_v52 = vmul.f32 0.5, %v469_v50 }
 0x13d   :  { %v471_v54 = vsub.f32 1.5, %v470_v52  ;;  %v425_v55 = vpop.f32.mrf.mxu2 }
 0x13e   :  { %v864_v56 = vpop.eup %863  ;;  %v426_v57 = vadd.f32 %v1212_v43, %v425_v55 }
 0x13f   :  { %v472_v58 = vmul.f32 %v862_v48, %v471_v54  ;;  %v478_v59 = vmul.f32 %v864_v56, %v423_v22  ;;  %vm484_vm6 = vweird.f32 %v864_v56 }
 0x140   :  { %865 = vrsqrt.f32 %v426_v57  ;;  %vm485_vm8 = vmor %vm483_vm7, %vm484_vm6  ;;  %vm493_vm10 = vweird.f32 %v426_v57 }
 0x141   :  { %v476_v61 = vsel %vm475_vm5, %v862_v48, %v472_v58  ;;  %v479_v63 = vmul.f32 %v864_v56, %v478_v59 }
 0x142   :  { %v627_v0 = vmul.f32 %v476_v61, %v1130_v26 }
 0x143   :  { %v480_v1 = vmul.f32 0.5, %v479_v63 }
 0x144   :  { %643 = vst [vmem:[%s1309_s5] sm:$0xff] %v627_v0 }
 0x145   :  { %v481_v2 = vsub.f32 1.5, %v480_v1  ;;  %v428_v3 = vpop.f32.mrf.mxu2 }
 0x146   :  { %v866_v4 = vpop.eup %865  ;;  %v429_v6 = vadd.f32 %v1212_v43, %v428_v3 }
 0x147   :  { %v482_v8 = vmul.f32 %v864_v56, %v481_v2  ;;  %v488_v9 = vmul.f32 %v866_v4, %v426_v57  ;;  %vm494_vm9 = vweird.f32 %v866_v4 }
 0x148   :  { %867 = vrsqrt.f32 %v429_v6  ;;  %vm495_vm11 = vmor %vm493_vm10, %vm494_vm9  ;;  %vm503_vm13 = vweird.f32 %v429_v6 }
 0x149   :  { %v486_v10 = vsel %vm485_vm8, %v864_v56, %v482_v8  ;;  %v489_v11 = vmul.f32 %v866_v4, %v488_v9 }
 0x14a   :  { %v628_v26 = vmul.f32 %v486_v10, %v1135_v32 }
 0x14b   :  { %v490_v12 = vmul.f32 0.5, %v489_v11 }
 0x14c   :  { %644 = vst [vmem:[%s1309_s5 + $0x8] sm:$0xff] %v628_v26 }
 0x14d   :  { %v491_v13 = vsub.f32 1.5, %v490_v12  ;;  %v431_v15 = vpop.f32.mrf.mxu2 }
 0x14e   :  { %v868_v17 = vpop.eup %867  ;;  %v432_v18 = vadd.f32 %v1212_v43, %v431_v15  ;;  %v455_v19 = vpop.f32.mrf.mxu3 }
 0x14f   :  { %v492_v20 = vmul.f32 %v866_v4, %v491_v13  ;;  %v498_v21 = vmul.f32 %v868_v17, %v429_v6  ;;  %v456_v24 = vadd.f32 %v1212_v43, %v455_v19  ;;  %vm504_vm12 = vweird.f32 %v868_v17 }
 0x150   :  { %869 = vrsqrt.f32 %v432_v18  ;;  %vm505_vm14 = vmor %vm503_vm13, %vm504_vm12  ;;  %vm513_vm1 = vweird.f32 %v432_v18 }
 0x151   :  { %v496_v32 = vsel %vm495_vm11, %v866_v4, %v492_v20  ;;  %v499_v25 = vmul.f32 %v868_v17, %v498_v21  ;;  %871 = vrsqrt.f32 %v456_v24  ;;  %vm593_vm3 = vweird.f32 %v456_v24 }
 0x152   :  { %v629_v27 = vmul.f32 %v496_v32, %v1140_v38 }
 0x153   :  { %v500_v28 = vmul.f32 0.5, %v499_v25 }
 0x154   :  { %645 = vst [vmem:[%s1309_s5 + $0x10] sm:$0xff] %v629_v27 }
 0x155   :  { %v501_v30 = vsub.f32 1.5, %v500_v28  ;;  %v434_v31 = vpop.f32.mrf.mxu2 }
 0x156   :  { %v870_v33 = vpop.eup %869  ;;  %v435_v34 = vadd.f32 %v1212_v43, %v434_v31  ;;  %v458_v36 = vpop.f32.mrf.mxu3 }
 0x157   :  { %v872_v37 = vpop.eup %871  ;;  %v502_v39 = vmul.f32 %v868_v17, %v501_v30  ;;  %v508_v40 = vmul.f32 %v870_v33, %v432_v18  ;;  %v459_v42 = vadd.f32 %v1212_v43, %v458_v36  ;;  %vm514_vm15 = vweird.f32 %v870_v33 }
 0x158   :  { %v588_v38 = vmul.f32 %v872_v37, %v456_v24  ;;  %873 = vrsqrt.f32 %v435_v34  ;;  %vm594_vm0 = vweird.f32 %v872_v37  ;;  %vm515_vm2 = vmor %vm513_vm1, %vm514_vm15  ;;  %vm523_vm7 = vweird.f32 %v435_v34 }
 0x159   :  { %v506_v45 = vsel %vm505_vm14, %v868_v17, %v502_v39  ;;  %v509_v46 = vmul.f32 %v870_v33, %v508_v40  ;;  %875 = vrsqrt.f32 %v459_v42  ;;  %vm595_vm4 = vmor %vm593_vm3, %vm594_vm0  ;;  %vm603_vm9 = vweird.f32 %v459_v42 }
 0x15a   :  { %v630_v47 = vmul.f32 %v506_v45, %v1145_v44  ;;  %v589_v48 = vmul.f32 %v872_v37, %v588_v38 }
 0x15b   :  { %v510_v22 = vmul.f32 0.5, %v509_v46 }
 0x15c   :  { %646 = vst [vmem:[%s1309_s5 + $0x18] sm:$0xff] %v630_v47  ;;  %v590_v49 = vmul.f32 0.5, %v589_v48 }
 0x15d   :  { %v511_v50 = vsub.f32 1.5, %v510_v22  ;;  %v437_v52 = vpop.f32.mrf.mxu2 }
 0x15e   :  { %v874_v54 = vpop.eup %873  ;;  %v591_v55 = vsub.f32 1.5, %v590_v49  ;;  %v1239_v56 = vadd.f32 %v1212_v43, %v437_v52  ;;  %v461_v57 = vpop.f32.mrf.mxu3 }
 0x15f   :  { %v876_v58 = vpop.eup %875  ;;  %v512_v59 = vmul.f32 %v870_v33, %v511_v50  ;;  %v518_v44 = vmul.f32 %v874_v54, %v435_v34  ;;  %v1242_v61 = vadd.f32 %v1212_v43, %v461_v57  ;;  %vm524_vm5 = vweird.f32 %v874_v54 }
 0x160   :  { %v592_v63 = vmul.f32 %v872_v37, %v591_v55  ;;  %v598_v0 = vmul.f32 %v876_v58, %v459_v42  ;;  %877 = vrsqrt.f32 %v1239_v56  ;;  %vm604_vm6 = vweird.f32 %v876_v58  ;;  %vm525_vm8 = vmor %vm523_vm7, %vm524_vm5 }
 0x161   :  { %v516_v1 = vsel %vm515_vm2, %v870_v33, %v512_v59  ;;  %v519_v2 = vmul.f32 %v874_v54, %v518_v44  ;;  %879 = vrsqrt.f32 %v1242_v61  ;;  %vm605_vm10 = vmor %vm603_vm9, %vm604_vm6  ;;  %vm533_vm13 = vweird.f32 %v1239_v56 }
 0x162   :  { %v631_v3 = vmul.f32 %v516_v1, %v1151_v51  ;;  %v596_v4 = vsel %vm595_vm4, %v872_v37, %v592_v63  ;;  %v599_v6 = vmul.f32 %v876_v58, %v598_v0  ;;  %vm613_vm15 = vweird.f32 %v1242_v61 }
 0x163   :  { %v639_v8 = vmul.f32 %v596_v4, %v1153_v53  ;;  %v520_v9 = vmul.f32 0.5, %v519_v2 }
 0x164   :  { %647 = vst [vmem:[%s1309_s5 + $0x20] sm:$0xff] %v631_v3  ;;  %v600_v10 = vmul.f32 0.5, %v599_v6 }
 0x165   :  { %655 = vst [vmem:[%s1309_s5 + $0x60] sm:$0xff] %v639_v8  ;;  %v521_v11 = vsub.f32 1.5, %v520_v9  ;;  %v440_v26 = vpop.f32.mrf.mxu2 }
 0x166   :  { %v878_v12 = vpop.eup %877  ;;  %v601_v13 = vsub.f32 1.5, %v600_v10  ;;  %v441_v51 = vadd.f32 %v1212_v43, %v440_v26  ;;  %v464_v15 = vpop.f32.mrf.mxu3 }
 0x167   :  { %v880_v53 = vpop.eup %879  ;;  %v522_v17 = vmul.f32 %v874_v54, %v521_v11  ;;  %v528_v18 = vmul.f32 %v878_v12, %v1239_v56  ;;  %v465_v19 = vadd.f32 %v1212_v43, %v464_v15  ;;  %vm534_vm11 = vweird.f32 %v878_v12 }
 0x168   :  { %v602_v20 = vmul.f32 %v876_v58, %v601_v13  ;;  %v608_v21 = vmul.f32 %v880_v53, %v1242_v61  ;;  %881 = vrsqrt.f32 %v441_v51  ;;  %vm614_vm12 = vweird.f32 %v880_v53  ;;  %vm535_vm14 = vmor %vm533_vm13, %vm534_vm11 }
 0x169   :  { %v526_v24 = vsel %vm525_vm8, %v874_v54, %v522_v17  ;;  %v529_v32 = vmul.f32 %v878_v12, %v528_v18  ;;  %883 = vrsqrt.f32 %v465_v19  ;;  %vm615_vm0 = vmor %vm613_vm15, %vm614_vm12  ;;  %vm543_vm3 = vweird.f32 %v441_v51 }
 0x16a   :  { %v632_v25 = vmul.f32 %v526_v24, %v1161_v60  ;;  %v606_v27 = vsel %vm605_vm10, %v876_v58, %v602_v20  ;;  %v609_v28 = vmul.f32 %v880_v53, %v608_v21  ;;  %vm623_vm5 = vweird.f32 %v465_v19 }
 0x16b   :  { %v640_v30 = vmul.f32 %v606_v27, %v1163_v62  ;;  %v530_v31 = vmul.f32 0.5, %v529_v32 }
 0x16c   :  { %648 = vst [vmem:[%s1309_s5 + $0x28] sm:$0xff] %v632_v25  ;;  %v610_v33 = vmul.f32 0.5, %v609_v28 }
 0x16d   :  { %656 = vst [vmem:[%s1309_s5 + $0x68] sm:$0xff] %v640_v30  ;;  %v531_v34 = vsub.f32 1.5, %v530_v31  ;;  %v443_v36 = vpop.f32.mrf.mxu2 }
 0x16e   :  { %v882_v37 = vpop.eup %881  ;;  %v611_v39 = vsub.f32 1.5, %v610_v33  ;;  %v444_v60 = vadd.f32 %v1212_v43, %v443_v36 }
 0x16f   :  { %v884_v40 = vpop.eup %883  ;;  %v532_v62 = vmul.f32 %v878_v12, %v531_v34  ;;  %v538_v42 = vmul.f32 %v882_v37, %v441_v51  ;;  %vm544_vm1 = vweird.f32 %v882_v37 }
 0x170   :  { %v612_v38 = vmul.f32 %v880_v53, %v611_v39  ;;  %v618_v45 = vmul.f32 %v884_v40, %v465_v19  ;;  %885 = vrsqrt.f32 %v444_v60  ;;  %vm624_vm2 = vweird.f32 %v884_v40  ;;  %vm545_vm4 = vmor %vm543_vm3, %vm544_vm1 }
 0x171   :  { %v536_v46 = vsel %vm535_vm14, %v878_v12, %v532_v62  ;;  %v539_v47 = vmul.f32 %v882_v37, %v538_v42  ;;  %vm625_vm6 = vmor %vm623_vm5, %vm624_vm2  ;;  %vm553_vm8 = vweird.f32 %v444_v60 }
 0x172   :  { %v633_v48 = vmul.f32 %v536_v46, %v1171_v5  ;;  %v616_v22 = vsel %vm615_vm0, %v880_v53, %v612_v38  ;;  %v619_v49 = vmul.f32 %v884_v40, %v618_v45 }
 0x173   :  { %v641_v50 = vmul.f32 %v616_v22, %v1173_v7  ;;  %v540_v52 = vmul.f32 0.5, %v539_v47 }
 0x174   :  { %649 = vst [vmem:[%s1309_s5 + $0x30] sm:$0xff] %v633_v48  ;;  %v620_v54 = vmul.f32 0.5, %v619_v49 }
 0x175   :  { %657 = vst [vmem:[%s1309_s5 + $0x70] sm:$0xff] %v641_v50  ;;  %v541_v55 = vsub.f32 1.5, %v540_v52  ;;  %v446_v56 = vpop.f32.mrf.mxu2 }
 0x176   :  { %v886_v57 = vpop.eup %885  ;;  %v621_v58 = vsub.f32 1.5, %v620_v54  ;;  %v447_v5 = vadd.f32 %v1212_v43, %v446_v56 }
 0x177   :  { %v542_v59 = vmul.f32 %v882_v37, %v541_v55  ;;  %v548_v7 = vmul.f32 %v886_v57, %v444_v60  ;;  %vm554_vm7 = vweird.f32 %v886_v57 }
 0x178   :  { %v622_v44 = vmul.f32 %v884_v40, %v621_v58  ;;  %887 = vrsqrt.f32 %v447_v5  ;;  %vm555_vm9 = vmor %vm553_vm8, %vm554_vm7  ;;  %vm563_vm11 = vweird.f32 %v447_v5 }
 0x179   :  { %v546_v61 = vsel %vm545_vm4, %v882_v37, %v542_v59  ;;  %v549_v63 = vmul.f32 %v886_v57, %v548_v7 }
 0x17a   :  { %v634_v0 = vmul.f32 %v546_v61, %v1181_v14  ;;  %v626_v1 = vsel %vm625_vm6, %v884_v40, %v622_v44 }
 0x17b   :  { %v642_v2 = vmul.f32 %v626_v1, %v1183_v16  ;;  %v550_v3 = vmul.f32 0.5, %v549_v63 }
 0x17c   :  { %650 = vst [vmem:[%s1309_s5 + $0x38] sm:$0xff] %v634_v0 }
 0x17d   :  { %658 = vst [vmem:[%s1309_s5 + $0x78] sm:$0xff] %v642_v2  ;;  %v551_v4 = vsub.f32 1.5, %v550_v3  ;;  %v449_v6 = vpop.f32.mrf.mxu2 }
 0x17e   :  { %v888_v8 = vpop.eup %887  ;;  %v450_v9 = vadd.f32 %v1212_v43, %v449_v6 }
 0x17f   :  { %v552_v10 = vmul.f32 %v886_v57, %v551_v4  ;;  %v558_v14 = vmul.f32 %v888_v8, %v447_v5  ;;  %vm564_vm10 = vweird.f32 %v888_v8 }
 0x180   :  { %889 = vrsqrt.f32 %v450_v9  ;;  %vm565_vm12 = vmor %vm563_vm11, %vm564_vm10  ;;  %vm573_vm14 = vweird.f32 %v450_v9 }
 0x181   :  { %v556_v16 = vsel %vm555_vm9, %v886_v57, %v552_v10  ;;  %v559_v11 = vmul.f32 %v888_v8, %v558_v14 }
 0x182   :  { %v635_v26 = vmul.f32 %v556_v16, %v1190_v23 }
 0x183   :  { %v560_v12 = vmul.f32 0.5, %v559_v11 }
 0x184   :  { %651 = vst [vmem:[%s1309_s5 + $0x40] sm:$0xff] %v635_v26 }
 0x185   :  { %v561_v13 = vsub.f32 1.5, %v560_v12  ;;  %v452_v51 = vpop.f32.mrf.mxu2 }
 0x186   :  { %v890_v15 = vpop.eup %889  ;;  %v453_v53 = vadd.f32 %v1212_v43, %v452_v51 }
 0x187   :  { %v562_v17 = vmul.f32 %v888_v8, %v561_v13  ;;  %v568_v18 = vmul.f32 %v890_v15, %v450_v9  ;;  %vm574_vm13 = vweird.f32 %v890_v15 }
 0x188   :  { %891 = vrsqrt.f32 %v453_v53  ;;  %vm575_vm15 = vmor %vm573_vm14, %vm574_vm13  ;;  %vm583_vm1 = vweird.f32 %v453_v53 }
 0x189   :  { %v566_v19 = vsel %vm565_vm12, %v888_v8, %v562_v17  ;;  %v569_v20 = vmul.f32 %v890_v15, %v568_v18 }
 0x18a   :  { %v636_v23 = vmul.f32 %v566_v19, %v1195_v29 }
 0x18b   :  { %v570_v21 = vmul.f32 0.5, %v569_v20 }
 0x18c   :  { %652 = vst [vmem:[%s1309_s5 + $0x48] sm:$0xff] %v636_v23 }
 0x18d   :  { %v571_v24 = vsub.f32 1.5, %v570_v21 }
 0x18e   :  { %v892_v32 = vpop.eup %891 }
 0x18f   :  { %v572_v25 = vmul.f32 %v890_v15, %v571_v24  ;;  %v578_v43 = vmul.f32 %v892_v32, %v453_v53  ;;  %vm584_vm0 = vweird.f32 %v892_v32 }
 0x190   :  { %vm585_vm2 = vmor %vm583_vm1, %vm584_vm0 }
 0x191   :  { %v576_v27 = vsel %vm575_vm15, %v890_v15, %v572_v25  ;;  %v579_v28 = vmul.f32 %v892_v32, %v578_v43 }
 0x192   :  { %v637_v30 = vmul.f32 %v576_v27, %v1200_v35 }
 0x193   :  { %v580_v31 = vmul.f32 0.5, %v579_v28 }
 0x194   :  { %653 = vst [vmem:[%s1309_s5 + $0x50] sm:$0xff] %v637_v30 }
 0x195   :  { %v581_v29 = vsub.f32 1.5, %v580_v31 }
 0x197   :  { %v582_v33 = vmul.f32 %v892_v32, %v581_v29 }
 0x199   :  { %v586_v34 = vsel %vm585_vm2, %v892_v32, %v582_v33 }
 0x19a   :  { %v638_v36 = vmul.f32 %v586_v34, %v1205_v41 }
 0x19c   :  { %654 = vst [vmem:[%s1309_s5 + $0x58] sm:$0xff] %v638_v36 }

// kernel: image_compressor_forward.30
= control target key start
LH: loop header
LB: loop body
LE: loop exit
PB: predicated region body
PF: predicated region fallthrough
CT: control target
= control target key end

     0   :  { %s4888_s1 = inlined_call_operand.vmem [shape: bf16[3200,128], index: 1, kind: input, shape index: {}]   ;;  %s4889_s0 = inlined_call_operand.vmem [shape: bf16[32,3200], index: 0, kind: input, shape index: {}]   ;;  %s4890_s2 = inlined_call_operand.vmem [shape: f32[1,128], index: 2, kind: input, shape index: {}]   ;;  %s4891_s4 = inlined_call_operand.vmem [shape: f32[1,128], index: 4, kind: input, shape index: {}]   ;;  %s4892_s3 = inlined_call_operand.vmem [shape: f32[128,128], index: 3, kind: input, shape index: {}]   ;;  %s4893_s5 = inlined_call_operand.vmem [shape: f32[32,128], index: 5, kind: output, shape index: {}]  }
   0x1   :  { %v3565_v0 = vld [vmem:[%s4888_s1 + $0x38] sm:$0xff]  ;;  %v3564_v4 = vld [vmem:[%s4888_s1 + $0x30] sm:$0xff]  ;;  %v3563_v8 = vld [vmem:[%s4888_s1 + $0x28] sm:$0xff] }
   0x2   :  { %v3581_v1 = vld [vmem:[%s4888_s1 + $0xb8] sm:$0xff]  ;;  %1928 = vmatpush.bf16.msra.mxu0 %v3565_v0  ;;  %v3580_v5 = vld [vmem:[%s4888_s1 + $0xb0] sm:$0xff]  ;;  %v3579_v9 = vld [vmem:[%s4888_s1 + $0xa8] sm:$0xff] }
   0x3   :  { %v3573_v2 = vld [vmem:[%s4888_s1 + $0x78] sm:$0xff]  ;;  %1966 = vmatpush.bf16.msra.mxu2 %v3581_v1  ;;  %v3572_v6 = vld [vmem:[%s4888_s1 + $0x70] sm:$0xff]  ;;  %v3571_v10 = vld [vmem:[%s4888_s1 + $0x68] sm:$0xff] }
   0x4   :  { %v3589_v3 = vld [vmem:[%s4888_s1 + $0xf8] sm:$0xff]  ;;  %1947 = vmatpush.bf16.msra.mxu1 %v3573_v2  ;;  %v3588_v7 = vld [vmem:[%s4888_s1 + $0xf0] sm:$0xff]  ;;  %v3587_v11 = vld [vmem:[%s4888_s1 + $0xe8] sm:$0xff] }
   0x5   :  { %1985 = vmatpush.bf16.msra.mxu3 %v3589_v3  ;;  %v3562_v12 = vld [vmem:[%s4888_s1 + $0x20] sm:$0xff]  ;;  %v3561_v16 = vld [vmem:[%s4888_s1 + $0x18] sm:$0xff]  ;;  %v3560_v20 = vld [vmem:[%s4888_s1 + $0x10] sm:$0xff] }
   0x6   :  { %1929 = vmatpush.bf16.msra.mxu0 %v3564_v4  ;;  %v3578_v13 = vld [vmem:[%s4888_s1 + $0xa0] sm:$0xff]  ;;  %v3577_v17 = vld [vmem:[%s4888_s1 + $0x98] sm:$0xff]  ;;  %v3576_v21 = vld [vmem:[%s4888_s1 + $0x90] sm:$0xff] }
   0x7   :  { %1967 = vmatpush.bf16.msra.mxu2 %v3580_v5  ;;  %v3570_v14 = vld [vmem:[%s4888_s1 + $0x60] sm:$0xff]  ;;  %v3569_v18 = vld [vmem:[%s4888_s1 + $0x58] sm:$0xff]  ;;  %v3568_v22 = vld [vmem:[%s4888_s1 + $0x50] sm:$0xff] }
   0x8   :  { %1948 = vmatpush.bf16.msra.mxu1 %v3572_v6  ;;  %v3586_v15 = vld [vmem:[%s4888_s1 + $0xe0] sm:$0xff]  ;;  %v3585_v19 = vld [vmem:[%s4888_s1 + $0xd8] sm:$0xff]  ;;  %v3584_v23 = vld [vmem:[%s4888_s1 + $0xd0] sm:$0xff] }
   0x9   :  { %1986 = vmatpush.bf16.msra.mxu3 %v3588_v7  ;;  %v3559_v24 = vld [vmem:[%s4888_s1 + $0x8] sm:$0xff]  ;;  %v3558_v28 = vld [vmem:[%s4888_s1] sm:$0xff]  ;;  %v2520_v39 = vld [vmem:[%s4889_s0 + $0x6c] sm:$0xf0] }
   0xa   :  { %1930 = vmatpush.bf16.msra.mxu0 %v3563_v8  ;;  %v3575_v25 = vld [vmem:[%s4888_s1 + $0x88] sm:$0xff]  ;;  %v3574_v29 = vld [vmem:[%s4888_s1 + $0x80] sm:$0xff]  ;;  %v3613_v40 = vld [vmem:[%s4888_s1 + $0x1b8] sm:$0xff] }
   0xb   :  { %1968 = vmatpush.bf16.msra.mxu2 %v3579_v9  ;;  %v3567_v26 = vld [vmem:[%s4888_s1 + $0x48] sm:$0xff]  ;;  %v3566_v30 = vld [vmem:[%s4888_s1 + $0x40] sm:$0xff]  ;;  %v3597_v41 = vld [vmem:[%s4888_s1 + $0x138] sm:$0xff] }
   0xc   :  { %1949 = vmatpush.bf16.msra.mxu1 %v3571_v10  ;;  %v3583_v27 = vld [vmem:[%s4888_s1 + $0xc8] sm:$0xff]  ;;  %v3582_v31 = vld [vmem:[%s4888_s1 + $0xc0] sm:$0xff]  ;;  %v3605_v46 = vld [vmem:[%s4888_s1 + $0x178] sm:$0xff] }
   0xd   :  { %1987 = vmatpush.bf16.msra.mxu3 %v3587_v11  ;;  %v2510_v32 = vld [vmem:[%s4889_s0] sm:$0xf]  ;;  %v3520_v33 = vld [vmem:[%s4889_s0 + $0x60] sm:$0xf0]  ;;  %v2518_v34 = vld [vmem:[%s4889_s0 + $0x8] sm:$0xf] }
   0xe   :  { %1931 = vmatpush.bf16.msra.mxu0 %v3562_v12  ;;  %v3521_v35 = vld [vmem:[%s4889_s0 + $0x68] sm:$0xf0]  ;;  %v3508_v36 = vld [vmem:[%s4889_s0 + $0x4] sm:$0xf]  ;;  %v2512_v37 = vld [vmem:[%s4889_s0 + $0x64] sm:$0xf0]  ;;  %v2511_v42 = vor.u32 %v3520_v33, %v2510_v32 }
   0xf   :  { %1969 = vmatpush.bf16.msra.mxu2 %v3578_v13  ;;  %v3509_v38 = vld [vmem:[%s4889_s0 + $0xc] sm:$0xf]  ;;  %v2519_v43 = vor.u32 %v3521_v35, %v2518_v34  ;;  %v2515_v44 = vor.u32 %v3508_v36, %v2512_v37  ;;  %v3621_v47 = vld [vmem:[%s4888_s1 + $0x1f8] sm:$0xff]  ;;  %v3612_v48 = vld [vmem:[%s4888_s1 + $0x1b0] sm:$0xff] }
  0x10   :  { %1950 = vmatpush.bf16.msra.mxu1 %v3570_v14  ;;  %v2523_v45 = vor.u32 %v3509_v38, %v2520_v39  ;;  %v3596_v49 = vld [vmem:[%s4888_s1 + $0x130] sm:$0xff]  ;;  %v3611_v52 = vld [vmem:[%s4888_s1 + $0x1a8] sm:$0xff]  ;;  %v3610_v56 = vld [vmem:[%s4888_s1 + $0x1a0] sm:$0xff] }
  0x11   :  { %1988 = vmatpush.bf16.msra.mxu3 %v3586_v15  ;;  %v3604_v50 = vld [vmem:[%s4888_s1 + $0x170] sm:$0xff]  ;;  %v3595_v53 = vld [vmem:[%s4888_s1 + $0x128] sm:$0xff]  ;;  %v3594_v57 = vld [vmem:[%s4888_s1 + $0x120] sm:$0xff] }
  0x12   :  { %1932 = vmatpush.bf16.msra.mxu0 %v3561_v16  ;;  %v3620_v51 = vld [vmem:[%s4888_s1 + $0x1f0] sm:$0xff]  ;;  %v3603_v54 = vld [vmem:[%s4888_s1 + $0x168] sm:$0xff]  ;;  %v3602_v58 = vld [vmem:[%s4888_s1 + $0x160] sm:$0xff] }
  0x13   :  { %1970 = vmatpush.bf16.msra.mxu2 %v3577_v17  ;;  %v3619_v55 = vld [vmem:[%s4888_s1 + $0x1e8] sm:$0xff]  ;;  %v3618_v59 = vld [vmem:[%s4888_s1 + $0x1e0] sm:$0xff]  ;;  %v2618_v62 = vld [vmem:[%s4889_s0 + $0xd0] sm:$0xf] }
  0x14   :  { %1951 = vmatpush.bf16.msra.mxu1 %v3569_v18  ;;  %v2610_v60 = vld [vmem:[%s4889_s0 + $0xc8] sm:$0xf]  ;;  %v3545_v61 = vld [vmem:[%s4889_s0 + $0x128] sm:$0xf0]  ;;  %v3546_v63 = vld [vmem:[%s4889_s0 + $0x130] sm:$0xf0] }
  0x15   :  { %1989 = vmatpush.bf16.msra.mxu3 %v3585_v19  ;;  %v3533_v0 = vld [vmem:[%s4889_s0 + $0xcc] sm:$0xf]  ;;  %v2612_v1 = vld [vmem:[%s4889_s0 + $0x12c] sm:$0xf0]  ;;  %v3534_v2 = vld [vmem:[%s4889_s0 + $0xd4] sm:$0xf]  ;;  %v2611_v6 = vor.u32 %v3545_v61, %v2610_v60  ;;  %v2619_v7 = vor.u32 %v3546_v63, %v2618_v62 }
  0x16   :  { %1933 = vmatpush.bf16.msra.mxu0 %v3560_v20  ;;  %v2620_v3 = vld [vmem:[%s4889_s0 + $0x134] sm:$0xf0]  ;;  %v2615_v8 = vor.u32 %v3533_v0, %v2612_v1  ;;  %v3608_v12 = vld [vmem:[%s4888_s1 + $0x190] sm:$0xff]  ;;  %v3607_v16 = vld [vmem:[%s4888_s1 + $0x188] sm:$0xff] }
  0x17   :  { %1971 = vmatpush.bf16.msra.mxu2 %v3576_v21  ;;  %v3609_v4 = vld [vmem:[%s4888_s1 + $0x198] sm:$0xff]  ;;  %v2623_v9 = vor.u32 %v3534_v2, %v2620_v3  ;;  %v3592_v13 = vld [vmem:[%s4888_s1 + $0x110] sm:$0xff]  ;;  %v3591_v17 = vld [vmem:[%s4888_s1 + $0x108] sm:$0xff] }
  0x18   :  { %1952 = vmatpush.bf16.msra.mxu1 %v3568_v22  ;;  %v3593_v5 = vld [vmem:[%s4888_s1 + $0x118] sm:$0xff]  ;;  %v3600_v14 = vld [vmem:[%s4888_s1 + $0x150] sm:$0xff]  ;;  %v3599_v18 = vld [vmem:[%s4888_s1 + $0x148] sm:$0xff] }
  0x19   :  { %1990 = vmatpush.bf16.msra.mxu3 %v3584_v23  ;;  %v3601_v10 = vld [vmem:[%s4888_s1 + $0x158] sm:$0xff]  ;;  %v3616_v15 = vld [vmem:[%s4888_s1 + $0x1d0] sm:$0xff]  ;;  %v3615_v19 = vld [vmem:[%s4888_s1 + $0x1c8] sm:$0xff] }
  0x1a   :  { %1934 = vmatpush.bf16.msra.mxu0 %v3559_v24  ;;  %v3617_v11 = vld [vmem:[%s4888_s1 + $0x1d8] sm:$0xff]  ;;  %v3606_v20 = vld [vmem:[%s4888_s1 + $0x180] sm:$0xff]  ;;  %v2526_v22 = vld [vmem:[%s4889_s0 + $0x10] sm:$0xf] }
  0x1b   :  { %1972 = vmatpush.bf16.msra.mxu2 %v3575_v25  ;;  %v3590_v21 = vld [vmem:[%s4888_s1 + $0x100] sm:$0xff]  ;;  %v3522_v25 = vld [vmem:[%s4889_s0 + $0x70] sm:$0xf0]  ;;  %v3511_v32 = vld [vmem:[%s4889_s0 + $0x1c] sm:$0xf] }
  0x1c   :  { %1953 = vmatpush.bf16.msra.mxu1 %v3567_v26  ;;  %v3598_v23 = vld [vmem:[%s4888_s1 + $0x140] sm:$0xff]  ;;  %v3645_v26 = vld [vmem:[%s4888_s1 + $0x2b8] sm:$0xff]  ;;  %v2527_v36 = vor.u32 %v3522_v25, %v2526_v22  ;;  %v2636_v61 = vld [vmem:[%s4889_s0 + $0x144] sm:$0xf0] }
  0x1d   :  { %1991 = vmatpush.bf16.msra.mxu3 %v3583_v27  ;;  %v3614_v24 = vld [vmem:[%s4888_s1 + $0x1c0] sm:$0xff]  ;;  %v3629_v27 = vld [vmem:[%s4888_s1 + $0x238] sm:$0xff]  ;;  %v2544_v25 = vld [vmem:[%s4889_s0 + $0x84] sm:$0xf0] }
  0x1e   :  { %1935 = vmatpush.bf16.msra.mxu0 %v3558_v28  ;;  %v2534_v28 = vld [vmem:[%s4889_s0 + $0x18] sm:$0xf]  ;;  %v2536_v33 = vld [vmem:[%s4889_s0 + $0x7c] sm:$0xf0]  ;;  %v3536_v60 = vld [vmem:[%s4889_s0 + $0xe4] sm:$0xf] }
  0x1f   :  { %1973 = vmatpush.bf16.msra.mxu2 %v3574_v29  ;;  %v3523_v29 = vld [vmem:[%s4889_s0 + $0x78] sm:$0xf0]  ;;  %v2539_v39 = vor.u32 %v3511_v32, %v2536_v33  ;;  %v2639_v3 = vor.u32 %v3536_v60, %v2636_v61  ;;  %v3512_v22 = vld [vmem:[%s4889_s0 + $0x24] sm:$0xf]  ;;  %v3676_v32 = vld [vmem:[%s4888_s1 + $0x3b0] sm:$0xff] }
  0x20   :  { %1954 = vmatpush.bf16.msra.mxu1 %v3566_v30  ;;  %v3510_v30 = vld [vmem:[%s4889_s0 + $0x14] sm:$0xf]  ;;  %v3637_v34 = vld [vmem:[%s4888_s1 + $0x278] sm:$0xff]  ;;  %v2535_v37 = vor.u32 %v3523_v29, %v2534_v28 }
  0x21   :  { %1992 = vmatpush.bf16.msra.mxu3 %v3582_v31  ;;  %1936 = vmatmul.bf16.vlgmr.msra.gmra.mxu0 %v2511_v42  ;;  %v2528_v31 = vld [vmem:[%s4889_s0 + $0x74] sm:$0xf0]  ;;  %v3636_v42 = vld [vmem:[%s4888_s1 + $0x270] sm:$0xff] }
  0x22   :  { %2004 = vmatpush.bf16.msrb.mxu0 %v3597_v41  ;;  %1974 = vmatmul.bf16.vlgmr.msra.gmra.mxu2 %v2519_v43  ;;  %v3653_v35 = vld [vmem:[%s4888_s1 + $0x2f8] sm:$0xff]  ;;  %v2531_v38 = vor.u32 %v3510_v30, %v2528_v31  ;;  %v3628_v41 = vld [vmem:[%s4888_s1 + $0x230] sm:$0xff]  ;;  %v2547_v30 = vor.u32 %v3512_v22, %v2544_v25 }
  0x23   :  { %2042 = vmatpush.bf16.msrb.mxu2 %v3613_v40  ;;  %1955 = vmatmul.bf16.vlgmr.msra.gmra.mxu1 %v2515_v44  ;;  %v3644_v40 = vld [vmem:[%s4888_s1 + $0x2b0] sm:$0xff]  ;;  %v3643_v44 = vld [vmem:[%s4888_s1 + $0x2a8] sm:$0xff]  ;;  %v3633_v62 = vld [vmem:[%s4888_s1 + $0x258] sm:$0xff] }
  0x24   :  { %1993 = vmatmul.bf16.vlgmr.msra.gmra.mxu3 %v2523_v45  ;;  %2023 = vmatpush.bf16.msrb.mxu1 %v3605_v46  ;;  %v3652_v43 = vld [vmem:[%s4888_s1 + $0x2f0] sm:$0xff]  ;;  %v3627_v45 = vld [vmem:[%s4888_s1 + $0x228] sm:$0xff]  ;;  %v3649_v63 = vld [vmem:[%s4888_s1 + $0x2d8] sm:$0xff] }
  0x25   :  { %2061 = vmatpush.bf16.msrb.mxu3 %v3621_v47  ;;  %v3635_v46 = vld [vmem:[%s4888_s1 + $0x268] sm:$0xff]  ;;  %v3660_v33 = vld [vmem:[%s4888_s1 + $0x330] sm:$0xff] }
  0x26   :  { %2005 = vmatpush.bf16.msrb.mxu0 %v3596_v49  ;;  %v3651_v47 = vld [vmem:[%s4888_s1 + $0x2e8] sm:$0xff]  ;;  %v3626_v49 = vld [vmem:[%s4888_s1 + $0x220] sm:$0xff]  ;;  %v3672_v60 = vld [vmem:[%s4888_s1 + $0x390] sm:$0xff] }
  0x27   :  { %2043 = vmatpush.bf16.msrb.mxu2 %v3612_v48  ;;  %v3642_v48 = vld [vmem:[%s4888_s1 + $0x2a0] sm:$0xff]  ;;  %v3656_v61 = vld [vmem:[%s4888_s1 + $0x310] sm:$0xff] }
  0x28   :  { %2024 = vmatpush.bf16.msrb.mxu1 %v3604_v50  ;;  %v3634_v50 = vld [vmem:[%s4888_s1 + $0x260] sm:$0xff]  ;;  %v3692_v25 = vld [vmem:[%s4888_s1 + $0x430] sm:$0xff] }
  0x29   :  { %2062 = vmatpush.bf16.msrb.mxu3 %v3620_v51  ;;  %v3650_v51 = vld [vmem:[%s4888_s1 + $0x2e0] sm:$0xff] }
  0x2a   :  { %2006 = vmatpush.bf16.msrb.mxu0 %v3595_v53  ;;  %v3547_v53 = vld [vmem:[%s4889_s0 + $0x138] sm:$0xf0] }
  0x2b   :  { %2044 = vmatpush.bf16.msrb.mxu2 %v3611_v52  ;;  %v2626_v52 = vld [vmem:[%s4889_s0 + $0xd8] sm:$0xf] }
  0x2c   :  { %2025 = vmatpush.bf16.msrb.mxu1 %v3603_v54  ;;  %v2634_v54 = vld [vmem:[%s4889_s0 + $0xe0] sm:$0xf]  ;;  %v2627_v0 = vor.u32 %v3547_v53, %v2626_v52  ;;  %v3538_v52 = vld [vmem:[%s4889_s0 + $0xf4] sm:$0xf]  ;;  %v2652_v53 = vld [vmem:[%s4889_s0 + $0x154] sm:$0xf0] }
  0x2d   :  { %2063 = vmatpush.bf16.msrb.mxu3 %v3619_v55  ;;  %v3548_v55 = vld [vmem:[%s4889_s0 + $0x140] sm:$0xf0] }
  0x2e   :  { %2007 = vmatpush.bf16.msrb.mxu0 %v3594_v57  ;;  %v3625_v57 = vld [vmem:[%s4888_s1 + $0x218] sm:$0xff]  ;;  %v2635_v1 = vor.u32 %v3548_v55, %v2634_v54 }
  0x2f   :  { %2045 = vmatpush.bf16.msrb.mxu2 %v3610_v56  ;;  %v3641_v56 = vld [vmem:[%s4888_s1 + $0x298] sm:$0xff] }
  0x30   :  { %2026 = vmatpush.bf16.msrb.mxu1 %v3602_v58  ;;  %v3535_v58 = vld [vmem:[%s4889_s0 + $0xdc] sm:$0xf] }
  0x31   :  { %2064 = vmatpush.bf16.msrb.mxu3 %v3618_v59  ;;  %1941 = vmatmul.bf16.gmra.mxu0 %v2611_v6  ;;  %v2628_v59 = vld [vmem:[%s4889_s0 + $0x13c] sm:$0xf0]  ;;  %v3632_v6 = vld [vmem:[%s4888_s1 + $0x250] sm:$0xff]  ;;  %v3665_v54 = vld [vmem:[%s4888_s1 + $0x358] sm:$0xff] }
  0x32   :  { %2008 = vmatpush.bf16.msrb.mxu0 %v3593_v5  ;;  %1979 = vmatmul.bf16.gmra.mxu2 %v2619_v7  ;;  %v2631_v2 = vor.u32 %v3535_v58, %v2628_v59  ;;  %v3624_v5 = vld [vmem:[%s4888_s1 + $0x210] sm:$0xff]  ;;  %v3681_v55 = vld [vmem:[%s4888_s1 + $0x3d8] sm:$0xff]  ;;  %v2655_v59 = vor.u32 %v3538_v52, %v2652_v53 }
  0x33   :  { %2046 = vmatpush.bf16.msrb.mxu2 %v3609_v4  ;;  %1960 = vmatmul.bf16.gmra.mxu1 %v2615_v8  ;;  %v3640_v4 = vld [vmem:[%s4888_s1 + $0x290] sm:$0xff]  ;;  %v3639_v8 = vld [vmem:[%s4888_s1 + $0x288] sm:$0xff] }
  0x34   :  { %1998 = vmatmul.bf16.gmra.mxu3 %v2623_v9  ;;  %2027 = vmatpush.bf16.msrb.mxu1 %v3601_v10  ;;  %v3648_v7 = vld [vmem:[%s4888_s1 + $0x2d0] sm:$0xff]  ;;  %v3623_v9 = vld [vmem:[%s4888_s1 + $0x208] sm:$0xff] }
  0x35   :  { %2065 = vmatpush.bf16.msrb.mxu3 %v3617_v11  ;;  %v3631_v10 = vld [vmem:[%s4888_s1 + $0x248] sm:$0xff]  ;;  %v3704_v52 = vld [vmem:[%s4888_s1 + $0x490] sm:$0xff] }
  0x36   :  { %2009 = vmatpush.bf16.msrb.mxu0 %v3592_v13  ;;  %v3647_v11 = vld [vmem:[%s4888_s1 + $0x2c8] sm:$0xff]  ;;  %v3622_v13 = vld [vmem:[%s4888_s1 + $0x200] sm:$0xff]  ;;  %v3688_v53 = vld [vmem:[%s4888_s1 + $0x410] sm:$0xff] }
  0x37   :  { %2047 = vmatpush.bf16.msrb.mxu2 %v3608_v12  ;;  %v3638_v12 = vld [vmem:[%s4888_s1 + $0x280] sm:$0xff] }
  0x38   :  { %2028 = vmatpush.bf16.msrb.mxu1 %v3600_v14  ;;  %v3630_v14 = vld [vmem:[%s4888_s1 + $0x240] sm:$0xff] }
  0x39   :  { %2066 = vmatpush.bf16.msrb.mxu3 %v3616_v15  ;;  %v3646_v15 = vld [vmem:[%s4888_s1 + $0x2c0] sm:$0xff] }
  0x3a   :  { %2010 = vmatpush.bf16.msrb.mxu0 %v3591_v17  ;;  %v3524_v17 = vld [vmem:[%s4889_s0 + $0x80] sm:$0xf0] }
  0x3b   :  { %2048 = vmatpush.bf16.msrb.mxu2 %v3607_v16  ;;  %v2542_v16 = vld [vmem:[%s4889_s0 + $0x20] sm:$0xf] }
  0x3c   :  { %2029 = vmatpush.bf16.msrb.mxu1 %v3599_v18  ;;  %v2550_v18 = vld [vmem:[%s4889_s0 + $0x28] sm:$0xf]  ;;  %v2543_v28 = vor.u32 %v3524_v17, %v2542_v16  ;;  %v3717_v16 = vld [vmem:[%s4888_s1 + $0x4f8] sm:$0xff] }
  0x3d   :  { %2067 = vmatpush.bf16.msrb.mxu3 %v3615_v19  ;;  %v3525_v19 = vld [vmem:[%s4889_s0 + $0x88] sm:$0xf0]  ;;  %v2560_v17 = vld [vmem:[%s4889_s0 + $0x94] sm:$0xf0] }
  0x3e   :  { %2011 = vmatpush.bf16.msrb.mxu0 %v3590_v21  ;;  %v3661_v21 = vld [vmem:[%s4888_s1 + $0x338] sm:$0xff]  ;;  %v2551_v29 = vor.u32 %v3525_v19, %v2550_v18  ;;  %v2568_v19 = vld [vmem:[%s4889_s0 + $0x9c] sm:$0xf0] }
  0x3f   :  { %2049 = vmatpush.bf16.msrb.mxu2 %v3606_v20  ;;  %v3677_v20 = vld [vmem:[%s4888_s1 + $0x3b8] sm:$0xff] }
  0x40   :  { %2030 = vmatpush.bf16.msrb.mxu1 %v3598_v23  ;;  %v3669_v23 = vld [vmem:[%s4888_s1 + $0x378] sm:$0xff] }
  0x41   :  { %2068 = vmatpush.bf16.msrb.mxu3 %v3614_v24  ;;  %2012 = vmatmul.bf16.vlgmr.msrb.gmra.mxu0 %v2527_v36  ;;  %v3685_v24 = vld [vmem:[%s4888_s1 + $0x3f8] sm:$0xff]  ;;  %v3675_v36 = vld [vmem:[%s4888_s1 + $0x3a8] sm:$0xff] }
  0x42   :  { %2080 = vmatpush.bf16.msra.mxu0 %v3629_v27  ;;  %2050 = vmatmul.bf16.vlgmr.msrb.gmra.mxu2 %v2535_v37  ;;  %v2552_v27 = vld [vmem:[%s4889_s0 + $0x8c] sm:$0xf0]  ;;  %v3659_v37 = vld [vmem:[%s4888_s1 + $0x328] sm:$0xff]  ;;  %v3515_v18 = vld [vmem:[%s4889_s0 + $0x3c] sm:$0xf] }
  0x43   :  { %2118 = vmatpush.bf16.msra.mxu2 %v3645_v26  ;;  %2031 = vmatmul.bf16.vlgmr.msrb.gmra.mxu1 %v2531_v38  ;;  %v3513_v26 = vld [vmem:[%s4889_s0 + $0x2c] sm:$0xf] }
  0x44   :  { %2099 = vmatpush.bf16.msra.mxu1 %v3637_v34  ;;  %2069 = vmatmul.bf16.vlgmr.msrb.gmra.mxu3 %v2539_v39  ;;  %v2555_v31 = vor.u32 %v3513_v26, %v2552_v27  ;;  %v3668_v34 = vld [vmem:[%s4888_s1 + $0x370] sm:$0xff]  ;;  %v3667_v38 = vld [vmem:[%s4888_s1 + $0x368] sm:$0xff] }
  0x45   :  { %2137 = vmatpush.bf16.msra.mxu3 %v3653_v35  ;;  %v3684_v35 = vld [vmem:[%s4888_s1 + $0x3f0] sm:$0xff]  ;;  %v3683_v39 = vld [vmem:[%s4888_s1 + $0x3e8] sm:$0xff] }
  0x46   :  { %2081 = vmatpush.bf16.msra.mxu0 %v3628_v41  ;;  %v3658_v41 = vld [vmem:[%s4888_s1 + $0x320] sm:$0xff]  ;;  %v3700_v26 = vld [vmem:[%s4888_s1 + $0x470] sm:$0xff] }
  0x47   :  { %2119 = vmatpush.bf16.msra.mxu2 %v3644_v40  ;;  %v3674_v40 = vld [vmem:[%s4888_s1 + $0x3a0] sm:$0xff]  ;;  %v3716_v27 = vld [vmem:[%s4888_s1 + $0x4f0] sm:$0xff] }
  0x48   :  { %2100 = vmatpush.bf16.msra.mxu1 %v3636_v42  ;;  %v3666_v42 = vld [vmem:[%s4888_s1 + $0x360] sm:$0xff] }
  0x49   :  { %2138 = vmatpush.bf16.msra.mxu3 %v3652_v43  ;;  %v3682_v43 = vld [vmem:[%s4888_s1 + $0x3e0] sm:$0xff] }
  0x4a   :  { %2082 = vmatpush.bf16.msra.mxu0 %v3627_v45  ;;  %v3549_v45 = vld [vmem:[%s4889_s0 + $0x148] sm:$0xf0] }
  0x4b   :  { %2120 = vmatpush.bf16.msra.mxu2 %v3643_v44  ;;  %v2642_v44 = vld [vmem:[%s4889_s0 + $0xe8] sm:$0xf] }
  0x4c   :  { %2101 = vmatpush.bf16.msra.mxu1 %v3635_v46  ;;  %v2650_v46 = vld [vmem:[%s4889_s0 + $0xf0] sm:$0xf] }
  0x4d   :  { %2139 = vmatpush.bf16.msra.mxu3 %v3651_v47  ;;  %v3550_v47 = vld [vmem:[%s4889_s0 + $0x150] sm:$0xf0] }
  0x4e   :  { %2083 = vmatpush.bf16.msra.mxu0 %v3626_v49  ;;  %v3657_v49 = vld [vmem:[%s4888_s1 + $0x318] sm:$0xff] }
  0x4f   :  { %2121 = vmatpush.bf16.msra.mxu2 %v3642_v48  ;;  %v3673_v48 = vld [vmem:[%s4888_s1 + $0x398] sm:$0xff] }
  0x50   :  { %2102 = vmatpush.bf16.msra.mxu1 %v3634_v50  ;;  %v3537_v50 = vld [vmem:[%s4889_s0 + $0xec] sm:$0xf] }
  0x51   :  { %2140 = vmatpush.bf16.msra.mxu3 %v3650_v51  ;;  %2017 = vmatmul.bf16.gmra.mxu0 %v2627_v0  ;;  %v2644_v51 = vld [vmem:[%s4889_s0 + $0x14c] sm:$0xf0]  ;;  %v3671_v0 = vld [vmem:[%s4888_s1 + $0x388] sm:$0xff] }
  0x52   :  { %2084 = vmatpush.bf16.msra.mxu0 %v3625_v57  ;;  %2055 = vmatmul.bf16.gmra.mxu2 %v2635_v1  ;;  %v2651_v57 = vor.u32 %v3550_v47, %v2650_v46  ;;  %v2647_v58 = vor.u32 %v3537_v50, %v2644_v51  ;;  %v3655_v1 = vld [vmem:[%s4888_s1 + $0x308] sm:$0xff]  ;;  %v3697_v46 = vld [vmem:[%s4888_s1 + $0x458] sm:$0xff] }
  0x53   :  { %2122 = vmatpush.bf16.msra.mxu2 %v3641_v56  ;;  %2036 = vmatmul.bf16.gmra.mxu1 %v2631_v2  ;;  %v2643_v56 = vor.u32 %v3549_v45, %v2642_v44  ;;  %v3663_v2 = vld [vmem:[%s4888_s1 + $0x348] sm:$0xff]  ;;  %v3540_v44 = vld [vmem:[%s4889_s0 + $0x104] sm:$0xf]  ;;  %v3713_v47 = vld [vmem:[%s4888_s1 + $0x4d8] sm:$0xff] }
  0x54   :  { %2103 = vmatpush.bf16.msra.mxu1 %v3633_v62  ;;  %2074 = vmatmul.bf16.gmra.mxu3 %v2639_v3  ;;  %v3664_v62 = vld [vmem:[%s4888_s1 + $0x350] sm:$0xff]  ;;  %v3679_v3 = vld [vmem:[%s4888_s1 + $0x3c8] sm:$0xff] }
  0x55   :  { %2141 = vmatpush.bf16.msra.mxu3 %v3649_v63  ;;  %v3680_v63 = vld [vmem:[%s4888_s1 + $0x3d0] sm:$0xff]  ;;  %v2668_v45 = vld [vmem:[%s4889_s0 + $0x164] sm:$0xf0] }
  0x56   :  { %2085 = vmatpush.bf16.msra.mxu0 %v3624_v5  ;;  %v3654_v5 = vld [vmem:[%s4888_s1 + $0x300] sm:$0xff]  ;;  %v2671_v51 = vor.u32 %v3540_v44, %v2668_v45  ;;  %v3737_v44 = vld [vmem:[%s4888_s1 + $0x598] sm:$0xff] }
  0x57   :  { %2123 = vmatpush.bf16.msra.mxu2 %v3640_v4  ;;  %v3670_v4 = vld [vmem:[%s4888_s1 + $0x380] sm:$0xff]  ;;  %v3721_v45 = vld [vmem:[%s4888_s1 + $0x518] sm:$0xff] }
  0x58   :  { %2104 = vmatpush.bf16.msra.mxu1 %v3632_v6  ;;  %v3662_v6 = vld [vmem:[%s4888_s1 + $0x340] sm:$0xff] }
  0x59   :  { %2142 = vmatpush.bf16.msra.mxu3 %v3648_v7  ;;  %v3678_v7 = vld [vmem:[%s4888_s1 + $0x3c0] sm:$0xff] }
  0x5a   :  { %2086 = vmatpush.bf16.msra.mxu0 %v3623_v9  ;;  %v3526_v9 = vld [vmem:[%s4889_s0 + $0x90] sm:$0xf0] }
  0x5b   :  { %2124 = vmatpush.bf16.msra.mxu2 %v3639_v8  ;;  %v2558_v8 = vld [vmem:[%s4889_s0 + $0x30] sm:$0xf] }
  0x5c   :  { %2105 = vmatpush.bf16.msra.mxu1 %v3631_v10  ;;  %v2566_v10 = vld [vmem:[%s4889_s0 + $0x38] sm:$0xf] }
  0x5d   :  { %2143 = vmatpush.bf16.msra.mxu3 %v3647_v11  ;;  %v3527_v11 = vld [vmem:[%s4889_s0 + $0x98] sm:$0xf0] }
  0x5e   :  { %2087 = vmatpush.bf16.msra.mxu0 %v3622_v13  ;;  %v3693_v13 = vld [vmem:[%s4888_s1 + $0x438] sm:$0xff] }
  0x5f   :  { %2125 = vmatpush.bf16.msra.mxu2 %v3638_v12  ;;  %v3709_v12 = vld [vmem:[%s4888_s1 + $0x4b8] sm:$0xff] }
  0x60   :  { %2106 = vmatpush.bf16.msra.mxu1 %v3630_v14  ;;  %v3514_v14 = vld [vmem:[%s4889_s0 + $0x34] sm:$0xf] }
  0x61   :  { %2144 = vmatpush.bf16.msra.mxu3 %v3646_v15  ;;  %2088 = vmatmul.bf16.vlgmr.msra.gmra.mxu0 %v2543_v28  ;;  %v3701_v15 = vld [vmem:[%s4888_s1 + $0x478] sm:$0xff]  ;;  %v2563_v22 = vor.u32 %v3514_v14, %v2560_v17  ;;  %v3707_v28 = vld [vmem:[%s4888_s1 + $0x4a8] sm:$0xff] }
  0x62   :  { %2156 = vmatpush.bf16.msrb.mxu0 %v3661_v21  ;;  %2126 = vmatmul.bf16.vlgmr.msra.gmra.mxu2 %v2551_v29  ;;  %v2567_v21 = vor.u32 %v3527_v11, %v2566_v10  ;;  %v3691_v29 = vld [vmem:[%s4888_s1 + $0x428] sm:$0xff] }
  0x63   :  { %2194 = vmatpush.bf16.msrb.mxu2 %v3677_v20  ;;  %2107 = vmatmul.bf16.vlgmr.msra.gmra.mxu1 %v2547_v30  ;;  %v2559_v20 = vor.u32 %v3526_v9, %v2558_v8  ;;  %v3699_v30 = vld [vmem:[%s4888_s1 + $0x468] sm:$0xff]  ;;  %v3733_v8 = vld [vmem:[%s4888_s1 + $0x578] sm:$0xff] }
  0x64   :  { %2175 = vmatpush.bf16.msrb.mxu1 %v3669_v23  ;;  %2145 = vmatmul.bf16.vlgmr.msra.gmra.mxu3 %v2555_v31  ;;  %v2571_v23 = vor.u32 %v3515_v18, %v2568_v19  ;;  %v3715_v31 = vld [vmem:[%s4888_s1 + $0x4e8] sm:$0xff]  ;;  %v3749_v9 = vld [vmem:[%s4888_s1 + $0x5f8] sm:$0xff] }
  0x65   :  { %2213 = vmatpush.bf16.msrb.mxu3 %v3685_v24  ;;  %v3708_v24 = vld [vmem:[%s4888_s1 + $0x4b0] sm:$0xff]  ;;  %v2576_v10 = vld [vmem:[%s4889_s0 + $0xa4] sm:$0xf0]  ;;  %v3517_v11 = vld [vmem:[%s4889_s0 + $0x4c] sm:$0xf] }
  0x66   :  { %2157 = vmatpush.bf16.msrb.mxu0 %v3660_v33  ;;  %v3690_v33 = vld [vmem:[%s4888_s1 + $0x420] sm:$0xff] }
  0x67   :  { %2195 = vmatpush.bf16.msrb.mxu2 %v3676_v32  ;;  %v3706_v32 = vld [vmem:[%s4888_s1 + $0x4a0] sm:$0xff] }
  0x68   :  { %2176 = vmatpush.bf16.msrb.mxu1 %v3668_v34  ;;  %v3698_v34 = vld [vmem:[%s4888_s1 + $0x460] sm:$0xff] }
  0x69   :  { %2214 = vmatpush.bf16.msrb.mxu3 %v3684_v35  ;;  %v3714_v35 = vld [vmem:[%s4888_s1 + $0x4e0] sm:$0xff] }
  0x6a   :  { %2158 = vmatpush.bf16.msrb.mxu0 %v3659_v37  ;;  %v3551_v37 = vld [vmem:[%s4889_s0 + $0x158] sm:$0xf0] }
  0x6b   :  { %2196 = vmatpush.bf16.msrb.mxu2 %v3675_v36  ;;  %v2658_v36 = vld [vmem:[%s4889_s0 + $0xf8] sm:$0xf] }
  0x6c   :  { %2177 = vmatpush.bf16.msrb.mxu1 %v3667_v38  ;;  %v2666_v38 = vld [vmem:[%s4889_s0 + $0x100] sm:$0xf] }
  0x6d   :  { %2215 = vmatpush.bf16.msrb.mxu3 %v3683_v39  ;;  %v3552_v39 = vld [vmem:[%s4889_s0 + $0x160] sm:$0xf0] }
  0x6e   :  { %2159 = vmatpush.bf16.msrb.mxu0 %v3658_v41  ;;  %v3689_v41 = vld [vmem:[%s4888_s1 + $0x418] sm:$0xff] }
  0x6f   :  { %2197 = vmatpush.bf16.msrb.mxu2 %v3674_v40  ;;  %v3705_v40 = vld [vmem:[%s4888_s1 + $0x498] sm:$0xff] }
  0x70   :  { %2178 = vmatpush.bf16.msrb.mxu1 %v3666_v42  ;;  %v3539_v42 = vld [vmem:[%s4889_s0 + $0xfc] sm:$0xf] }
  0x71   :  { %2216 = vmatpush.bf16.msrb.mxu3 %v3682_v43  ;;  %2093 = vmatmul.bf16.gmra.mxu0 %v2643_v56  ;;  %v2660_v43 = vld [vmem:[%s4889_s0 + $0x15c] sm:$0xf0]  ;;  %v3703_v56 = vld [vmem:[%s4888_s1 + $0x488] sm:$0xff] }
  0x72   :  { %2160 = vmatpush.bf16.msrb.mxu0 %v3657_v49  ;;  %2131 = vmatmul.bf16.gmra.mxu2 %v2651_v57  ;;  %v2667_v49 = vor.u32 %v3552_v39, %v2666_v38  ;;  %v2663_v50 = vor.u32 %v3539_v42, %v2660_v43  ;;  %v3687_v57 = vld [vmem:[%s4888_s1 + $0x408] sm:$0xff]  ;;  %v3746_v38 = vld [vmem:[%s4888_s1 + $0x5e0] sm:$0xff]  ;;  %v2682_v42 = vld [vmem:[%s4889_s0 + $0x110] sm:$0xf] }
  0x73   :  { %2198 = vmatpush.bf16.msrb.mxu2 %v3673_v48  ;;  %2112 = vmatmul.bf16.gmra.mxu1 %v2647_v58  ;;  %v2659_v48 = vor.u32 %v3551_v37, %v2658_v36  ;;  %v3695_v58 = vld [vmem:[%s4888_s1 + $0x448] sm:$0xff]  ;;  %v3722_v36 = vld [vmem:[%s4888_s1 + $0x520] sm:$0xff]  ;;  %v3554_v43 = vld [vmem:[%s4889_s0 + $0x170] sm:$0xf0] }
  0x74   :  { %2179 = vmatpush.bf16.msrb.mxu1 %v3665_v54  ;;  %2150 = vmatmul.bf16.gmra.mxu3 %v2655_v59  ;;  %v3696_v54 = vld [vmem:[%s4888_s1 + $0x450] sm:$0xff]  ;;  %v3711_v59 = vld [vmem:[%s4888_s1 + $0x4c8] sm:$0xff]  ;;  %v3730_v37 = vld [vmem:[%s4888_s1 + $0x560] sm:$0xff] }
  0x75   :  { %2217 = vmatpush.bf16.msrb.mxu3 %v3681_v55  ;;  %v3712_v55 = vld [vmem:[%s4888_s1 + $0x4d0] sm:$0xff]  ;;  %v2674_v39 = vld [vmem:[%s4889_s0 + $0x108] sm:$0xf] }
  0x76   :  { %2161 = vmatpush.bf16.msrb.mxu0 %v3656_v61  ;;  %v3686_v61 = vld [vmem:[%s4888_s1 + $0x400] sm:$0xff] }
  0x77   :  { %2199 = vmatpush.bf16.msrb.mxu2 %v3672_v60  ;;  %v3702_v60 = vld [vmem:[%s4888_s1 + $0x480] sm:$0xff] }
  0x78   :  { %2180 = vmatpush.bf16.msrb.mxu1 %v3664_v62  ;;  %v3694_v62 = vld [vmem:[%s4888_s1 + $0x440] sm:$0xff] }
  0x79   :  { %2218 = vmatpush.bf16.msrb.mxu3 %v3680_v63  ;;  %v3710_v63 = vld [vmem:[%s4888_s1 + $0x4c0] sm:$0xff] }
  0x7a   :  { %2162 = vmatpush.bf16.msrb.mxu0 %v3655_v1  ;;  %v3528_v1 = vld [vmem:[%s4889_s0 + $0xa0] sm:$0xf0] }
  0x7b   :  { %2200 = vmatpush.bf16.msrb.mxu2 %v3671_v0  ;;  %v2574_v0 = vld [vmem:[%s4889_s0 + $0x40] sm:$0xf] }
  0x7c   :  { %2181 = vmatpush.bf16.msrb.mxu1 %v3663_v2  ;;  %v2582_v2 = vld [vmem:[%s4889_s0 + $0x48] sm:$0xf] }
  0x7d   :  { %2219 = vmatpush.bf16.msrb.mxu3 %v3679_v3  ;;  %v4506_v3 = vld [vmem:[%s4890_s2] ss:$0 sm:$0xff] }
  0x7e   :  { %2163 = vmatpush.bf16.msrb.mxu0 %v3654_v5  ;;  %v3741_v5 = vld [vmem:[%s4888_s1 + $0x5b8] sm:$0xff] }
  0x7f   :  { %2201 = vmatpush.bf16.msrb.mxu2 %v3670_v4  ;;  %v3529_v4 = vld [vmem:[%s4889_s0 + $0xa8] sm:$0xf0] }
  0x80   :  { %2182 = vmatpush.bf16.msrb.mxu1 %v3662_v6  ;;  %v3725_v6 = vld [vmem:[%s4888_s1 + $0x538] sm:$0xff]  ;;  %v2583_v14 = vor.u32 %v3529_v4, %v2582_v2  ;;  %v3735_v4 = vld [vmem:[%s4888_s1 + $0x588] sm:$0xff] }
  0x81   :  { %2220 = vmatpush.bf16.msrb.mxu3 %v3678_v7  ;;  %2164 = vmatmul.bf16.vlgmr.msrb.gmra.mxu0 %v2559_v20  ;;  %v3516_v7 = vld [vmem:[%s4889_s0 + $0x44] sm:$0xf]  ;;  %v3740_v20 = vld [vmem:[%s4888_s1 + $0x5b0] sm:$0xff] }
  0x82   :  { %2232 = vmatpush.bf16.msra.mxu0 %v3693_v13  ;;  %2202 = vmatmul.bf16.vlgmr.msrb.gmra.mxu2 %v2567_v21  ;;  %v2575_v13 = vor.u32 %v3528_v1, %v2574_v0  ;;  %v3724_v21 = vld [vmem:[%s4888_s1 + $0x530] sm:$0xff] }
  0x83   :  { %2270 = vmatpush.bf16.msra.mxu2 %v3709_v12  ;;  %2183 = vmatmul.bf16.vlgmr.msrb.gmra.mxu1 %v2563_v22  ;;  %v2584_v12 = vld [vmem:[%s4889_s0 + $0xac] sm:$0xf0] }
  0x84   :  { %2251 = vmatpush.bf16.msra.mxu1 %v3701_v15  ;;  %2221 = vmatmul.bf16.vlgmr.msrb.gmra.mxu3 %v2571_v23  ;;  %v2587_v17 = vor.u32 %v3517_v11, %v2584_v12  ;;  %v3732_v22 = vld [vmem:[%s4888_s1 + $0x570] sm:$0xff] }
  0x85   :  { %2289 = vmatpush.bf16.msra.mxu3 %v3717_v16  ;;  %v2579_v16 = vor.u32 %v3516_v7, %v2576_v10  ;;  %v3748_v23 = vld [vmem:[%s4888_s1 + $0x5f0] sm:$0xff]  ;;  %v3727_v7 = vld [vmem:[%s4888_s1 + $0x548] sm:$0xff] }
  0x86   :  { %2233 = vmatpush.bf16.msra.mxu0 %v3692_v25  ;;  %v3739_v25 = vld [vmem:[%s4888_s1 + $0x5a8] sm:$0xff]  ;;  %v3728_v0 = vld [vmem:[%s4888_s1 + $0x550] sm:$0xff] }
  0x87   :  { %2271 = vmatpush.bf16.msra.mxu2 %v3708_v24  ;;  %v3744_v1 = vld [vmem:[%s4888_s1 + $0x5d0] sm:$0xff] }
  0x88   :  { %2252 = vmatpush.bf16.msra.mxu1 %v3700_v26  ;;  %v3723_v26 = vld [vmem:[%s4888_s1 + $0x528] sm:$0xff] }
  0x89   :  { %2290 = vmatpush.bf16.msra.mxu3 %v3716_v27 }
  0x8a   :  { %2234 = vmatpush.bf16.msra.mxu0 %v3691_v29  ;;  %v3747_v29 = vld [vmem:[%s4888_s1 + $0x5e8] sm:$0xff] }
  0x8b   :  { %2272 = vmatpush.bf16.msra.mxu2 %v3707_v28  ;;  %v3731_v28 = vld [vmem:[%s4888_s1 + $0x568] sm:$0xff] }
  0x8c   :  { %2253 = vmatpush.bf16.msra.mxu1 %v3699_v30 }
  0x8d   :  { %2291 = vmatpush.bf16.msra.mxu3 %v3715_v31 }
  0x8e   :  { %2235 = vmatpush.bf16.msra.mxu0 %v3690_v33 }
  0x8f   :  { %2273 = vmatpush.bf16.msra.mxu2 %v3706_v32 }
  0x90   :  { %2254 = vmatpush.bf16.msra.mxu1 %v3698_v34 }
  0x91   :  { %2292 = vmatpush.bf16.msra.mxu3 %v3714_v35  ;;  %2169 = vmatmul.bf16.gmra.mxu0 %v2659_v48  ;;  %v3738_v35 = vld [vmem:[%s4888_s1 + $0x5a0] sm:$0xff]  ;;  %v3542_v48 = vld [vmem:[%s4889_s0 + $0x114] sm:$0xf] }
  0x92   :  { %2236 = vmatpush.bf16.msra.mxu0 %v3689_v41  ;;  %2207 = vmatmul.bf16.gmra.mxu2 %v2667_v49  ;;  %v3553_v41 = vld [vmem:[%s4889_s0 + $0x168] sm:$0xf0]  ;;  %v2684_v49 = vld [vmem:[%s4889_s0 + $0x174] sm:$0xf0] }
  0x93   :  { %2274 = vmatpush.bf16.msra.mxu2 %v3705_v40  ;;  %2188 = vmatmul.bf16.gmra.mxu1 %v2663_v50 }
  0x94   :  { %2255 = vmatpush.bf16.msra.mxu1 %v3697_v46  ;;  %2226 = vmatmul.bf16.gmra.mxu3 %v2671_v51  ;;  %v3541_v46 = vld [vmem:[%s4889_s0 + $0x10c] sm:$0xf]  ;;  %v3729_v51 = vld [vmem:[%s4888_s1 + $0x558] sm:$0xff] }
  0x95   :  { %2293 = vmatpush.bf16.msra.mxu3 %v3713_v47  ;;  %v2676_v47 = vld [vmem:[%s4889_s0 + $0x16c] sm:$0xf0] }
  0x96   :  { %2237 = vmatpush.bf16.msra.mxu0 %v3688_v53 }
  0x97   :  { %2275 = vmatpush.bf16.msra.mxu2 %v3704_v52  ;;  %v3745_v52 = vld [vmem:[%s4888_s1 + $0x5d8] sm:$0xff] }
  0x98   :  { %2256 = vmatpush.bf16.msra.mxu1 %v3696_v54 }
  0x99   :  { %2294 = vmatpush.bf16.msra.mxu3 %v3712_v55  ;;  %v2675_v55 = vor.u32 %v3553_v41, %v2674_v39 }
  0x9a   :  { %2238 = vmatpush.bf16.msra.mxu0 %v3687_v57 }
  0x9b   :  { %2276 = vmatpush.bf16.msra.mxu2 %v3703_v56  ;;  %v2683_v56 = vor.u32 %v3554_v43, %v2682_v42  ;;  %v3756_v42 = vld [vmem:[%s4888_s1 + $0x630] sm:$0xff] }
  0x9c   :  { %2257 = vmatpush.bf16.msra.mxu1 %v3695_v58  ;;  %v2679_v58 = vor.u32 %v3541_v46, %v2676_v47 }
  0x9d   :  { %2295 = vmatpush.bf16.msra.mxu3 %v3711_v59  ;;  %v2687_v59 = vor.u32 %v3542_v48, %v2684_v49 }
  0x9e   :  { %2239 = vmatpush.bf16.msra.mxu0 %v3686_v61  ;;  %v1937_v15 = vpop.f32.mrf.mxu0 }
  0x9f   :  { %2277 = vmatpush.bf16.msra.mxu2 %v3702_v60  ;;  %v1938_v18 = vadd.f32 %v4506_v3, %v1937_v15  ;;  %v3734_v15 = vld [vmem:[%s4888_s1 + $0x580] sm:$0xff] }
  0xa0   :  { %2258 = vmatpush.bf16.msra.mxu1 %v3694_v62  ;;  %v1956_v19 = vpop.f32.mrf.mxu1  ;;  %v3736_v62 = vld [vmem:[%s4888_s1 + $0x590] sm:$0xff] }
  0xa1   :  { %2296 = vmatpush.bf16.msra.mxu3 %v3710_v63  ;;  %v1957_v24 = vadd.f32 %v1956_v19, %v1938_v18  ;;  %2240 = vmatmul.bf16.vlgmr.msra.gmra.mxu0 %v2575_v13  ;;  %v3720_v63 = vld [vmem:[%s4888_s1 + $0x510] sm:$0xff] }
  0xa2   :  { %2308 = vmatpush.bf16.msrb.mxu0 %v3725_v6  ;;  %2278 = vmatmul.bf16.vlgmr.msra.gmra.mxu2 %v2583_v14  ;;  %v2590_v19 = vld [vmem:[%s4889_s0 + $0x50] sm:$0xf] }
  0xa3   :  { %2346 = vmatpush.bf16.msrb.mxu2 %v3741_v5  ;;  %2259 = vmatmul.bf16.vlgmr.msra.gmra.mxu1 %v2579_v16  ;;  %v3719_v5 = vld [vmem:[%s4888_s1 + $0x508] sm:$0xff]  ;;  %v3718_v16 = vld [vmem:[%s4888_s1 + $0x500] sm:$0xff] }
  0xa4   :  { %2327 = vmatpush.bf16.msrb.mxu1 %v3733_v8  ;;  %2297 = vmatmul.bf16.vlgmr.msra.gmra.mxu3 %v2587_v17  ;;  %v3743_v8 = vld [vmem:[%s4888_s1 + $0x5c8] sm:$0xff]  ;;  %v3726_v17 = vld [vmem:[%s4888_s1 + $0x540] sm:$0xff] }
  0xa5   :  { %2365 = vmatpush.bf16.msrb.mxu3 %v3749_v9  ;;  %v1975_v27 = vpop.f32.mrf.mxu2 }
  0xa6   :  { %2309 = vmatpush.bf16.msrb.mxu0 %v3724_v21  ;;  %v4560_v30 = vadd.f32 %v1975_v27, %v1957_v24  ;;  %v1939_v32 = vpop.f32.mrf.mxu0  ;;  %v3757_v21 = vld [vmem:[%s4888_s1 + $0x638] sm:$0xff]  ;;  %v3518_v24 = vld [vmem:[%s4889_s0 + $0x54] sm:$0xf]  ;;  %v2600_v27 = vld [vmem:[%s4889_s0 + $0xbc] sm:$0xf0] }
  0xa7   :  { %2347 = vmatpush.bf16.msrb.mxu2 %v3740_v20  ;;  %v4562_v31 = vpop.f32.mrf.mxu3  ;;  %v1940_v33 = vadd.f32 %v4506_v3, %v1939_v32  ;;  %v3530_v20 = vld [vmem:[%s4889_s0 + $0xb0] sm:$0xf0] }
  0xa8   :  { %2328 = vmatpush.bf16.msrb.mxu1 %v3732_v22  ;;  %v1958_v34 = vpop.f32.mrf.mxu1  ;;  %v2598_v22 = vld [vmem:[%s4889_s0 + $0x58] sm:$0xf]  ;;  %v1995_v32 = vadd.f32 %v4562_v31, %v4560_v30  ;;  %v3755_v30 = vld [vmem:[%s4888_s1 + $0x628] sm:$0xff] }
  0xa9   :  { %2366 = vmatpush.bf16.msrb.mxu3 %v3748_v23  ;;  %v1959_v40 = vadd.f32 %v1958_v34, %v1940_v33  ;;  %v3531_v23 = vld [vmem:[%s4889_s0 + $0xb8] sm:$0xf0] }
  0xaa   :  { %2310 = vmatpush.bf16.msrb.mxu0 %v3723_v26  ;;  %v3519_v26 = vld [vmem:[%s4889_s0 + $0x5c] sm:$0xf] }
  0xab   :  { %2348 = vmatpush.bf16.msrb.mxu2 %v3739_v25  ;;  %v2592_v25 = vld [vmem:[%s4889_s0 + $0xb4] sm:$0xf0] }
  0xac   :  { %2329 = vmatpush.bf16.msrb.mxu1 %v3731_v28 }
  0xad   :  { %2367 = vmatpush.bf16.msrb.mxu3 %v3747_v29  ;;  %v1977_v50 = vpop.f32.mrf.mxu2  ;;  %v2591_v29 = vor.u32 %v3530_v20, %v2590_v19  ;;  %v3750_v19 = vld [vmem:[%s4888_s1 + $0x600] sm:$0xff] }
  0xae   :  { %2311 = vmatpush.bf16.msrb.mxu0 %v3722_v36  ;;  %v4613_v53 = vadd.f32 %v1977_v50, %v1959_v40  ;;  %v1942_v57 = vpop.f32.mrf.mxu0 }
  0xaf   :  { %2349 = vmatpush.bf16.msrb.mxu2 %v3738_v35  ;;  %v4615_v54 = vpop.f32.mrf.mxu3  ;;  %v1943_v60 = vadd.f32 %v4506_v3, %v1942_v57  ;;  %v2599_v35 = vor.u32 %v3531_v23, %v2598_v22  ;;  %v3753_v57 = vld [vmem:[%s4888_s1 + $0x618] sm:$0xff]  ;;  %v3532_v22 = vld [vmem:[%s4889_s0 + $0xc0] sm:$0xf0]  ;;  %v2706_v23 = vld [vmem:[%s4889_s0 + $0x128] sm:$0xf] }
  0xb0   :  { %2330 = vmatpush.bf16.msrb.mxu1 %v3730_v37  ;;  %v1961_v61 = vpop.f32.mrf.mxu1  ;;  %v2595_v37 = vor.u32 %v3518_v24, %v2592_v25  ;;  %v3557_v24 = vld [vmem:[%s4889_s0 + $0x188] sm:$0xf0] }
  0xb1   :  { %2368 = vmatpush.bf16.msrb.mxu3 %v3746_v38  ;;  %v1962_v2 = vadd.f32 %v1961_v61, %v1943_v60  ;;  %2245 = vmatmul.bf16.gmra.mxu0 %v2675_v55  ;;  %v2603_v38 = vor.u32 %v3519_v26, %v2600_v27  ;;  %v2690_v55 = vld [vmem:[%s4889_s0 + $0x118] sm:$0xf]  ;;  %v3544_v60 = vld [vmem:[%s4889_s0 + $0x124] sm:$0xf]  ;;  %v2700_v61 = vld [vmem:[%s4889_s0 + $0x184] sm:$0xf0] }
  0xb2   :  { %2312 = vmatpush.bf16.msrb.mxu0 %v3721_v45  ;;  %2283 = vmatmul.bf16.gmra.mxu2 %v2683_v56  ;;  %v3556_v56 = vld [vmem:[%s4889_s0 + $0x180] sm:$0xf0] }
  0xb3   :  { %2350 = vmatpush.bf16.msrb.mxu2 %v3737_v44  ;;  %2264 = vmatmul.bf16.gmra.mxu1 %v2679_v58  ;;  %v1997_v44 = vadd.f32 %v4615_v54, %v4613_v53  ;;  %v3555_v53 = vld [vmem:[%s4889_s0 + $0x178] sm:$0xf0]  ;;  %v2698_v54 = vld [vmem:[%s4889_s0 + $0x120] sm:$0xf] }
  0xb4   :  { %2331 = vmatpush.bf16.msrb.mxu1 %v3729_v51  ;;  %2302 = vmatmul.bf16.gmra.mxu3 %v2687_v59  ;;  %v3754_v51 = vld [vmem:[%s4888_s1 + $0x620] sm:$0xff]  ;;  %v3543_v58 = vld [vmem:[%s4889_s0 + $0x11c] sm:$0xf] }
  0xb5   :  { %2369 = vmatpush.bf16.msrb.mxu3 %v3745_v52  ;;  %v1980_v6 = vpop.f32.mrf.mxu2  ;;  %v2692_v59 = vld [vmem:[%s4889_s0 + $0x17c] sm:$0xf0] }
  0xb6   :  { %2313 = vmatpush.bf16.msrb.mxu0 %v3720_v63  ;;  %v1981_v9 = vadd.f32 %v1980_v6, %v1962_v2  ;;  %v1944_v11 = vpop.f32.mrf.mxu0  ;;  %v2699_v2 = vor.u32 %v3556_v56, %v2698_v54  ;;  %v2703_v6 = vor.u32 %v3544_v60, %v2700_v61 }
  0xb7   :  { %2351 = vmatpush.bf16.msrb.mxu2 %v3736_v62  ;;  %v1999_v10 = vpop.f32.mrf.mxu3  ;;  %v1945_v12 = vadd.f32 %v4506_v3, %v1944_v11  ;;  %v3742_v3 = vld [vmem:[%s4888_s1 + $0x5c0] sm:$0xff] }
  0xb8   :  { %2332 = vmatpush.bf16.msrb.mxu1 %v3728_v0  ;;  %v4643_v13 = vadd.f32 %v1999_v10, %v1981_v9  ;;  %v1963_v14 = vpop.f32.mrf.mxu1  ;;  %v3752_v10 = vld [vmem:[%s4888_s1 + $0x610] sm:$0xff] }
  0xb9   :  { %2370 = vmatpush.bf16.msrb.mxu3 %v3744_v1  ;;  %v1964_v18 = vadd.f32 %v1963_v14, %v1945_v12  ;;  %v2691_v1 = vor.u32 %v3555_v53, %v2690_v55  ;;  %v3751_v12 = vld [vmem:[%s4888_s1 + $0x608] sm:$0xff] }
  0xba   :  { %2314 = vmatpush.bf16.msrb.mxu0 %v3719_v5  ;;  %v2695_v5 = vor.u32 %v3543_v58, %v2692_v59 }
  0xbb   :  { %2352 = vmatpush.bf16.msrb.mxu2 %v3735_v4 }
  0xbc   :  { %2333 = vmatpush.bf16.msrb.mxu1 %v3727_v7 }
  0xbd   :  { %2371 = vmatpush.bf16.msrb.mxu3 %v3743_v8  ;;  %v1982_v28 = vpop.f32.mrf.mxu2 }
  0xbe   :  { %2315 = vmatpush.bf16.msrb.mxu0 %v3718_v16  ;;  %v1983_v33 = vadd.f32 %v1982_v28, %v1964_v18  ;;  %v2013_v36 = vpop.f32.mrf.mxu0 }
  0xbf   :  { %2353 = vmatpush.bf16.msrb.mxu2 %v3734_v15  ;;  %v2001_v34 = vpop.f32.mrf.mxu3  ;;  %v2014_v40 = vadd.f32 %v2013_v36, %v1995_v32 }
  0xc0   :  { %2334 = vmatpush.bf16.msrb.mxu1 %v3726_v17  ;;  %v2002_v39 = vadd.f32 %v2001_v34, %v1983_v33  ;;  %v2032_v41 = vpop.f32.mrf.mxu1 }
  0xc1   :  { %2372 = vmatpush.bf16.msrb.mxu3 %v3742_v3  ;;  %v2033_v43 = vadd.f32 %v2032_v41, %v2014_v40  ;;  %2316 = vmatmul.bf16.vlgmr.msrb.gmra.mxu0 %v2591_v29  ;;  %v2707_v29 = vor.u32 %v3557_v24, %v2706_v23  ;;  %v2422_v23 = vld [vmem:[%s4892_s3 + $0x78] sm:$0xff] }
  0xc2   :  { %2384 = vmatpush.bf16.msra.mxu0 %v3757_v21  ;;  %2354 = vmatmul.bf16.vlgmr.msrb.gmra.mxu2 %v2599_v35 }
  0xc3   :  { %3758 = vmatpush.bf16.msra.mxu2 %v3757_v21  ;;  %2335 = vmatmul.bf16.vlgmr.msrb.gmra.mxu1 %v2595_v37  ;;  %v2606_v21 = vld [vmem:[%s4889_s0 + $0x60] sm:$0xf] }
  0xc4   :  { %2373 = vmatmul.bf16.vlgmr.msrb.gmra.mxu3 %v2603_v38  ;;  %v2607_v28 = vor.u32 %v3532_v22, %v2606_v21  ;;  %2427 = vmatpush.msra.mxu1 %v2422_v23 }
  0xc5   :  { %v2051_v31 = vpop.f32.mrf.mxu2  ;;  %3766 = vmatpush.msra.mxu3 %v2422_v23 }
  0xc6   :  { %2385 = vmatpush.bf16.msra.mxu0 %v3756_v42  ;;  %v2052_v45 = vadd.f32 %v2051_v31, %v2033_v43  ;;  %v2015_v47 = vpop.f32.mrf.mxu0 }
  0xc7   :  { %3759 = vmatpush.bf16.msra.mxu2 %v3756_v42  ;;  %v2070_v46 = vpop.f32.mrf.mxu3  ;;  %v2016_v48 = vadd.f32 %v2015_v47, %v1997_v44 }
  0xc8   :  { %v4694_v49 = vadd.f32 %v2070_v46, %v2052_v45  ;;  %v2034_v50 = vpop.f32.mrf.mxu1 }
  0xc9   :  { %v2035_v52 = vadd.f32 %v2034_v50, %v2016_v48 }
  0xca   :  { %2386 = vmatpush.bf16.msra.mxu0 %v3755_v30 }
  0xcb   :  { %3760 = vmatpush.bf16.msra.mxu2 %v3755_v30 }
  0xcd   :  { %v2053_v62 = vpop.f32.mrf.mxu2 }
  0xce   :  { %2387 = vmatpush.bf16.msra.mxu0 %v3754_v51  ;;  %v2054_v63 = vadd.f32 %v2053_v62, %v2035_v52  ;;  %v2018_v4 = vpop.f32.mrf.mxu0 }
  0xcf   :  { %3761 = vmatpush.bf16.msra.mxu2 %v3754_v51  ;;  %v2072_v0 = vpop.f32.mrf.mxu3  ;;  %v2019_v7 = vadd.f32 %v2018_v4, %v4643_v13 }
  0xd0   :  { %v2073_v8 = vadd.f32 %v2072_v0, %v2054_v63  ;;  %v2037_v9 = vpop.f32.mrf.mxu1 }
  0xd1   :  { %v2038_v11 = vadd.f32 %v2037_v9, %v2019_v7  ;;  %2321 = vmatmul.bf16.gmra.mxu0 %v2691_v1 }
  0xd2   :  { %2388 = vmatpush.bf16.msra.mxu0 %v3753_v57  ;;  %2359 = vmatmul.bf16.gmra.mxu2 %v2699_v2 }
  0xd3   :  { %3762 = vmatpush.bf16.msra.mxu2 %v3753_v57  ;;  %2340 = vmatmul.bf16.gmra.mxu1 %v2695_v5 }
  0xd4   :  { %2378 = vmatmul.bf16.gmra.mxu3 %v2703_v6 }
  0xd5   :  { %v2056_v13 = vpop.f32.mrf.mxu2 }
  0xd6   :  { %2389 = vmatpush.bf16.msra.mxu0 %v3752_v10  ;;  %v2057_v14 = vadd.f32 %v2056_v13, %v2038_v11  ;;  %v2020_v16 = vpop.f32.mrf.mxu0 }
  0xd7   :  { %3763 = vmatpush.bf16.msra.mxu2 %v3752_v10  ;;  %v2075_v15 = vpop.f32.mrf.mxu3  ;;  %v2021_v17 = vadd.f32 %v2020_v16, %v2002_v39 }
  0xd8   :  { %v2076_v3 = vadd.f32 %v2075_v15, %v2057_v14  ;;  %v2039_v18 = vpop.f32.mrf.mxu1 }
  0xd9   :  { %v2040_v20 = vadd.f32 %v2039_v18, %v2021_v17 }
  0xda   :  { %2390 = vmatpush.bf16.msra.mxu0 %v3751_v12 }
  0xdb   :  { %3764 = vmatpush.bf16.msra.mxu2 %v3751_v12 }
  0xdd   :  { %v2058_v25 = vpop.f32.mrf.mxu2 }
  0xde   :  { %2391 = vmatpush.bf16.msra.mxu0 %v3750_v19  ;;  %v2059_v26 = vadd.f32 %v2058_v25, %v2040_v20  ;;  %v2089_v32 = vpop.f32.mrf.mxu0 }
  0xdf   :  { %3765 = vmatpush.bf16.msra.mxu2 %v3750_v19  ;;  %v2077_v27 = vpop.f32.mrf.mxu3  ;;  %v2090_v34 = vadd.f32 %v2089_v32, %v4694_v49  ;;  %v2419_v32 = vld [vmem:[%s4892_s3 + $0x60] sm:$0xff] }
  0xe0   :  { %v2078_v33 = vadd.f32 %v2077_v27, %v2059_v26  ;;  %v2108_v35 = vpop.f32.mrf.mxu1  ;;  %v2421_v26 = vld [vmem:[%s4892_s3 + $0x70] sm:$0xff] }
  0xe1   :  { %v2109_v36 = vadd.f32 %v2108_v35, %v2090_v34  ;;  %2392 = vmatmul.bf16.vlgmr.msra.gmra.mxu0 %v2607_v28  ;;  %2428 = vmatpush.msra.mxu1 %v2421_v26 }
  0xe2   :  { %2397 = vmatmul.bf16.vlgmr.msra.gmra.mxu2 %v2707_v29  ;;  %3767 = vmatpush.msra.mxu3 %v2421_v26  ;;  %v2420_v29 = vld [vmem:[%s4892_s3 + $0x68] sm:$0xff] }
  0xe3   :  { %2429 = vmatpush.msra.mxu1 %v2420_v29 }
  0xe4   :  { %3768 = vmatpush.msra.mxu3 %v2420_v29 }
  0xe5   :  { %v2127_v37 = vpop.f32.mrf.mxu2  ;;  %2430 = vmatpush.msra.mxu1 %v2419_v32 }
  0xe6   :  { %v2128_v38 = vadd.f32 %v2127_v37, %v2109_v36  ;;  %v2091_v40 = vpop.f32.mrf.mxu0  ;;  %3769 = vmatpush.msra.mxu3 %v2419_v32  ;;  %v2417_v36 = vld [vmem:[%s4892_s3 + $0x50] sm:$0xff] }
  0xe7   :  { %v2146_v39 = vpop.f32.mrf.mxu3  ;;  %v2092_v41 = vadd.f32 %v2091_v40, %v2073_v8  ;;  %v2415_v40 = vld [vmem:[%s4892_s3 + $0x40] sm:$0xff] }
  0xe8   :  { %v2147_v42 = vadd.f32 %v2146_v39, %v2128_v38  ;;  %v2110_v43 = vpop.f32.mrf.mxu1  ;;  %v2416_v38 = vld [vmem:[%s4892_s3 + $0x48] sm:$0xff] }
  0xe9   :  { %v2111_v30 = vadd.f32 %v2110_v43, %v2092_v41  ;;  %v2414_v41 = vld [vmem:[%s4892_s3 + $0x38] sm:$0xff]  ;;  %v2413_v43 = vld [vmem:[%s4892_s3 + $0x30] sm:$0xff] }
  0xed   :  { %v2129_v31 = vpop.f32.mrf.mxu2 }
  0xee   :  { %v2130_v44 = vadd.f32 %v2129_v31, %v2111_v30  ;;  %v2094_v46 = vpop.f32.mrf.mxu0 }
  0xef   :  { %v2148_v45 = vpop.f32.mrf.mxu3  ;;  %v2095_v47 = vadd.f32 %v2094_v46, %v2076_v3 }
  0xf0   :  { %v2149_v48 = vadd.f32 %v2148_v45, %v2130_v44  ;;  %v2113_v50 = vpop.f32.mrf.mxu1  ;;  %v2412_v44 = vld [vmem:[%s4892_s3 + $0x28] sm:$0xff]  ;;  %v2411_v45 = vld [vmem:[%s4892_s3 + $0x20] sm:$0xff] }
  0xf1   :  { %v2114_v49 = vadd.f32 %v2113_v50, %v2095_v47  ;;  %v2410_v47 = vld [vmem:[%s4892_s3 + $0x18] sm:$0xff]  ;;  %v2409_v50 = vld [vmem:[%s4892_s3 + $0x10] sm:$0xff] }
  0xf5   :  { %v2132_v51 = vpop.f32.mrf.mxu2 }
  0xf6   :  { %v2133_v52 = vadd.f32 %v2132_v51, %v2114_v49  ;;  %v2096_v53 = vpop.f32.mrf.mxu0  ;;  %v2408_v51 = vld [vmem:[%s4892_s3 + $0x8] sm:$0xff] }
  0xf7   :  { %v2151_v55 = vpop.f32.mrf.mxu3  ;;  %v2097_v54 = vadd.f32 %v2096_v53, %v2078_v33  ;;  %v2418_v33 = vld [vmem:[%s4892_s3 + $0x58] sm:$0xff]  ;;  %v2407_v53 = vld [vmem:[%s4892_s3] sm:$0xff] }
  0xf8   :  { %v4749_v56 = vadd.f32 %v2151_v55, %v2133_v52  ;;  %v2115_v57 = vpop.f32.mrf.mxu1  ;;  %2431 = vmatpush.msra.mxu1 %v2418_v33  ;;  %3770 = vmatpush.msra.mxu3 %v2418_v33 }
  0xf9   :  { %v2116_v58 = vadd.f32 %v2115_v57, %v2097_v54 }
  0xfa   :  { %2432 = vmatpush.msra.mxu1 %v2417_v36  ;;  %3771 = vmatpush.msra.mxu3 %v2417_v36 }
  0xfc   :  { %2433 = vmatpush.msra.mxu1 %v2416_v38  ;;  %3772 = vmatpush.msra.mxu3 %v2416_v38 }
  0xfd   :  { %v2134_v59 = vpop.f32.mrf.mxu2 }
  0xfe   :  { %v2135_v60 = vadd.f32 %v2134_v59, %v2116_v58  ;;  %v2165_v62 = vpop.f32.mrf.mxu0  ;;  %2434 = vmatpush.msra.mxu1 %v2415_v40  ;;  %3773 = vmatpush.msra.mxu3 %v2415_v40 }
  0xff   :  { %v2153_v61 = vpop.f32.mrf.mxu3  ;;  %v2166_v0 = vadd.f32 %v2165_v62, %v2147_v42 }
 0x100   :  { %v4751_v63 = vadd.f32 %v2153_v61, %v2135_v60  ;;  %v2184_v1 = vpop.f32.mrf.mxu1  ;;  %2435 = vmatpush.msra.mxu1 %v2414_v41  ;;  %3774 = vmatpush.msra.mxu3 %v2414_v41 }
 0x101   :  { %v2185_v2 = vadd.f32 %v2184_v1, %v2166_v0 }
 0x102   :  { %2436 = vmatpush.msra.mxu1 %v2413_v43  ;;  %3775 = vmatpush.msra.mxu3 %v2413_v43 }
 0x104   :  { %2437 = vmatpush.msra.mxu1 %v2412_v44  ;;  %3776 = vmatpush.msra.mxu3 %v2412_v44 }
 0x105   :  { %v2203_v4 = vpop.f32.mrf.mxu2 }
 0x106   :  { %v4753_v5 = vadd.f32 %v2203_v4, %v2185_v2  ;;  %v2167_v7 = vpop.f32.mrf.mxu0  ;;  %2438 = vmatpush.msra.mxu1 %v2411_v45  ;;  %3777 = vmatpush.msra.mxu3 %v2411_v45 }
 0x107   :  { %v4755_v6 = vpop.f32.mrf.mxu3  ;;  %v2168_v8 = vadd.f32 %v2167_v7, %v2149_v48 }
 0x108   :  { %v2186_v9 = vpop.f32.mrf.mxu1  ;;  %2439 = vmatpush.msra.mxu1 %v2410_v47  ;;  %3778 = vmatpush.msra.mxu3 %v2410_v47  ;;  %v2223_v58 = vadd.f32 %v4755_v6, %v4753_v5 }
 0x109   :  { %v2187_v10 = vadd.f32 %v2186_v9, %v2168_v8 }
 0x10a   :  { %2440 = vmatpush.msra.mxu1 %v2409_v50  ;;  %3779 = vmatpush.msra.mxu3 %v2409_v50 }
 0x10c   :  { %2441 = vmatpush.msra.mxu1 %v2408_v51  ;;  %3780 = vmatpush.msra.mxu3 %v2408_v51 }
 0x10d   :  { %v2205_v11 = vpop.f32.mrf.mxu2 }
 0x10e   :  { %v4757_v12 = vadd.f32 %v2205_v11, %v2187_v10  ;;  %v4761_v14 = vpop.f32.mrf.mxu0  ;;  %2442 = vmatpush.msra.mxu1 %v2407_v53  ;;  %3781 = vmatpush.msra.mxu3 %v2407_v53 }
 0x10f   :  { %v4759_v13 = vpop.f32.mrf.mxu3  ;;  %v2171_v55 = vadd.f32 %v4761_v14, %v4749_v56 }
 0x110   :  { %v4763_v15 = vpop.f32.mrf.mxu1  ;;  %v2225_v7 = vadd.f32 %v4759_v13, %v4757_v12 }
 0x111   :  { %v2190_v59 = vadd.f32 %v4763_v15, %v2171_v55 }
 0x115   :  { %v4765_v16 = vpop.f32.mrf.mxu2 }
 0x116   :  { %v4769_v3 = vpop.f32.mrf.mxu0  ;;  %v2209_v61 = vadd.f32 %v4765_v16, %v2190_v59 }
 0x117   :  { %v4767_v17 = vpop.f32.mrf.mxu3  ;;  %v2173_v56 = vadd.f32 %v4769_v3, %v4751_v63 }
 0x118   :  { %v4771_v18 = vpop.f32.mrf.mxu1  ;;  %v2228_v1 = vadd.f32 %v4767_v17, %v2209_v61 }
 0x119   :  { %v2192_v5 = vadd.f32 %v4771_v18, %v2173_v56 }
 0x11d   :  { %v4773_v19 = vpop.f32.mrf.mxu2 }
 0x11e   :  { %v4777_v21 = vpop.f32.mrf.mxu0  ;;  %v2211_v11 = vadd.f32 %v4773_v19, %v2192_v5 }
 0x11f   :  { %v4775_v20 = vpop.f32.mrf.mxu3  ;;  %v2242_v62 = vadd.f32 %v4777_v21, %v2223_v58 }
 0x120   :  { %v4779_v22 = vpop.f32.mrf.mxu1  ;;  %v2230_v16 = vadd.f32 %v4775_v20, %v2211_v11 }
 0x121   :  { %v2261_v2 = vadd.f32 %v4779_v22, %v2242_v62 }
 0x125   :  { %v4784_v24 = vpop.f32.mrf.mxu2 }
 0x126   :  { %v4791_v27 = vpop.f32.mrf.mxu0  ;;  %v2280_v6 = vadd.f32 %v4784_v24, %v2261_v2 }
 0x127   :  { %v4786_v25 = vpop.f32.mrf.mxu3  ;;  %v2244_v63 = vadd.f32 %v4791_v27, %v2225_v7 }
 0x128   :  { %v4793_v28 = vpop.f32.mrf.mxu1  ;;  %v2299_v14 = vadd.f32 %v4786_v25, %v2280_v6 }
 0x129   :  { %v2263_v17 = vadd.f32 %v4793_v28, %v2244_v63 }
 0x12d   :  { %v4804_v34 = vpop.f32.mrf.mxu2 }
 0x12e   :  { %v2246_v37 = vpop.f32.mrf.mxu0  ;;  %v2282_v21 = vadd.f32 %v4804_v34, %v2263_v17 }
 0x12f   :  { %v4806_v35 = vpop.f32.mrf.mxu3  ;;  %v2247_v8 = vadd.f32 %v2246_v37, %v2228_v1 }
 0x130   :  { %v2265_v39 = vpop.f32.mrf.mxu1  ;;  %v2301_v27 = vadd.f32 %v4806_v35, %v2282_v21 }
 0x131   :  { %v2266_v15 = vadd.f32 %v2265_v39, %v2247_v8 }
 0x135   :  { %v2284_v42 = vpop.f32.mrf.mxu2 }
 0x136   :  { %v2248_v30 = vpop.f32.mrf.mxu0  ;;  %v2285_v3 = vadd.f32 %v2284_v42, %v2266_v15 }
 0x137   :  { %v2303_v31 = vpop.f32.mrf.mxu3  ;;  %v2249_v22 = vadd.f32 %v2248_v30, %v2230_v16 }
 0x138   :  { %v2267_v46 = vpop.f32.mrf.mxu1  ;;  %v2304_v24 = vadd.f32 %v2303_v31, %v2285_v3 }
 0x139   :  { %v2268_v29 = vadd.f32 %v2267_v46, %v2249_v22 }
 0x13d   :  { %v2286_v48 = vpop.f32.mrf.mxu2 }
 0x13e   :  { %v2317_v49 = vpop.f32.mrf.mxu0  ;;  %v2287_v33 = vadd.f32 %v2286_v48, %v2268_v29 }
 0x13f   :  { %v2305_v52 = vpop.f32.mrf.mxu3  ;;  %v2318_v12 = vadd.f32 %v2317_v49, %v2299_v14 }
 0x140   :  { %v2336_v54 = vpop.f32.mrf.mxu1  ;;  %v2306_v40 = vadd.f32 %v2305_v52, %v2287_v33 }
 0x141   :  { %v2337_v26 = vadd.f32 %v2336_v54, %v2318_v12 }
 0x145   :  { %v2355_v57 = vpop.f32.mrf.mxu2 }
 0x146   :  { %v2319_v60 = vpop.f32.mrf.mxu0  ;;  %v2356_v25 = vadd.f32 %v2355_v57, %v2337_v26 }
 0x147   :  { %v2374_v0 = vpop.f32.mrf.mxu3  ;;  %v2320_v20 = vadd.f32 %v2319_v60, %v2301_v27  ;;  %v3783_v60 = vld [vmem:[%s4891_s4] ss:$0 sm:$0xff] }
 0x148   :  { %v2338_v9 = vpop.f32.mrf.mxu1  ;;  %v2375_v28 = vadd.f32 %v2374_v0, %v2356_v25 }
 0x149   :  { %v2339_v41 = vadd.f32 %v2338_v9, %v2320_v20 }
 0x14d   :  { %v2357_v4 = vpop.f32.mrf.mxu2 }
 0x14e   :  { %v2322_v10 = vpop.f32.mrf.mxu0  ;;  %v2358_v43 = vadd.f32 %v2357_v4, %v2339_v41 }
 0x14f   :  { %v2376_v13 = vpop.f32.mrf.mxu3  ;;  %v2323_v32 = vadd.f32 %v2322_v10, %v2304_v24 }
 0x150   :  { %v2341_v19 = vpop.f32.mrf.mxu1  ;;  %v2377_v46 = vadd.f32 %v2376_v13, %v2358_v43 }
 0x151   :  { %v2342_v37 = vadd.f32 %v2341_v19, %v2323_v32 }
 0x155   :  { %v2360_v18 = vpop.f32.mrf.mxu2 }
 0x156   :  { %v2324_v23 = vpop.f32.mrf.mxu0  ;;  %v2361_v34 = vadd.f32 %v2360_v18, %v2342_v37 }
 0x157   :  { %v2379_v38 = vpop.f32.mrf.mxu3  ;;  %v2325_v30 = vadd.f32 %v2324_v23, %v2306_v40 }
 0x158   :  { %v2343_v44 = vpop.f32.mrf.mxu1  ;;  %v2380_v45 = vadd.f32 %v2379_v38, %v2361_v34 }
 0x159   :  { %v2344_v47 = vadd.f32 %v2343_v44, %v2325_v30 }
 0x15d   :  { %v2362_v36 = vpop.f32.mrf.mxu2 }
 0x15e   :  { %v2393_v39 = vpop.f32.mrf.mxu0  ;;  %v2363_v49 = vadd.f32 %v2362_v36, %v2344_v47 }
 0x15f   :  { %v2394_v42 = vadd.f32 %v2393_v39, %v2375_v28  ;;  %v2381_v55 = vpop.f32.mrf.mxu3 }
 0x160   :  { %v2382_v54 = vadd.f32 %v2381_v55, %v2363_v49 }
 0x161   :  { %v2403_v31 = vmul.f32 %v2394_v42, %v2394_v42 }
 0x163   :  { %2443 = vmatmul.f32.vlgmr.msra.gmra.mxu1 %v2403_v31 }
 0x165   :  { %v2398_v35 = vpop.f32.mrf.mxu2 }
 0x166   :  { %v4863_v48 = vadd.f32 %v2398_v35, %v2380_v45  ;;  %v2395_v50 = vpop.f32.mrf.mxu0 }
 0x167   :  { %v2396_v52 = vadd.f32 %v2395_v50, %v2377_v46 }
 0x168   :  { %v2405_v51 = vmul.f32 %v4863_v48, %v4863_v48 }
 0x169   :  { %v2404_v53 = vmul.f32 %v2396_v52, %v2396_v52 }
 0x16a   :  { %2449 = vmatmul.f32.vlgmr.msra.gmra.mxu3 %v2405_v51 }
 0x16b   :  { %2446 = vmatmul.f32.gmra.mxu1 %v2404_v53 }
 0x16d   :  { %v2400_v57 = vpop.f32.mrf.mxu2 }
 0x16e   :  { %v4867_v58 = vadd.f32 %v2400_v57, %v2382_v54 }
 0x170   :  { %v2406_v59 = vmul.f32 %v4867_v58, %v4867_v58 }
 0x172   :  { %2452 = vmatmul.f32.gmra.mxu3 %v2406_v59 }
 0x1e0   :  { %v2444_v61 = vpop.f32.mrf.mxu1 }
 0x1e1   :  { %v2445_v62 = vadd.f32 %v3783_v60, %v2444_v61 }
 0x1e3   :  { %3784 = vrsqrt.f32 %v2445_v62  ;;  %vm2462_vm1 = vweird.f32 %v2445_v62 }
 0x1e8   :  { %v2447_v56 = vpop.f32.mrf.mxu1 }
 0x1e9   :  { %v3785_v0 = vpop.eup %3784  ;;  %v2448_v1 = vadd.f32 %v3783_v60, %v2447_v56 }
 0x1ea   :  { %v2457_v2 = vmul.f32 %v3785_v0, %v2445_v62  ;;  %vm2463_vm0 = vweird.f32 %v3785_v0 }
 0x1eb   :  { %3786 = vrsqrt.f32 %v2448_v1  ;;  %vm2464_vm2 = vmor %vm2462_vm1, %vm2463_vm0  ;;  %vm2472_vm4 = vweird.f32 %v2448_v1 }
 0x1ec   :  { %v2458_v4 = vmul.f32 %v3785_v0, %v2457_v2 }
 0x1ed   :  { %v2450_v7 = vpop.f32.mrf.mxu3 }
 0x1ee   :  { %v2451_v5 = vadd.f32 %v3783_v60, %v2450_v7  ;;  %v2459_v6 = vmul.f32 0.5, %v2458_v4 }
 0x1f0   :  { %3788 = vrsqrt.f32 %v2451_v5  ;;  %v2460_v8 = vsub.f32 1.5, %v2459_v6  ;;  %vm2482_vm7 = vweird.f32 %v2451_v5 }
 0x1f1   :  { %v3787_v9 = vpop.eup %3786 }
 0x1f2   :  { %v2461_v10 = vmul.f32 %v3785_v0, %v2460_v8  ;;  %v2467_v11 = vmul.f32 %v3787_v9, %v2448_v1  ;;  %vm2473_vm3 = vweird.f32 %v3787_v9 }
 0x1f3   :  { %vm2474_vm5 = vmor %vm2472_vm4, %vm2473_vm3 }
 0x1f4   :  { %v2465_v63 = vsel %vm2464_vm2, %v3785_v0, %v2461_v10  ;;  %v2468_v14 = vmul.f32 %v3787_v9, %v2467_v11 }
 0x1f5   :  { %v2453_v15 = vpop.f32.mrf.mxu3  ;;  %v2496_v17 = vmul.f32 %v2465_v63, %v2394_v42 }
 0x1f6   :  { %v3789_v16 = vpop.eup %3788  ;;  %v2454_v3 = vadd.f32 %v3783_v60, %v2453_v15  ;;  %v2469_v12 = vmul.f32 0.5, %v2468_v14 }
 0x1f7   :  { %v2477_v13 = vmul.f32 %v3789_v16, %v2451_v5  ;;  %2500 = vst [vmem:[%s4893_s5] sm:$0xff] %v2496_v17  ;;  %vm2483_vm6 = vweird.f32 %v3789_v16 }
 0x1f8   :  { %3790 = vrsqrt.f32 %v2454_v3  ;;  %v2470_v18 = vsub.f32 1.5, %v2469_v12  ;;  %vm2484_vm8 = vmor %vm2482_vm7, %vm2483_vm6  ;;  %vm2492_vm10 = vweird.f32 %v2454_v3 }
 0x1f9   :  { %v2478_v21 = vmul.f32 %v3789_v16, %v2477_v13 }
 0x1fa   :  { %v2471_v22 = vmul.f32 %v3787_v9, %v2470_v18 }
 0x1fb   :  { %v2479_v23 = vmul.f32 0.5, %v2478_v21 }
 0x1fc   :  { %v2475_v24 = vsel %vm2474_vm5, %v3787_v9, %v2471_v22 }
 0x1fd   :  { %v2480_v26 = vsub.f32 1.5, %v2479_v23  ;;  %v2497_v27 = vmul.f32 %v2475_v24, %v2396_v52 }
 0x1fe   :  { %v3791_v19 = vpop.eup %3790 }
 0x1ff   :  { %v2481_v29 = vmul.f32 %v3789_v16, %v2480_v26  ;;  %v2487_v25 = vmul.f32 %v3791_v19, %v2454_v3  ;;  %2501 = vst [vmem:[%s4893_s5 + $0x8] sm:$0xff] %v2497_v27  ;;  %vm2493_vm9 = vweird.f32 %v3791_v19 }
 0x200   :  { %vm2494_vm11 = vmor %vm2492_vm10, %vm2493_vm9 }
 0x201   :  { %v2485_v32 = vsel %vm2484_vm8, %v3789_v16, %v2481_v29  ;;  %v2488_v33 = vmul.f32 %v3791_v19, %v2487_v25 }
 0x202   :  { %v2498_v20 = vmul.f32 %v2485_v32, %v4863_v48 }
 0x203   :  { %v2489_v36 = vmul.f32 0.5, %v2488_v33 }
 0x204   :  { %2502 = vst [vmem:[%s4893_s5 + $0x10] sm:$0xff] %v2498_v20 }
 0x205   :  { %v2490_v28 = vsub.f32 1.5, %v2489_v36 }
 0x207   :  { %v2491_v37 = vmul.f32 %v3791_v19, %v2490_v28 }
 0x209   :  { %v2495_v38 = vsel %vm2494_vm11, %v3791_v19, %v2491_v37 }
 0x20a   :  { %v2499_v39 = vmul.f32 %v2495_v38, %v4867_v58 }
 0x20c   :  { %2503 = vst [vmem:[%s4893_s5 + $0x18] sm:$0xff] %v2499_v39 }

// kernel: image_compressor_forward.31
= control target key start
LH: loop header
LB: loop body
LE: loop exit
PB: predicated region body
PF: predicated region fallthrough
CT: control target
= control target key end

     0   :  { %s4037_s1 = inlined_call_operand.vmem [shape: bf16[3200,128], index: 1, kind: input, shape index: {}]   ;;  %s4038_s0 = inlined_call_operand.vmem [shape: bf16[16,3200], index: 0, kind: input, shape index: {}]   ;;  %s4039_s2 = inlined_call_operand.vmem [shape: f32[1,128], index: 2, kind: input, shape index: {}]   ;;  %s4040_s3 = inlined_call_operand.vmem [shape: f32[16,128], index: 3, kind: output, shape index: {}]  }
   0x1   :  { %v3064_v0 = vld [vmem:[%s4037_s1 + $0x38] sm:$0xff]  ;;  %v3063_v4 = vld [vmem:[%s4037_s1 + $0x30] sm:$0xff]  ;;  %v3062_v8 = vld [vmem:[%s4037_s1 + $0x28] sm:$0xff] }
   0x2   :  { %v3080_v1 = vld [vmem:[%s4037_s1 + $0xb8] sm:$0xff]  ;;  %1770 = vmatpush.bf16.msra.mxu0 %v3064_v0  ;;  %v3079_v5 = vld [vmem:[%s4037_s1 + $0xb0] sm:$0xff]  ;;  %v3078_v9 = vld [vmem:[%s4037_s1 + $0xa8] sm:$0xff] }
   0x3   :  { %v3072_v2 = vld [vmem:[%s4037_s1 + $0x78] sm:$0xff]  ;;  %1798 = vmatpush.bf16.msra.mxu2 %v3080_v1  ;;  %v3071_v6 = vld [vmem:[%s4037_s1 + $0x70] sm:$0xff]  ;;  %v3070_v10 = vld [vmem:[%s4037_s1 + $0x68] sm:$0xff] }
   0x4   :  { %v3088_v3 = vld [vmem:[%s4037_s1 + $0xf8] sm:$0xff]  ;;  %1784 = vmatpush.bf16.msra.mxu1 %v3072_v2  ;;  %v3087_v7 = vld [vmem:[%s4037_s1 + $0xf0] sm:$0xff]  ;;  %v3086_v11 = vld [vmem:[%s4037_s1 + $0xe8] sm:$0xff] }
   0x5   :  { %1812 = vmatpush.bf16.msra.mxu3 %v3088_v3  ;;  %v3061_v12 = vld [vmem:[%s4037_s1 + $0x20] sm:$0xff]  ;;  %v3060_v16 = vld [vmem:[%s4037_s1 + $0x18] sm:$0xff]  ;;  %v3059_v20 = vld [vmem:[%s4037_s1 + $0x10] sm:$0xff] }
   0x6   :  { %1771 = vmatpush.bf16.msra.mxu0 %v3063_v4  ;;  %v3077_v13 = vld [vmem:[%s4037_s1 + $0xa0] sm:$0xff]  ;;  %v3076_v17 = vld [vmem:[%s4037_s1 + $0x98] sm:$0xff]  ;;  %v3075_v21 = vld [vmem:[%s4037_s1 + $0x90] sm:$0xff] }
   0x7   :  { %1799 = vmatpush.bf16.msra.mxu2 %v3079_v5  ;;  %v3069_v14 = vld [vmem:[%s4037_s1 + $0x60] sm:$0xff]  ;;  %v3068_v18 = vld [vmem:[%s4037_s1 + $0x58] sm:$0xff]  ;;  %v3067_v22 = vld [vmem:[%s4037_s1 + $0x50] sm:$0xff] }
   0x8   :  { %1785 = vmatpush.bf16.msra.mxu1 %v3071_v6  ;;  %v3085_v15 = vld [vmem:[%s4037_s1 + $0xe0] sm:$0xff]  ;;  %v3084_v19 = vld [vmem:[%s4037_s1 + $0xd8] sm:$0xff]  ;;  %v3083_v23 = vld [vmem:[%s4037_s1 + $0xd0] sm:$0xff] }
   0x9   :  { %1813 = vmatpush.bf16.msra.mxu3 %v3087_v7  ;;  %v3058_v24 = vld [vmem:[%s4037_s1 + $0x8] sm:$0xff]  ;;  %v3057_v28 = vld [vmem:[%s4037_s1] sm:$0xff]  ;;  %v3096_v30 = vld [vmem:[%s4037_s1 + $0x138] sm:$0xff] }
   0xa   :  { %1772 = vmatpush.bf16.msra.mxu0 %v3062_v8  ;;  %v3074_v25 = vld [vmem:[%s4037_s1 + $0x88] sm:$0xff]  ;;  %v3073_v29 = vld [vmem:[%s4037_s1 + $0x80] sm:$0xff]  ;;  %v3112_v31 = vld [vmem:[%s4037_s1 + $0x1b8] sm:$0xff] }
   0xb   :  { %1800 = vmatpush.bf16.msra.mxu2 %v3078_v9  ;;  %v3066_v26 = vld [vmem:[%s4037_s1 + $0x48] sm:$0xff]  ;;  %v3065_v32 = vld [vmem:[%s4037_s1 + $0x40] sm:$0xff]  ;;  %v3104_v38 = vld [vmem:[%s4037_s1 + $0x178] sm:$0xff] }
   0xc   :  { %1786 = vmatpush.bf16.msra.mxu1 %v3070_v10  ;;  %v3082_v27 = vld [vmem:[%s4037_s1 + $0xc8] sm:$0xff]  ;;  %v3081_v33 = vld [vmem:[%s4037_s1 + $0xc0] sm:$0xff]  ;;  %v3120_v39 = vld [vmem:[%s4037_s1 + $0x1f8] sm:$0xff] }
   0xd   :  { %1814 = vmatpush.bf16.msra.mxu3 %v3086_v11  ;;  %v2132_v34 = vld [vmem:[%s4038_s0] sm:$0xf]  ;;  %v3044_v35 = vld [vmem:[%s4038_s0 + $0x60] sm:$0xf0]  ;;  %v2140_v36 = vld [vmem:[%s4038_s0 + $0x8] sm:$0xf] }
   0xe   :  { %1773 = vmatpush.bf16.msra.mxu0 %v3061_v12  ;;  %v3045_v37 = vld [vmem:[%s4038_s0 + $0x68] sm:$0xf0]  ;;  %v3032_v40 = vld [vmem:[%s4038_s0 + $0x4] sm:$0xf]  ;;  %v2134_v41 = vld [vmem:[%s4038_s0 + $0x64] sm:$0xf0]  ;;  %v2133_v44 = vor.u32 %v3044_v35, %v2132_v34 }
   0xf   :  { %1801 = vmatpush.bf16.msra.mxu2 %v3077_v13  ;;  %v3033_v42 = vld [vmem:[%s4038_s0 + $0xc] sm:$0xf]  ;;  %v2142_v43 = vld [vmem:[%s4038_s0 + $0x6c] sm:$0xf0]  ;;  %v2141_v45 = vor.u32 %v3045_v37, %v2140_v36  ;;  %v2137_v48 = vor.u32 %v3032_v40, %v2134_v41  ;;  %v3093_v56 = vld [vmem:[%s4037_s1 + $0x120] sm:$0xff] }
  0x10   :  { %1787 = vmatpush.bf16.msra.mxu1 %v3069_v14  ;;  %v3095_v46 = vld [vmem:[%s4037_s1 + $0x130] sm:$0xff]  ;;  %v2145_v49 = vor.u32 %v3033_v42, %v2142_v43  ;;  %v3094_v52 = vld [vmem:[%s4037_s1 + $0x128] sm:$0xff]  ;;  %v3109_v57 = vld [vmem:[%s4037_s1 + $0x1a0] sm:$0xff] }
  0x11   :  { %1815 = vmatpush.bf16.msra.mxu3 %v3085_v15  ;;  %v3111_v47 = vld [vmem:[%s4037_s1 + $0x1b0] sm:$0xff]  ;;  %v3110_v53 = vld [vmem:[%s4037_s1 + $0x1a8] sm:$0xff]  ;;  %v3101_v58 = vld [vmem:[%s4037_s1 + $0x160] sm:$0xff] }
  0x12   :  { %1774 = vmatpush.bf16.msra.mxu0 %v3060_v16  ;;  %v3103_v50 = vld [vmem:[%s4037_s1 + $0x170] sm:$0xff]  ;;  %v3102_v54 = vld [vmem:[%s4037_s1 + $0x168] sm:$0xff]  ;;  %v3117_v59 = vld [vmem:[%s4037_s1 + $0x1e0] sm:$0xff] }
  0x13   :  { %1802 = vmatpush.bf16.msra.mxu2 %v3076_v17  ;;  %v3119_v51 = vld [vmem:[%s4037_s1 + $0x1f0] sm:$0xff]  ;;  %v3118_v55 = vld [vmem:[%s4037_s1 + $0x1e8] sm:$0xff]  ;;  %v3092_v60 = vld [vmem:[%s4037_s1 + $0x118] sm:$0xff] }
  0x14   :  { %1788 = vmatpush.bf16.msra.mxu1 %v3068_v18  ;;  %v3108_v61 = vld [vmem:[%s4037_s1 + $0x198] sm:$0xff]  ;;  %v3091_v0 = vld [vmem:[%s4037_s1 + $0x110] sm:$0xff]  ;;  %v3090_v4 = vld [vmem:[%s4037_s1 + $0x108] sm:$0xff] }
  0x15   :  { %1816 = vmatpush.bf16.msra.mxu3 %v3084_v19  ;;  %v3100_v62 = vld [vmem:[%s4037_s1 + $0x158] sm:$0xff]  ;;  %v3107_v1 = vld [vmem:[%s4037_s1 + $0x190] sm:$0xff]  ;;  %v3106_v5 = vld [vmem:[%s4037_s1 + $0x188] sm:$0xff] }
  0x16   :  { %1775 = vmatpush.bf16.msra.mxu0 %v3059_v20  ;;  %v3116_v63 = vld [vmem:[%s4037_s1 + $0x1d8] sm:$0xff]  ;;  %v3099_v2 = vld [vmem:[%s4037_s1 + $0x150] sm:$0xff]  ;;  %v3098_v6 = vld [vmem:[%s4037_s1 + $0x148] sm:$0xff] }
  0x17   :  { %1803 = vmatpush.bf16.msra.mxu2 %v3075_v21  ;;  %v3115_v3 = vld [vmem:[%s4037_s1 + $0x1d0] sm:$0xff]  ;;  %v3114_v7 = vld [vmem:[%s4037_s1 + $0x1c8] sm:$0xff]  ;;  %v3089_v8 = vld [vmem:[%s4037_s1 + $0x100] sm:$0xff] }
  0x18   :  { %1789 = vmatpush.bf16.msra.mxu1 %v3067_v22  ;;  %v3105_v9 = vld [vmem:[%s4037_s1 + $0x180] sm:$0xff]  ;;  %v3128_v10 = vld [vmem:[%s4037_s1 + $0x238] sm:$0xff]  ;;  %v2148_v12 = vld [vmem:[%s4038_s0 + $0x10] sm:$0xf] }
  0x19   :  { %1817 = vmatpush.bf16.msra.mxu3 %v3083_v23  ;;  %v3144_v11 = vld [vmem:[%s4037_s1 + $0x2b8] sm:$0xff]  ;;  %v3046_v13 = vld [vmem:[%s4038_s0 + $0x70] sm:$0xf0]  ;;  %v3097_v16 = vld [vmem:[%s4037_s1 + $0x140] sm:$0xff] }
  0x1a   :  { %1776 = vmatpush.bf16.msra.mxu0 %v3058_v24  ;;  %v2156_v14 = vld [vmem:[%s4038_s0 + $0x18] sm:$0xf]  ;;  %v3047_v15 = vld [vmem:[%s4038_s0 + $0x78] sm:$0xf0]  ;;  %v3113_v17 = vld [vmem:[%s4037_s1 + $0x1c0] sm:$0xff]  ;;  %v2149_v22 = vor.u32 %v3046_v13, %v2148_v12 }
  0x1b   :  { %1804 = vmatpush.bf16.msra.mxu2 %v3074_v25  ;;  %v3034_v18 = vld [vmem:[%s4038_s0 + $0x14] sm:$0xf]  ;;  %v2150_v19 = vld [vmem:[%s4038_s0 + $0x74] sm:$0xf0]  ;;  %v3035_v20 = vld [vmem:[%s4038_s0 + $0x1c] sm:$0xf]  ;;  %v2157_v23 = vor.u32 %v3047_v15, %v2156_v14 }
  0x1c   :  { %1790 = vmatpush.bf16.msra.mxu1 %v3066_v26  ;;  %v2158_v21 = vld [vmem:[%s4038_s0 + $0x7c] sm:$0xf0]  ;;  %v3136_v24 = vld [vmem:[%s4037_s1 + $0x278] sm:$0xff]  ;;  %v2153_v26 = vor.u32 %v3034_v18, %v2150_v19  ;;  %v3134_v34 = vld [vmem:[%s4037_s1 + $0x268] sm:$0xff] }
  0x1d   :  { %1818 = vmatpush.bf16.msra.mxu3 %v3082_v27  ;;  %v3152_v25 = vld [vmem:[%s4037_s1 + $0x2f8] sm:$0xff]  ;;  %v2161_v27 = vor.u32 %v3035_v20, %v2158_v21  ;;  %v3150_v35 = vld [vmem:[%s4037_s1 + $0x2e8] sm:$0xff]  ;;  %v3125_v36 = vld [vmem:[%s4037_s1 + $0x220] sm:$0xff] }
  0x1e   :  { %1777 = vmatpush.bf16.msra.mxu0 %v3057_v28  ;;  %v3127_v28 = vld [vmem:[%s4037_s1 + $0x230] sm:$0xff]  ;;  %v3141_v37 = vld [vmem:[%s4037_s1 + $0x2a0] sm:$0xff]  ;;  %v3124_v40 = vld [vmem:[%s4037_s1 + $0x218] sm:$0xff] }
  0x1f   :  { %1805 = vmatpush.bf16.msra.mxu2 %v3073_v29  ;;  %v3143_v29 = vld [vmem:[%s4037_s1 + $0x2b0] sm:$0xff]  ;;  %v3140_v41 = vld [vmem:[%s4037_s1 + $0x298] sm:$0xff]  ;;  %v3158_v12 = vld [vmem:[%s4037_s1 + $0x328] sm:$0xff] }
  0x20   :  { %1791 = vmatpush.bf16.msra.mxu1 %v3065_v32  ;;  %v3126_v32 = vld [vmem:[%s4037_s1 + $0x228] sm:$0xff]  ;;  %v3132_v42 = vld [vmem:[%s4037_s1 + $0x258] sm:$0xff]  ;;  %v3165_v18 = vld [vmem:[%s4037_s1 + $0x360] sm:$0xff] }
  0x21   :  { %1819 = vmatpush.bf16.msra.mxu3 %v3081_v33  ;;  %1778 = vmatmul.bf16.vlgmr.msra.gmra.mxu0 %v2133_v44  ;;  %v3142_v33 = vld [vmem:[%s4037_s1 + $0x2a8] sm:$0xff]  ;;  %v3148_v43 = vld [vmem:[%s4037_s1 + $0x2d8] sm:$0xff]  ;;  %v3123_v44 = vld [vmem:[%s4037_s1 + $0x210] sm:$0xff] }
  0x22   :  { %1826 = vmatpush.bf16.msrb.mxu0 %v3096_v30  ;;  %1806 = vmatmul.bf16.vlgmr.msra.gmra.mxu2 %v2141_v45  ;;  %v3135_v30 = vld [vmem:[%s4037_s1 + $0x270] sm:$0xff]  ;;  %v3174_v13 = vld [vmem:[%s4037_s1 + $0x3a8] sm:$0xff]  ;;  %v3181_v19 = vld [vmem:[%s4037_s1 + $0x3e0] sm:$0xff] }
  0x23   :  { %1854 = vmatpush.bf16.msrb.mxu2 %v3112_v31  ;;  %1792 = vmatmul.bf16.vlgmr.msra.gmra.mxu1 %v2137_v48  ;;  %v3151_v31 = vld [vmem:[%s4037_s1 + $0x2f0] sm:$0xff]  ;;  %v3122_v48 = vld [vmem:[%s4037_s1 + $0x208] sm:$0xff]  ;;  %v3156_v20 = vld [vmem:[%s4037_s1 + $0x318] sm:$0xff] }
  0x24   :  { %1840 = vmatpush.bf16.msrb.mxu1 %v3104_v38  ;;  %1820 = vmatmul.bf16.vlgmr.msra.gmra.mxu3 %v2145_v49  ;;  %v3133_v38 = vld [vmem:[%s4037_s1 + $0x260] sm:$0xff]  ;;  %v3139_v45 = vld [vmem:[%s4037_s1 + $0x290] sm:$0xff]  ;;  %v3138_v49 = vld [vmem:[%s4037_s1 + $0x288] sm:$0xff] }
  0x25   :  { %1868 = vmatpush.bf16.msrb.mxu3 %v3120_v39  ;;  %v3149_v39 = vld [vmem:[%s4037_s1 + $0x2e0] sm:$0xff]  ;;  %v3166_v14 = vld [vmem:[%s4037_s1 + $0x368] sm:$0xff]  ;;  %v3172_v21 = vld [vmem:[%s4037_s1 + $0x398] sm:$0xff] }
  0x26   :  { %1827 = vmatpush.bf16.msrb.mxu0 %v3095_v46  ;;  %v3131_v46 = vld [vmem:[%s4037_s1 + $0x250] sm:$0xff]  ;;  %v3182_v15 = vld [vmem:[%s4037_s1 + $0x3e8] sm:$0xff] }
  0x27   :  { %1855 = vmatpush.bf16.msrb.mxu2 %v3111_v47  ;;  %v3147_v47 = vld [vmem:[%s4037_s1 + $0x2d0] sm:$0xff] }
  0x28   :  { %1841 = vmatpush.bf16.msrb.mxu1 %v3103_v50  ;;  %v3130_v50 = vld [vmem:[%s4037_s1 + $0x248] sm:$0xff] }
  0x29   :  { %1869 = vmatpush.bf16.msrb.mxu3 %v3119_v51  ;;  %v3146_v51 = vld [vmem:[%s4037_s1 + $0x2c8] sm:$0xff] }
  0x2a   :  { %1828 = vmatpush.bf16.msrb.mxu0 %v3094_v52  ;;  %v3121_v52 = vld [vmem:[%s4037_s1 + $0x200] sm:$0xff] }
  0x2b   :  { %1856 = vmatpush.bf16.msrb.mxu2 %v3110_v53  ;;  %v3137_v53 = vld [vmem:[%s4037_s1 + $0x280] sm:$0xff] }
  0x2c   :  { %1842 = vmatpush.bf16.msrb.mxu1 %v3102_v54  ;;  %v3160_v54 = vld [vmem:[%s4037_s1 + $0x338] sm:$0xff] }
  0x2d   :  { %1870 = vmatpush.bf16.msrb.mxu3 %v3118_v55  ;;  %v3176_v55 = vld [vmem:[%s4037_s1 + $0x3b8] sm:$0xff] }
  0x2e   :  { %1829 = vmatpush.bf16.msrb.mxu0 %v3093_v56  ;;  %v2164_v56 = vld [vmem:[%s4038_s0 + $0x20] sm:$0xf] }
  0x2f   :  { %1857 = vmatpush.bf16.msrb.mxu2 %v3109_v57  ;;  %v3048_v57 = vld [vmem:[%s4038_s0 + $0x80] sm:$0xf0] }
  0x30   :  { %1843 = vmatpush.bf16.msrb.mxu1 %v3101_v58  ;;  %v2172_v58 = vld [vmem:[%s4038_s0 + $0x28] sm:$0xf] }
  0x31   :  { %1871 = vmatpush.bf16.msrb.mxu3 %v3117_v59  ;;  %v3049_v59 = vld [vmem:[%s4038_s0 + $0x88] sm:$0xf0] }
  0x32   :  { %1830 = vmatpush.bf16.msrb.mxu0 %v3092_v60  ;;  %v3129_v60 = vld [vmem:[%s4037_s1 + $0x240] sm:$0xff] }
  0x33   :  { %1858 = vmatpush.bf16.msrb.mxu2 %v3108_v61  ;;  %v3145_v61 = vld [vmem:[%s4037_s1 + $0x2c0] sm:$0xff] }
  0x34   :  { %1844 = vmatpush.bf16.msrb.mxu1 %v3100_v62  ;;  %v3036_v62 = vld [vmem:[%s4038_s0 + $0x24] sm:$0xf] }
  0x35   :  { %1872 = vmatpush.bf16.msrb.mxu3 %v3116_v63  ;;  %v2166_v63 = vld [vmem:[%s4038_s0 + $0x84] sm:$0xf0] }
  0x36   :  { %1831 = vmatpush.bf16.msrb.mxu0 %v3091_v0  ;;  %v3037_v0 = vld [vmem:[%s4038_s0 + $0x2c] sm:$0xf] }
  0x37   :  { %1859 = vmatpush.bf16.msrb.mxu2 %v3107_v1  ;;  %v2174_v1 = vld [vmem:[%s4038_s0 + $0x8c] sm:$0xf0] }
  0x38   :  { %1845 = vmatpush.bf16.msrb.mxu1 %v3099_v2  ;;  %v2165_v2 = vor.u32 %v3048_v57, %v2164_v56  ;;  %v3190_v56 = vld [vmem:[%s4037_s1 + $0x428] sm:$0xff] }
  0x39   :  { %1873 = vmatpush.bf16.msrb.mxu3 %v3115_v3  ;;  %v2173_v3 = vor.u32 %v3049_v59, %v2172_v58  ;;  %v3206_v57 = vld [vmem:[%s4037_s1 + $0x4a8] sm:$0xff] }
  0x3a   :  { %1832 = vmatpush.bf16.msrb.mxu0 %v3090_v4  ;;  %v3168_v4 = vld [vmem:[%s4037_s1 + $0x378] sm:$0xff]  ;;  %v3198_v58 = vld [vmem:[%s4037_s1 + $0x468] sm:$0xff] }
  0x3b   :  { %1860 = vmatpush.bf16.msrb.mxu2 %v3106_v5  ;;  %v3184_v5 = vld [vmem:[%s4037_s1 + $0x3f8] sm:$0xff]  ;;  %v3214_v59 = vld [vmem:[%s4037_s1 + $0x4e8] sm:$0xff] }
  0x3c   :  { %1846 = vmatpush.bf16.msrb.mxu1 %v3098_v6  ;;  %v2169_v6 = vor.u32 %v3036_v62, %v2166_v63  ;;  %v3197_v62 = vld [vmem:[%s4037_s1 + $0x460] sm:$0xff] }
  0x3d   :  { %1874 = vmatpush.bf16.msrb.mxu3 %v3114_v7  ;;  %v2177_v7 = vor.u32 %v3037_v0, %v2174_v1  ;;  %v3213_v63 = vld [vmem:[%s4037_s1 + $0x4e0] sm:$0xff]  ;;  %v3188_v0 = vld [vmem:[%s4037_s1 + $0x418] sm:$0xff] }
  0x3e   :  { %1833 = vmatpush.bf16.msrb.mxu0 %v3089_v8  ;;  %v3159_v8 = vld [vmem:[%s4037_s1 + $0x330] sm:$0xff]  ;;  %v3204_v1 = vld [vmem:[%s4037_s1 + $0x498] sm:$0xff] }
  0x3f   :  { %1861 = vmatpush.bf16.msrb.mxu2 %v3105_v9  ;;  %v3175_v9 = vld [vmem:[%s4037_s1 + $0x3b0] sm:$0xff] }
  0x40   :  { %1847 = vmatpush.bf16.msrb.mxu1 %v3097_v16  ;;  %v3157_v16 = vld [vmem:[%s4037_s1 + $0x320] sm:$0xff] }
  0x41   :  { %1875 = vmatpush.bf16.msrb.mxu3 %v3113_v17  ;;  %1834 = vmatmul.bf16.vlgmr.msrb.gmra.mxu0 %v2149_v22  ;;  %v3173_v17 = vld [vmem:[%s4037_s1 + $0x3a0] sm:$0xff]  ;;  %v3164_v22 = vld [vmem:[%s4037_s1 + $0x358] sm:$0xff] }
  0x42   :  { %1882 = vmatpush.bf16.msra.mxu0 %v3128_v10  ;;  %1862 = vmatmul.bf16.vlgmr.msrb.gmra.mxu2 %v2157_v23  ;;  %v3167_v10 = vld [vmem:[%s4037_s1 + $0x370] sm:$0xff]  ;;  %v3180_v23 = vld [vmem:[%s4037_s1 + $0x3d8] sm:$0xff] }
  0x43   :  { %1910 = vmatpush.bf16.msra.mxu2 %v3144_v11  ;;  %1848 = vmatmul.bf16.vlgmr.msrb.gmra.mxu1 %v2153_v26  ;;  %v3183_v11 = vld [vmem:[%s4037_s1 + $0x3f0] sm:$0xff] }
  0x44   :  { %1896 = vmatpush.bf16.msra.mxu1 %v3136_v24  ;;  %1876 = vmatmul.bf16.vlgmr.msrb.gmra.mxu3 %v2161_v27  ;;  %v3155_v24 = vld [vmem:[%s4037_s1 + $0x310] sm:$0xff] }
  0x45   :  { %1924 = vmatpush.bf16.msra.mxu3 %v3152_v25  ;;  %v3171_v25 = vld [vmem:[%s4037_s1 + $0x390] sm:$0xff] }
  0x46   :  { %1883 = vmatpush.bf16.msra.mxu0 %v3127_v28  ;;  %v3163_v26 = vld [vmem:[%s4037_s1 + $0x350] sm:$0xff]  ;;  %v3154_v28 = vld [vmem:[%s4037_s1 + $0x308] sm:$0xff] }
  0x47   :  { %1911 = vmatpush.bf16.msra.mxu2 %v3143_v29  ;;  %v3179_v27 = vld [vmem:[%s4037_s1 + $0x3d0] sm:$0xff]  ;;  %v3170_v29 = vld [vmem:[%s4037_s1 + $0x388] sm:$0xff] }
  0x48   :  { %1897 = vmatpush.bf16.msra.mxu1 %v3135_v30  ;;  %v3162_v30 = vld [vmem:[%s4037_s1 + $0x348] sm:$0xff] }
  0x49   :  { %1925 = vmatpush.bf16.msra.mxu3 %v3151_v31  ;;  %v3178_v31 = vld [vmem:[%s4037_s1 + $0x3c8] sm:$0xff] }
  0x4a   :  { %1884 = vmatpush.bf16.msra.mxu0 %v3126_v32  ;;  %v3153_v32 = vld [vmem:[%s4037_s1 + $0x300] sm:$0xff] }
  0x4b   :  { %1912 = vmatpush.bf16.msra.mxu2 %v3142_v33  ;;  %v3169_v33 = vld [vmem:[%s4037_s1 + $0x380] sm:$0xff] }
  0x4c   :  { %1898 = vmatpush.bf16.msra.mxu1 %v3134_v34  ;;  %v3192_v34 = vld [vmem:[%s4037_s1 + $0x438] sm:$0xff] }
  0x4d   :  { %1926 = vmatpush.bf16.msra.mxu3 %v3150_v35  ;;  %v3208_v35 = vld [vmem:[%s4037_s1 + $0x4b8] sm:$0xff] }
  0x4e   :  { %1885 = vmatpush.bf16.msra.mxu0 %v3125_v36  ;;  %v2180_v36 = vld [vmem:[%s4038_s0 + $0x30] sm:$0xf] }
  0x4f   :  { %1913 = vmatpush.bf16.msra.mxu2 %v3141_v37  ;;  %v3050_v37 = vld [vmem:[%s4038_s0 + $0x90] sm:$0xf0] }
  0x50   :  { %1899 = vmatpush.bf16.msra.mxu1 %v3133_v38  ;;  %v2188_v38 = vld [vmem:[%s4038_s0 + $0x38] sm:$0xf] }
  0x51   :  { %1927 = vmatpush.bf16.msra.mxu3 %v3149_v39  ;;  %v3051_v39 = vld [vmem:[%s4038_s0 + $0x98] sm:$0xf0] }
  0x52   :  { %1886 = vmatpush.bf16.msra.mxu0 %v3124_v40  ;;  %v3161_v40 = vld [vmem:[%s4037_s1 + $0x340] sm:$0xff] }
  0x53   :  { %1914 = vmatpush.bf16.msra.mxu2 %v3140_v41  ;;  %v3177_v41 = vld [vmem:[%s4037_s1 + $0x3c0] sm:$0xff] }
  0x54   :  { %1900 = vmatpush.bf16.msra.mxu1 %v3132_v42  ;;  %v3038_v42 = vld [vmem:[%s4038_s0 + $0x34] sm:$0xf] }
  0x55   :  { %1928 = vmatpush.bf16.msra.mxu3 %v3148_v43  ;;  %v2182_v43 = vld [vmem:[%s4038_s0 + $0x94] sm:$0xf0] }
  0x56   :  { %1887 = vmatpush.bf16.msra.mxu0 %v3123_v44  ;;  %v3039_v44 = vld [vmem:[%s4038_s0 + $0x3c] sm:$0xf] }
  0x57   :  { %1915 = vmatpush.bf16.msra.mxu2 %v3139_v45  ;;  %v2190_v45 = vld [vmem:[%s4038_s0 + $0x9c] sm:$0xf0] }
  0x58   :  { %1901 = vmatpush.bf16.msra.mxu1 %v3131_v46  ;;  %v2181_v46 = vor.u32 %v3050_v37, %v2180_v36  ;;  %v3222_v36 = vld [vmem:[%s4037_s1 + $0x528] sm:$0xff] }
  0x59   :  { %1929 = vmatpush.bf16.msra.mxu3 %v3147_v47  ;;  %v2189_v47 = vor.u32 %v3051_v39, %v2188_v38  ;;  %v3238_v37 = vld [vmem:[%s4037_s1 + $0x5a8] sm:$0xff] }
  0x5a   :  { %1888 = vmatpush.bf16.msra.mxu0 %v3122_v48  ;;  %v3200_v48 = vld [vmem:[%s4037_s1 + $0x478] sm:$0xff]  ;;  %v3230_v38 = vld [vmem:[%s4037_s1 + $0x568] sm:$0xff] }
  0x5b   :  { %1916 = vmatpush.bf16.msra.mxu2 %v3138_v49  ;;  %v3216_v49 = vld [vmem:[%s4037_s1 + $0x4f8] sm:$0xff]  ;;  %v3246_v39 = vld [vmem:[%s4037_s1 + $0x5e8] sm:$0xff] }
  0x5c   :  { %1902 = vmatpush.bf16.msra.mxu1 %v3130_v50  ;;  %v2185_v50 = vor.u32 %v3038_v42, %v2182_v43  ;;  %v3229_v42 = vld [vmem:[%s4037_s1 + $0x560] sm:$0xff] }
  0x5d   :  { %1930 = vmatpush.bf16.msra.mxu3 %v3146_v51  ;;  %v2193_v51 = vor.u32 %v3039_v44, %v2190_v45  ;;  %v3245_v43 = vld [vmem:[%s4037_s1 + $0x5e0] sm:$0xff]  ;;  %v3220_v44 = vld [vmem:[%s4037_s1 + $0x518] sm:$0xff] }
  0x5e   :  { %1889 = vmatpush.bf16.msra.mxu0 %v3121_v52  ;;  %v3191_v52 = vld [vmem:[%s4037_s1 + $0x430] sm:$0xff]  ;;  %v3236_v45 = vld [vmem:[%s4037_s1 + $0x598] sm:$0xff] }
  0x5f   :  { %1917 = vmatpush.bf16.msra.mxu2 %v3137_v53  ;;  %v3207_v53 = vld [vmem:[%s4037_s1 + $0x4b0] sm:$0xff] }
  0x60   :  { %1903 = vmatpush.bf16.msra.mxu1 %v3129_v60  ;;  %v3189_v60 = vld [vmem:[%s4037_s1 + $0x420] sm:$0xff] }
  0x61   :  { %1931 = vmatpush.bf16.msra.mxu3 %v3145_v61  ;;  %1890 = vmatmul.bf16.vlgmr.msra.gmra.mxu0 %v2165_v2  ;;  %v3205_v61 = vld [vmem:[%s4037_s1 + $0x4a0] sm:$0xff]  ;;  %v3196_v2 = vld [vmem:[%s4037_s1 + $0x458] sm:$0xff] }
  0x62   :  { %1938 = vmatpush.bf16.msrb.mxu0 %v3160_v54  ;;  %1918 = vmatmul.bf16.vlgmr.msra.gmra.mxu2 %v2173_v3  ;;  %v3199_v54 = vld [vmem:[%s4037_s1 + $0x470] sm:$0xff]  ;;  %v3212_v3 = vld [vmem:[%s4037_s1 + $0x4d8] sm:$0xff] }
  0x63   :  { %1966 = vmatpush.bf16.msrb.mxu2 %v3176_v55  ;;  %1904 = vmatmul.bf16.vlgmr.msra.gmra.mxu1 %v2169_v6  ;;  %v3215_v55 = vld [vmem:[%s4037_s1 + $0x4f0] sm:$0xff] }
  0x64   :  { %1952 = vmatpush.bf16.msrb.mxu1 %v3168_v4  ;;  %1932 = vmatmul.bf16.vlgmr.msra.gmra.mxu3 %v2177_v7  ;;  %v3187_v4 = vld [vmem:[%s4037_s1 + $0x410] sm:$0xff] }
  0x65   :  { %1980 = vmatpush.bf16.msrb.mxu3 %v3184_v5  ;;  %v3203_v5 = vld [vmem:[%s4037_s1 + $0x490] sm:$0xff] }
  0x66   :  { %1939 = vmatpush.bf16.msrb.mxu0 %v3159_v8  ;;  %v3195_v6 = vld [vmem:[%s4037_s1 + $0x450] sm:$0xff]  ;;  %v3186_v8 = vld [vmem:[%s4037_s1 + $0x408] sm:$0xff] }
  0x67   :  { %1967 = vmatpush.bf16.msrb.mxu2 %v3175_v9  ;;  %v3211_v7 = vld [vmem:[%s4037_s1 + $0x4d0] sm:$0xff]  ;;  %v3202_v9 = vld [vmem:[%s4037_s1 + $0x488] sm:$0xff] }
  0x68   :  { %1953 = vmatpush.bf16.msrb.mxu1 %v3167_v10  ;;  %v3194_v10 = vld [vmem:[%s4037_s1 + $0x448] sm:$0xff] }
  0x69   :  { %1981 = vmatpush.bf16.msrb.mxu3 %v3183_v11  ;;  %v3210_v11 = vld [vmem:[%s4037_s1 + $0x4c8] sm:$0xff] }
  0x6a   :  { %1940 = vmatpush.bf16.msrb.mxu0 %v3158_v12  ;;  %v3185_v12 = vld [vmem:[%s4037_s1 + $0x400] sm:$0xff] }
  0x6b   :  { %1968 = vmatpush.bf16.msrb.mxu2 %v3174_v13  ;;  %v3201_v13 = vld [vmem:[%s4037_s1 + $0x480] sm:$0xff] }
  0x6c   :  { %1954 = vmatpush.bf16.msrb.mxu1 %v3166_v14  ;;  %v3224_v14 = vld [vmem:[%s4037_s1 + $0x538] sm:$0xff] }
  0x6d   :  { %1982 = vmatpush.bf16.msrb.mxu3 %v3182_v15  ;;  %v3240_v15 = vld [vmem:[%s4037_s1 + $0x5b8] sm:$0xff] }
  0x6e   :  { %1941 = vmatpush.bf16.msrb.mxu0 %v3157_v16  ;;  %v2196_v16 = vld [vmem:[%s4038_s0 + $0x40] sm:$0xf] }
  0x6f   :  { %1969 = vmatpush.bf16.msrb.mxu2 %v3173_v17  ;;  %v3052_v17 = vld [vmem:[%s4038_s0 + $0xa0] sm:$0xf0] }
  0x70   :  { %1955 = vmatpush.bf16.msrb.mxu1 %v3165_v18  ;;  %v2204_v18 = vld [vmem:[%s4038_s0 + $0x48] sm:$0xf] }
  0x71   :  { %1983 = vmatpush.bf16.msrb.mxu3 %v3181_v19  ;;  %v3053_v19 = vld [vmem:[%s4038_s0 + $0xa8] sm:$0xf0] }
  0x72   :  { %1942 = vmatpush.bf16.msrb.mxu0 %v3156_v20  ;;  %v3193_v20 = vld [vmem:[%s4037_s1 + $0x440] sm:$0xff] }
  0x73   :  { %1970 = vmatpush.bf16.msrb.mxu2 %v3172_v21  ;;  %v3209_v21 = vld [vmem:[%s4037_s1 + $0x4c0] sm:$0xff] }
  0x74   :  { %1956 = vmatpush.bf16.msrb.mxu1 %v3164_v22  ;;  %v3040_v22 = vld [vmem:[%s4038_s0 + $0x44] sm:$0xf] }
  0x75   :  { %1984 = vmatpush.bf16.msrb.mxu3 %v3180_v23  ;;  %v2198_v23 = vld [vmem:[%s4038_s0 + $0xa4] sm:$0xf0] }
  0x76   :  { %1943 = vmatpush.bf16.msrb.mxu0 %v3155_v24  ;;  %v3041_v24 = vld [vmem:[%s4038_s0 + $0x4c] sm:$0xf] }
  0x77   :  { %1971 = vmatpush.bf16.msrb.mxu2 %v3171_v25  ;;  %v2206_v25 = vld [vmem:[%s4038_s0 + $0xac] sm:$0xf0] }
  0x78   :  { %1957 = vmatpush.bf16.msrb.mxu1 %v3163_v26  ;;  %v2197_v26 = vor.u32 %v3052_v17, %v2196_v16  ;;  %v2228_v16 = vld [vmem:[%s4038_s0 + $0x60] sm:$0xf]  ;;  %v3056_v17 = vld [vmem:[%s4038_s0 + $0xc0] sm:$0xf0] }
  0x79   :  { %1985 = vmatpush.bf16.msrb.mxu3 %v3179_v27  ;;  %v2205_v27 = vor.u32 %v3053_v19, %v2204_v18  ;;  %v2229_v18 = vor.u32 %v3056_v17, %v2228_v16 }
  0x7a   :  { %1944 = vmatpush.bf16.msrb.mxu0 %v3154_v28  ;;  %v3232_v28 = vld [vmem:[%s4037_s1 + $0x578] sm:$0xff] }
  0x7b   :  { %1972 = vmatpush.bf16.msrb.mxu2 %v3170_v29  ;;  %v3248_v29 = vld [vmem:[%s4037_s1 + $0x5f8] sm:$0xff] }
  0x7c   :  { %1958 = vmatpush.bf16.msrb.mxu1 %v3162_v30  ;;  %v2201_v30 = vor.u32 %v3040_v22, %v2198_v23 }
  0x7d   :  { %1986 = vmatpush.bf16.msrb.mxu3 %v3178_v31  ;;  %v2209_v31 = vor.u32 %v3041_v24, %v2206_v25 }
  0x7e   :  { %1945 = vmatpush.bf16.msrb.mxu0 %v3153_v32  ;;  %v3223_v32 = vld [vmem:[%s4037_s1 + $0x530] sm:$0xff] }
  0x7f   :  { %1973 = vmatpush.bf16.msrb.mxu2 %v3169_v33  ;;  %v3239_v33 = vld [vmem:[%s4037_s1 + $0x5b0] sm:$0xff] }
  0x80   :  { %1959 = vmatpush.bf16.msrb.mxu1 %v3161_v40  ;;  %v3221_v40 = vld [vmem:[%s4037_s1 + $0x520] sm:$0xff] }
  0x81   :  { %1987 = vmatpush.bf16.msrb.mxu3 %v3177_v41  ;;  %1946 = vmatmul.bf16.vlgmr.msrb.gmra.mxu0 %v2181_v46  ;;  %v3237_v41 = vld [vmem:[%s4037_s1 + $0x5a0] sm:$0xff]  ;;  %v3228_v46 = vld [vmem:[%s4037_s1 + $0x558] sm:$0xff] }
  0x82   :  { %1994 = vmatpush.bf16.msra.mxu0 %v3192_v34  ;;  %1974 = vmatmul.bf16.vlgmr.msrb.gmra.mxu2 %v2189_v47  ;;  %v3231_v34 = vld [vmem:[%s4037_s1 + $0x570] sm:$0xff]  ;;  %v3244_v47 = vld [vmem:[%s4037_s1 + $0x5d8] sm:$0xff] }
  0x83   :  { %2022 = vmatpush.bf16.msra.mxu2 %v3208_v35  ;;  %1960 = vmatmul.bf16.vlgmr.msrb.gmra.mxu1 %v2185_v50  ;;  %v3247_v35 = vld [vmem:[%s4037_s1 + $0x5f0] sm:$0xff] }
  0x84   :  { %2008 = vmatpush.bf16.msra.mxu1 %v3200_v48  ;;  %1988 = vmatmul.bf16.vlgmr.msrb.gmra.mxu3 %v2193_v51  ;;  %v3219_v48 = vld [vmem:[%s4037_s1 + $0x510] sm:$0xff] }
  0x85   :  { %2036 = vmatpush.bf16.msra.mxu3 %v3216_v49  ;;  %v3235_v49 = vld [vmem:[%s4037_s1 + $0x590] sm:$0xff] }
  0x86   :  { %1995 = vmatpush.bf16.msra.mxu0 %v3191_v52  ;;  %v3227_v50 = vld [vmem:[%s4037_s1 + $0x550] sm:$0xff]  ;;  %v3218_v52 = vld [vmem:[%s4037_s1 + $0x508] sm:$0xff] }
  0x87   :  { %2023 = vmatpush.bf16.msra.mxu2 %v3207_v53  ;;  %v3243_v51 = vld [vmem:[%s4037_s1 + $0x5d0] sm:$0xff]  ;;  %v3234_v53 = vld [vmem:[%s4037_s1 + $0x588] sm:$0xff] }
  0x88   :  { %2009 = vmatpush.bf16.msra.mxu1 %v3199_v54  ;;  %v3226_v54 = vld [vmem:[%s4037_s1 + $0x548] sm:$0xff] }
  0x89   :  { %2037 = vmatpush.bf16.msra.mxu3 %v3215_v55  ;;  %v3242_v55 = vld [vmem:[%s4037_s1 + $0x5c8] sm:$0xff] }
  0x8a   :  { %1996 = vmatpush.bf16.msra.mxu0 %v3190_v56  ;;  %v3217_v56 = vld [vmem:[%s4037_s1 + $0x500] sm:$0xff] }
  0x8b   :  { %2024 = vmatpush.bf16.msra.mxu2 %v3206_v57  ;;  %v3233_v57 = vld [vmem:[%s4037_s1 + $0x580] sm:$0xff] }
  0x8c   :  { %2010 = vmatpush.bf16.msra.mxu1 %v3198_v58  ;;  %v3256_v58 = vld [vmem:[%s4037_s1 + $0x638] sm:$0xff] }
  0x8d   :  { %2038 = vmatpush.bf16.msra.mxu3 %v3214_v59  ;;  %v2212_v59 = vld [vmem:[%s4038_s0 + $0x50] sm:$0xf] }
  0x8e   :  { %1997 = vmatpush.bf16.msra.mxu0 %v3189_v60  ;;  %v3054_v60 = vld [vmem:[%s4038_s0 + $0xb0] sm:$0xf0] }
  0x8f   :  { %2025 = vmatpush.bf16.msra.mxu2 %v3205_v61  ;;  %v2220_v61 = vld [vmem:[%s4038_s0 + $0x58] sm:$0xf] }
  0x90   :  { %2011 = vmatpush.bf16.msra.mxu1 %v3197_v62  ;;  %v3055_v62 = vld [vmem:[%s4038_s0 + $0xb8] sm:$0xf0] }
  0x91   :  { %2039 = vmatpush.bf16.msra.mxu3 %v3213_v63  ;;  %v3225_v63 = vld [vmem:[%s4037_s1 + $0x540] sm:$0xff] }
  0x92   :  { %1998 = vmatpush.bf16.msra.mxu0 %v3188_v0  ;;  %v3241_v0 = vld [vmem:[%s4037_s1 + $0x5c0] sm:$0xff] }
  0x93   :  { %2026 = vmatpush.bf16.msra.mxu2 %v3204_v1  ;;  %v3042_v1 = vld [vmem:[%s4038_s0 + $0x54] sm:$0xf] }
  0x94   :  { %2012 = vmatpush.bf16.msra.mxu1 %v3196_v2  ;;  %v2214_v2 = vld [vmem:[%s4038_s0 + $0xb4] sm:$0xf0] }
  0x95   :  { %2040 = vmatpush.bf16.msra.mxu3 %v3212_v3  ;;  %v3043_v3 = vld [vmem:[%s4038_s0 + $0x5c] sm:$0xf] }
  0x96   :  { %1999 = vmatpush.bf16.msra.mxu0 %v3187_v4  ;;  %v2222_v4 = vld [vmem:[%s4038_s0 + $0xbc] sm:$0xf0] }
  0x97   :  { %2027 = vmatpush.bf16.msra.mxu2 %v3203_v5  ;;  %v2213_v5 = vor.u32 %v3054_v60, %v2212_v59 }
  0x98   :  { %2013 = vmatpush.bf16.msra.mxu1 %v3195_v6  ;;  %v2221_v6 = vor.u32 %v3055_v62, %v2220_v61 }
  0x99   :  { %2041 = vmatpush.bf16.msra.mxu3 %v3211_v7  ;;  %v2217_v7 = vor.u32 %v3042_v1, %v2214_v2 }
  0x9a   :  { %2000 = vmatpush.bf16.msra.mxu0 %v3186_v8  ;;  %v2225_v8 = vor.u32 %v3043_v3, %v2222_v4 }
  0x9b   :  { %2028 = vmatpush.bf16.msra.mxu2 %v3202_v9  ;;  %v3255_v9 = vld [vmem:[%s4037_s1 + $0x630] sm:$0xff] }
  0x9c   :  { %2014 = vmatpush.bf16.msra.mxu1 %v3194_v10  ;;  %v3254_v10 = vld [vmem:[%s4037_s1 + $0x628] sm:$0xff] }
  0x9d   :  { %2042 = vmatpush.bf16.msra.mxu3 %v3210_v11  ;;  %v3253_v11 = vld [vmem:[%s4037_s1 + $0x620] sm:$0xff] }
  0x9e   :  { %2001 = vmatpush.bf16.msra.mxu0 %v3185_v12  ;;  %v3252_v12 = vld [vmem:[%s4037_s1 + $0x618] sm:$0xff]  ;;  %v1779_v19 = vpop.f32.mrf.mxu0 }
  0x9f   :  { %2029 = vmatpush.bf16.msra.mxu2 %v3201_v13  ;;  %v3251_v13 = vld [vmem:[%s4037_s1 + $0x610] sm:$0xff] }
  0xa0   :  { %2015 = vmatpush.bf16.msra.mxu1 %v3193_v20  ;;  %v1793_v20 = vpop.f32.mrf.mxu1 }
  0xa1   :  { %2043 = vmatpush.bf16.msra.mxu3 %v3209_v21  ;;  %2002 = vmatmul.bf16.vlgmr.msra.gmra.mxu0 %v2197_v26 }
  0xa2   :  { %2050 = vmatpush.bf16.msrb.mxu0 %v3224_v14  ;;  %2030 = vmatmul.bf16.vlgmr.msra.gmra.mxu2 %v2205_v27  ;;  %v3250_v14 = vld [vmem:[%s4037_s1 + $0x608] sm:$0xff] }
  0xa3   :  { %2078 = vmatpush.bf16.msrb.mxu2 %v3240_v15  ;;  %2016 = vmatmul.bf16.vlgmr.msra.gmra.mxu1 %v2201_v30  ;;  %v3249_v15 = vld [vmem:[%s4037_s1 + $0x600] sm:$0xff] }
  0xa4   :  { %2064 = vmatpush.bf16.msrb.mxu1 %v3232_v28  ;;  %2044 = vmatmul.bf16.vlgmr.msra.gmra.mxu3 %v2209_v31  ;;  %v3257_v30 = vld [vmem:[%s4039_s2] ss:$0 sm:$0xff] }
  0xa5   :  { %2092 = vmatpush.bf16.msrb.mxu3 %v3248_v29  ;;  %v1807_v21 = vpop.f32.mrf.mxu2 }
  0xa6   :  { %2051 = vmatpush.bf16.msrb.mxu0 %v3223_v32  ;;  %v1781_v22 = vpop.f32.mrf.mxu0 }
  0xa7   :  { %2079 = vmatpush.bf16.msrb.mxu2 %v3239_v33  ;;  %v1821_v23 = vpop.f32.mrf.mxu3  ;;  %v1780_v33 = vadd.f32 %v3257_v30, %v1779_v19 }
  0xa8   :  { %2065 = vmatpush.bf16.msrb.mxu1 %v3231_v34  ;;  %v1795_v24 = vpop.f32.mrf.mxu1 }
  0xa9   :  { %2093 = vmatpush.bf16.msrb.mxu3 %v3247_v35  ;;  %v1794_v35 = vadd.f32 %v1793_v20, %v1780_v33 }
  0xaa   :  { %2052 = vmatpush.bf16.msrb.mxu0 %v3222_v36 }
  0xab   :  { %2080 = vmatpush.bf16.msrb.mxu2 %v3238_v37 }
  0xac   :  { %2066 = vmatpush.bf16.msrb.mxu1 %v3230_v38  ;;  %v1808_v38 = vadd.f32 %v1807_v21, %v1794_v35 }
  0xad   :  { %2094 = vmatpush.bf16.msrb.mxu3 %v3246_v39  ;;  %v1809_v25 = vpop.f32.mrf.mxu2 }
  0xae   :  { %2053 = vmatpush.bf16.msrb.mxu0 %v3221_v40 }
  0xaf   :  { %2081 = vmatpush.bf16.msrb.mxu2 %v3237_v41  ;;  %v1823_v27 = vpop.f32.mrf.mxu3  ;;  %v1782_v41 = vadd.f32 %v3257_v30, %v1781_v22 }
  0xb0   :  { %2067 = vmatpush.bf16.msrb.mxu1 %v3229_v42  ;;  %v1822_v42 = vadd.f32 %v1821_v23, %v1808_v38 }
  0xb1   :  { %2095 = vmatpush.bf16.msrb.mxu3 %v3245_v43 }
  0xb2   :  { %2054 = vmatpush.bf16.msrb.mxu0 %v3220_v44 }
  0xb3   :  { %2082 = vmatpush.bf16.msrb.mxu2 %v3236_v45  ;;  %v1796_v45 = vadd.f32 %v1795_v24, %v1782_v41 }
  0xb4   :  { %2068 = vmatpush.bf16.msrb.mxu1 %v3228_v46 }
  0xb5   :  { %2096 = vmatpush.bf16.msrb.mxu3 %v3244_v47 }
  0xb6   :  { %2055 = vmatpush.bf16.msrb.mxu0 %v3219_v48  ;;  %v1810_v48 = vadd.f32 %v1809_v25, %v1796_v45 }
  0xb7   :  { %2083 = vmatpush.bf16.msrb.mxu2 %v3235_v49 }
  0xb8   :  { %2069 = vmatpush.bf16.msrb.mxu1 %v3227_v50 }
  0xb9   :  { %2097 = vmatpush.bf16.msrb.mxu3 %v3243_v51 }
  0xba   :  { %2056 = vmatpush.bf16.msrb.mxu0 %v3218_v52 }
  0xbb   :  { %2084 = vmatpush.bf16.msrb.mxu2 %v3234_v53  ;;  %v1824_v53 = vadd.f32 %v1823_v27, %v1810_v48 }
  0xbc   :  { %2070 = vmatpush.bf16.msrb.mxu1 %v3226_v54 }
  0xbd   :  { %2098 = vmatpush.bf16.msrb.mxu3 %v3242_v55 }
  0xbe   :  { %2057 = vmatpush.bf16.msrb.mxu0 %v3217_v56  ;;  %v1835_v26 = vpop.f32.mrf.mxu0 }
  0xbf   :  { %2085 = vmatpush.bf16.msrb.mxu2 %v3233_v57  ;;  %v1836_v46 = vadd.f32 %v1835_v26, %v1822_v42 }
  0xc0   :  { %2071 = vmatpush.bf16.msrb.mxu1 %v3225_v63  ;;  %v1849_v28 = vpop.f32.mrf.mxu1 }
  0xc1   :  { %2099 = vmatpush.bf16.msrb.mxu3 %v3241_v0  ;;  %2058 = vmatmul.bf16.vlgmr.msrb.gmra.mxu0 %v2213_v5  ;;  %v1850_v49 = vadd.f32 %v1849_v28, %v1836_v46 }
  0xc2   :  { %2106 = vmatpush.bf16.msra.mxu0 %v3256_v58  ;;  %2086 = vmatmul.bf16.vlgmr.msrb.gmra.mxu2 %v2221_v6 }
  0xc3   :  { %2072 = vmatmul.bf16.vlgmr.msrb.gmra.mxu1 %v2217_v7 }
  0xc4   :  { %2100 = vmatmul.bf16.vlgmr.msrb.gmra.mxu3 %v2225_v8 }
  0xc5   :  { %v1863_v29 = vpop.f32.mrf.mxu2 }
  0xc6   :  { %2107 = vmatpush.bf16.msra.mxu0 %v3255_v9  ;;  %v1837_v31 = vpop.f32.mrf.mxu0  ;;  %v1864_v54 = vadd.f32 %v1863_v29, %v1850_v49 }
  0xc7   :  { %v1877_v32 = vpop.f32.mrf.mxu3  ;;  %v1838_v55 = vadd.f32 %v1837_v31, %v1824_v53 }
  0xc8   :  { %v1851_v34 = vpop.f32.mrf.mxu1  ;;  %v1878_v57 = vadd.f32 %v1877_v32, %v1864_v54 }
  0xc9   :  { %v1852_v59 = vadd.f32 %v1851_v34, %v1838_v55 }
  0xca   :  { %2108 = vmatpush.bf16.msra.mxu0 %v3254_v10 }
  0xcd   :  { %v1865_v36 = vpop.f32.mrf.mxu2 }
  0xce   :  { %2109 = vmatpush.bf16.msra.mxu0 %v3253_v11  ;;  %v1866_v62 = vadd.f32 %v1865_v36, %v1852_v59 }
  0xcf   :  { %v1879_v39 = vpop.f32.mrf.mxu3 }
  0xd0   :  { %v1880_v2 = vadd.f32 %v1879_v39, %v1866_v62 }
  0xd2   :  { %2110 = vmatpush.bf16.msra.mxu0 %v3252_v12 }
  0xd6   :  { %2111 = vmatpush.bf16.msra.mxu0 %v3251_v13 }
  0xda   :  { %2112 = vmatpush.bf16.msra.mxu0 %v3250_v14 }
  0xde   :  { %2113 = vmatpush.bf16.msra.mxu0 %v3249_v15  ;;  %v1891_v37 = vpop.f32.mrf.mxu0 }
  0xdf   :  { %v1892_v60 = vadd.f32 %v1891_v37, %v1878_v57 }
  0xe0   :  { %v1905_v40 = vpop.f32.mrf.mxu1 }
  0xe1   :  { %2114 = vmatmul.bf16.vlgmr.msra.gmra.mxu0 %v2229_v18  ;;  %v1906_v0 = vadd.f32 %v1905_v40, %v1892_v60 }
  0xe5   :  { %v1919_v43 = vpop.f32.mrf.mxu2 }
  0xe6   :  { %v1893_v44 = vpop.f32.mrf.mxu0  ;;  %v1920_v3 = vadd.f32 %v1919_v43, %v1906_v0 }
  0xe7   :  { %v1933_v47 = vpop.f32.mrf.mxu3  ;;  %v1894_v4 = vadd.f32 %v1893_v44, %v1880_v2 }
  0xe8   :  { %v1907_v50 = vpop.f32.mrf.mxu1  ;;  %v1934_v6 = vadd.f32 %v1933_v47, %v1920_v3 }
  0xe9   :  { %v1908_v9 = vadd.f32 %v1907_v50, %v1894_v4 }
  0xed   :  { %v1921_v51 = vpop.f32.mrf.mxu2 }
  0xee   :  { %v1922_v11 = vadd.f32 %v1921_v51, %v1908_v9 }
  0xef   :  { %v1935_v56 = vpop.f32.mrf.mxu3 }
  0xf0   :  { %v1936_v15 = vadd.f32 %v1935_v56, %v1922_v11 }
  0xfe   :  { %v1947_v52 = vpop.f32.mrf.mxu0 }
  0xff   :  { %v1948_v10 = vadd.f32 %v1947_v52, %v1934_v6 }
 0x100   :  { %v1961_v58 = vpop.f32.mrf.mxu1 }
 0x101   :  { %v1962_v13 = vadd.f32 %v1961_v58, %v1948_v10 }
 0x105   :  { %v1975_v61 = vpop.f32.mrf.mxu2 }
 0x106   :  { %v1949_v63 = vpop.f32.mrf.mxu0  ;;  %v1976_v16 = vadd.f32 %v1975_v61, %v1962_v13 }
 0x107   :  { %v1989_v1 = vpop.f32.mrf.mxu3  ;;  %v1950_v18 = vadd.f32 %v1949_v63, %v1936_v15 }
 0x108   :  { %v1963_v5 = vpop.f32.mrf.mxu1  ;;  %v1990_v20 = vadd.f32 %v1989_v1, %v1976_v16 }
 0x109   :  { %v1964_v22 = vadd.f32 %v1963_v5, %v1950_v18 }
 0x10d   :  { %v1977_v7 = vpop.f32.mrf.mxu2 }
 0x10e   :  { %v1978_v24 = vadd.f32 %v1977_v7, %v1964_v22 }
 0x10f   :  { %v1991_v12 = vpop.f32.mrf.mxu3 }
 0x110   :  { %v1992_v29 = vadd.f32 %v1991_v12, %v1978_v24 }
 0x11e   :  { %v2003_v8 = vpop.f32.mrf.mxu0 }
 0x11f   :  { %v2004_v23 = vadd.f32 %v2003_v8, %v1990_v20 }
 0x120   :  { %v2017_v14 = vpop.f32.mrf.mxu1 }
 0x121   :  { %v2018_v26 = vadd.f32 %v2017_v14, %v2004_v23 }
 0x125   :  { %v2031_v17 = vpop.f32.mrf.mxu2 }
 0x126   :  { %v2005_v19 = vpop.f32.mrf.mxu0  ;;  %v2032_v30 = vadd.f32 %v2031_v17, %v2018_v26 }
 0x127   :  { %v2045_v21 = vpop.f32.mrf.mxu3  ;;  %v2006_v31 = vadd.f32 %v2005_v19, %v1992_v29 }
 0x128   :  { %v2019_v25 = vpop.f32.mrf.mxu1  ;;  %v2046_v33 = vadd.f32 %v2045_v21, %v2032_v30 }
 0x129   :  { %v2020_v35 = vadd.f32 %v2019_v25, %v2006_v31 }
 0x12d   :  { %v2033_v27 = vpop.f32.mrf.mxu2 }
 0x12e   :  { %v2034_v38 = vadd.f32 %v2033_v27, %v2020_v35 }
 0x12f   :  { %v2047_v32 = vpop.f32.mrf.mxu3 }
 0x130   :  { %v2048_v42 = vadd.f32 %v2047_v32, %v2034_v38 }
 0x13e   :  { %v2059_v28 = vpop.f32.mrf.mxu0 }
 0x13f   :  { %v2060_v36 = vadd.f32 %v2059_v28, %v2046_v33 }
 0x140   :  { %v2073_v34 = vpop.f32.mrf.mxu1 }
 0x141   :  { %v2074_v40 = vadd.f32 %v2073_v34, %v2060_v36 }
 0x145   :  { %v2087_v37 = vpop.f32.mrf.mxu2 }
 0x146   :  { %v2061_v39 = vpop.f32.mrf.mxu0  ;;  %v2088_v43 = vadd.f32 %v2087_v37, %v2074_v40 }
 0x147   :  { %v2101_v41 = vpop.f32.mrf.mxu3  ;;  %v2062_v44 = vadd.f32 %v2061_v39, %v2048_v42 }
 0x148   :  { %v2075_v45 = vpop.f32.mrf.mxu1  ;;  %v2102_v46 = vadd.f32 %v2101_v41, %v2088_v43 }
 0x149   :  { %v2076_v49 = vadd.f32 %v2075_v45, %v2062_v44 }
 0x14d   :  { %v2089_v47 = vpop.f32.mrf.mxu2 }
 0x14e   :  { %v2090_v51 = vadd.f32 %v2089_v47, %v2076_v49 }
 0x14f   :  { %v2103_v53 = vpop.f32.mrf.mxu3 }
 0x150   :  { %v2104_v55 = vadd.f32 %v2103_v53, %v2090_v51 }
 0x15e   :  { %v2115_v48 = vpop.f32.mrf.mxu0 }
 0x15f   :  { %v2116_v50 = vadd.f32 %v2115_v48, %v2102_v46 }
 0x161   :  { %v2120_v52 = vadd.f32 12582912.0, %v2116_v50 }
 0x163   :  { %v3030_v54 = vadd.f32 -12582912.0, %v2120_v52 }
 0x165   :  { %2124 = vst [vmem:[%s4040_s3] sm:$0xff] %v3030_v54 }
 0x166   :  { %v2117_v56 = vpop.f32.mrf.mxu0 }
 0x167   :  { %v2118_v57 = vadd.f32 %v2117_v56, %v2104_v55 }
 0x169   :  { %v2121_v58 = vadd.f32 12582912.0, %v2118_v57 }
 0x16b   :  { %v3031_v59 = vadd.f32 -12582912.0, %v2121_v58 }
 0x16d   :  { %2125 = vst [vmem:[%s4040_s3 + $0x8] sm:$0xff] %v3031_v59 }

// kernel: image_compressor_forward.35
= control target key start
LH: loop header
LB: loop body
LE: loop exit
PB: predicated region body
PF: predicated region fallthrough
CT: control target
= control target key end

     0   :  { %s849_s1 = inlined_call_operand.vmem [shape: bf16[512,128], index: 1, kind: input, shape index: {}]   ;;  %s850_s2 = inlined_call_operand.vmem [shape: f32[1,128], index: 2, kind: input, shape index: {}]   ;;  %s851_s0 = inlined_call_operand.vmem [shape: bf16[16,512], index: 0, kind: input, shape index: {}]   ;;  %s852_s3 = inlined_call_operand.vmem [shape: f32[128,128], index: 3, kind: input, shape index: {}]   ;;  %s853_s4 = inlined_call_operand.vmem [shape: f32[1,128], index: 4, kind: input, shape index: {}]   ;;  %s854_s5 = inlined_call_operand.vmem [shape: f32[16,128], index: 5, kind: output, shape index: {}]  }
   0x1   :  { %v592_v0 = vld [vmem:[%s849_s1 + $0x38] sm:$0xff]  ;;  %v591_v4 = vld [vmem:[%s849_s1 + $0x30] sm:$0xff]  ;;  %v590_v8 = vld [vmem:[%s849_s1 + $0x28] sm:$0xff] }
   0x2   :  { %v600_v1 = vld [vmem:[%s849_s1 + $0x78] sm:$0xff]  ;;  %304 = vmatpush.bf16.msra.mxu0 %v592_v0  ;;  %v599_v5 = vld [vmem:[%s849_s1 + $0x70] sm:$0xff]  ;;  %v598_v9 = vld [vmem:[%s849_s1 + $0x68] sm:$0xff] }
   0x3   :  { %v608_v2 = vld [vmem:[%s849_s1 + $0xb8] sm:$0xff]  ;;  %318 = vmatpush.bf16.msra.mxu1 %v600_v1  ;;  %v607_v6 = vld [vmem:[%s849_s1 + $0xb0] sm:$0xff]  ;;  %v606_v10 = vld [vmem:[%s849_s1 + $0xa8] sm:$0xff] }
   0x4   :  { %v616_v3 = vld [vmem:[%s849_s1 + $0xf8] sm:$0xff]  ;;  %332 = vmatpush.bf16.msra.mxu2 %v608_v2  ;;  %v615_v7 = vld [vmem:[%s849_s1 + $0xf0] sm:$0xff]  ;;  %v614_v11 = vld [vmem:[%s849_s1 + $0xe8] sm:$0xff] }
   0x5   :  { %346 = vmatpush.bf16.msra.mxu3 %v616_v3  ;;  %v589_v12 = vld [vmem:[%s849_s1 + $0x20] sm:$0xff]  ;;  %v588_v16 = vld [vmem:[%s849_s1 + $0x18] sm:$0xff]  ;;  %v587_v20 = vld [vmem:[%s849_s1 + $0x10] sm:$0xff] }
   0x6   :  { %305 = vmatpush.bf16.msra.mxu0 %v591_v4  ;;  %v597_v13 = vld [vmem:[%s849_s1 + $0x60] sm:$0xff]  ;;  %v596_v17 = vld [vmem:[%s849_s1 + $0x58] sm:$0xff]  ;;  %v595_v21 = vld [vmem:[%s849_s1 + $0x50] sm:$0xff] }
   0x7   :  { %319 = vmatpush.bf16.msra.mxu1 %v599_v5  ;;  %v605_v14 = vld [vmem:[%s849_s1 + $0xa0] sm:$0xff]  ;;  %v604_v18 = vld [vmem:[%s849_s1 + $0x98] sm:$0xff]  ;;  %v603_v22 = vld [vmem:[%s849_s1 + $0x90] sm:$0xff] }
   0x8   :  { %333 = vmatpush.bf16.msra.mxu2 %v607_v6  ;;  %v613_v15 = vld [vmem:[%s849_s1 + $0xe0] sm:$0xff]  ;;  %v612_v19 = vld [vmem:[%s849_s1 + $0xd8] sm:$0xff]  ;;  %v611_v23 = vld [vmem:[%s849_s1 + $0xd0] sm:$0xff] }
   0x9   :  { %347 = vmatpush.bf16.msra.mxu3 %v615_v7  ;;  %v586_v24 = vld [vmem:[%s849_s1 + $0x8] sm:$0xff]  ;;  %v585_v28 = vld [vmem:[%s849_s1] sm:$0xff]  ;;  %v583_v33 = vld [vmem:[%s851_s0 + $0xc] sm:$0xf0] }
   0xa   :  { %306 = vmatpush.bf16.msra.mxu0 %v590_v8  ;;  %v594_v25 = vld [vmem:[%s849_s1 + $0x48] sm:$0xff]  ;;  %v593_v29 = vld [vmem:[%s849_s1 + $0x40] sm:$0xff]  ;;  %v441_v35 = vld [vmem:[%s851_s0 + $0x10] sm:$0xf0] }
   0xb   :  { %320 = vmatpush.bf16.msra.mxu1 %v598_v9  ;;  %v602_v26 = vld [vmem:[%s849_s1 + $0x88] sm:$0xff]  ;;  %v601_v30 = vld [vmem:[%s849_s1 + $0x80] sm:$0xff]  ;;  %v584_v37 = vld [vmem:[%s851_s0 + $0x14] sm:$0xf0] }
   0xc   :  { %334 = vmatpush.bf16.msra.mxu2 %v606_v10  ;;  %v610_v27 = vld [vmem:[%s849_s1 + $0xc8] sm:$0xff]  ;;  %v609_v31 = vld [vmem:[%s849_s1 + $0xc0] sm:$0xff]  ;;  %v449_v39 = vld [vmem:[%s851_s0 + $0x18] sm:$0xf0] }
   0xd   :  { %348 = vmatpush.bf16.msra.mxu3 %v614_v11  ;;  %v439_v32 = vld [vmem:[%s851_s0] sm:$0xf]  ;;  %v581_v34 = vld [vmem:[%s851_s0 + $0x4] sm:$0xf]  ;;  %v447_v36 = vld [vmem:[%s851_s0 + $0x8] sm:$0xf] }
   0xe   :  { %307 = vmatpush.bf16.msra.mxu0 %v589_v12  ;;  %v582_v38 = vld [vmem:[%s851_s0 + $0xc] sm:$0xf]  ;;  %v440_v40 = vor.u32 %v583_v33, %v439_v32  ;;  %v444_v41 = vor.u32 %v581_v34, %v441_v35  ;;  %v377_v42 = vld [vmem:[%s852_s3 + $0x78] sm:$0xff]  ;;  %v448_v43 = vor.u32 %v584_v37, %v447_v36  ;;  %v376_v45 = vld [vmem:[%s852_s3 + $0x70] sm:$0xff] }
   0xf   :  { %321 = vmatpush.bf16.msra.mxu1 %v597_v13  ;;  %v452_v44 = vor.u32 %v582_v38, %v449_v39  ;;  %v375_v46 = vld [vmem:[%s852_s3 + $0x68] sm:$0xff]  ;;  %v374_v47 = vld [vmem:[%s852_s3 + $0x60] sm:$0xff]  ;;  %v373_v48 = vld [vmem:[%s852_s3 + $0x58] sm:$0xff] }
  0x10   :  { %335 = vmatpush.bf16.msra.mxu2 %v605_v14  ;;  %v372_v49 = vld [vmem:[%s852_s3 + $0x50] sm:$0xff]  ;;  %v371_v50 = vld [vmem:[%s852_s3 + $0x48] sm:$0xff]  ;;  %v370_v51 = vld [vmem:[%s852_s3 + $0x40] sm:$0xff] }
  0x11   :  { %349 = vmatpush.bf16.msra.mxu3 %v613_v15  ;;  %v369_v52 = vld [vmem:[%s852_s3 + $0x38] sm:$0xff]  ;;  %v368_v53 = vld [vmem:[%s852_s3 + $0x30] sm:$0xff]  ;;  %v367_v54 = vld [vmem:[%s852_s3 + $0x28] sm:$0xff] }
  0x12   :  { %308 = vmatpush.bf16.msra.mxu0 %v588_v16  ;;  %v366_v55 = vld [vmem:[%s852_s3 + $0x20] sm:$0xff]  ;;  %v365_v56 = vld [vmem:[%s852_s3 + $0x18] sm:$0xff]  ;;  %v364_v57 = vld [vmem:[%s852_s3 + $0x10] sm:$0xff] }
  0x13   :  { %322 = vmatpush.bf16.msra.mxu1 %v596_v17  ;;  %v363_v58 = vld [vmem:[%s852_s3 + $0x8] sm:$0xff]  ;;  %v362_v59 = vld [vmem:[%s852_s3] sm:$0xff] }
  0x14   :  { %336 = vmatpush.bf16.msra.mxu2 %v604_v18  ;;  %v633_v60 = vld [vmem:[%s850_s2] ss:$0 sm:$0xff] }
  0x15   :  { %350 = vmatpush.bf16.msra.mxu3 %v612_v19  ;;  %v634_v15 = vld [vmem:[%s853_s4] ss:$0 sm:$0xff] }
  0x16   :  { %309 = vmatpush.bf16.msra.mxu0 %v587_v20 }
  0x17   :  { %323 = vmatpush.bf16.msra.mxu1 %v595_v21 }
  0x18   :  { %337 = vmatpush.bf16.msra.mxu2 %v603_v22 }
  0x19   :  { %351 = vmatpush.bf16.msra.mxu3 %v611_v23 }
  0x1a   :  { %310 = vmatpush.bf16.msra.mxu0 %v586_v24 }
  0x1b   :  { %324 = vmatpush.bf16.msra.mxu1 %v594_v25 }
  0x1c   :  { %338 = vmatpush.bf16.msra.mxu2 %v602_v26 }
  0x1d   :  { %352 = vmatpush.bf16.msra.mxu3 %v610_v27 }
  0x1e   :  { %311 = vmatpush.bf16.msra.mxu0 %v585_v28 }
  0x1f   :  { %325 = vmatpush.bf16.msra.mxu1 %v593_v29 }
  0x20   :  { %339 = vmatpush.bf16.msra.mxu2 %v601_v30 }
  0x21   :  { %353 = vmatpush.bf16.msra.mxu3 %v609_v31  ;;  %312 = vmatmul.bf16.vlgmr.msra.gmra.mxu0 %v440_v40 }
  0x22   :  { %382 = vmatpush.msrb.mxu0 %v377_v42  ;;  %326 = vmatmul.bf16.vlgmr.msra.gmra.mxu1 %v444_v41 }
  0x23   :  { %617 = vmatpush.msrb.mxu1 %v377_v42  ;;  %340 = vmatmul.bf16.vlgmr.msra.gmra.mxu2 %v448_v43 }
  0x24   :  { %354 = vmatmul.bf16.vlgmr.msra.gmra.mxu3 %v452_v44  ;;  %383 = vmatpush.msrb.mxu0 %v376_v45 }
  0x25   :  { %618 = vmatpush.msrb.mxu1 %v376_v45 }
  0x26   :  { %384 = vmatpush.msrb.mxu0 %v375_v46 }
  0x27   :  { %619 = vmatpush.msrb.mxu1 %v375_v46 }
  0x28   :  { %385 = vmatpush.msrb.mxu0 %v374_v47 }
  0x29   :  { %620 = vmatpush.msrb.mxu1 %v374_v47 }
  0x2a   :  { %386 = vmatpush.msrb.mxu0 %v373_v48 }
  0x2b   :  { %621 = vmatpush.msrb.mxu1 %v373_v48 }
  0x2c   :  { %387 = vmatpush.msrb.mxu0 %v372_v49 }
  0x2d   :  { %622 = vmatpush.msrb.mxu1 %v372_v49 }
  0x2e   :  { %388 = vmatpush.msrb.mxu0 %v371_v50 }
  0x2f   :  { %623 = vmatpush.msrb.mxu1 %v371_v50 }
  0x30   :  { %389 = vmatpush.msrb.mxu0 %v370_v51 }
  0x31   :  { %624 = vmatpush.msrb.mxu1 %v370_v51 }
  0x32   :  { %390 = vmatpush.msrb.mxu0 %v369_v52 }
  0x33   :  { %625 = vmatpush.msrb.mxu1 %v369_v52 }
  0x34   :  { %391 = vmatpush.msrb.mxu0 %v368_v53 }
  0x35   :  { %626 = vmatpush.msrb.mxu1 %v368_v53 }
  0x36   :  { %392 = vmatpush.msrb.mxu0 %v367_v54 }
  0x37   :  { %627 = vmatpush.msrb.mxu1 %v367_v54 }
  0x38   :  { %393 = vmatpush.msrb.mxu0 %v366_v55 }
  0x39   :  { %628 = vmatpush.msrb.mxu1 %v366_v55 }
  0x3a   :  { %394 = vmatpush.msrb.mxu0 %v365_v56 }
  0x3b   :  { %629 = vmatpush.msrb.mxu1 %v365_v56 }
  0x3c   :  { %395 = vmatpush.msrb.mxu0 %v364_v57 }
  0x3d   :  { %630 = vmatpush.msrb.mxu1 %v364_v57 }
  0x3e   :  { %396 = vmatpush.msrb.mxu0 %v363_v58 }
  0x3f   :  { %631 = vmatpush.msrb.mxu1 %v363_v58 }
  0x40   :  { %397 = vmatpush.msrb.mxu0 %v362_v59 }
  0x41   :  { %632 = vmatpush.msrb.mxu1 %v362_v59 }
  0x9e   :  { %v313_v61 = vpop.f32.mrf.mxu0 }
  0x9f   :  { %v314_v62 = vadd.f32 %v633_v60, %v313_v61  ;;  %v327_v63 = vpop.f32.mrf.mxu1 }
  0xa1   :  { %v328_v0 = vadd.f32 %v327_v63, %v314_v62 }
  0xa6   :  { %v341_v1 = vpop.f32.mrf.mxu2  ;;  %v315_v4 = vpop.f32.mrf.mxu0 }
  0xa7   :  { %v355_v2 = vpop.f32.mrf.mxu3  ;;  %v342_v3 = vadd.f32 %v341_v1, %v328_v0  ;;  %v316_v6 = vadd.f32 %v633_v60, %v315_v4  ;;  %v329_v8 = vpop.f32.mrf.mxu1 }
  0xa9   :  { %v356_v5 = vadd.f32 %v355_v2, %v342_v3  ;;  %v330_v9 = vadd.f32 %v329_v8, %v316_v6 }
  0xab   :  { %v360_v7 = vmul.f32 %v356_v5, %v356_v5 }
  0xad   :  { %398 = vmatmul.f32.vlgmr.msrb.gmra.mxu0 %v360_v7 }
  0xae   :  { %v343_v10 = vpop.f32.mrf.mxu2 }
  0xaf   :  { %v344_v11 = vadd.f32 %v343_v10, %v330_v9  ;;  %v357_v12 = vpop.f32.mrf.mxu3 }
  0xb1   :  { %v358_v13 = vadd.f32 %v357_v12, %v344_v11 }
  0xb3   :  { %v361_v14 = vmul.f32 %v358_v13, %v358_v13 }
  0xb5   :  { %401 = vmatmul.f32.vlgmr.msrb.gmra.mxu1 %v361_v14 }
 0x12a   :  { %v399_v16 = vpop.f32.mrf.mxu0 }
 0x12b   :  { %v400_v17 = vadd.f32 %v634_v15, %v399_v16 }
 0x12d   :  { %635 = vrsqrt.f32 %v400_v17  ;;  %vm412_vm0 = vcmp.eq.f32.partialorder %v400_v17, inf  ;;  %v415_v30 = vand.u32 2147483648, %v400_v17  ;;  %vm414_vm1 = vcmp.eq.f32.partialorder %v400_v17, 0.0 }
 0x132   :  { %v402_v18 = vpop.f32.mrf.mxu1 }
 0x133   :  { %v636_v19 = vpop.eup %635  ;;  %v403_v20 = vadd.f32 %v634_v15, %v402_v18 }
 0x134   :  { %v406_v21 = vmul.f32 %v636_v19, %v400_v17 }
 0x135   :  { %637 = vrsqrt.f32 %v403_v20  ;;  %vm424_vm2 = vcmp.eq.f32.partialorder %v403_v20, inf  ;;  %v427_v38 = vand.u32 2147483648, %v403_v20  ;;  %vm426_vm3 = vcmp.eq.f32.partialorder %v403_v20, 0.0 }
 0x136   :  { %v407_v22 = vmul.f32 %v636_v19, %v406_v21 }
 0x138   :  { %v408_v23 = vmul.f32 0.5, %v407_v22 }
 0x13a   :  { %v409_v24 = vsub.f32 1.5, %v408_v23 }
 0x13b   :  { %v638_v25 = vpop.eup %637 }
 0x13c   :  { %v410_v26 = vmul.f32 %v636_v19, %v409_v24  ;;  %v418_v27 = vmul.f32 %v638_v25, %v403_v20 }
 0x13e   :  { %v411_v28 = vmul.f32 %v410_v26, %v400_v17  ;;  %v419_v29 = vmul.f32 %v638_v25, %v418_v27 }
 0x140   :  { %v413_v31 = vsel %vm412_vm0, %v400_v17, %v411_v28  ;;  %v420_v32 = vmul.f32 0.5, %v419_v29 }
 0x141   :  { %v416_v33 = vsel %vm414_vm1, %v415_v30, %v413_v31 }
 0x142   :  { %v429_v34 = vmul.f32 %v416_v33, %v356_v5  ;;  %v421_v35 = vsub.f32 1.5, %v420_v32 }
 0x144   :  { %431 = vst [vmem:[%s854_s5] sm:$0xff] %v429_v34  ;;  %v422_v36 = vmul.f32 %v638_v25, %v421_v35 }
 0x146   :  { %v423_v37 = vmul.f32 %v422_v36, %v403_v20 }
 0x148   :  { %v425_v39 = vsel %vm424_vm2, %v403_v20, %v423_v37 }
 0x149   :  { %v428_v40 = vsel %vm426_vm3, %v427_v38, %v425_v39 }
 0x14a   :  { %v430_v41 = vmul.f32 %v428_v40, %v358_v13 }
 0x14c   :  { %432 = vst [vmem:[%s854_s5 + $0x8] sm:$0xff] %v430_v41 }

// kernel: image_compressor_forward.32
= control target key start
LH: loop header
LB: loop body
LE: loop exit
PB: predicated region body
PF: predicated region fallthrough
CT: control target
= control target key end

     0   :  { %s1630_s1 = inlined_call_operand.vmem [shape: bf16[1152,128], index: 1, kind: input, shape index: {}]   ;;  %s1631_s2 = inlined_call_operand.vmem [shape: f32[1,128], index: 2, kind: input, shape index: {}]   ;;  %s1632_s0 = inlined_call_operand.vmem [shape: bf16[16,1152], index: 0, kind: input, shape index: {}]   ;;  %s1633_s4 = inlined_call_operand.vmem [shape: f32[1,128], index: 4, kind: input, shape index: {}]   ;;  %s1634_s3 = inlined_call_operand.vmem [shape: f32[128,128], index: 3, kind: input, shape index: {}]   ;;  %s1635_s5 = inlined_call_operand.vmem [shape: f32[16,128], index: 5, kind: output, shape index: {}]  }
   0x1   :  { %v1199_v0 = vld [vmem:[%s1630_s1 + $0x38] sm:$0xff]  ;;  %v1198_v4 = vld [vmem:[%s1630_s1 + $0x30] sm:$0xff]  ;;  %v1197_v8 = vld [vmem:[%s1630_s1 + $0x28] sm:$0xff] }
   0x2   :  { %v1215_v1 = vld [vmem:[%s1630_s1 + $0xb8] sm:$0xff]  ;;  %656 = vmatpush.bf16.msra.mxu0 %v1199_v0  ;;  %v1214_v5 = vld [vmem:[%s1630_s1 + $0xb0] sm:$0xff]  ;;  %v1213_v9 = vld [vmem:[%s1630_s1 + $0xa8] sm:$0xff] }
   0x3   :  { %v1207_v2 = vld [vmem:[%s1630_s1 + $0x78] sm:$0xff]  ;;  %684 = vmatpush.bf16.msra.mxu2 %v1215_v1  ;;  %v1206_v6 = vld [vmem:[%s1630_s1 + $0x70] sm:$0xff]  ;;  %v1205_v10 = vld [vmem:[%s1630_s1 + $0x68] sm:$0xff] }
   0x4   :  { %v1223_v3 = vld [vmem:[%s1630_s1 + $0xf8] sm:$0xff]  ;;  %670 = vmatpush.bf16.msra.mxu1 %v1207_v2  ;;  %v1222_v7 = vld [vmem:[%s1630_s1 + $0xf0] sm:$0xff]  ;;  %v1221_v11 = vld [vmem:[%s1630_s1 + $0xe8] sm:$0xff] }
   0x5   :  { %698 = vmatpush.bf16.msra.mxu3 %v1223_v3  ;;  %v1196_v12 = vld [vmem:[%s1630_s1 + $0x20] sm:$0xff]  ;;  %v1195_v16 = vld [vmem:[%s1630_s1 + $0x18] sm:$0xff]  ;;  %v1194_v20 = vld [vmem:[%s1630_s1 + $0x10] sm:$0xff] }
   0x6   :  { %657 = vmatpush.bf16.msra.mxu0 %v1198_v4  ;;  %v1212_v13 = vld [vmem:[%s1630_s1 + $0xa0] sm:$0xff]  ;;  %v1211_v17 = vld [vmem:[%s1630_s1 + $0x98] sm:$0xff]  ;;  %v1210_v21 = vld [vmem:[%s1630_s1 + $0x90] sm:$0xff] }
   0x7   :  { %685 = vmatpush.bf16.msra.mxu2 %v1214_v5  ;;  %v1204_v14 = vld [vmem:[%s1630_s1 + $0x60] sm:$0xff]  ;;  %v1203_v18 = vld [vmem:[%s1630_s1 + $0x58] sm:$0xff]  ;;  %v1202_v22 = vld [vmem:[%s1630_s1 + $0x50] sm:$0xff] }
   0x8   :  { %671 = vmatpush.bf16.msra.mxu1 %v1206_v6  ;;  %v1220_v15 = vld [vmem:[%s1630_s1 + $0xe0] sm:$0xff]  ;;  %v1219_v19 = vld [vmem:[%s1630_s1 + $0xd8] sm:$0xff]  ;;  %v1218_v23 = vld [vmem:[%s1630_s1 + $0xd0] sm:$0xff] }
   0x9   :  { %699 = vmatpush.bf16.msra.mxu3 %v1222_v7  ;;  %v1193_v24 = vld [vmem:[%s1630_s1 + $0x8] sm:$0xff]  ;;  %v1192_v28 = vld [vmem:[%s1630_s1] sm:$0xff]  ;;  %v1231_v30 = vld [vmem:[%s1630_s1 + $0x138] sm:$0xff] }
   0xa   :  { %658 = vmatpush.bf16.msra.mxu0 %v1197_v8  ;;  %v1209_v25 = vld [vmem:[%s1630_s1 + $0x88] sm:$0xff]  ;;  %v1208_v29 = vld [vmem:[%s1630_s1 + $0x80] sm:$0xff]  ;;  %v1247_v31 = vld [vmem:[%s1630_s1 + $0x1b8] sm:$0xff] }
   0xb   :  { %686 = vmatpush.bf16.msra.mxu2 %v1213_v9  ;;  %v1201_v26 = vld [vmem:[%s1630_s1 + $0x48] sm:$0xff]  ;;  %v1200_v32 = vld [vmem:[%s1630_s1 + $0x40] sm:$0xff]  ;;  %v1239_v38 = vld [vmem:[%s1630_s1 + $0x178] sm:$0xff] }
   0xc   :  { %672 = vmatpush.bf16.msra.mxu1 %v1205_v10  ;;  %v1217_v27 = vld [vmem:[%s1630_s1 + $0xc8] sm:$0xff]  ;;  %v1216_v33 = vld [vmem:[%s1630_s1 + $0xc0] sm:$0xff]  ;;  %v1255_v39 = vld [vmem:[%s1630_s1 + $0x1f8] sm:$0xff] }
   0xd   :  { %700 = vmatpush.bf16.msra.mxu3 %v1221_v11  ;;  %v861_v34 = vld [vmem:[%s1632_s0] sm:$0xf]  ;;  %v1187_v35 = vld [vmem:[%s1632_s0 + $0x20] sm:$0xf0]  ;;  %v869_v36 = vld [vmem:[%s1632_s0 + $0x8] sm:$0xf] }
   0xe   :  { %659 = vmatpush.bf16.msra.mxu0 %v1196_v12  ;;  %v1188_v37 = vld [vmem:[%s1632_s0 + $0x28] sm:$0xf0]  ;;  %v1183_v40 = vld [vmem:[%s1632_s0 + $0x4] sm:$0xf]  ;;  %v863_v41 = vld [vmem:[%s1632_s0 + $0x24] sm:$0xf0]  ;;  %v862_v44 = vor.u32 %v1187_v35, %v861_v34 }
   0xf   :  { %687 = vmatpush.bf16.msra.mxu2 %v1212_v13  ;;  %v1184_v42 = vld [vmem:[%s1632_s0 + $0xc] sm:$0xf]  ;;  %v871_v43 = vld [vmem:[%s1632_s0 + $0x2c] sm:$0xf0]  ;;  %v870_v45 = vor.u32 %v1188_v37, %v869_v36  ;;  %v866_v48 = vor.u32 %v1183_v40, %v863_v41  ;;  %v1228_v56 = vld [vmem:[%s1630_s1 + $0x120] sm:$0xff] }
  0x10   :  { %673 = vmatpush.bf16.msra.mxu1 %v1204_v14  ;;  %v1230_v46 = vld [vmem:[%s1630_s1 + $0x130] sm:$0xff]  ;;  %v874_v49 = vor.u32 %v1184_v42, %v871_v43  ;;  %v1229_v52 = vld [vmem:[%s1630_s1 + $0x128] sm:$0xff]  ;;  %v1244_v57 = vld [vmem:[%s1630_s1 + $0x1a0] sm:$0xff] }
  0x11   :  { %701 = vmatpush.bf16.msra.mxu3 %v1220_v15  ;;  %v1246_v47 = vld [vmem:[%s1630_s1 + $0x1b0] sm:$0xff]  ;;  %v1245_v53 = vld [vmem:[%s1630_s1 + $0x1a8] sm:$0xff]  ;;  %v1236_v58 = vld [vmem:[%s1630_s1 + $0x160] sm:$0xff] }
  0x12   :  { %660 = vmatpush.bf16.msra.mxu0 %v1195_v16  ;;  %v1238_v50 = vld [vmem:[%s1630_s1 + $0x170] sm:$0xff]  ;;  %v1237_v54 = vld [vmem:[%s1630_s1 + $0x168] sm:$0xff]  ;;  %v1252_v59 = vld [vmem:[%s1630_s1 + $0x1e0] sm:$0xff] }
  0x13   :  { %688 = vmatpush.bf16.msra.mxu2 %v1211_v17  ;;  %v1254_v51 = vld [vmem:[%s1630_s1 + $0x1f0] sm:$0xff]  ;;  %v1253_v55 = vld [vmem:[%s1630_s1 + $0x1e8] sm:$0xff]  ;;  %v1227_v60 = vld [vmem:[%s1630_s1 + $0x118] sm:$0xff] }
  0x14   :  { %674 = vmatpush.bf16.msra.mxu1 %v1203_v18  ;;  %v1243_v61 = vld [vmem:[%s1630_s1 + $0x198] sm:$0xff]  ;;  %v1226_v0 = vld [vmem:[%s1630_s1 + $0x110] sm:$0xff]  ;;  %v1225_v4 = vld [vmem:[%s1630_s1 + $0x108] sm:$0xff] }
  0x15   :  { %702 = vmatpush.bf16.msra.mxu3 %v1219_v19  ;;  %v1235_v62 = vld [vmem:[%s1630_s1 + $0x158] sm:$0xff]  ;;  %v1242_v1 = vld [vmem:[%s1630_s1 + $0x190] sm:$0xff]  ;;  %v1241_v5 = vld [vmem:[%s1630_s1 + $0x188] sm:$0xff] }
  0x16   :  { %661 = vmatpush.bf16.msra.mxu0 %v1194_v20  ;;  %v1251_v63 = vld [vmem:[%s1630_s1 + $0x1d8] sm:$0xff]  ;;  %v1234_v2 = vld [vmem:[%s1630_s1 + $0x150] sm:$0xff]  ;;  %v1233_v6 = vld [vmem:[%s1630_s1 + $0x148] sm:$0xff] }
  0x17   :  { %689 = vmatpush.bf16.msra.mxu2 %v1210_v21  ;;  %v1250_v3 = vld [vmem:[%s1630_s1 + $0x1d0] sm:$0xff]  ;;  %v1249_v7 = vld [vmem:[%s1630_s1 + $0x1c8] sm:$0xff]  ;;  %v1224_v8 = vld [vmem:[%s1630_s1 + $0x100] sm:$0xff] }
  0x18   :  { %675 = vmatpush.bf16.msra.mxu1 %v1202_v22  ;;  %v1240_v9 = vld [vmem:[%s1630_s1 + $0x180] sm:$0xff]  ;;  %v1263_v10 = vld [vmem:[%s1630_s1 + $0x238] sm:$0xff]  ;;  %v877_v11 = vld [vmem:[%s1632_s0 + $0x10] sm:$0xf] }
  0x19   :  { %703 = vmatpush.bf16.msra.mxu3 %v1218_v23  ;;  %v1189_v12 = vld [vmem:[%s1632_s0 + $0x30] sm:$0xf0]  ;;  %v885_v13 = vld [vmem:[%s1632_s0 + $0x18] sm:$0xf]  ;;  %v1190_v14 = vld [vmem:[%s1632_s0 + $0x38] sm:$0xf0] }
  0x1a   :  { %662 = vmatpush.bf16.msra.mxu0 %v1193_v24  ;;  %v1232_v15 = vld [vmem:[%s1630_s1 + $0x140] sm:$0xff]  ;;  %v1185_v17 = vld [vmem:[%s1632_s0 + $0x14] sm:$0xf]  ;;  %v879_v18 = vld [vmem:[%s1632_s0 + $0x34] sm:$0xf0]  ;;  %v878_v21 = vor.u32 %v1189_v12, %v877_v11  ;;  %v886_v22 = vor.u32 %v1190_v14, %v885_v13 }
  0x1b   :  { %690 = vmatpush.bf16.msra.mxu2 %v1209_v25  ;;  %v1248_v16 = vld [vmem:[%s1630_s1 + $0x1c0] sm:$0xff]  ;;  %v1186_v19 = vld [vmem:[%s1632_s0 + $0x1c] sm:$0xf]  ;;  %v882_v23 = vor.u32 %v1185_v17, %v879_v18  ;;  %v1262_v25 = vld [vmem:[%s1630_s1 + $0x230] sm:$0xff] }
  0x1c   :  { %676 = vmatpush.bf16.msra.mxu1 %v1201_v26  ;;  %v887_v20 = vld [vmem:[%s1632_s0 + $0x3c] sm:$0xf0]  ;;  %v1261_v26 = vld [vmem:[%s1630_s1 + $0x228] sm:$0xff]  ;;  %v799_v35 = vld [vmem:[%s1634_s3 + $0x78] sm:$0xff] }
  0x1d   :  { %704 = vmatpush.bf16.msra.mxu3 %v1217_v27  ;;  %v890_v24 = vor.u32 %v1186_v19, %v887_v20  ;;  %v1260_v27 = vld [vmem:[%s1630_s1 + $0x220] sm:$0xff]  ;;  %v798_v36 = vld [vmem:[%s1634_s3 + $0x70] sm:$0xff]  ;;  %v797_v37 = vld [vmem:[%s1634_s3 + $0x68] sm:$0xff] }
  0x1e   :  { %663 = vmatpush.bf16.msra.mxu0 %v1192_v28  ;;  %v1259_v28 = vld [vmem:[%s1630_s1 + $0x218] sm:$0xff]  ;;  %v794_v40 = vld [vmem:[%s1634_s3 + $0x50] sm:$0xff]  ;;  %v793_v41 = vld [vmem:[%s1634_s3 + $0x48] sm:$0xff] }
  0x1f   :  { %691 = vmatpush.bf16.msra.mxu2 %v1208_v29  ;;  %v1258_v29 = vld [vmem:[%s1630_s1 + $0x210] sm:$0xff]  ;;  %v792_v42 = vld [vmem:[%s1634_s3 + $0x40] sm:$0xff]  ;;  %v791_v43 = vld [vmem:[%s1634_s3 + $0x38] sm:$0xff] }
  0x20   :  { %677 = vmatpush.bf16.msra.mxu1 %v1200_v32  ;;  %v893_v32 = vld [vmem:[%s1632_s0 + $0x20] sm:$0xf] }
  0x21   :  { %705 = vmatpush.bf16.msra.mxu3 %v1216_v33  ;;  %664 = vmatmul.bf16.vlgmr.msra.gmra.mxu0 %v862_v44  ;;  %v1191_v33 = vld [vmem:[%s1632_s0 + $0x40] sm:$0xf0]  ;;  %v790_v44 = vld [vmem:[%s1634_s3 + $0x30] sm:$0xff] }
  0x22   :  { %712 = vmatpush.bf16.msrb.mxu0 %v1231_v30  ;;  %692 = vmatmul.bf16.vlgmr.msra.gmra.mxu2 %v870_v45  ;;  %v1257_v30 = vld [vmem:[%s1630_s1 + $0x208] sm:$0xff]  ;;  %v894_v34 = vor.u32 %v1191_v33, %v893_v32 }
  0x23   :  { %740 = vmatpush.bf16.msrb.mxu2 %v1247_v31  ;;  %678 = vmatmul.bf16.vlgmr.msra.gmra.mxu1 %v866_v48  ;;  %v1256_v31 = vld [vmem:[%s1630_s1 + $0x200] sm:$0xff]  ;;  %v789_v45 = vld [vmem:[%s1634_s3 + $0x28] sm:$0xff]  ;;  %v787_v48 = vld [vmem:[%s1634_s3 + $0x18] sm:$0xff] }
  0x24   :  { %726 = vmatpush.bf16.msrb.mxu1 %v1239_v38  ;;  %706 = vmatmul.bf16.vlgmr.msra.gmra.mxu3 %v874_v49  ;;  %v796_v38 = vld [vmem:[%s1634_s3 + $0x60] sm:$0xff] }
  0x25   :  { %754 = vmatpush.bf16.msrb.mxu3 %v1255_v39  ;;  %v795_v39 = vld [vmem:[%s1634_s3 + $0x58] sm:$0xff]  ;;  %v1264_v49 = vld [vmem:[%s1631_s2] ss:$0 sm:$0xff] }
  0x26   :  { %713 = vmatpush.bf16.msrb.mxu0 %v1230_v46  ;;  %v788_v46 = vld [vmem:[%s1634_s3 + $0x20] sm:$0xff] }
  0x27   :  { %741 = vmatpush.bf16.msrb.mxu2 %v1246_v47 }
  0x28   :  { %727 = vmatpush.bf16.msrb.mxu1 %v1238_v50  ;;  %v786_v50 = vld [vmem:[%s1634_s3 + $0x10] sm:$0xff] }
  0x29   :  { %755 = vmatpush.bf16.msrb.mxu3 %v1254_v51 }
  0x2a   :  { %714 = vmatpush.bf16.msrb.mxu0 %v1229_v52  ;;  %v785_v52 = vld [vmem:[%s1634_s3 + $0x8] sm:$0xff] }
  0x2b   :  { %742 = vmatpush.bf16.msrb.mxu2 %v1245_v53 }
  0x2c   :  { %728 = vmatpush.bf16.msrb.mxu1 %v1237_v54 }
  0x2d   :  { %756 = vmatpush.bf16.msrb.mxu3 %v1253_v55  ;;  %v784_v55 = vld [vmem:[%s1634_s3] sm:$0xff] }
  0x2e   :  { %715 = vmatpush.bf16.msrb.mxu0 %v1228_v56 }
  0x2f   :  { %743 = vmatpush.bf16.msrb.mxu2 %v1244_v57 }
  0x30   :  { %729 = vmatpush.bf16.msrb.mxu1 %v1236_v58 }
  0x31   :  { %757 = vmatpush.bf16.msrb.mxu3 %v1252_v59 }
  0x32   :  { %716 = vmatpush.bf16.msrb.mxu0 %v1227_v60 }
  0x33   :  { %744 = vmatpush.bf16.msrb.mxu2 %v1243_v61 }
  0x34   :  { %730 = vmatpush.bf16.msrb.mxu1 %v1235_v62 }
  0x35   :  { %758 = vmatpush.bf16.msrb.mxu3 %v1251_v63 }
  0x36   :  { %717 = vmatpush.bf16.msrb.mxu0 %v1226_v0 }
  0x37   :  { %745 = vmatpush.bf16.msrb.mxu2 %v1242_v1 }
  0x38   :  { %731 = vmatpush.bf16.msrb.mxu1 %v1234_v2 }
  0x39   :  { %759 = vmatpush.bf16.msrb.mxu3 %v1250_v3 }
  0x3a   :  { %718 = vmatpush.bf16.msrb.mxu0 %v1225_v4 }
  0x3b   :  { %746 = vmatpush.bf16.msrb.mxu2 %v1241_v5 }
  0x3c   :  { %732 = vmatpush.bf16.msrb.mxu1 %v1233_v6 }
  0x3d   :  { %760 = vmatpush.bf16.msrb.mxu3 %v1249_v7 }
  0x3e   :  { %719 = vmatpush.bf16.msrb.mxu0 %v1224_v8 }
  0x3f   :  { %747 = vmatpush.bf16.msrb.mxu2 %v1240_v9 }
  0x40   :  { %733 = vmatpush.bf16.msrb.mxu1 %v1232_v15 }
  0x41   :  { %761 = vmatpush.bf16.msrb.mxu3 %v1248_v16  ;;  %720 = vmatmul.bf16.vlgmr.msrb.gmra.mxu0 %v878_v21 }
  0x42   :  { %768 = vmatpush.bf16.msra.mxu0 %v1263_v10  ;;  %748 = vmatmul.bf16.vlgmr.msrb.gmra.mxu2 %v886_v22 }
  0x43   :  { %734 = vmatmul.bf16.vlgmr.msrb.gmra.mxu1 %v882_v23 }
  0x44   :  { %762 = vmatmul.bf16.vlgmr.msrb.gmra.mxu3 %v890_v24  ;;  %804 = vmatpush.msra.mxu1 %v799_v35 }
  0x46   :  { %769 = vmatpush.bf16.msra.mxu0 %v1262_v25  ;;  %805 = vmatpush.msra.mxu1 %v798_v36 }
  0x48   :  { %806 = vmatpush.msra.mxu1 %v797_v37 }
  0x4a   :  { %770 = vmatpush.bf16.msra.mxu0 %v1261_v26  ;;  %807 = vmatpush.msra.mxu1 %v796_v38  ;;  %v1265_v26 = vld [vmem:[%s1633_s4] ss:$0 sm:$0xff] }
  0x4c   :  { %808 = vmatpush.msra.mxu1 %v795_v39 }
  0x4e   :  { %771 = vmatpush.bf16.msra.mxu0 %v1260_v27  ;;  %809 = vmatpush.msra.mxu1 %v794_v40 }
  0x50   :  { %810 = vmatpush.msra.mxu1 %v793_v41 }
  0x52   :  { %772 = vmatpush.bf16.msra.mxu0 %v1259_v28  ;;  %811 = vmatpush.msra.mxu1 %v792_v42 }
  0x54   :  { %812 = vmatpush.msra.mxu1 %v791_v43 }
  0x56   :  { %773 = vmatpush.bf16.msra.mxu0 %v1258_v29  ;;  %813 = vmatpush.msra.mxu1 %v790_v44 }
  0x58   :  { %814 = vmatpush.msra.mxu1 %v789_v45 }
  0x5a   :  { %774 = vmatpush.bf16.msra.mxu0 %v1257_v30  ;;  %815 = vmatpush.msra.mxu1 %v788_v46 }
  0x5c   :  { %816 = vmatpush.msra.mxu1 %v787_v48 }
  0x5e   :  { %775 = vmatpush.bf16.msra.mxu0 %v1256_v31  ;;  %817 = vmatpush.msra.mxu1 %v786_v50 }
  0x60   :  { %818 = vmatpush.msra.mxu1 %v785_v52 }
  0x61   :  { %776 = vmatmul.bf16.vlgmr.msra.gmra.mxu0 %v894_v34 }
  0x62   :  { %819 = vmatpush.msra.mxu1 %v784_v55 }
  0x9e   :  { %v665_v47 = vpop.f32.mrf.mxu0 }
  0x9f   :  { %v666_v54 = vadd.f32 %v1264_v49, %v665_v47 }
  0xa0   :  { %v679_v51 = vpop.f32.mrf.mxu1 }
  0xa1   :  { %v680_v58 = vadd.f32 %v679_v51, %v666_v54 }
  0xa5   :  { %v693_v53 = vpop.f32.mrf.mxu2 }
  0xa6   :  { %v667_v56 = vpop.f32.mrf.mxu0  ;;  %v694_v60 = vadd.f32 %v693_v53, %v680_v58 }
  0xa7   :  { %v707_v57 = vpop.f32.mrf.mxu3  ;;  %v668_v63 = vadd.f32 %v1264_v49, %v667_v56 }
  0xa8   :  { %v681_v59 = vpop.f32.mrf.mxu1  ;;  %v708_v0 = vadd.f32 %v707_v57, %v694_v60 }
  0xa9   :  { %v682_v2 = vadd.f32 %v681_v59, %v668_v63 }
  0xad   :  { %v695_v61 = vpop.f32.mrf.mxu2 }
  0xae   :  { %v696_v6 = vadd.f32 %v695_v61, %v682_v2 }
  0xaf   :  { %v709_v1 = vpop.f32.mrf.mxu3 }
  0xb0   :  { %v710_v10 = vadd.f32 %v709_v1, %v696_v6 }
  0xbe   :  { %v721_v62 = vpop.f32.mrf.mxu0 }
  0xbf   :  { %v722_v3 = vadd.f32 %v721_v62, %v708_v0 }
  0xc0   :  { %v735_v4 = vpop.f32.mrf.mxu1 }
  0xc1   :  { %v736_v7 = vadd.f32 %v735_v4, %v722_v3 }
  0xc5   :  { %v749_v5 = vpop.f32.mrf.mxu2 }
  0xc6   :  { %v723_v8 = vpop.f32.mrf.mxu0  ;;  %v750_v11 = vadd.f32 %v749_v5, %v736_v7 }
  0xc7   :  { %v763_v9 = vpop.f32.mrf.mxu3  ;;  %v724_v12 = vadd.f32 %v723_v8, %v710_v10 }
  0xc8   :  { %v737_v13 = vpop.f32.mrf.mxu1  ;;  %v764_v14 = vadd.f32 %v763_v9, %v750_v11 }
  0xc9   :  { %v738_v17 = vadd.f32 %v737_v13, %v724_v12 }
  0xcd   :  { %v751_v15 = vpop.f32.mrf.mxu2 }
  0xce   :  { %v752_v19 = vadd.f32 %v751_v15, %v738_v17 }
  0xcf   :  { %v765_v21 = vpop.f32.mrf.mxu3 }
  0xd0   :  { %v766_v22 = vadd.f32 %v765_v21, %v752_v19 }
  0xde   :  { %v777_v16 = vpop.f32.mrf.mxu0 }
  0xdf   :  { %v778_v18 = vadd.f32 %v777_v16, %v764_v14 }
  0xe1   :  { %v782_v20 = vmul.f32 %v778_v18, %v778_v18 }
  0xe3   :  { %820 = vmatmul.f32.vlgmr.msra.gmra.mxu1 %v782_v20 }
  0xe6   :  { %v779_v23 = vpop.f32.mrf.mxu0 }
  0xe7   :  { %v780_v24 = vadd.f32 %v779_v23, %v766_v22 }
  0xe9   :  { %v783_v25 = vmul.f32 %v780_v24, %v780_v24 }
  0xeb   :  { %823 = vmatmul.f32.gmra.mxu1 %v783_v25 }
 0x160   :  { %v821_v27 = vpop.f32.mrf.mxu1 }
 0x161   :  { %v822_v28 = vadd.f32 %v1265_v26, %v821_v27 }
 0x163   :  { %1266 = vrsqrt.f32 %v822_v28  ;;  %vm834_vm0 = vcmp.eq.f32.partialorder %v822_v28, inf  ;;  %v837_v41 = vand.u32 2147483648, %v822_v28  ;;  %vm836_vm1 = vcmp.eq.f32.partialorder %v822_v28, 0.0 }
 0x168   :  { %v824_v29 = vpop.f32.mrf.mxu1 }
 0x169   :  { %v1267_v30 = vpop.eup %1266  ;;  %v825_v31 = vadd.f32 %v1265_v26, %v824_v29 }
 0x16a   :  { %v828_v32 = vmul.f32 %v1267_v30, %v822_v28 }
 0x16b   :  { %1268 = vrsqrt.f32 %v825_v31  ;;  %vm846_vm2 = vcmp.eq.f32.partialorder %v825_v31, inf  ;;  %v849_v49 = vand.u32 2147483648, %v825_v31  ;;  %vm848_vm3 = vcmp.eq.f32.partialorder %v825_v31, 0.0 }
 0x16c   :  { %v829_v33 = vmul.f32 %v1267_v30, %v828_v32 }
 0x16e   :  { %v830_v34 = vmul.f32 0.5, %v829_v33 }
 0x170   :  { %v831_v35 = vsub.f32 1.5, %v830_v34 }
 0x171   :  { %v1269_v36 = vpop.eup %1268 }
 0x172   :  { %v832_v37 = vmul.f32 %v1267_v30, %v831_v35  ;;  %v840_v38 = vmul.f32 %v1269_v36, %v825_v31 }
 0x174   :  { %v833_v39 = vmul.f32 %v832_v37, %v822_v28  ;;  %v841_v40 = vmul.f32 %v1269_v36, %v840_v38 }
 0x176   :  { %v835_v42 = vsel %vm834_vm0, %v822_v28, %v833_v39  ;;  %v842_v43 = vmul.f32 0.5, %v841_v40 }
 0x177   :  { %v838_v44 = vsel %vm836_vm1, %v837_v41, %v835_v42 }
 0x178   :  { %v851_v45 = vmul.f32 %v838_v44, %v778_v18  ;;  %v843_v46 = vsub.f32 1.5, %v842_v43 }
 0x17a   :  { %853 = vst [vmem:[%s1635_s5] sm:$0xff] %v851_v45  ;;  %v844_v47 = vmul.f32 %v1269_v36, %v843_v46 }
 0x17c   :  { %v845_v48 = vmul.f32 %v844_v47, %v825_v31 }
 0x17e   :  { %v847_v50 = vsel %vm846_vm2, %v825_v31, %v845_v48 }
 0x17f   :  { %v850_v51 = vsel %vm848_vm3, %v849_v49, %v847_v50 }
 0x180   :  { %v852_v52 = vmul.f32 %v850_v51, %v780_v24 }
 0x182   :  { %854 = vst [vmem:[%s1635_s5 + $0x8] sm:$0xff] %v852_v52 }

// kernel: image_compressor_forward.33
= control target key start
LH: loop header
LB: loop body
LE: loop exit
PB: predicated region body
PF: predicated region fallthrough
CT: control target
= control target key end

     0   :  { %s1151_s1 = inlined_call_operand.vmem [shape: bf16[768,128], index: 1, kind: input, shape index: {}]   ;;  %s1152_s2 = inlined_call_operand.vmem [shape: f32[1,128], index: 2, kind: input, shape index: {}]   ;;  %s1153_s0 = inlined_call_operand.vmem [shape: bf16[16,768], index: 0, kind: input, shape index: {}]   ;;  %s1154_s4 = inlined_call_operand.vmem [shape: f32[1,128], index: 4, kind: input, shape index: {}]   ;;  %s1155_s3 = inlined_call_operand.vmem [shape: f32[128,128], index: 3, kind: input, shape index: {}]   ;;  %s1156_s5 = inlined_call_operand.vmem [shape: f32[16,128], index: 5, kind: output, shape index: {}]  }
   0x1   :  { %v834_v0 = vld [vmem:[%s1151_s1 + $0x38] sm:$0xff]  ;;  %v833_v4 = vld [vmem:[%s1151_s1 + $0x30] sm:$0xff]  ;;  %v832_v8 = vld [vmem:[%s1151_s1 + $0x28] sm:$0xff] }
   0x2   :  { %v842_v1 = vld [vmem:[%s1151_s1 + $0x78] sm:$0xff]  ;;  %444 = vmatpush.bf16.msra.mxu0 %v834_v0  ;;  %v841_v5 = vld [vmem:[%s1151_s1 + $0x70] sm:$0xff]  ;;  %v840_v9 = vld [vmem:[%s1151_s1 + $0x68] sm:$0xff] }
   0x3   :  { %v850_v2 = vld [vmem:[%s1151_s1 + $0xb8] sm:$0xff]  ;;  %458 = vmatpush.bf16.msra.mxu1 %v842_v1  ;;  %v849_v6 = vld [vmem:[%s1151_s1 + $0xb0] sm:$0xff]  ;;  %v848_v10 = vld [vmem:[%s1151_s1 + $0xa8] sm:$0xff] }
   0x4   :  { %v858_v3 = vld [vmem:[%s1151_s1 + $0xf8] sm:$0xff]  ;;  %472 = vmatpush.bf16.msra.mxu2 %v850_v2  ;;  %v857_v7 = vld [vmem:[%s1151_s1 + $0xf0] sm:$0xff]  ;;  %v856_v11 = vld [vmem:[%s1151_s1 + $0xe8] sm:$0xff] }
   0x5   :  { %486 = vmatpush.bf16.msra.mxu3 %v858_v3  ;;  %v831_v12 = vld [vmem:[%s1151_s1 + $0x20] sm:$0xff]  ;;  %v830_v16 = vld [vmem:[%s1151_s1 + $0x18] sm:$0xff]  ;;  %v829_v20 = vld [vmem:[%s1151_s1 + $0x10] sm:$0xff] }
   0x6   :  { %445 = vmatpush.bf16.msra.mxu0 %v833_v4  ;;  %v839_v13 = vld [vmem:[%s1151_s1 + $0x60] sm:$0xff]  ;;  %v838_v17 = vld [vmem:[%s1151_s1 + $0x58] sm:$0xff]  ;;  %v837_v21 = vld [vmem:[%s1151_s1 + $0x50] sm:$0xff] }
   0x7   :  { %459 = vmatpush.bf16.msra.mxu1 %v841_v5  ;;  %v847_v14 = vld [vmem:[%s1151_s1 + $0xa0] sm:$0xff]  ;;  %v846_v18 = vld [vmem:[%s1151_s1 + $0x98] sm:$0xff]  ;;  %v845_v22 = vld [vmem:[%s1151_s1 + $0x90] sm:$0xff] }
   0x8   :  { %473 = vmatpush.bf16.msra.mxu2 %v849_v6  ;;  %v855_v15 = vld [vmem:[%s1151_s1 + $0xe0] sm:$0xff]  ;;  %v854_v19 = vld [vmem:[%s1151_s1 + $0xd8] sm:$0xff]  ;;  %v853_v23 = vld [vmem:[%s1151_s1 + $0xd0] sm:$0xff] }
   0x9   :  { %487 = vmatpush.bf16.msra.mxu3 %v857_v7  ;;  %v828_v24 = vld [vmem:[%s1151_s1 + $0x8] sm:$0xff]  ;;  %v827_v28 = vld [vmem:[%s1151_s1] sm:$0xff]  ;;  %v824_v31 = vld [vmem:[%s1153_s0 + $0x14] sm:$0xf0] }
   0xa   :  { %446 = vmatpush.bf16.msra.mxu0 %v832_v8  ;;  %v836_v25 = vld [vmem:[%s1151_s1 + $0x48] sm:$0xff]  ;;  %v835_v29 = vld [vmem:[%s1151_s1 + $0x40] sm:$0xff]  ;;  %v609_v33 = vld [vmem:[%s1153_s0 + $0x18] sm:$0xf0] }
   0xb   :  { %460 = vmatpush.bf16.msra.mxu1 %v840_v9  ;;  %v844_v26 = vld [vmem:[%s1151_s1 + $0x88] sm:$0xff]  ;;  %v607_v30 = vld [vmem:[%s1153_s0] sm:$0xf]  ;;  %v821_v32 = vld [vmem:[%s1153_s0 + $0x4] sm:$0xf] }
   0xc   :  { %474 = vmatpush.bf16.msra.mxu2 %v848_v10  ;;  %v852_v27 = vld [vmem:[%s1151_s1 + $0xc8] sm:$0xff]  ;;  %v866_v34 = vld [vmem:[%s1151_s1 + $0x138] sm:$0xff]  ;;  %v843_v36 = vld [vmem:[%s1151_s1 + $0x80] sm:$0xff]  ;;  %v608_v40 = vor.u32 %v824_v31, %v607_v30  ;;  %v612_v43 = vor.u32 %v821_v32, %v609_v33 }
   0xd   :  { %488 = vmatpush.bf16.msra.mxu3 %v856_v11  ;;  %v874_v35 = vld [vmem:[%s1151_s1 + $0x178] sm:$0xff]  ;;  %v851_v37 = vld [vmem:[%s1151_s1 + $0xc0] sm:$0xff]  ;;  %v615_v38 = vld [vmem:[%s1153_s0 + $0x8] sm:$0xf] }
   0xe   :  { %447 = vmatpush.bf16.msra.mxu0 %v831_v12  ;;  %v825_v39 = vld [vmem:[%s1153_s0 + $0x1c] sm:$0xf0]  ;;  %v822_v41 = vld [vmem:[%s1153_s0 + $0xc] sm:$0xf]  ;;  %v617_v42 = vld [vmem:[%s1153_s0 + $0x20] sm:$0xf0] }
   0xf   :  { %461 = vmatpush.bf16.msra.mxu1 %v839_v13  ;;  %v865_v44 = vld [vmem:[%s1151_s1 + $0x130] sm:$0xff]  ;;  %v616_v46 = vor.u32 %v825_v39, %v615_v38  ;;  %v620_v47 = vor.u32 %v822_v41, %v617_v42  ;;  %v864_v48 = vld [vmem:[%s1151_s1 + $0x128] sm:$0xff]  ;;  %v863_v50 = vld [vmem:[%s1151_s1 + $0x120] sm:$0xff] }
  0x10   :  { %475 = vmatpush.bf16.msra.mxu2 %v847_v14  ;;  %v873_v45 = vld [vmem:[%s1151_s1 + $0x170] sm:$0xff]  ;;  %v872_v49 = vld [vmem:[%s1151_s1 + $0x168] sm:$0xff]  ;;  %v871_v51 = vld [vmem:[%s1151_s1 + $0x160] sm:$0xff] }
  0x11   :  { %489 = vmatpush.bf16.msra.mxu3 %v855_v15  ;;  %v862_v52 = vld [vmem:[%s1151_s1 + $0x118] sm:$0xff]  ;;  %v861_v54 = vld [vmem:[%s1151_s1 + $0x110] sm:$0xff]  ;;  %v860_v56 = vld [vmem:[%s1151_s1 + $0x108] sm:$0xff] }
  0x12   :  { %448 = vmatpush.bf16.msra.mxu0 %v830_v16  ;;  %v870_v53 = vld [vmem:[%s1151_s1 + $0x158] sm:$0xff]  ;;  %v869_v55 = vld [vmem:[%s1151_s1 + $0x150] sm:$0xff]  ;;  %v868_v57 = vld [vmem:[%s1151_s1 + $0x148] sm:$0xff] }
  0x13   :  { %462 = vmatpush.bf16.msra.mxu1 %v838_v17  ;;  %v859_v58 = vld [vmem:[%s1151_s1 + $0x100] sm:$0xff]  ;;  %v623_v60 = vld [vmem:[%s1153_s0 + $0x10] sm:$0xf]  ;;  %v826_v61 = vld [vmem:[%s1153_s0 + $0x24] sm:$0xf0] }
  0x14   :  { %476 = vmatpush.bf16.msra.mxu2 %v846_v18  ;;  %v867_v59 = vld [vmem:[%s1151_s1 + $0x140] sm:$0xff]  ;;  %v823_v62 = vld [vmem:[%s1153_s0 + $0x14] sm:$0xf]  ;;  %v625_v63 = vld [vmem:[%s1153_s0 + $0x28] sm:$0xf0]  ;;  %v624_v0 = vor.u32 %v826_v61, %v623_v60 }
  0x15   :  { %490 = vmatpush.bf16.msra.mxu3 %v854_v19  ;;  %v628_v1 = vor.u32 %v823_v62, %v625_v63  ;;  %v545_v2 = vld [vmem:[%s1155_s3 + $0x78] sm:$0xff]  ;;  %v544_v3 = vld [vmem:[%s1155_s3 + $0x70] sm:$0xff]  ;;  %v543_v4 = vld [vmem:[%s1155_s3 + $0x68] sm:$0xff] }
  0x16   :  { %449 = vmatpush.bf16.msra.mxu0 %v829_v20  ;;  %v542_v5 = vld [vmem:[%s1155_s3 + $0x60] sm:$0xff]  ;;  %v541_v6 = vld [vmem:[%s1155_s3 + $0x58] sm:$0xff]  ;;  %v540_v7 = vld [vmem:[%s1155_s3 + $0x50] sm:$0xff] }
  0x17   :  { %463 = vmatpush.bf16.msra.mxu1 %v837_v21  ;;  %v539_v8 = vld [vmem:[%s1155_s3 + $0x48] sm:$0xff]  ;;  %v538_v9 = vld [vmem:[%s1155_s3 + $0x40] sm:$0xff]  ;;  %v537_v10 = vld [vmem:[%s1155_s3 + $0x38] sm:$0xff] }
  0x18   :  { %477 = vmatpush.bf16.msra.mxu2 %v845_v22  ;;  %v536_v11 = vld [vmem:[%s1155_s3 + $0x30] sm:$0xff]  ;;  %v535_v12 = vld [vmem:[%s1155_s3 + $0x28] sm:$0xff]  ;;  %v534_v13 = vld [vmem:[%s1155_s3 + $0x20] sm:$0xff] }
  0x19   :  { %491 = vmatpush.bf16.msra.mxu3 %v853_v23  ;;  %v533_v14 = vld [vmem:[%s1155_s3 + $0x18] sm:$0xff]  ;;  %v532_v15 = vld [vmem:[%s1155_s3 + $0x10] sm:$0xff]  ;;  %v531_v16 = vld [vmem:[%s1155_s3 + $0x8] sm:$0xff] }
  0x1a   :  { %450 = vmatpush.bf16.msra.mxu0 %v828_v24  ;;  %v530_v17 = vld [vmem:[%s1155_s3] sm:$0xff] }
  0x1b   :  { %464 = vmatpush.bf16.msra.mxu1 %v836_v25  ;;  %v875_v20 = vld [vmem:[%s1152_s2] ss:$0 sm:$0xff] }
  0x1c   :  { %478 = vmatpush.bf16.msra.mxu2 %v844_v26 }
  0x1d   :  { %492 = vmatpush.bf16.msra.mxu3 %v852_v27 }
  0x1e   :  { %451 = vmatpush.bf16.msra.mxu0 %v827_v28 }
  0x1f   :  { %465 = vmatpush.bf16.msra.mxu1 %v835_v29 }
  0x20   :  { %479 = vmatpush.bf16.msra.mxu2 %v843_v36 }
  0x21   :  { %493 = vmatpush.bf16.msra.mxu3 %v851_v37  ;;  %452 = vmatmul.bf16.vlgmr.msra.gmra.mxu0 %v608_v40 }
  0x22   :  { %500 = vmatpush.bf16.msrb.mxu0 %v866_v34  ;;  %466 = vmatmul.bf16.vlgmr.msra.gmra.mxu1 %v612_v43 }
  0x23   :  { %514 = vmatpush.bf16.msrb.mxu1 %v874_v35  ;;  %480 = vmatmul.bf16.vlgmr.msra.gmra.mxu2 %v616_v46 }
  0x24   :  { %494 = vmatmul.bf16.vlgmr.msra.gmra.mxu3 %v620_v47  ;;  %550 = vmatpush.msrb.mxu2 %v545_v2 }
  0x26   :  { %501 = vmatpush.bf16.msrb.mxu0 %v865_v44  ;;  %551 = vmatpush.msrb.mxu2 %v544_v3 }
  0x27   :  { %515 = vmatpush.bf16.msrb.mxu1 %v873_v45  ;;  %v876_v45 = vld [vmem:[%s1154_s4] ss:$0 sm:$0xff] }
  0x28   :  { %552 = vmatpush.msrb.mxu2 %v543_v4 }
  0x2a   :  { %502 = vmatpush.bf16.msrb.mxu0 %v864_v48  ;;  %553 = vmatpush.msrb.mxu2 %v542_v5 }
  0x2b   :  { %516 = vmatpush.bf16.msrb.mxu1 %v872_v49 }
  0x2c   :  { %554 = vmatpush.msrb.mxu2 %v541_v6 }
  0x2e   :  { %503 = vmatpush.bf16.msrb.mxu0 %v863_v50  ;;  %555 = vmatpush.msrb.mxu2 %v540_v7 }
  0x2f   :  { %517 = vmatpush.bf16.msrb.mxu1 %v871_v51 }
  0x30   :  { %556 = vmatpush.msrb.mxu2 %v539_v8 }
  0x32   :  { %504 = vmatpush.bf16.msrb.mxu0 %v862_v52  ;;  %557 = vmatpush.msrb.mxu2 %v538_v9 }
  0x33   :  { %518 = vmatpush.bf16.msrb.mxu1 %v870_v53 }
  0x34   :  { %558 = vmatpush.msrb.mxu2 %v537_v10 }
  0x36   :  { %505 = vmatpush.bf16.msrb.mxu0 %v861_v54  ;;  %559 = vmatpush.msrb.mxu2 %v536_v11 }
  0x37   :  { %519 = vmatpush.bf16.msrb.mxu1 %v869_v55 }
  0x38   :  { %560 = vmatpush.msrb.mxu2 %v535_v12 }
  0x3a   :  { %506 = vmatpush.bf16.msrb.mxu0 %v860_v56  ;;  %561 = vmatpush.msrb.mxu2 %v534_v13 }
  0x3b   :  { %520 = vmatpush.bf16.msrb.mxu1 %v868_v57 }
  0x3c   :  { %562 = vmatpush.msrb.mxu2 %v533_v14 }
  0x3e   :  { %507 = vmatpush.bf16.msrb.mxu0 %v859_v58  ;;  %563 = vmatpush.msrb.mxu2 %v532_v15 }
  0x3f   :  { %521 = vmatpush.bf16.msrb.mxu1 %v867_v59 }
  0x40   :  { %564 = vmatpush.msrb.mxu2 %v531_v16 }
  0x41   :  { %508 = vmatmul.bf16.vlgmr.msrb.gmra.mxu0 %v624_v0 }
  0x42   :  { %522 = vmatmul.bf16.vlgmr.msrb.gmra.mxu1 %v628_v1  ;;  %565 = vmatpush.msrb.mxu2 %v530_v17 }
  0x9e   :  { %v453_v18 = vpop.f32.mrf.mxu0 }
  0x9f   :  { %v467_v19 = vpop.f32.mrf.mxu1  ;;  %v454_v21 = vadd.f32 %v875_v20, %v453_v18 }
  0xa1   :  { %v468_v23 = vadd.f32 %v467_v19, %v454_v21 }
  0xa6   :  { %v481_v22 = vpop.f32.mrf.mxu2  ;;  %v455_v24 = vpop.f32.mrf.mxu0 }
  0xa7   :  { %v469_v25 = vpop.f32.mrf.mxu1  ;;  %v495_v26 = vpop.f32.mrf.mxu3  ;;  %v482_v27 = vadd.f32 %v481_v22, %v468_v23  ;;  %v456_v28 = vadd.f32 %v875_v20, %v455_v24 }
  0xa9   :  { %v496_v29 = vadd.f32 %v495_v26, %v482_v27  ;;  %v470_v30 = vadd.f32 %v469_v25, %v456_v28 }
  0xae   :  { %v483_v31 = vpop.f32.mrf.mxu2 }
  0xaf   :  { %v484_v35 = vadd.f32 %v483_v31, %v470_v30  ;;  %v497_v37 = vpop.f32.mrf.mxu3 }
  0xb1   :  { %v498_v39 = vadd.f32 %v497_v37, %v484_v35 }
  0xbe   :  { %v509_v32 = vpop.f32.mrf.mxu0 }
  0xbf   :  { %v523_v33 = vpop.f32.mrf.mxu1  ;;  %v510_v34 = vadd.f32 %v509_v32, %v496_v29 }
  0xc1   :  { %v524_v36 = vadd.f32 %v523_v33, %v510_v34 }
  0xc3   :  { %v528_v38 = vmul.f32 %v524_v36, %v524_v36 }
  0xc5   :  { %566 = vmatmul.f32.vlgmr.msrb.gmra.mxu2 %v528_v38 }
  0xc6   :  { %v511_v40 = vpop.f32.mrf.mxu0 }
  0xc7   :  { %v512_v41 = vadd.f32 %v511_v40, %v498_v39  ;;  %v525_v42 = vpop.f32.mrf.mxu1 }
  0xc9   :  { %v526_v43 = vadd.f32 %v525_v42, %v512_v41 }
  0xcb   :  { %v529_v44 = vmul.f32 %v526_v43, %v526_v43 }
  0xcd   :  { %569 = vmatmul.f32.gmra.mxu2 %v529_v44 }
 0x148   :  { %v567_v46 = vpop.f32.mrf.mxu2 }
 0x149   :  { %v568_v47 = vadd.f32 %v876_v45, %v567_v46 }
 0x14b   :  { %877 = vrsqrt.f32 %v568_v47  ;;  %vm580_vm0 = vcmp.eq.f32.partialorder %v568_v47, inf  ;;  %v583_v60 = vand.u32 2147483648, %v568_v47  ;;  %vm582_vm1 = vcmp.eq.f32.partialorder %v568_v47, 0.0 }
 0x150   :  { %v570_v48 = vpop.f32.mrf.mxu2 }
 0x151   :  { %v878_v49 = vpop.eup %877  ;;  %v571_v50 = vadd.f32 %v876_v45, %v570_v48 }
 0x152   :  { %v574_v51 = vmul.f32 %v878_v49, %v568_v47 }
 0x153   :  { %879 = vrsqrt.f32 %v571_v50  ;;  %vm592_vm2 = vcmp.eq.f32.partialorder %v571_v50, inf  ;;  %v595_v4 = vand.u32 2147483648, %v571_v50  ;;  %vm594_vm3 = vcmp.eq.f32.partialorder %v571_v50, 0.0 }
 0x154   :  { %v575_v52 = vmul.f32 %v878_v49, %v574_v51 }
 0x156   :  { %v576_v53 = vmul.f32 0.5, %v575_v52 }
 0x158   :  { %v577_v54 = vsub.f32 1.5, %v576_v53 }
 0x159   :  { %v880_v55 = vpop.eup %879 }
 0x15a   :  { %v578_v56 = vmul.f32 %v878_v49, %v577_v54  ;;  %v586_v57 = vmul.f32 %v880_v55, %v571_v50 }
 0x15c   :  { %v579_v58 = vmul.f32 %v578_v56, %v568_v47  ;;  %v587_v59 = vmul.f32 %v880_v55, %v586_v57 }
 0x15e   :  { %v581_v61 = vsel %vm580_vm0, %v568_v47, %v579_v58  ;;  %v588_v62 = vmul.f32 0.5, %v587_v59 }
 0x15f   :  { %v584_v63 = vsel %vm582_vm1, %v583_v60, %v581_v61 }
 0x160   :  { %v597_v0 = vmul.f32 %v584_v63, %v524_v36  ;;  %v589_v1 = vsub.f32 1.5, %v588_v62 }
 0x162   :  { %599 = vst [vmem:[%s1156_s5] sm:$0xff] %v597_v0  ;;  %v590_v2 = vmul.f32 %v880_v55, %v589_v1 }
 0x164   :  { %v591_v3 = vmul.f32 %v590_v2, %v571_v50 }
 0x166   :  { %v593_v5 = vsel %vm592_vm2, %v571_v50, %v591_v3 }
 0x167   :  { %v596_v6 = vsel %vm594_vm3, %v595_v4, %v593_v5 }
 0x168   :  { %v598_v7 = vmul.f32 %v596_v6, %v526_v43 }
 0x16a   :  { %600 = vst [vmem:[%s1156_s5 + $0x8] sm:$0xff] %v598_v7 }

// kernel: image_compressor_forward.39
= control target key start
LH: loop header
LB: loop body
LE: loop exit
PB: predicated region body
PF: predicated region fallthrough
CT: control target
= control target key end

     0   :  { %s1025_s1 = inlined_call_operand.vmem [shape: bf16[512,128], index: 1, kind: input, shape index: {}]   ;;  %s1026_s2 = inlined_call_operand.vmem [shape: f32[1,128], index: 2, kind: input, shape index: {}]   ;;  %s1027_s0 = inlined_call_operand.vmem [shape: bf16[32,512], index: 0, kind: input, shape index: {}]   ;;  %s1028_s3 = inlined_call_operand.vmem [shape: f32[128,128], index: 3, kind: input, shape index: {}]   ;;  %s1029_s4 = inlined_call_operand.vmem [shape: f32[1,128], index: 4, kind: input, shape index: {}]   ;;  %s1030_s5 = inlined_call_operand.vmem [shape: f32[32,128], index: 5, kind: output, shape index: {}]  }
   0x1   :  { %v692_v0 = vld [vmem:[%s1025_s1 + $0x38] sm:$0xff]  ;;  %v691_v4 = vld [vmem:[%s1025_s1 + $0x30] sm:$0xff]  ;;  %v690_v8 = vld [vmem:[%s1025_s1 + $0x28] sm:$0xff] }
   0x2   :  { %v700_v1 = vld [vmem:[%s1025_s1 + $0x78] sm:$0xff]  ;;  %328 = vmatpush.bf16.msra.mxu0 %v692_v0  ;;  %v699_v5 = vld [vmem:[%s1025_s1 + $0x70] sm:$0xff]  ;;  %v698_v9 = vld [vmem:[%s1025_s1 + $0x68] sm:$0xff] }
   0x3   :  { %v708_v2 = vld [vmem:[%s1025_s1 + $0xb8] sm:$0xff]  ;;  %347 = vmatpush.bf16.msra.mxu1 %v700_v1  ;;  %v707_v6 = vld [vmem:[%s1025_s1 + $0xb0] sm:$0xff]  ;;  %v706_v10 = vld [vmem:[%s1025_s1 + $0xa8] sm:$0xff] }
   0x4   :  { %v716_v3 = vld [vmem:[%s1025_s1 + $0xf8] sm:$0xff]  ;;  %366 = vmatpush.bf16.msra.mxu2 %v708_v2  ;;  %v715_v7 = vld [vmem:[%s1025_s1 + $0xf0] sm:$0xff]  ;;  %v714_v11 = vld [vmem:[%s1025_s1 + $0xe8] sm:$0xff] }
   0x5   :  { %385 = vmatpush.bf16.msra.mxu3 %v716_v3  ;;  %v689_v12 = vld [vmem:[%s1025_s1 + $0x20] sm:$0xff]  ;;  %v688_v16 = vld [vmem:[%s1025_s1 + $0x18] sm:$0xff]  ;;  %v687_v20 = vld [vmem:[%s1025_s1 + $0x10] sm:$0xff] }
   0x6   :  { %329 = vmatpush.bf16.msra.mxu0 %v691_v4  ;;  %v697_v13 = vld [vmem:[%s1025_s1 + $0x60] sm:$0xff]  ;;  %v696_v17 = vld [vmem:[%s1025_s1 + $0x58] sm:$0xff]  ;;  %v695_v21 = vld [vmem:[%s1025_s1 + $0x50] sm:$0xff] }
   0x7   :  { %348 = vmatpush.bf16.msra.mxu1 %v699_v5  ;;  %v705_v14 = vld [vmem:[%s1025_s1 + $0xa0] sm:$0xff]  ;;  %v704_v18 = vld [vmem:[%s1025_s1 + $0x98] sm:$0xff]  ;;  %v703_v22 = vld [vmem:[%s1025_s1 + $0x90] sm:$0xff] }
   0x8   :  { %367 = vmatpush.bf16.msra.mxu2 %v707_v6  ;;  %v713_v15 = vld [vmem:[%s1025_s1 + $0xe0] sm:$0xff]  ;;  %v712_v19 = vld [vmem:[%s1025_s1 + $0xd8] sm:$0xff]  ;;  %v711_v23 = vld [vmem:[%s1025_s1 + $0xd0] sm:$0xff] }
   0x9   :  { %386 = vmatpush.bf16.msra.mxu3 %v715_v7  ;;  %v686_v24 = vld [vmem:[%s1025_s1 + $0x8] sm:$0xff]  ;;  %v685_v28 = vld [vmem:[%s1025_s1] sm:$0xff]  ;;  %v679_v33 = vld [vmem:[%s1027_s0 + $0xc] sm:$0xf0] }
   0xa   :  { %330 = vmatpush.bf16.msra.mxu0 %v690_v8  ;;  %v694_v25 = vld [vmem:[%s1025_s1 + $0x48] sm:$0xff]  ;;  %v693_v29 = vld [vmem:[%s1025_s1 + $0x40] sm:$0xff]  ;;  %v521_v35 = vld [vmem:[%s1027_s0 + $0x10] sm:$0xf0] }
   0xb   :  { %349 = vmatpush.bf16.msra.mxu1 %v698_v9  ;;  %v702_v26 = vld [vmem:[%s1025_s1 + $0x88] sm:$0xff]  ;;  %v701_v30 = vld [vmem:[%s1025_s1 + $0x80] sm:$0xff]  ;;  %v680_v37 = vld [vmem:[%s1027_s0 + $0x14] sm:$0xf0] }
   0xc   :  { %368 = vmatpush.bf16.msra.mxu2 %v706_v10  ;;  %v710_v27 = vld [vmem:[%s1025_s1 + $0xc8] sm:$0xff]  ;;  %v709_v31 = vld [vmem:[%s1025_s1 + $0xc0] sm:$0xff]  ;;  %v529_v39 = vld [vmem:[%s1027_s0 + $0x18] sm:$0xf0] }
   0xd   :  { %387 = vmatpush.bf16.msra.mxu3 %v714_v11  ;;  %v519_v32 = vld [vmem:[%s1027_s0] sm:$0xf]  ;;  %v677_v34 = vld [vmem:[%s1027_s0 + $0x4] sm:$0xf]  ;;  %v527_v36 = vld [vmem:[%s1027_s0 + $0x8] sm:$0xf] }
   0xe   :  { %331 = vmatpush.bf16.msra.mxu0 %v689_v12  ;;  %v678_v38 = vld [vmem:[%s1027_s0 + $0xc] sm:$0xf]  ;;  %v520_v40 = vor.u32 %v679_v33, %v519_v32  ;;  %v524_v41 = vor.u32 %v677_v34, %v521_v35  ;;  %v423_v42 = vld [vmem:[%s1028_s3 + $0x78] sm:$0xff]  ;;  %v528_v43 = vor.u32 %v680_v37, %v527_v36  ;;  %v422_v45 = vld [vmem:[%s1028_s3 + $0x70] sm:$0xff] }
   0xf   :  { %350 = vmatpush.bf16.msra.mxu1 %v697_v13  ;;  %v532_v44 = vor.u32 %v678_v38, %v529_v39  ;;  %v421_v46 = vld [vmem:[%s1028_s3 + $0x68] sm:$0xff]  ;;  %v420_v47 = vld [vmem:[%s1028_s3 + $0x60] sm:$0xff]  ;;  %v419_v48 = vld [vmem:[%s1028_s3 + $0x58] sm:$0xff] }
  0x10   :  { %369 = vmatpush.bf16.msra.mxu2 %v705_v14  ;;  %v418_v49 = vld [vmem:[%s1028_s3 + $0x50] sm:$0xff]  ;;  %v535_v50 = vld [vmem:[%s1027_s0 + $0x20] sm:$0xf]  ;;  %v681_v52 = vld [vmem:[%s1027_s0 + $0x24] sm:$0xf] }
  0x11   :  { %388 = vmatpush.bf16.msra.mxu3 %v713_v15  ;;  %v683_v51 = vld [vmem:[%s1027_s0 + $0x2c] sm:$0xf0]  ;;  %v537_v53 = vld [vmem:[%s1027_s0 + $0x30] sm:$0xf0]  ;;  %v543_v54 = vld [vmem:[%s1027_s0 + $0x28] sm:$0xf] }
  0x12   :  { %332 = vmatpush.bf16.msra.mxu0 %v688_v16  ;;  %v417_v55 = vld [vmem:[%s1028_s3 + $0x48] sm:$0xff]  ;;  %v684_v56 = vld [vmem:[%s1027_s0 + $0x34] sm:$0xf0]  ;;  %v545_v58 = vld [vmem:[%s1027_s0 + $0x38] sm:$0xf0]  ;;  %v536_v60 = vor.u32 %v683_v51, %v535_v50  ;;  %v540_v61 = vor.u32 %v681_v52, %v537_v53 }
  0x13   :  { %351 = vmatpush.bf16.msra.mxu1 %v696_v17  ;;  %v682_v57 = vld [vmem:[%s1027_s0 + $0x2c] sm:$0xf]  ;;  %v416_v59 = vld [vmem:[%s1028_s3 + $0x40] sm:$0xff]  ;;  %v544_v62 = vor.u32 %v684_v56, %v543_v54  ;;  %v415_v0 = vld [vmem:[%s1028_s3 + $0x38] sm:$0xff] }
  0x14   :  { %370 = vmatpush.bf16.msra.mxu2 %v704_v18  ;;  %v548_v63 = vor.u32 %v682_v57, %v545_v58  ;;  %v414_v1 = vld [vmem:[%s1028_s3 + $0x30] sm:$0xff]  ;;  %v413_v2 = vld [vmem:[%s1028_s3 + $0x28] sm:$0xff]  ;;  %v412_v3 = vld [vmem:[%s1028_s3 + $0x20] sm:$0xff] }
  0x15   :  { %389 = vmatpush.bf16.msra.mxu3 %v712_v19  ;;  %v411_v4 = vld [vmem:[%s1028_s3 + $0x18] sm:$0xff]  ;;  %v410_v5 = vld [vmem:[%s1028_s3 + $0x10] sm:$0xff]  ;;  %v409_v6 = vld [vmem:[%s1028_s3 + $0x8] sm:$0xff] }
  0x16   :  { %333 = vmatpush.bf16.msra.mxu0 %v687_v20  ;;  %v408_v7 = vld [vmem:[%s1028_s3] sm:$0xff] }
  0x17   :  { %352 = vmatpush.bf16.msra.mxu1 %v695_v21  ;;  %v765_v8 = vld [vmem:[%s1026_s2] ss:$0 sm:$0xff] }
  0x18   :  { %371 = vmatpush.bf16.msra.mxu2 %v703_v22 }
  0x19   :  { %390 = vmatpush.bf16.msra.mxu3 %v711_v23 }
  0x1a   :  { %334 = vmatpush.bf16.msra.mxu0 %v686_v24 }
  0x1b   :  { %353 = vmatpush.bf16.msra.mxu1 %v694_v25 }
  0x1c   :  { %372 = vmatpush.bf16.msra.mxu2 %v702_v26 }
  0x1d   :  { %391 = vmatpush.bf16.msra.mxu3 %v710_v27 }
  0x1e   :  { %335 = vmatpush.bf16.msra.mxu0 %v685_v28 }
  0x1f   :  { %354 = vmatpush.bf16.msra.mxu1 %v693_v29 }
  0x20   :  { %373 = vmatpush.bf16.msra.mxu2 %v701_v30 }
  0x21   :  { %392 = vmatpush.bf16.msra.mxu3 %v709_v31  ;;  %336 = vmatmul.bf16.vlgmr.msra.gmra.mxu0 %v520_v40 }
  0x22   :  { %428 = vmatpush.msrb.mxu0 %v423_v42  ;;  %355 = vmatmul.bf16.vlgmr.msra.gmra.mxu1 %v524_v41 }
  0x23   :  { %717 = vmatpush.msrb.mxu1 %v423_v42  ;;  %374 = vmatmul.bf16.vlgmr.msra.gmra.mxu2 %v528_v43 }
  0x24   :  { %393 = vmatmul.bf16.vlgmr.msra.gmra.mxu3 %v532_v44  ;;  %429 = vmatpush.msrb.mxu0 %v422_v45 }
  0x25   :  { %720 = vmatpush.msrb.mxu1 %v422_v45  ;;  %718 = vmatpush.msrb.mxu2 %v423_v42 }
  0x26   :  { %719 = vmatpush.msrb.mxu3 %v423_v42  ;;  %430 = vmatpush.msrb.mxu0 %v421_v46 }
  0x27   :  { %723 = vmatpush.msrb.mxu1 %v421_v46  ;;  %721 = vmatpush.msrb.mxu2 %v422_v45 }
  0x28   :  { %722 = vmatpush.msrb.mxu3 %v422_v45  ;;  %431 = vmatpush.msrb.mxu0 %v420_v47  ;;  %v766_v45 = vld [vmem:[%s1029_s4] ss:$0 sm:$0xff] }
  0x29   :  { %726 = vmatpush.msrb.mxu1 %v420_v47  ;;  %724 = vmatpush.msrb.mxu2 %v421_v46 }
  0x2a   :  { %725 = vmatpush.msrb.mxu3 %v421_v46  ;;  %432 = vmatpush.msrb.mxu0 %v419_v48 }
  0x2b   :  { %729 = vmatpush.msrb.mxu1 %v419_v48  ;;  %727 = vmatpush.msrb.mxu2 %v420_v47 }
  0x2c   :  { %728 = vmatpush.msrb.mxu3 %v420_v47  ;;  %433 = vmatpush.msrb.mxu0 %v418_v49 }
  0x2d   :  { %732 = vmatpush.msrb.mxu1 %v418_v49  ;;  %730 = vmatpush.msrb.mxu2 %v419_v48 }
  0x2e   :  { %731 = vmatpush.msrb.mxu3 %v419_v48  ;;  %434 = vmatpush.msrb.mxu0 %v417_v55 }
  0x2f   :  { %735 = vmatpush.msrb.mxu1 %v417_v55  ;;  %733 = vmatpush.msrb.mxu2 %v418_v49 }
  0x30   :  { %734 = vmatpush.msrb.mxu3 %v418_v49  ;;  %435 = vmatpush.msrb.mxu0 %v416_v59 }
  0x31   :  { %738 = vmatpush.msrb.mxu1 %v416_v59  ;;  %736 = vmatpush.msrb.mxu2 %v417_v55 }
  0x32   :  { %737 = vmatpush.msrb.mxu3 %v417_v55  ;;  %341 = vmatmul.bf16.gmra.mxu0 %v536_v60 }
  0x33   :  { %360 = vmatmul.bf16.gmra.mxu1 %v540_v61  ;;  %379 = vmatmul.bf16.gmra.mxu2 %v544_v62 }
  0x34   :  { %398 = vmatmul.bf16.gmra.mxu3 %v548_v63  ;;  %436 = vmatpush.msrb.mxu0 %v415_v0 }
  0x35   :  { %741 = vmatpush.msrb.mxu1 %v415_v0  ;;  %739 = vmatpush.msrb.mxu2 %v416_v59 }
  0x36   :  { %740 = vmatpush.msrb.mxu3 %v416_v59  ;;  %437 = vmatpush.msrb.mxu0 %v414_v1 }
  0x37   :  { %742 = vmatpush.msrb.mxu2 %v415_v0  ;;  %744 = vmatpush.msrb.mxu1 %v414_v1 }
  0x38   :  { %743 = vmatpush.msrb.mxu3 %v415_v0  ;;  %438 = vmatpush.msrb.mxu0 %v413_v2 }
  0x39   :  { %745 = vmatpush.msrb.mxu2 %v414_v1  ;;  %747 = vmatpush.msrb.mxu1 %v413_v2 }
  0x3a   :  { %746 = vmatpush.msrb.mxu3 %v414_v1  ;;  %439 = vmatpush.msrb.mxu0 %v412_v3 }
  0x3b   :  { %748 = vmatpush.msrb.mxu2 %v413_v2  ;;  %750 = vmatpush.msrb.mxu1 %v412_v3 }
  0x3c   :  { %749 = vmatpush.msrb.mxu3 %v413_v2  ;;  %440 = vmatpush.msrb.mxu0 %v411_v4 }
  0x3d   :  { %751 = vmatpush.msrb.mxu2 %v412_v3  ;;  %753 = vmatpush.msrb.mxu1 %v411_v4 }
  0x3e   :  { %752 = vmatpush.msrb.mxu3 %v412_v3  ;;  %441 = vmatpush.msrb.mxu0 %v410_v5 }
  0x3f   :  { %754 = vmatpush.msrb.mxu2 %v411_v4  ;;  %756 = vmatpush.msrb.mxu1 %v410_v5 }
  0x40   :  { %755 = vmatpush.msrb.mxu3 %v411_v4  ;;  %442 = vmatpush.msrb.mxu0 %v409_v6 }
  0x41   :  { %757 = vmatpush.msrb.mxu2 %v410_v5  ;;  %759 = vmatpush.msrb.mxu1 %v409_v6 }
  0x42   :  { %758 = vmatpush.msrb.mxu3 %v410_v5  ;;  %443 = vmatpush.msrb.mxu0 %v408_v7 }
  0x43   :  { %760 = vmatpush.msrb.mxu2 %v409_v6  ;;  %762 = vmatpush.msrb.mxu1 %v408_v7 }
  0x44   :  { %761 = vmatpush.msrb.mxu3 %v409_v6 }
  0x45   :  { %763 = vmatpush.msrb.mxu2 %v408_v7 }
  0x46   :  { %764 = vmatpush.msrb.mxu3 %v408_v7 }
  0x9e   :  { %v337_v9 = vpop.f32.mrf.mxu0 }
  0x9f   :  { %v356_v10 = vpop.f32.mrf.mxu1  ;;  %v338_v11 = vadd.f32 %v765_v8, %v337_v9 }
  0xa1   :  { %v357_v12 = vadd.f32 %v356_v10, %v338_v11 }
  0xa6   :  { %v375_v13 = vpop.f32.mrf.mxu2  ;;  %v339_v16 = vpop.f32.mrf.mxu0 }
  0xa7   :  { %v394_v14 = vpop.f32.mrf.mxu3  ;;  %v376_v15 = vadd.f32 %v375_v13, %v357_v12  ;;  %v358_v17 = vpop.f32.mrf.mxu1  ;;  %v340_v19 = vadd.f32 %v765_v8, %v339_v16 }
  0xa9   :  { %v395_v18 = vadd.f32 %v394_v14, %v376_v15  ;;  %v359_v21 = vadd.f32 %v358_v17, %v340_v19 }
  0xab   :  { %v404_v20 = vmul.f32 %v395_v18, %v395_v18 }
  0xad   :  { %444 = vmatmul.f32.vlgmr.msrb.gmra.mxu0 %v404_v20 }
  0xae   :  { %v377_v22 = vpop.f32.mrf.mxu2 }
  0xaf   :  { %v396_v23 = vpop.f32.mrf.mxu3  ;;  %v378_v24 = vadd.f32 %v377_v22, %v359_v21  ;;  %v342_v25 = vpop.f32.mrf.mxu0 }
  0xb0   :  { %v343_v26 = vadd.f32 %v765_v8, %v342_v25  ;;  %v361_v28 = vpop.f32.mrf.mxu1 }
  0xb1   :  { %v397_v27 = vadd.f32 %v396_v23, %v378_v24 }
  0xb2   :  { %v362_v30 = vadd.f32 %v361_v28, %v343_v26 }
  0xb3   :  { %v405_v29 = vmul.f32 %v397_v27, %v397_v27 }
  0xb5   :  { %447 = vmatmul.f32.vlgmr.msrb.gmra.mxu1 %v405_v29 }
  0xb6   :  { %v380_v31 = vpop.f32.mrf.mxu2 }
  0xb7   :  { %v399_v32 = vpop.f32.mrf.mxu3  ;;  %v381_v33 = vadd.f32 %v380_v31, %v362_v30  ;;  %v344_v34 = vpop.f32.mrf.mxu0 }
  0xb8   :  { %v345_v36 = vadd.f32 %v765_v8, %v344_v34  ;;  %v363_v38 = vpop.f32.mrf.mxu1 }
  0xb9   :  { %v1000_v35 = vadd.f32 %v399_v32, %v381_v33 }
  0xba   :  { %v364_v39 = vadd.f32 %v363_v38, %v345_v36 }
  0xbb   :  { %v406_v37 = vmul.f32 %v1000_v35, %v1000_v35 }
  0xbd   :  { %450 = vmatmul.f32.vlgmr.msrb.gmra.mxu2 %v406_v37 }
  0xbe   :  { %v382_v40 = vpop.f32.mrf.mxu2 }
  0xbf   :  { %v383_v41 = vadd.f32 %v382_v40, %v364_v39  ;;  %v401_v42 = vpop.f32.mrf.mxu3 }
  0xc1   :  { %v1004_v43 = vadd.f32 %v401_v42, %v383_v41 }
  0xc3   :  { %v407_v44 = vmul.f32 %v1004_v43, %v1004_v43 }
  0xc5   :  { %453 = vmatmul.f32.vlgmr.msrb.gmra.mxu3 %v407_v44 }
 0x12a   :  { %v445_v46 = vpop.f32.mrf.mxu0 }
 0x12b   :  { %v446_v47 = vadd.f32 %v766_v45, %v445_v46 }
 0x12d   :  { %767 = vrsqrt.f32 %v446_v47  ;;  %vm464_vm0 = vcmp.eq.f32.partialorder %v446_v47, inf  ;;  %v467_v60 = vand.u32 2147483648, %v446_v47  ;;  %vm466_vm1 = vcmp.eq.f32.partialorder %v446_v47, 0.0 }
 0x132   :  { %v448_v48 = vpop.f32.mrf.mxu1 }
 0x133   :  { %v768_v49 = vpop.eup %767  ;;  %v449_v50 = vadd.f32 %v766_v45, %v448_v48 }
 0x134   :  { %v458_v51 = vmul.f32 %v768_v49, %v446_v47 }
 0x135   :  { %769 = vrsqrt.f32 %v449_v50  ;;  %vm476_vm2 = vcmp.eq.f32.partialorder %v449_v50, inf  ;;  %v479_v6 = vand.u32 2147483648, %v449_v50  ;;  %vm478_vm3 = vcmp.eq.f32.partialorder %v449_v50, 0.0 }
 0x136   :  { %v459_v52 = vmul.f32 %v768_v49, %v458_v51 }
 0x138   :  { %v460_v53 = vmul.f32 0.5, %v459_v52 }
 0x13a   :  { %v461_v54 = vsub.f32 1.5, %v460_v53 }
 0x13b   :  { %v770_v55 = vpop.eup %769 }
 0x13c   :  { %v462_v56 = vmul.f32 %v768_v49, %v461_v54  ;;  %v470_v57 = vmul.f32 %v770_v55, %v449_v50 }
 0x13e   :  { %v463_v58 = vmul.f32 %v462_v56, %v446_v47  ;;  %v471_v59 = vmul.f32 %v770_v55, %v470_v57 }
 0x140   :  { %v465_v61 = vsel %vm464_vm0, %v446_v47, %v463_v58  ;;  %v472_v62 = vmul.f32 0.5, %v471_v59  ;;  %v451_v63 = vpop.f32.mrf.mxu2 }
 0x141   :  { %v468_v0 = vsel %vm466_vm1, %v467_v60, %v465_v61  ;;  %v452_v1 = vadd.f32 %v766_v45, %v451_v63 }
 0x142   :  { %v505_v2 = vmul.f32 %v468_v0, %v395_v18  ;;  %v473_v3 = vsub.f32 1.5, %v472_v62 }
 0x143   :  { %771 = vrsqrt.f32 %v452_v1  ;;  %vm488_vm4 = vcmp.eq.f32.partialorder %v452_v1, inf  ;;  %v491_v22 = vand.u32 2147483648, %v452_v1  ;;  %vm490_vm5 = vcmp.eq.f32.partialorder %v452_v1, 0.0 }
 0x144   :  { %509 = vst [vmem:[%s1030_s5] sm:$0xff] %v505_v2  ;;  %v474_v4 = vmul.f32 %v770_v55, %v473_v3 }
 0x146   :  { %v475_v5 = vmul.f32 %v474_v4, %v449_v50 }
 0x148   :  { %v477_v7 = vsel %vm476_vm2, %v449_v50, %v475_v5  ;;  %v454_v8 = vpop.f32.mrf.mxu3 }
 0x149   :  { %v772_v9 = vpop.eup %771  ;;  %v480_v10 = vsel %vm478_vm3, %v479_v6, %v477_v7  ;;  %v455_v11 = vadd.f32 %v766_v45, %v454_v8 }
 0x14a   :  { %v506_v12 = vmul.f32 %v480_v10, %v397_v27  ;;  %v482_v13 = vmul.f32 %v772_v9, %v452_v1 }
 0x14b   :  { %773 = vrsqrt.f32 %v455_v11  ;;  %vm500_vm6 = vcmp.eq.f32.partialorder %v455_v11, inf  ;;  %v503_v30 = vand.u32 2147483648, %v455_v11  ;;  %vm502_vm7 = vcmp.eq.f32.partialorder %v455_v11, 0.0 }
 0x14c   :  { %510 = vst [vmem:[%s1030_s5 + $0x8] sm:$0xff] %v506_v12  ;;  %v483_v14 = vmul.f32 %v772_v9, %v482_v13 }
 0x14e   :  { %v484_v15 = vmul.f32 0.5, %v483_v14 }
 0x150   :  { %v485_v16 = vsub.f32 1.5, %v484_v15 }
 0x151   :  { %v774_v17 = vpop.eup %773 }
 0x152   :  { %v486_v18 = vmul.f32 %v772_v9, %v485_v16  ;;  %v494_v19 = vmul.f32 %v774_v17, %v455_v11 }
 0x154   :  { %v487_v20 = vmul.f32 %v486_v18, %v452_v1  ;;  %v495_v21 = vmul.f32 %v774_v17, %v494_v19 }
 0x156   :  { %v489_v23 = vsel %vm488_vm4, %v452_v1, %v487_v20  ;;  %v496_v24 = vmul.f32 0.5, %v495_v21 }
 0x157   :  { %v492_v25 = vsel %vm490_vm5, %v491_v22, %v489_v23 }
 0x158   :  { %v507_v26 = vmul.f32 %v492_v25, %v1000_v35  ;;  %v497_v27 = vsub.f32 1.5, %v496_v24 }
 0x15a   :  { %511 = vst [vmem:[%s1030_s5 + $0x10] sm:$0xff] %v507_v26  ;;  %v498_v28 = vmul.f32 %v774_v17, %v497_v27 }
 0x15c   :  { %v499_v29 = vmul.f32 %v498_v28, %v455_v11 }
 0x15e   :  { %v501_v31 = vsel %vm500_vm6, %v455_v11, %v499_v29 }
 0x15f   :  { %v504_v32 = vsel %vm502_vm7, %v503_v30, %v501_v31 }
 0x160   :  { %v508_v33 = vmul.f32 %v504_v32, %v1004_v43 }
 0x162   :  { %512 = vst [vmem:[%s1030_s5 + $0x18] sm:$0xff] %v508_v33 }

// kernel: image_compressor_forward.36
= control target key start
LH: loop header
LB: loop body
LE: loop exit
PB: predicated region body
PF: predicated region fallthrough
CT: control target
= control target key end

     0   :  { %s1934_s1 = inlined_call_operand.vmem [shape: bf16[1152,128], index: 1, kind: input, shape index: {}]   ;;  %s1935_s0 = inlined_call_operand.vmem [shape: bf16[32,1152], index: 0, kind: input, shape index: {}]   ;;  %s1936_s2 = inlined_call_operand.vmem [shape: f32[1,128], index: 2, kind: input, shape index: {}]   ;;  %s1937_s4 = inlined_call_operand.vmem [shape: f32[1,128], index: 4, kind: input, shape index: {}]   ;;  %s1938_s3 = inlined_call_operand.vmem [shape: f32[128,128], index: 3, kind: input, shape index: {}]   ;;  %s1939_s5 = inlined_call_operand.vmem [shape: f32[32,128], index: 5, kind: output, shape index: {}]  }
   0x1   :  { %v1381_v0 = vld [vmem:[%s1934_s1 + $0x38] sm:$0xff]  ;;  %v1380_v4 = vld [vmem:[%s1934_s1 + $0x30] sm:$0xff]  ;;  %v1379_v8 = vld [vmem:[%s1934_s1 + $0x28] sm:$0xff] }
   0x2   :  { %v1397_v1 = vld [vmem:[%s1934_s1 + $0xb8] sm:$0xff]  ;;  %712 = vmatpush.bf16.msra.mxu0 %v1381_v0  ;;  %v1396_v5 = vld [vmem:[%s1934_s1 + $0xb0] sm:$0xff]  ;;  %v1395_v9 = vld [vmem:[%s1934_s1 + $0xa8] sm:$0xff] }
   0x3   :  { %v1389_v2 = vld [vmem:[%s1934_s1 + $0x78] sm:$0xff]  ;;  %750 = vmatpush.bf16.msra.mxu2 %v1397_v1  ;;  %v1388_v6 = vld [vmem:[%s1934_s1 + $0x70] sm:$0xff]  ;;  %v1387_v10 = vld [vmem:[%s1934_s1 + $0x68] sm:$0xff] }
   0x4   :  { %v1405_v3 = vld [vmem:[%s1934_s1 + $0xf8] sm:$0xff]  ;;  %731 = vmatpush.bf16.msra.mxu1 %v1389_v2  ;;  %v1404_v7 = vld [vmem:[%s1934_s1 + $0xf0] sm:$0xff]  ;;  %v1403_v11 = vld [vmem:[%s1934_s1 + $0xe8] sm:$0xff] }
   0x5   :  { %769 = vmatpush.bf16.msra.mxu3 %v1405_v3  ;;  %v1378_v12 = vld [vmem:[%s1934_s1 + $0x20] sm:$0xff]  ;;  %v1377_v16 = vld [vmem:[%s1934_s1 + $0x18] sm:$0xff]  ;;  %v1376_v20 = vld [vmem:[%s1934_s1 + $0x10] sm:$0xff] }
   0x6   :  { %713 = vmatpush.bf16.msra.mxu0 %v1380_v4  ;;  %v1394_v13 = vld [vmem:[%s1934_s1 + $0xa0] sm:$0xff]  ;;  %v1393_v17 = vld [vmem:[%s1934_s1 + $0x98] sm:$0xff]  ;;  %v1392_v21 = vld [vmem:[%s1934_s1 + $0x90] sm:$0xff] }
   0x7   :  { %751 = vmatpush.bf16.msra.mxu2 %v1396_v5  ;;  %v1386_v14 = vld [vmem:[%s1934_s1 + $0x60] sm:$0xff]  ;;  %v1385_v18 = vld [vmem:[%s1934_s1 + $0x58] sm:$0xff]  ;;  %v1384_v22 = vld [vmem:[%s1934_s1 + $0x50] sm:$0xff] }
   0x8   :  { %732 = vmatpush.bf16.msra.mxu1 %v1388_v6  ;;  %v1402_v15 = vld [vmem:[%s1934_s1 + $0xe0] sm:$0xff]  ;;  %v1401_v19 = vld [vmem:[%s1934_s1 + $0xd8] sm:$0xff]  ;;  %v1400_v23 = vld [vmem:[%s1934_s1 + $0xd0] sm:$0xff] }
   0x9   :  { %770 = vmatpush.bf16.msra.mxu3 %v1404_v7  ;;  %v1375_v24 = vld [vmem:[%s1934_s1 + $0x8] sm:$0xff]  ;;  %v1374_v28 = vld [vmem:[%s1934_s1] sm:$0xff]  ;;  %v1008_v39 = vld [vmem:[%s1935_s0 + $0x2c] sm:$0xf0] }
   0xa   :  { %714 = vmatpush.bf16.msra.mxu0 %v1379_v8  ;;  %v1391_v25 = vld [vmem:[%s1934_s1 + $0x88] sm:$0xff]  ;;  %v1390_v29 = vld [vmem:[%s1934_s1 + $0x80] sm:$0xff]  ;;  %v1429_v40 = vld [vmem:[%s1934_s1 + $0x1b8] sm:$0xff] }
   0xb   :  { %752 = vmatpush.bf16.msra.mxu2 %v1395_v9  ;;  %v1383_v26 = vld [vmem:[%s1934_s1 + $0x48] sm:$0xff]  ;;  %v1382_v30 = vld [vmem:[%s1934_s1 + $0x40] sm:$0xff]  ;;  %v1413_v41 = vld [vmem:[%s1934_s1 + $0x138] sm:$0xff] }
   0xc   :  { %733 = vmatpush.bf16.msra.mxu1 %v1387_v10  ;;  %v1399_v27 = vld [vmem:[%s1934_s1 + $0xc8] sm:$0xff]  ;;  %v1398_v31 = vld [vmem:[%s1934_s1 + $0xc0] sm:$0xff]  ;;  %v1421_v46 = vld [vmem:[%s1934_s1 + $0x178] sm:$0xff] }
   0xd   :  { %771 = vmatpush.bf16.msra.mxu3 %v1403_v11  ;;  %v998_v32 = vld [vmem:[%s1935_s0] sm:$0xf]  ;;  %v1360_v33 = vld [vmem:[%s1935_s0 + $0x20] sm:$0xf0]  ;;  %v1006_v34 = vld [vmem:[%s1935_s0 + $0x8] sm:$0xf] }
   0xe   :  { %715 = vmatpush.bf16.msra.mxu0 %v1378_v12  ;;  %v1361_v35 = vld [vmem:[%s1935_s0 + $0x28] sm:$0xf0]  ;;  %v1356_v36 = vld [vmem:[%s1935_s0 + $0x4] sm:$0xf]  ;;  %v1000_v37 = vld [vmem:[%s1935_s0 + $0x24] sm:$0xf0]  ;;  %v999_v42 = vor.u32 %v1360_v33, %v998_v32 }
   0xf   :  { %753 = vmatpush.bf16.msra.mxu2 %v1394_v13  ;;  %v1357_v38 = vld [vmem:[%s1935_s0 + $0xc] sm:$0xf]  ;;  %v1007_v43 = vor.u32 %v1361_v35, %v1006_v34  ;;  %v1003_v44 = vor.u32 %v1356_v36, %v1000_v37  ;;  %v1437_v47 = vld [vmem:[%s1934_s1 + $0x1f8] sm:$0xff]  ;;  %v1428_v48 = vld [vmem:[%s1934_s1 + $0x1b0] sm:$0xff] }
  0x10   :  { %734 = vmatpush.bf16.msra.mxu1 %v1386_v14  ;;  %v1011_v45 = vor.u32 %v1357_v38, %v1008_v39  ;;  %v1412_v49 = vld [vmem:[%s1934_s1 + $0x130] sm:$0xff]  ;;  %v1427_v52 = vld [vmem:[%s1934_s1 + $0x1a8] sm:$0xff]  ;;  %v1426_v56 = vld [vmem:[%s1934_s1 + $0x1a0] sm:$0xff] }
  0x11   :  { %772 = vmatpush.bf16.msra.mxu3 %v1402_v15  ;;  %v1420_v50 = vld [vmem:[%s1934_s1 + $0x170] sm:$0xff]  ;;  %v1411_v53 = vld [vmem:[%s1934_s1 + $0x128] sm:$0xff]  ;;  %v1410_v57 = vld [vmem:[%s1934_s1 + $0x120] sm:$0xff] }
  0x12   :  { %716 = vmatpush.bf16.msra.mxu0 %v1377_v16  ;;  %v1436_v51 = vld [vmem:[%s1934_s1 + $0x1f0] sm:$0xff]  ;;  %v1419_v54 = vld [vmem:[%s1934_s1 + $0x168] sm:$0xff]  ;;  %v1418_v58 = vld [vmem:[%s1934_s1 + $0x160] sm:$0xff] }
  0x13   :  { %754 = vmatpush.bf16.msra.mxu2 %v1393_v17  ;;  %v1435_v55 = vld [vmem:[%s1934_s1 + $0x1e8] sm:$0xff]  ;;  %v1434_v59 = vld [vmem:[%s1934_s1 + $0x1e0] sm:$0xff]  ;;  %v1042_v62 = vld [vmem:[%s1935_s0 + $0x50] sm:$0xf] }
  0x14   :  { %735 = vmatpush.bf16.msra.mxu1 %v1385_v18  ;;  %v1034_v60 = vld [vmem:[%s1935_s0 + $0x48] sm:$0xf]  ;;  %v1369_v61 = vld [vmem:[%s1935_s0 + $0x68] sm:$0xf0]  ;;  %v1370_v63 = vld [vmem:[%s1935_s0 + $0x70] sm:$0xf0] }
  0x15   :  { %773 = vmatpush.bf16.msra.mxu3 %v1401_v19  ;;  %v1365_v0 = vld [vmem:[%s1935_s0 + $0x4c] sm:$0xf]  ;;  %v1036_v1 = vld [vmem:[%s1935_s0 + $0x6c] sm:$0xf0]  ;;  %v1366_v2 = vld [vmem:[%s1935_s0 + $0x54] sm:$0xf]  ;;  %v1035_v6 = vor.u32 %v1369_v61, %v1034_v60  ;;  %v1043_v7 = vor.u32 %v1370_v63, %v1042_v62 }
  0x16   :  { %717 = vmatpush.bf16.msra.mxu0 %v1376_v20  ;;  %v1044_v3 = vld [vmem:[%s1935_s0 + $0x74] sm:$0xf0]  ;;  %v1039_v8 = vor.u32 %v1365_v0, %v1036_v1  ;;  %v1424_v12 = vld [vmem:[%s1934_s1 + $0x190] sm:$0xff]  ;;  %v1423_v16 = vld [vmem:[%s1934_s1 + $0x188] sm:$0xff] }
  0x17   :  { %755 = vmatpush.bf16.msra.mxu2 %v1392_v21  ;;  %v1425_v4 = vld [vmem:[%s1934_s1 + $0x198] sm:$0xff]  ;;  %v1047_v9 = vor.u32 %v1366_v2, %v1044_v3  ;;  %v1408_v13 = vld [vmem:[%s1934_s1 + $0x110] sm:$0xff]  ;;  %v1407_v17 = vld [vmem:[%s1934_s1 + $0x108] sm:$0xff] }
  0x18   :  { %736 = vmatpush.bf16.msra.mxu1 %v1384_v22  ;;  %v1409_v5 = vld [vmem:[%s1934_s1 + $0x118] sm:$0xff]  ;;  %v1416_v14 = vld [vmem:[%s1934_s1 + $0x150] sm:$0xff]  ;;  %v1415_v18 = vld [vmem:[%s1934_s1 + $0x148] sm:$0xff] }
  0x19   :  { %774 = vmatpush.bf16.msra.mxu3 %v1400_v23  ;;  %v1417_v10 = vld [vmem:[%s1934_s1 + $0x158] sm:$0xff]  ;;  %v1432_v15 = vld [vmem:[%s1934_s1 + $0x1d0] sm:$0xff]  ;;  %v1431_v19 = vld [vmem:[%s1934_s1 + $0x1c8] sm:$0xff] }
  0x1a   :  { %718 = vmatpush.bf16.msra.mxu0 %v1375_v24  ;;  %v1433_v11 = vld [vmem:[%s1934_s1 + $0x1d8] sm:$0xff]  ;;  %v1422_v20 = vld [vmem:[%s1934_s1 + $0x180] sm:$0xff]  ;;  %v1014_v24 = vld [vmem:[%s1935_s0 + $0x10] sm:$0xf] }
  0x1b   :  { %756 = vmatpush.bf16.msra.mxu2 %v1391_v25  ;;  %v1406_v21 = vld [vmem:[%s1934_s1 + $0x100] sm:$0xff]  ;;  %v1362_v25 = vld [vmem:[%s1935_s0 + $0x30] sm:$0xf0]  ;;  %v1443_v38 = vld [vmem:[%s1934_s1 + $0x228] sm:$0xff] }
  0x1c   :  { %737 = vmatpush.bf16.msra.mxu1 %v1383_v26  ;;  %v1414_v22 = vld [vmem:[%s1934_s1 + $0x140] sm:$0xff]  ;;  %v1445_v26 = vld [vmem:[%s1934_s1 + $0x238] sm:$0xff]  ;;  %v1015_v33 = vor.u32 %v1362_v25, %v1014_v24  ;;  %v1444_v37 = vld [vmem:[%s1934_s1 + $0x230] sm:$0xff] }
  0x1d   :  { %775 = vmatpush.bf16.msra.mxu3 %v1399_v27  ;;  %v1430_v23 = vld [vmem:[%s1934_s1 + $0x1c0] sm:$0xff]  ;;  %v1022_v27 = vld [vmem:[%s1935_s0 + $0x18] sm:$0xf]  ;;  %v901_v3 = vld [vmem:[%s1938_s3 + $0x70] sm:$0xff] }
  0x1e   :  { %719 = vmatpush.bf16.msra.mxu0 %v1374_v28  ;;  %v1363_v28 = vld [vmem:[%s1935_s0 + $0x38] sm:$0xf0]  ;;  %v1024_v32 = vld [vmem:[%s1935_s0 + $0x3c] sm:$0xf0] }
  0x1f   :  { %757 = vmatpush.bf16.msra.mxu2 %v1390_v29  ;;  %v1358_v29 = vld [vmem:[%s1935_s0 + $0x14] sm:$0xf]  ;;  %v1023_v34 = vor.u32 %v1363_v28, %v1022_v27  ;;  %v1442_v39 = vld [vmem:[%s1934_s1 + $0x220] sm:$0xff]  ;;  %v902_v0 = vld [vmem:[%s1938_s3 + $0x78] sm:$0xff] }
  0x20   :  { %738 = vmatpush.bf16.msra.mxu1 %v1382_v30  ;;  %v1016_v30 = vld [vmem:[%s1935_s0 + $0x34] sm:$0xf0]  ;;  %v888_v28 = vld [vmem:[%s1938_s3 + $0x8] sm:$0xff] }
  0x21   :  { %776 = vmatpush.bf16.msra.mxu3 %v1398_v31  ;;  %720 = vmatmul.bf16.vlgmr.msra.gmra.mxu0 %v999_v42  ;;  %v1359_v31 = vld [vmem:[%s1935_s0 + $0x1c] sm:$0xf]  ;;  %v1019_v35 = vor.u32 %v1358_v29, %v1016_v30  ;;  %v1058_v42 = vld [vmem:[%s1935_s0 + $0x60] sm:$0xf] }
  0x22   :  { %788 = vmatpush.bf16.msrb.mxu0 %v1413_v41  ;;  %758 = vmatmul.bf16.vlgmr.msra.gmra.mxu2 %v1007_v43  ;;  %v1027_v36 = vor.u32 %v1359_v31, %v1024_v32  ;;  %v1371_v41 = vld [vmem:[%s1935_s0 + $0x78] sm:$0xf0]  ;;  %v1372_v43 = vld [vmem:[%s1935_s0 + $0x80] sm:$0xf0]  ;;  %v1470_v30 = vld [vmem:[%s1936_s2] ss:$0 sm:$0xff] }
  0x23   :  { %826 = vmatpush.bf16.msrb.mxu2 %v1429_v40  ;;  %739 = vmatmul.bf16.vlgmr.msra.gmra.mxu1 %v1003_v44  ;;  %v1050_v40 = vld [vmem:[%s1935_s0 + $0x58] sm:$0xf]  ;;  %v887_v31 = vld [vmem:[%s1938_s3] sm:$0xff] }
  0x24   :  { %777 = vmatmul.bf16.vlgmr.msra.gmra.mxu3 %v1011_v45  ;;  %807 = vmatpush.bf16.msrb.mxu1 %v1421_v46  ;;  %v1441_v44 = vld [vmem:[%s1934_s1 + $0x218] sm:$0xff]  ;;  %v1052_v46 = vld [vmem:[%s1935_s0 + $0x7c] sm:$0xf0] }
  0x25   :  { %845 = vmatpush.bf16.msrb.mxu3 %v1437_v47  ;;  %v1367_v45 = vld [vmem:[%s1935_s0 + $0x5c] sm:$0xf]  ;;  %v1368_v47 = vld [vmem:[%s1935_s0 + $0x64] sm:$0xf] }
  0x26   :  { %789 = vmatpush.bf16.msrb.mxu0 %v1412_v49  ;;  %v1051_v49 = vor.u32 %v1371_v41, %v1050_v40  ;;  %v890_v24 = vld [vmem:[%s1938_s3 + $0x18] sm:$0xff] }
  0x27   :  { %827 = vmatpush.bf16.msrb.mxu2 %v1428_v48  ;;  %v1060_v48 = vld [vmem:[%s1935_s0 + $0x84] sm:$0xf0] }
  0x28   :  { %808 = vmatpush.bf16.msrb.mxu1 %v1420_v50  ;;  %v1059_v50 = vor.u32 %v1372_v43, %v1058_v42 }
  0x29   :  { %846 = vmatpush.bf16.msrb.mxu3 %v1436_v51  ;;  %v1055_v51 = vor.u32 %v1367_v45, %v1052_v46 }
  0x2a   :  { %790 = vmatpush.bf16.msrb.mxu0 %v1411_v53  ;;  %v1440_v53 = vld [vmem:[%s1934_s1 + $0x210] sm:$0xff] }
  0x2b   :  { %828 = vmatpush.bf16.msrb.mxu2 %v1427_v52  ;;  %v1063_v52 = vor.u32 %v1368_v47, %v1060_v48 }
  0x2c   :  { %809 = vmatpush.bf16.msrb.mxu1 %v1419_v54  ;;  %v1439_v54 = vld [vmem:[%s1934_s1 + $0x208] sm:$0xff] }
  0x2d   :  { %847 = vmatpush.bf16.msrb.mxu3 %v1435_v55  ;;  %v1438_v55 = vld [vmem:[%s1934_s1 + $0x200] sm:$0xff] }
  0x2e   :  { %791 = vmatpush.bf16.msrb.mxu0 %v1410_v57  ;;  %v1364_v57 = vld [vmem:[%s1935_s0 + $0x40] sm:$0xf0] }
  0x2f   :  { %829 = vmatpush.bf16.msrb.mxu2 %v1426_v56  ;;  %v1030_v56 = vld [vmem:[%s1935_s0 + $0x20] sm:$0xf] }
  0x30   :  { %810 = vmatpush.bf16.msrb.mxu1 %v1418_v58  ;;  %v1066_v58 = vld [vmem:[%s1935_s0 + $0x68] sm:$0xf]  ;;  %v1031_v60 = vor.u32 %v1364_v57, %v1030_v56 }
  0x31   :  { %848 = vmatpush.bf16.msrb.mxu3 %v1434_v59  ;;  %725 = vmatmul.bf16.gmra.mxu0 %v1035_v6  ;;  %v1373_v59 = vld [vmem:[%s1935_s0 + $0x88] sm:$0xf0] }
  0x32   :  { %792 = vmatpush.bf16.msrb.mxu0 %v1409_v5  ;;  %763 = vmatmul.bf16.gmra.mxu2 %v1043_v7  ;;  %v1067_v61 = vor.u32 %v1373_v59, %v1066_v58  ;;  %v900_v6 = vld [vmem:[%s1938_s3 + $0x68] sm:$0xff]  ;;  %v899_v7 = vld [vmem:[%s1938_s3 + $0x60] sm:$0xff] }
  0x33   :  { %830 = vmatpush.bf16.msrb.mxu2 %v1425_v4  ;;  %744 = vmatmul.bf16.gmra.mxu1 %v1039_v8  ;;  %v898_v8 = vld [vmem:[%s1938_s3 + $0x58] sm:$0xff] }
  0x34   :  { %782 = vmatmul.bf16.gmra.mxu3 %v1047_v9  ;;  %811 = vmatpush.bf16.msrb.mxu1 %v1417_v10 }
  0x35   :  { %849 = vmatpush.bf16.msrb.mxu3 %v1433_v11  ;;  %v897_v11 = vld [vmem:[%s1938_s3 + $0x50] sm:$0xff] }
  0x36   :  { %793 = vmatpush.bf16.msrb.mxu0 %v1408_v13  ;;  %v896_v13 = vld [vmem:[%s1938_s3 + $0x48] sm:$0xff] }
  0x37   :  { %831 = vmatpush.bf16.msrb.mxu2 %v1424_v12 }
  0x38   :  { %812 = vmatpush.bf16.msrb.mxu1 %v1416_v14 }
  0x39   :  { %850 = vmatpush.bf16.msrb.mxu3 %v1432_v15  ;;  %v895_v15 = vld [vmem:[%s1938_s3 + $0x40] sm:$0xff] }
  0x3a   :  { %794 = vmatpush.bf16.msrb.mxu0 %v1407_v17 }
  0x3b   :  { %832 = vmatpush.bf16.msrb.mxu2 %v1423_v16  ;;  %v894_v16 = vld [vmem:[%s1938_s3 + $0x38] sm:$0xff] }
  0x3c   :  { %813 = vmatpush.bf16.msrb.mxu1 %v1415_v18  ;;  %v893_v18 = vld [vmem:[%s1938_s3 + $0x30] sm:$0xff] }
  0x3d   :  { %851 = vmatpush.bf16.msrb.mxu3 %v1431_v19 }
  0x3e   :  { %795 = vmatpush.bf16.msrb.mxu0 %v1406_v21  ;;  %v892_v21 = vld [vmem:[%s1938_s3 + $0x28] sm:$0xff] }
  0x3f   :  { %833 = vmatpush.bf16.msrb.mxu2 %v1422_v20 }
  0x40   :  { %814 = vmatpush.bf16.msrb.mxu1 %v1414_v22  ;;  %v891_v22 = vld [vmem:[%s1938_s3 + $0x20] sm:$0xff] }
  0x41   :  { %852 = vmatpush.bf16.msrb.mxu3 %v1430_v23  ;;  %796 = vmatmul.bf16.vlgmr.msrb.gmra.mxu0 %v1015_v33 }
  0x42   :  { %864 = vmatpush.bf16.msra.mxu0 %v1445_v26  ;;  %834 = vmatmul.bf16.vlgmr.msrb.gmra.mxu2 %v1023_v34 }
  0x43   :  { %1446 = vmatpush.bf16.msra.mxu2 %v1445_v26  ;;  %815 = vmatmul.bf16.vlgmr.msrb.gmra.mxu1 %v1019_v35  ;;  %v889_v26 = vld [vmem:[%s1938_s3 + $0x10] sm:$0xff] }
  0x44   :  { %853 = vmatmul.bf16.vlgmr.msrb.gmra.mxu3 %v1027_v36  ;;  %907 = vmatpush.msra.mxu1 %v902_v0 }
  0x45   :  { %1454 = vmatpush.msra.mxu3 %v902_v0 }
  0x46   :  { %865 = vmatpush.bf16.msra.mxu0 %v1444_v37  ;;  %908 = vmatpush.msra.mxu1 %v901_v3 }
  0x47   :  { %1447 = vmatpush.bf16.msra.mxu2 %v1444_v37  ;;  %1455 = vmatpush.msra.mxu3 %v901_v3 }
  0x48   :  { %909 = vmatpush.msra.mxu1 %v900_v6 }
  0x49   :  { %1456 = vmatpush.msra.mxu3 %v900_v6 }
  0x4a   :  { %866 = vmatpush.bf16.msra.mxu0 %v1443_v38  ;;  %910 = vmatpush.msra.mxu1 %v899_v7 }
  0x4b   :  { %1448 = vmatpush.bf16.msra.mxu2 %v1443_v38  ;;  %1457 = vmatpush.msra.mxu3 %v899_v7 }
  0x4c   :  { %911 = vmatpush.msra.mxu1 %v898_v8 }
  0x4d   :  { %1458 = vmatpush.msra.mxu3 %v898_v8 }
  0x4e   :  { %867 = vmatpush.bf16.msra.mxu0 %v1442_v39  ;;  %912 = vmatpush.msra.mxu1 %v897_v11 }
  0x4f   :  { %1449 = vmatpush.bf16.msra.mxu2 %v1442_v39  ;;  %1459 = vmatpush.msra.mxu3 %v897_v11 }
  0x50   :  { %913 = vmatpush.msra.mxu1 %v896_v13 }
  0x51   :  { %801 = vmatmul.bf16.gmra.mxu0 %v1051_v49  ;;  %1460 = vmatpush.msra.mxu3 %v896_v13 }
  0x52   :  { %868 = vmatpush.bf16.msra.mxu0 %v1441_v44  ;;  %839 = vmatmul.bf16.gmra.mxu2 %v1059_v50 }
  0x53   :  { %1450 = vmatpush.bf16.msra.mxu2 %v1441_v44  ;;  %820 = vmatmul.bf16.gmra.mxu1 %v1055_v51 }
  0x54   :  { %858 = vmatmul.bf16.gmra.mxu3 %v1063_v52  ;;  %914 = vmatpush.msra.mxu1 %v895_v15 }
  0x55   :  { %1461 = vmatpush.msra.mxu3 %v895_v15 }
  0x56   :  { %869 = vmatpush.bf16.msra.mxu0 %v1440_v53  ;;  %915 = vmatpush.msra.mxu1 %v894_v16 }
  0x57   :  { %1451 = vmatpush.bf16.msra.mxu2 %v1440_v53  ;;  %1462 = vmatpush.msra.mxu3 %v894_v16 }
  0x58   :  { %916 = vmatpush.msra.mxu1 %v893_v18 }
  0x59   :  { %1463 = vmatpush.msra.mxu3 %v893_v18 }
  0x5a   :  { %870 = vmatpush.bf16.msra.mxu0 %v1439_v54  ;;  %917 = vmatpush.msra.mxu1 %v892_v21 }
  0x5b   :  { %1452 = vmatpush.bf16.msra.mxu2 %v1439_v54  ;;  %1464 = vmatpush.msra.mxu3 %v892_v21 }
  0x5c   :  { %918 = vmatpush.msra.mxu1 %v891_v22 }
  0x5d   :  { %1465 = vmatpush.msra.mxu3 %v891_v22 }
  0x5e   :  { %871 = vmatpush.bf16.msra.mxu0 %v1438_v55  ;;  %919 = vmatpush.msra.mxu1 %v890_v24 }
  0x5f   :  { %1453 = vmatpush.bf16.msra.mxu2 %v1438_v55  ;;  %1466 = vmatpush.msra.mxu3 %v890_v24 }
  0x60   :  { %920 = vmatpush.msra.mxu1 %v889_v26 }
  0x61   :  { %872 = vmatmul.bf16.vlgmr.msra.gmra.mxu0 %v1031_v60  ;;  %1467 = vmatpush.msra.mxu3 %v889_v26 }
  0x62   :  { %877 = vmatmul.bf16.vlgmr.msra.gmra.mxu2 %v1067_v61  ;;  %921 = vmatpush.msra.mxu1 %v888_v28 }
  0x63   :  { %1468 = vmatpush.msra.mxu3 %v888_v28 }
  0x64   :  { %922 = vmatpush.msra.mxu1 %v887_v31 }
  0x65   :  { %1469 = vmatpush.msra.mxu3 %v887_v31 }
  0x9e   :  { %v1834_v62 = vpop.f32.mrf.mxu0 }
  0x9f   :  { %v722_v34 = vadd.f32 %v1470_v30, %v1834_v62 }
  0xa0   :  { %v1836_v63 = vpop.f32.mrf.mxu1 }
  0xa1   :  { %v741_v36 = vadd.f32 %v1836_v63, %v722_v34 }
  0xa5   :  { %v1841_v1 = vpop.f32.mrf.mxu2 }
  0xa6   :  { %v1848_v4 = vpop.f32.mrf.mxu0  ;;  %v760_v40 = vadd.f32 %v1841_v1, %v741_v36 }
  0xa7   :  { %v1843_v2 = vpop.f32.mrf.mxu3  ;;  %v724_v41 = vadd.f32 %v1470_v30, %v1848_v4 }
  0xa8   :  { %v1850_v5 = vpop.f32.mrf.mxu1  ;;  %v779_v45 = vadd.f32 %v1843_v2, %v760_v40 }
  0xa9   :  { %v743_v46 = vadd.f32 %v1850_v5, %v724_v41 }
  0xad   :  { %v1861_v9 = vpop.f32.mrf.mxu2 }
  0xae   :  { %v726_v12 = vpop.f32.mrf.mxu0  ;;  %v762_v52 = vadd.f32 %v1861_v9, %v743_v46 }
  0xaf   :  { %v1863_v10 = vpop.f32.mrf.mxu3  ;;  %v727_v38 = vadd.f32 %v1470_v30, %v726_v12 }
  0xb0   :  { %v745_v14 = vpop.f32.mrf.mxu1  ;;  %v781_v58 = vadd.f32 %v1863_v10, %v762_v52 }
  0xb1   :  { %v746_v44 = vadd.f32 %v745_v14, %v727_v38 }
  0xb5   :  { %v764_v17 = vpop.f32.mrf.mxu2 }
  0xb6   :  { %v728_v19 = vpop.f32.mrf.mxu0  ;;  %v765_v47 = vadd.f32 %v764_v17, %v746_v44 }
  0xb7   :  { %v783_v20 = vpop.f32.mrf.mxu3  ;;  %v729_v48 = vadd.f32 %v1470_v30, %v728_v19 }
  0xb8   :  { %v747_v23 = vpop.f32.mrf.mxu1  ;;  %v784_v54 = vadd.f32 %v783_v20, %v765_v47 }
  0xb9   :  { %v748_v55 = vadd.f32 %v747_v23, %v729_v48 }
  0xbd   :  { %v766_v25 = vpop.f32.mrf.mxu2 }
  0xbe   :  { %v797_v27 = vpop.f32.mrf.mxu0  ;;  %v767_v61 = vadd.f32 %v766_v25, %v748_v55 }
  0xbf   :  { %v785_v29 = vpop.f32.mrf.mxu3  ;;  %v798_v49 = vadd.f32 %v797_v27, %v779_v45  ;;  %v1471_v27 = vld [vmem:[%s1937_s4] ss:$0 sm:$0xff] }
  0xc0   :  { %v816_v32 = vpop.f32.mrf.mxu1  ;;  %v786_v4 = vadd.f32 %v785_v29, %v767_v61 }
  0xc1   :  { %v817_v56 = vadd.f32 %v816_v32, %v798_v49 }
  0xc5   :  { %v835_v33 = vpop.f32.mrf.mxu2 }
  0xc6   :  { %v799_v35 = vpop.f32.mrf.mxu0  ;;  %v836_v59 = vadd.f32 %v835_v33, %v817_v56 }
  0xc7   :  { %v854_v37 = vpop.f32.mrf.mxu3  ;;  %v800_v62 = vadd.f32 %v799_v35, %v781_v58 }
  0xc8   :  { %v818_v42 = vpop.f32.mrf.mxu1  ;;  %v855_v0 = vadd.f32 %v854_v37, %v836_v59 }
  0xc9   :  { %v819_v5 = vadd.f32 %v818_v42, %v800_v62 }
  0xcd   :  { %v837_v39 = vpop.f32.mrf.mxu2 }
  0xce   :  { %v802_v43 = vpop.f32.mrf.mxu0  ;;  %v838_v8 = vadd.f32 %v837_v39, %v819_v5 }
  0xcf   :  { %v856_v50 = vpop.f32.mrf.mxu3  ;;  %v803_v60 = vadd.f32 %v802_v43, %v784_v54 }
  0xd0   :  { %v821_v57 = vpop.f32.mrf.mxu1  ;;  %v857_v14 = vadd.f32 %v856_v50, %v838_v8 }
  0xd1   :  { %v822_v1 = vadd.f32 %v821_v57, %v803_v60 }
  0xd5   :  { %v840_v51 = vpop.f32.mrf.mxu2 }
  0xd6   :  { %v804_v53 = vpop.f32.mrf.mxu0  ;;  %v841_v6 = vadd.f32 %v840_v51, %v822_v1 }
  0xd7   :  { %v859_v2 = vpop.f32.mrf.mxu3  ;;  %v805_v9 = vadd.f32 %v804_v53, %v786_v4 }
  0xd8   :  { %v823_v12 = vpop.f32.mrf.mxu1  ;;  %v860_v13 = vadd.f32 %v859_v2, %v841_v6 }
  0xd9   :  { %v824_v15 = vadd.f32 %v823_v12, %v805_v9 }
  0xdd   :  { %v842_v63 = vpop.f32.mrf.mxu2 }
  0xde   :  { %v873_v3 = vpop.f32.mrf.mxu0  ;;  %v843_v18 = vadd.f32 %v842_v63, %v824_v15 }
  0xdf   :  { %v874_v7 = vadd.f32 %v873_v3, %v855_v0  ;;  %v861_v21 = vpop.f32.mrf.mxu3 }
  0xe0   :  { %v862_v23 = vadd.f32 %v861_v21, %v843_v18 }
  0xe1   :  { %v883_v11 = vmul.f32 %v874_v7, %v874_v7 }
  0xe3   :  { %923 = vmatmul.f32.vlgmr.msra.gmra.mxu1 %v883_v11 }
  0xe5   :  { %v878_v10 = vpop.f32.mrf.mxu2 }
  0xe6   :  { %v1909_v16 = vadd.f32 %v878_v10, %v860_v13  ;;  %v875_v17 = vpop.f32.mrf.mxu0 }
  0xe7   :  { %v876_v20 = vadd.f32 %v875_v17, %v857_v14 }
  0xe8   :  { %v885_v19 = vmul.f32 %v1909_v16, %v1909_v16 }
  0xe9   :  { %v884_v22 = vmul.f32 %v876_v20, %v876_v20 }
  0xea   :  { %929 = vmatmul.f32.vlgmr.msra.gmra.mxu3 %v885_v19 }
  0xeb   :  { %926 = vmatmul.f32.gmra.mxu1 %v884_v22 }
  0xed   :  { %v880_v24 = vpop.f32.mrf.mxu2 }
  0xee   :  { %v1913_v25 = vadd.f32 %v880_v24, %v862_v23 }
  0xf0   :  { %v886_v26 = vmul.f32 %v1913_v25, %v1913_v25 }
  0xf2   :  { %932 = vmatmul.f32.gmra.mxu3 %v886_v26 }
 0x160   :  { %v924_v28 = vpop.f32.mrf.mxu1 }
 0x161   :  { %v925_v29 = vadd.f32 %v1471_v27, %v924_v28 }
 0x163   :  { %1472 = vrsqrt.f32 %v925_v29  ;;  %vm943_vm0 = vcmp.eq.f32.partialorder %v925_v29, inf  ;;  %v946_v46 = vand.u32 2147483648, %v925_v29  ;;  %vm945_vm1 = vcmp.eq.f32.partialorder %v925_v29, 0.0 }
 0x168   :  { %v927_v30 = vpop.f32.mrf.mxu1 }
 0x169   :  { %v1473_v31 = vpop.eup %1472  ;;  %v928_v32 = vadd.f32 %v1471_v27, %v927_v30 }
 0x16a   :  { %v937_v33 = vmul.f32 %v1473_v31, %v925_v29 }
 0x16b   :  { %1474 = vrsqrt.f32 %v928_v32  ;;  %vm955_vm2 = vcmp.eq.f32.partialorder %v928_v32, inf  ;;  %v958_v60 = vand.u32 2147483648, %v928_v32  ;;  %vm957_vm3 = vcmp.eq.f32.partialorder %v928_v32, 0.0 }
 0x16c   :  { %v938_v34 = vmul.f32 %v1473_v31, %v937_v33 }
 0x16d   :  { %v930_v35 = vpop.f32.mrf.mxu3 }
 0x16e   :  { %v931_v36 = vadd.f32 %v1471_v27, %v930_v35  ;;  %v939_v37 = vmul.f32 0.5, %v938_v34 }
 0x170   :  { %1476 = vrsqrt.f32 %v931_v36  ;;  %v940_v38 = vsub.f32 1.5, %v939_v37  ;;  %vm967_vm4 = vcmp.eq.f32.partialorder %v931_v36, inf  ;;  %v970_v4 = vand.u32 2147483648, %v931_v36 }
 0x171   :  { %v1475_v39 = vpop.eup %1474  ;;  %vm969_vm5 = vcmp.eq.f32.partialorder %v931_v36, 0.0 }
 0x172   :  { %v941_v40 = vmul.f32 %v1473_v31, %v940_v38  ;;  %v949_v41 = vmul.f32 %v1475_v39, %v928_v32 }
 0x174   :  { %v942_v42 = vmul.f32 %v941_v40, %v925_v29  ;;  %v950_v43 = vmul.f32 %v1475_v39, %v949_v41 }
 0x175   :  { %v933_v44 = vpop.f32.mrf.mxu3 }
 0x176   :  { %v1477_v45 = vpop.eup %1476  ;;  %v934_v47 = vadd.f32 %v1471_v27, %v933_v44  ;;  %v944_v48 = vsel %vm943_vm0, %v925_v29, %v942_v42  ;;  %v951_v49 = vmul.f32 0.5, %v950_v43 }
 0x177   :  { %v961_v50 = vmul.f32 %v1477_v45, %v931_v36  ;;  %v947_v51 = vsel %vm945_vm1, %v946_v46, %v944_v48 }
 0x178   :  { %1478 = vrsqrt.f32 %v934_v47  ;;  %v984_v52 = vmul.f32 %v947_v51, %v874_v7  ;;  %v952_v53 = vsub.f32 1.5, %v951_v49  ;;  %vm979_vm6 = vcmp.eq.f32.partialorder %v934_v47, inf }
 0x179   :  { %v962_v54 = vmul.f32 %v1477_v45, %v961_v50  ;;  %v982_v13 = vand.u32 2147483648, %v934_v47  ;;  %vm981_vm7 = vcmp.eq.f32.partialorder %v934_v47, 0.0 }
 0x17a   :  { %988 = vst [vmem:[%s1939_s5] sm:$0xff] %v984_v52  ;;  %v953_v55 = vmul.f32 %v1475_v39, %v952_v53 }
 0x17b   :  { %v963_v56 = vmul.f32 0.5, %v962_v54 }
 0x17c   :  { %v954_v57 = vmul.f32 %v953_v55, %v928_v32 }
 0x17d   :  { %v964_v58 = vsub.f32 1.5, %v963_v56 }
 0x17e   :  { %v1479_v59 = vpop.eup %1478  ;;  %v956_v61 = vsel %vm955_vm2, %v928_v32, %v954_v57 }
 0x17f   :  { %v965_v62 = vmul.f32 %v1477_v45, %v964_v58  ;;  %v973_v63 = vmul.f32 %v1479_v59, %v934_v47  ;;  %v959_v0 = vsel %vm957_vm3, %v958_v60, %v956_v61 }
 0x180   :  { %v985_v1 = vmul.f32 %v959_v0, %v876_v20 }
 0x181   :  { %v966_v2 = vmul.f32 %v965_v62, %v931_v36  ;;  %v974_v3 = vmul.f32 %v1479_v59, %v973_v63 }
 0x182   :  { %989 = vst [vmem:[%s1939_s5 + $0x8] sm:$0xff] %v985_v1 }
 0x183   :  { %v968_v5 = vsel %vm967_vm4, %v931_v36, %v966_v2  ;;  %v975_v6 = vmul.f32 0.5, %v974_v3 }
 0x184   :  { %v971_v7 = vsel %vm969_vm5, %v970_v4, %v968_v5 }
 0x185   :  { %v986_v8 = vmul.f32 %v971_v7, %v1909_v16  ;;  %v976_v9 = vsub.f32 1.5, %v975_v6 }
 0x187   :  { %990 = vst [vmem:[%s1939_s5 + $0x10] sm:$0xff] %v986_v8  ;;  %v977_v11 = vmul.f32 %v1479_v59, %v976_v9 }
 0x189   :  { %v978_v12 = vmul.f32 %v977_v11, %v934_v47 }
 0x18b   :  { %v980_v10 = vsel %vm979_vm6, %v934_v47, %v978_v12 }
 0x18c   :  { %v983_v14 = vsel %vm981_vm7, %v982_v13, %v980_v10 }
 0x18d   :  { %v987_v15 = vmul.f32 %v983_v14, %v1913_v25 }
 0x18f   :  { %991 = vst [vmem:[%s1939_s5 + $0x18] sm:$0xff] %v987_v15 }

// kernel: image_compressor_forward.37
= control target key start
LH: loop header
LB: loop body
LE: loop exit
PB: predicated region body
PF: predicated region fallthrough
CT: control target
= control target key end

     0   :  { %s1352_s1 = inlined_call_operand.vmem [shape: bf16[768,128], index: 1, kind: input, shape index: {}]   ;;  %s1353_s2 = inlined_call_operand.vmem [shape: f32[1,128], index: 2, kind: input, shape index: {}]   ;;  %s1354_s0 = inlined_call_operand.vmem [shape: bf16[32,768], index: 0, kind: input, shape index: {}]   ;;  %s1355_s4 = inlined_call_operand.vmem [shape: f32[1,128], index: 4, kind: input, shape index: {}]   ;;  %s1356_s3 = inlined_call_operand.vmem [shape: f32[128,128], index: 3, kind: input, shape index: {}]   ;;  %s1357_s5 = inlined_call_operand.vmem [shape: f32[32,128], index: 5, kind: output, shape index: {}]  }
   0x1   :  { %v966_v0 = vld [vmem:[%s1352_s1 + $0x38] sm:$0xff]  ;;  %v965_v4 = vld [vmem:[%s1352_s1 + $0x30] sm:$0xff]  ;;  %v964_v8 = vld [vmem:[%s1352_s1 + $0x28] sm:$0xff] }
   0x2   :  { %v974_v1 = vld [vmem:[%s1352_s1 + $0x78] sm:$0xff]  ;;  %480 = vmatpush.bf16.msra.mxu0 %v966_v0  ;;  %v973_v5 = vld [vmem:[%s1352_s1 + $0x70] sm:$0xff]  ;;  %v972_v9 = vld [vmem:[%s1352_s1 + $0x68] sm:$0xff] }
   0x3   :  { %v982_v2 = vld [vmem:[%s1352_s1 + $0xb8] sm:$0xff]  ;;  %499 = vmatpush.bf16.msra.mxu1 %v974_v1  ;;  %v981_v6 = vld [vmem:[%s1352_s1 + $0xb0] sm:$0xff]  ;;  %v980_v10 = vld [vmem:[%s1352_s1 + $0xa8] sm:$0xff] }
   0x4   :  { %v990_v3 = vld [vmem:[%s1352_s1 + $0xf8] sm:$0xff]  ;;  %518 = vmatpush.bf16.msra.mxu2 %v982_v2  ;;  %v989_v7 = vld [vmem:[%s1352_s1 + $0xf0] sm:$0xff]  ;;  %v988_v11 = vld [vmem:[%s1352_s1 + $0xe8] sm:$0xff] }
   0x5   :  { %537 = vmatpush.bf16.msra.mxu3 %v990_v3  ;;  %v963_v12 = vld [vmem:[%s1352_s1 + $0x20] sm:$0xff]  ;;  %v962_v16 = vld [vmem:[%s1352_s1 + $0x18] sm:$0xff]  ;;  %v961_v20 = vld [vmem:[%s1352_s1 + $0x10] sm:$0xff] }
   0x6   :  { %481 = vmatpush.bf16.msra.mxu0 %v965_v4  ;;  %v971_v13 = vld [vmem:[%s1352_s1 + $0x60] sm:$0xff]  ;;  %v970_v17 = vld [vmem:[%s1352_s1 + $0x58] sm:$0xff]  ;;  %v969_v21 = vld [vmem:[%s1352_s1 + $0x50] sm:$0xff] }
   0x7   :  { %500 = vmatpush.bf16.msra.mxu1 %v973_v5  ;;  %v979_v14 = vld [vmem:[%s1352_s1 + $0xa0] sm:$0xff]  ;;  %v978_v18 = vld [vmem:[%s1352_s1 + $0x98] sm:$0xff]  ;;  %v977_v22 = vld [vmem:[%s1352_s1 + $0x90] sm:$0xff] }
   0x8   :  { %519 = vmatpush.bf16.msra.mxu2 %v981_v6  ;;  %v987_v15 = vld [vmem:[%s1352_s1 + $0xe0] sm:$0xff]  ;;  %v986_v19 = vld [vmem:[%s1352_s1 + $0xd8] sm:$0xff]  ;;  %v985_v23 = vld [vmem:[%s1352_s1 + $0xd0] sm:$0xff] }
   0x9   :  { %538 = vmatpush.bf16.msra.mxu3 %v989_v7  ;;  %v960_v24 = vld [vmem:[%s1352_s1 + $0x8] sm:$0xff]  ;;  %v959_v28 = vld [vmem:[%s1352_s1] sm:$0xff]  ;;  %v950_v33 = vld [vmem:[%s1354_s0 + $0x14] sm:$0xf0] }
   0xa   :  { %482 = vmatpush.bf16.msra.mxu0 %v964_v8  ;;  %v968_v25 = vld [vmem:[%s1352_s1 + $0x48] sm:$0xff]  ;;  %v967_v29 = vld [vmem:[%s1352_s1 + $0x40] sm:$0xff]  ;;  %v711_v35 = vld [vmem:[%s1354_s0 + $0x18] sm:$0xf0] }
   0xb   :  { %501 = vmatpush.bf16.msra.mxu1 %v972_v9  ;;  %v976_v26 = vld [vmem:[%s1352_s1 + $0x88] sm:$0xff]  ;;  %v975_v30 = vld [vmem:[%s1352_s1 + $0x80] sm:$0xff]  ;;  %v998_v40 = vld [vmem:[%s1352_s1 + $0x138] sm:$0xff] }
   0xc   :  { %520 = vmatpush.bf16.msra.mxu2 %v980_v10  ;;  %v984_v27 = vld [vmem:[%s1352_s1 + $0xc8] sm:$0xff]  ;;  %v983_v31 = vld [vmem:[%s1352_s1 + $0xc0] sm:$0xff]  ;;  %v1006_v45 = vld [vmem:[%s1352_s1 + $0x178] sm:$0xff] }
   0xd   :  { %539 = vmatpush.bf16.msra.mxu3 %v988_v11  ;;  %v709_v32 = vld [vmem:[%s1354_s0] sm:$0xf]  ;;  %v947_v34 = vld [vmem:[%s1354_s0 + $0x4] sm:$0xf]  ;;  %v717_v36 = vld [vmem:[%s1354_s0 + $0x8] sm:$0xf] }
   0xe   :  { %483 = vmatpush.bf16.msra.mxu0 %v963_v12  ;;  %v951_v37 = vld [vmem:[%s1354_s0 + $0x1c] sm:$0xf0]  ;;  %v948_v38 = vld [vmem:[%s1354_s0 + $0xc] sm:$0xf]  ;;  %v719_v39 = vld [vmem:[%s1354_s0 + $0x20] sm:$0xf0]  ;;  %v710_v41 = vor.u32 %v950_v33, %v709_v32  ;;  %v714_v42 = vor.u32 %v947_v34, %v711_v35 }
   0xf   :  { %502 = vmatpush.bf16.msra.mxu1 %v971_v13  ;;  %v718_v43 = vor.u32 %v951_v37, %v717_v36  ;;  %v722_v44 = vor.u32 %v948_v38, %v719_v39  ;;  %v997_v46 = vld [vmem:[%s1352_s1 + $0x130] sm:$0xff]  ;;  %v996_v48 = vld [vmem:[%s1352_s1 + $0x128] sm:$0xff]  ;;  %v995_v50 = vld [vmem:[%s1352_s1 + $0x120] sm:$0xff] }
  0x10   :  { %521 = vmatpush.bf16.msra.mxu2 %v979_v14  ;;  %v1005_v47 = vld [vmem:[%s1352_s1 + $0x170] sm:$0xff]  ;;  %v1004_v49 = vld [vmem:[%s1352_s1 + $0x168] sm:$0xff]  ;;  %v1003_v51 = vld [vmem:[%s1352_s1 + $0x160] sm:$0xff] }
  0x11   :  { %540 = vmatpush.bf16.msra.mxu3 %v987_v15  ;;  %v733_v52 = vld [vmem:[%s1354_s0 + $0x30] sm:$0xf]  ;;  %v956_v53 = vld [vmem:[%s1354_s0 + $0x44] sm:$0xf0]  ;;  %v953_v54 = vld [vmem:[%s1354_s0 + $0x34] sm:$0xf] }
  0x12   :  { %484 = vmatpush.bf16.msra.mxu0 %v962_v16  ;;  %v735_v55 = vld [vmem:[%s1354_s0 + $0x48] sm:$0xf0]  ;;  %v741_v56 = vld [vmem:[%s1354_s0 + $0x38] sm:$0xf]  ;;  %v957_v57 = vld [vmem:[%s1354_s0 + $0x4c] sm:$0xf0]  ;;  %v734_v61 = vor.u32 %v956_v53, %v733_v52 }
  0x13   :  { %503 = vmatpush.bf16.msra.mxu1 %v970_v17  ;;  %v954_v58 = vld [vmem:[%s1354_s0 + $0x3c] sm:$0xf]  ;;  %v743_v59 = vld [vmem:[%s1354_s0 + $0x50] sm:$0xf0]  ;;  %v738_v62 = vor.u32 %v953_v54, %v735_v55  ;;  %v742_v63 = vor.u32 %v957_v57, %v741_v56  ;;  %v992_v4 = vld [vmem:[%s1352_s1 + $0x108] sm:$0xff] }
  0x14   :  { %522 = vmatpush.bf16.msra.mxu2 %v978_v18  ;;  %v994_v60 = vld [vmem:[%s1352_s1 + $0x118] sm:$0xff]  ;;  %v746_v0 = vor.u32 %v954_v58, %v743_v59  ;;  %v993_v2 = vld [vmem:[%s1352_s1 + $0x110] sm:$0xff]  ;;  %v1000_v5 = vld [vmem:[%s1352_s1 + $0x148] sm:$0xff] }
  0x15   :  { %541 = vmatpush.bf16.msra.mxu3 %v986_v19  ;;  %v1002_v1 = vld [vmem:[%s1352_s1 + $0x158] sm:$0xff]  ;;  %v1001_v3 = vld [vmem:[%s1352_s1 + $0x150] sm:$0xff]  ;;  %v991_v6 = vld [vmem:[%s1352_s1 + $0x100] sm:$0xff] }
  0x16   :  { %485 = vmatpush.bf16.msra.mxu0 %v961_v20  ;;  %v999_v7 = vld [vmem:[%s1352_s1 + $0x140] sm:$0xff]  ;;  %v725_v8 = vld [vmem:[%s1354_s0 + $0x10] sm:$0xf]  ;;  %v952_v9 = vld [vmem:[%s1354_s0 + $0x24] sm:$0xf0] }
  0x17   :  { %504 = vmatpush.bf16.msra.mxu1 %v969_v21  ;;  %v749_v10 = vld [vmem:[%s1354_s0 + $0x40] sm:$0xf]  ;;  %v958_v11 = vld [vmem:[%s1354_s0 + $0x54] sm:$0xf0]  ;;  %v949_v12 = vld [vmem:[%s1354_s0 + $0x14] sm:$0xf]  ;;  %v726_v14 = vor.u32 %v952_v9, %v725_v8 }
  0x18   :  { %523 = vmatpush.bf16.msra.mxu2 %v977_v22  ;;  %v727_v13 = vld [vmem:[%s1354_s0 + $0x28] sm:$0xf0]  ;;  %v750_v15 = vor.u32 %v958_v11, %v749_v10  ;;  %v955_v17 = vld [vmem:[%s1354_s0 + $0x44] sm:$0xf]  ;;  %v751_v18 = vld [vmem:[%s1354_s0 + $0x58] sm:$0xf0] }
  0x19   :  { %542 = vmatpush.bf16.msra.mxu3 %v985_v23  ;;  %v730_v16 = vor.u32 %v949_v12, %v727_v13  ;;  %v754_v19 = vor.u32 %v955_v17, %v751_v18  ;;  %v613_v20 = vld [vmem:[%s1356_s3 + $0x78] sm:$0xff]  ;;  %v612_v21 = vld [vmem:[%s1356_s3 + $0x70] sm:$0xff]  ;;  %v611_v22 = vld [vmem:[%s1356_s3 + $0x68] sm:$0xff] }
  0x1a   :  { %486 = vmatpush.bf16.msra.mxu0 %v960_v24  ;;  %v610_v23 = vld [vmem:[%s1356_s3 + $0x60] sm:$0xff]  ;;  %v609_v24 = vld [vmem:[%s1356_s3 + $0x58] sm:$0xff]  ;;  %v600_v35 = vld [vmem:[%s1356_s3 + $0x10] sm:$0xff] }
  0x1b   :  { %505 = vmatpush.bf16.msra.mxu1 %v968_v25  ;;  %v608_v25 = vld [vmem:[%s1356_s3 + $0x50] sm:$0xff]  ;;  %v601_v34 = vld [vmem:[%s1356_s3 + $0x18] sm:$0xff]  ;;  %v599_v36 = vld [vmem:[%s1356_s3 + $0x8] sm:$0xff] }
  0x1c   :  { %524 = vmatpush.bf16.msra.mxu2 %v976_v26  ;;  %v607_v26 = vld [vmem:[%s1356_s3 + $0x48] sm:$0xff]  ;;  %v598_v37 = vld [vmem:[%s1356_s3] sm:$0xff] }
  0x1d   :  { %543 = vmatpush.bf16.msra.mxu3 %v984_v27  ;;  %v606_v27 = vld [vmem:[%s1356_s3 + $0x40] sm:$0xff] }
  0x1e   :  { %487 = vmatpush.bf16.msra.mxu0 %v959_v28  ;;  %v605_v28 = vld [vmem:[%s1356_s3 + $0x38] sm:$0xff] }
  0x1f   :  { %506 = vmatpush.bf16.msra.mxu1 %v967_v29  ;;  %v604_v29 = vld [vmem:[%s1356_s3 + $0x30] sm:$0xff] }
  0x20   :  { %525 = vmatpush.bf16.msra.mxu2 %v975_v30  ;;  %v603_v30 = vld [vmem:[%s1356_s3 + $0x28] sm:$0xff] }
  0x21   :  { %544 = vmatpush.bf16.msra.mxu3 %v983_v31  ;;  %488 = vmatmul.bf16.vlgmr.msra.gmra.mxu0 %v710_v41  ;;  %v602_v31 = vld [vmem:[%s1356_s3 + $0x20] sm:$0xff] }
  0x22   :  { %556 = vmatpush.bf16.msrb.mxu0 %v998_v40  ;;  %507 = vmatmul.bf16.vlgmr.msra.gmra.mxu1 %v714_v42 }
  0x23   :  { %526 = vmatmul.bf16.vlgmr.msra.gmra.mxu2 %v718_v43  ;;  %575 = vmatpush.bf16.msrb.mxu1 %v1006_v45 }
  0x24   :  { %545 = vmatmul.bf16.vlgmr.msra.gmra.mxu3 %v722_v44  ;;  %618 = vmatpush.msrb.mxu2 %v613_v20  ;;  %v1015_v44 = vld [vmem:[%s1353_s2] ss:$0 sm:$0xff] }
  0x25   :  { %1007 = vmatpush.bf16.msrb.mxu3 %v998_v40 }
  0x26   :  { %557 = vmatpush.bf16.msrb.mxu0 %v997_v46  ;;  %619 = vmatpush.msrb.mxu2 %v612_v21 }
  0x27   :  { %576 = vmatpush.bf16.msrb.mxu1 %v1005_v47 }
  0x28   :  { %620 = vmatpush.msrb.mxu2 %v611_v22 }
  0x29   :  { %1008 = vmatpush.bf16.msrb.mxu3 %v997_v46 }
  0x2a   :  { %558 = vmatpush.bf16.msrb.mxu0 %v996_v48  ;;  %621 = vmatpush.msrb.mxu2 %v610_v23 }
  0x2b   :  { %577 = vmatpush.bf16.msrb.mxu1 %v1004_v49 }
  0x2c   :  { %622 = vmatpush.msrb.mxu2 %v609_v24 }
  0x2d   :  { %1009 = vmatpush.bf16.msrb.mxu3 %v996_v48 }
  0x2e   :  { %559 = vmatpush.bf16.msrb.mxu0 %v995_v50  ;;  %623 = vmatpush.msrb.mxu2 %v608_v25  ;;  %v1016_v25 = vld [vmem:[%s1355_s4] ss:$0 sm:$0xff] }
  0x2f   :  { %578 = vmatpush.bf16.msrb.mxu1 %v1003_v51 }
  0x30   :  { %624 = vmatpush.msrb.mxu2 %v607_v26 }
  0x31   :  { %1010 = vmatpush.bf16.msrb.mxu3 %v995_v50  ;;  %493 = vmatmul.bf16.gmra.mxu0 %v734_v61 }
  0x32   :  { %560 = vmatpush.bf16.msrb.mxu0 %v994_v60  ;;  %512 = vmatmul.bf16.gmra.mxu1 %v738_v62 }
  0x33   :  { %531 = vmatmul.bf16.gmra.mxu2 %v742_v63  ;;  %579 = vmatpush.bf16.msrb.mxu1 %v1002_v1 }
  0x34   :  { %550 = vmatmul.bf16.gmra.mxu3 %v746_v0  ;;  %625 = vmatpush.msrb.mxu2 %v606_v27 }
  0x35   :  { %1011 = vmatpush.bf16.msrb.mxu3 %v994_v60 }
  0x36   :  { %561 = vmatpush.bf16.msrb.mxu0 %v993_v2  ;;  %626 = vmatpush.msrb.mxu2 %v605_v28 }
  0x37   :  { %580 = vmatpush.bf16.msrb.mxu1 %v1001_v3 }
  0x38   :  { %627 = vmatpush.msrb.mxu2 %v604_v29 }
  0x39   :  { %1012 = vmatpush.bf16.msrb.mxu3 %v993_v2 }
  0x3a   :  { %562 = vmatpush.bf16.msrb.mxu0 %v992_v4  ;;  %628 = vmatpush.msrb.mxu2 %v603_v30 }
  0x3b   :  { %581 = vmatpush.bf16.msrb.mxu1 %v1000_v5 }
  0x3c   :  { %629 = vmatpush.msrb.mxu2 %v602_v31 }
  0x3d   :  { %1013 = vmatpush.bf16.msrb.mxu3 %v992_v4 }
  0x3e   :  { %563 = vmatpush.bf16.msrb.mxu0 %v991_v6  ;;  %630 = vmatpush.msrb.mxu2 %v601_v34 }
  0x3f   :  { %582 = vmatpush.bf16.msrb.mxu1 %v999_v7 }
  0x40   :  { %631 = vmatpush.msrb.mxu2 %v600_v35 }
  0x41   :  { %1014 = vmatpush.bf16.msrb.mxu3 %v991_v6  ;;  %564 = vmatmul.bf16.vlgmr.msrb.gmra.mxu0 %v726_v14 }
  0x42   :  { %583 = vmatmul.bf16.vlgmr.msrb.gmra.mxu1 %v730_v16  ;;  %632 = vmatpush.msrb.mxu2 %v599_v36 }
  0x44   :  { %569 = vmatmul.bf16.vlgmr.msrb.gmra.mxu3 %v750_v15  ;;  %633 = vmatpush.msrb.mxu2 %v598_v37 }
  0x52   :  { %588 = vmatmul.bf16.gmra.mxu1 %v754_v19 }
  0x9e   :  { %v489_v32 = vpop.f32.mrf.mxu0 }
  0x9f   :  { %v508_v33 = vpop.f32.mrf.mxu1  ;;  %v490_v46 = vadd.f32 %v1015_v44, %v489_v32 }
  0xa1   :  { %v509_v50 = vadd.f32 %v508_v33, %v490_v46 }
  0xa6   :  { %v491_v39 = vpop.f32.mrf.mxu0  ;;  %v527_v45 = vpop.f32.mrf.mxu2 }
  0xa7   :  { %v546_v38 = vpop.f32.mrf.mxu3  ;;  %v510_v40 = vpop.f32.mrf.mxu1  ;;  %v528_v51 = vadd.f32 %v527_v45, %v509_v50  ;;  %v492_v53 = vadd.f32 %v1015_v44, %v491_v39 }
  0xa9   :  { %v547_v54 = vadd.f32 %v546_v38, %v528_v51  ;;  %v511_v56 = vadd.f32 %v510_v40, %v492_v53 }
  0xae   :  { %v494_v42 = vpop.f32.mrf.mxu0  ;;  %v529_v52 = vpop.f32.mrf.mxu2 }
  0xaf   :  { %v548_v41 = vpop.f32.mrf.mxu3  ;;  %v513_v43 = vpop.f32.mrf.mxu1  ;;  %v530_v60 = vadd.f32 %v529_v52, %v511_v56  ;;  %v495_v62 = vadd.f32 %v1015_v44, %v494_v42 }
  0xb1   :  { %v549_v1 = vadd.f32 %v548_v41, %v530_v60  ;;  %v514_v2 = vadd.f32 %v513_v43, %v495_v62 }
  0xb6   :  { %v496_v48 = vpop.f32.mrf.mxu0  ;;  %v532_v63 = vpop.f32.mrf.mxu2 }
  0xb7   :  { %v551_v47 = vpop.f32.mrf.mxu3  ;;  %v515_v49 = vpop.f32.mrf.mxu1  ;;  %v533_v6 = vadd.f32 %v532_v63, %v514_v2  ;;  %v497_v9 = vadd.f32 %v1015_v44, %v496_v48 }
  0xb9   :  { %v552_v11 = vadd.f32 %v551_v47, %v533_v6  ;;  %v516_v13 = vadd.f32 %v515_v49, %v497_v9 }
  0xbe   :  { %v565_v55 = vpop.f32.mrf.mxu0  ;;  %v534_v12 = vpop.f32.mrf.mxu2 }
  0xbf   :  { %v553_v57 = vpop.f32.mrf.mxu3  ;;  %v566_v58 = vadd.f32 %v565_v55, %v547_v54  ;;  %v584_v59 = vpop.f32.mrf.mxu1  ;;  %v535_v16 = vadd.f32 %v534_v12, %v516_v13 }
  0xc1   :  { %v585_v61 = vadd.f32 %v584_v59, %v566_v58  ;;  %v554_v20 = vadd.f32 %v553_v57, %v535_v16 }
  0xc3   :  { %v594_v0 = vmul.f32 %v585_v61, %v585_v61 }
  0xc5   :  { %634 = vmatmul.f32.vlgmr.msrb.gmra.mxu2 %v594_v0 }
  0xc6   :  { %v567_v3 = vpop.f32.mrf.mxu0 }
  0xc7   :  { %v568_v4 = vadd.f32 %v567_v3, %v549_v1  ;;  %v586_v5 = vpop.f32.mrf.mxu1  ;;  %v570_v7 = vpop.f32.mrf.mxu3 }
  0xc8   :  { %v571_v14 = vadd.f32 %v570_v7, %v552_v11 }
  0xc9   :  { %v1322_v8 = vadd.f32 %v586_v5, %v568_v4 }
  0xcb   :  { %v595_v10 = vmul.f32 %v1322_v8, %v1322_v8 }
  0xcd   :  { %637 = vmatmul.f32.gmra.mxu2 %v595_v10 }
  0xcf   :  { %v589_v15 = vpop.f32.mrf.mxu1  ;;  %v572_v18 = vpop.f32.mrf.mxu3 }
  0xd0   :  { %v1326_v17 = vadd.f32 %v589_v15, %v571_v14  ;;  %v573_v21 = vadd.f32 %v572_v18, %v554_v20 }
  0xd2   :  { %v596_v19 = vmul.f32 %v1326_v17, %v1326_v17 }
  0xd5   :  { %640 = vmatmul.f32.gmra.mxu2 %v596_v19 }
  0xd7   :  { %v591_v22 = vpop.f32.mrf.mxu1 }
  0xd8   :  { %v1330_v23 = vadd.f32 %v591_v22, %v573_v21 }
  0xda   :  { %v597_v24 = vmul.f32 %v1330_v23, %v1330_v23 }
  0xdd   :  { %643 = vmatmul.f32.gmra.mxu2 %v597_v24 }
 0x148   :  { %v635_v26 = vpop.f32.mrf.mxu2 }
 0x149   :  { %v636_v27 = vadd.f32 %v1016_v25, %v635_v26 }
 0x14b   :  { %1017 = vrsqrt.f32 %v636_v27  ;;  %vm654_vm0 = vcmp.eq.f32.partialorder %v636_v27, inf  ;;  %v657_v42 = vand.u32 2147483648, %v636_v27  ;;  %vm656_vm1 = vcmp.eq.f32.partialorder %v636_v27, 0.0 }
 0x150   :  { %v638_v28 = vpop.f32.mrf.mxu2 }
 0x151   :  { %v1018_v29 = vpop.eup %1017  ;;  %v639_v30 = vadd.f32 %v1016_v25, %v638_v28 }
 0x152   :  { %v648_v31 = vmul.f32 %v1018_v29, %v636_v27 }
 0x153   :  { %1019 = vrsqrt.f32 %v639_v30  ;;  %vm666_vm2 = vcmp.eq.f32.partialorder %v639_v30, inf  ;;  %v669_v55 = vand.u32 2147483648, %v639_v30  ;;  %vm668_vm3 = vcmp.eq.f32.partialorder %v639_v30, 0.0 }
 0x154   :  { %v649_v32 = vmul.f32 %v1018_v29, %v648_v31 }
 0x156   :  { %v650_v33 = vmul.f32 0.5, %v649_v32 }
 0x158   :  { %v651_v34 = vsub.f32 1.5, %v650_v33  ;;  %v641_v35 = vpop.f32.mrf.mxu2 }
 0x159   :  { %v1020_v36 = vpop.eup %1019  ;;  %v642_v37 = vadd.f32 %v1016_v25, %v641_v35 }
 0x15a   :  { %v652_v38 = vmul.f32 %v1018_v29, %v651_v34  ;;  %v660_v39 = vmul.f32 %v1020_v36, %v639_v30 }
 0x15b   :  { %1021 = vrsqrt.f32 %v642_v37  ;;  %vm678_vm4 = vcmp.eq.f32.partialorder %v642_v37, inf  ;;  %v681_v2 = vand.u32 2147483648, %v642_v37  ;;  %vm680_vm5 = vcmp.eq.f32.partialorder %v642_v37, 0.0 }
 0x15c   :  { %v653_v40 = vmul.f32 %v652_v38, %v636_v27  ;;  %v661_v41 = vmul.f32 %v1020_v36, %v660_v39 }
 0x15e   :  { %v655_v43 = vsel %vm654_vm0, %v636_v27, %v653_v40  ;;  %v662_v44 = vmul.f32 0.5, %v661_v41 }
 0x15f   :  { %v658_v45 = vsel %vm656_vm1, %v657_v42, %v655_v43 }
 0x160   :  { %v695_v46 = vmul.f32 %v658_v45, %v585_v61  ;;  %v663_v47 = vsub.f32 1.5, %v662_v44  ;;  %v644_v48 = vpop.f32.mrf.mxu2 }
 0x161   :  { %v1022_v49 = vpop.eup %1021  ;;  %v645_v50 = vadd.f32 %v1016_v25, %v644_v48 }
 0x162   :  { %699 = vst [vmem:[%s1357_s5] sm:$0xff] %v695_v46  ;;  %v664_v51 = vmul.f32 %v1020_v36, %v663_v47  ;;  %v672_v52 = vmul.f32 %v1022_v49, %v642_v37 }
 0x163   :  { %1023 = vrsqrt.f32 %v645_v50  ;;  %vm690_vm6 = vcmp.eq.f32.partialorder %v645_v50, inf  ;;  %v693_v10 = vand.u32 2147483648, %v645_v50  ;;  %vm692_vm7 = vcmp.eq.f32.partialorder %v645_v50, 0.0 }
 0x164   :  { %v665_v53 = vmul.f32 %v664_v51, %v639_v30  ;;  %v673_v54 = vmul.f32 %v1022_v49, %v672_v52 }
 0x166   :  { %v667_v56 = vsel %vm666_vm2, %v639_v30, %v665_v53  ;;  %v674_v57 = vmul.f32 0.5, %v673_v54 }
 0x167   :  { %v670_v58 = vsel %vm668_vm3, %v669_v55, %v667_v56 }
 0x168   :  { %v696_v59 = vmul.f32 %v670_v58, %v1322_v8  ;;  %v675_v60 = vsub.f32 1.5, %v674_v57 }
 0x169   :  { %v1024_v61 = vpop.eup %1023 }
 0x16a   :  { %700 = vst [vmem:[%s1357_s5 + $0x8] sm:$0xff] %v696_v59  ;;  %v676_v62 = vmul.f32 %v1022_v49, %v675_v60  ;;  %v684_v63 = vmul.f32 %v1024_v61, %v645_v50 }
 0x16c   :  { %v677_v0 = vmul.f32 %v676_v62, %v642_v37  ;;  %v685_v1 = vmul.f32 %v1024_v61, %v684_v63 }
 0x16e   :  { %v679_v3 = vsel %vm678_vm4, %v642_v37, %v677_v0  ;;  %v686_v4 = vmul.f32 0.5, %v685_v1 }
 0x16f   :  { %v682_v5 = vsel %vm680_vm5, %v681_v2, %v679_v3 }
 0x170   :  { %v697_v6 = vmul.f32 %v682_v5, %v1326_v17  ;;  %v687_v7 = vsub.f32 1.5, %v686_v4 }
 0x172   :  { %701 = vst [vmem:[%s1357_s5 + $0x10] sm:$0xff] %v697_v6  ;;  %v688_v8 = vmul.f32 %v1024_v61, %v687_v7 }
 0x174   :  { %v689_v9 = vmul.f32 %v688_v8, %v645_v50 }
 0x176   :  { %v691_v11 = vsel %vm690_vm6, %v645_v50, %v689_v9 }
 0x177   :  { %v694_v12 = vsel %vm692_vm7, %v693_v10, %v691_v11 }
 0x178   :  { %v698_v13 = vmul.f32 %v694_v12, %v1330_v23 }
 0x17a   :  { %702 = vst [vmem:[%s1357_s5 + $0x18] sm:$0xff] %v698_v13 }

// kernel: image_compressor_forward.45
= control target key start
LH: loop header
LB: loop body
LE: loop exit
PB: predicated region body
PF: predicated region fallthrough
CT: control target
= control target key end

     0   :  { %vm694_vm0 = vcmask 23552   ;;  %s1429_s1 = inlined_call_operand.vmem [shape: bf16[512,3], index: 1, kind: input, shape index: {}]   ;;  %s1430_s2 = inlined_call_operand.vmem [shape: f32[1,3], index: 2, kind: input, shape index: {}]   ;;  %s1431_s0 = inlined_call_operand.vmem [shape: bf16[128,512], index: 0, kind: input, shape index: {}]   ;;  %s1432_s3 = inlined_call_operand.vmem [shape: f32[128,3], index: 3, kind: output, shape index: {}]  }
   0x1   :  { %v1010_v0 = vld [vmem:[%s1429_s1 + $0x38] sm:$0xff]  ;;  %v1009_v4 = vld [vmem:[%s1429_s1 + $0x30] sm:$0xff]  ;;  %v1008_v8 = vld [vmem:[%s1429_s1 + $0x28] sm:$0xff] }
   0x2   :  { %v1018_v1 = vld [vmem:[%s1429_s1 + $0x78] sm:$0xff]  ;;  %466 = vmatpush.bf16.msra.mxu0 %v1010_v0  ;;  %v1017_v5 = vld [vmem:[%s1429_s1 + $0x70] sm:$0xff]  ;;  %v1016_v9 = vld [vmem:[%s1429_s1 + $0x68] sm:$0xff] }
   0x3   :  { %v1026_v2 = vld [vmem:[%s1429_s1 + $0xb8] sm:$0xff]  ;;  %515 = vmatpush.bf16.msra.mxu1 %v1018_v1  ;;  %v1025_v6 = vld [vmem:[%s1429_s1 + $0xb0] sm:$0xff]  ;;  %v1024_v10 = vld [vmem:[%s1429_s1 + $0xa8] sm:$0xff] }
   0x4   :  { %v1034_v3 = vld [vmem:[%s1429_s1 + $0xf8] sm:$0xff]  ;;  %564 = vmatpush.bf16.msra.mxu2 %v1026_v2  ;;  %v1033_v7 = vld [vmem:[%s1429_s1 + $0xf0] sm:$0xff]  ;;  %v1032_v11 = vld [vmem:[%s1429_s1 + $0xe8] sm:$0xff] }
   0x5   :  { %613 = vmatpush.bf16.msra.mxu3 %v1034_v3  ;;  %v1007_v12 = vld [vmem:[%s1429_s1 + $0x20] sm:$0xff]  ;;  %v1006_v16 = vld [vmem:[%s1429_s1 + $0x18] sm:$0xff]  ;;  %v1005_v20 = vld [vmem:[%s1429_s1 + $0x10] sm:$0xff] }
   0x6   :  { %467 = vmatpush.bf16.msra.mxu0 %v1009_v4  ;;  %v1015_v13 = vld [vmem:[%s1429_s1 + $0x60] sm:$0xff]  ;;  %v1014_v17 = vld [vmem:[%s1429_s1 + $0x58] sm:$0xff]  ;;  %v1013_v21 = vld [vmem:[%s1429_s1 + $0x50] sm:$0xff] }
   0x7   :  { %516 = vmatpush.bf16.msra.mxu1 %v1017_v5  ;;  %v1023_v14 = vld [vmem:[%s1429_s1 + $0xa0] sm:$0xff]  ;;  %v1022_v18 = vld [vmem:[%s1429_s1 + $0x98] sm:$0xff]  ;;  %v1021_v22 = vld [vmem:[%s1429_s1 + $0x90] sm:$0xff] }
   0x8   :  { %565 = vmatpush.bf16.msra.mxu2 %v1025_v6  ;;  %v1031_v15 = vld [vmem:[%s1429_s1 + $0xe0] sm:$0xff]  ;;  %v1030_v19 = vld [vmem:[%s1429_s1 + $0xd8] sm:$0xff]  ;;  %v1029_v23 = vld [vmem:[%s1429_s1 + $0xd0] sm:$0xff] }
   0x9   :  { %614 = vmatpush.bf16.msra.mxu3 %v1033_v7  ;;  %v1004_v24 = vld [vmem:[%s1429_s1 + $0x8] sm:$0xff]  ;;  %v1003_v28 = vld [vmem:[%s1429_s1] sm:$0xff]  ;;  %v973_v33 = vld [vmem:[%s1431_s0 + $0xc] sm:$0xf0] }
   0xa   :  { %468 = vmatpush.bf16.msra.mxu0 %v1008_v8  ;;  %v1012_v25 = vld [vmem:[%s1429_s1 + $0x48] sm:$0xff]  ;;  %v1011_v29 = vld [vmem:[%s1429_s1 + $0x40] sm:$0xff]  ;;  %v719_v35 = vld [vmem:[%s1431_s0 + $0x10] sm:$0xf0] }
   0xb   :  { %517 = vmatpush.bf16.msra.mxu1 %v1016_v9  ;;  %v1020_v26 = vld [vmem:[%s1429_s1 + $0x88] sm:$0xff]  ;;  %v1019_v30 = vld [vmem:[%s1429_s1 + $0x80] sm:$0xff]  ;;  %v974_v37 = vld [vmem:[%s1431_s0 + $0x14] sm:$0xf0] }
   0xc   :  { %566 = vmatpush.bf16.msra.mxu2 %v1024_v10  ;;  %v1028_v27 = vld [vmem:[%s1429_s1 + $0xc8] sm:$0xff]  ;;  %v1027_v31 = vld [vmem:[%s1429_s1 + $0xc0] sm:$0xff]  ;;  %v727_v39 = vld [vmem:[%s1431_s0 + $0x18] sm:$0xf0] }
   0xd   :  { %615 = vmatpush.bf16.msra.mxu3 %v1032_v11  ;;  %v717_v32 = vld [vmem:[%s1431_s0] sm:$0xf]  ;;  %v971_v34 = vld [vmem:[%s1431_s0 + $0x4] sm:$0xf]  ;;  %v725_v36 = vld [vmem:[%s1431_s0 + $0x8] sm:$0xf] }
   0xe   :  { %469 = vmatpush.bf16.msra.mxu0 %v1007_v12  ;;  %v972_v38 = vld [vmem:[%s1431_s0 + $0xc] sm:$0xf]  ;;  %v718_v40 = vor.u32 %v973_v33, %v717_v32  ;;  %v722_v41 = vor.u32 %v971_v34, %v719_v35  ;;  %v726_v42 = vor.u32 %v974_v37, %v725_v36  ;;  %v733_v44 = vld [vmem:[%s1431_s0 + $0x20] sm:$0xf]  ;;  %v977_v45 = vld [vmem:[%s1431_s0 + $0x2c] sm:$0xf0] }
   0xf   :  { %518 = vmatpush.bf16.msra.mxu1 %v1015_v13  ;;  %v730_v43 = vor.u32 %v972_v38, %v727_v39  ;;  %v975_v46 = vld [vmem:[%s1431_s0 + $0x24] sm:$0xf]  ;;  %v735_v47 = vld [vmem:[%s1431_s0 + $0x30] sm:$0xf0]  ;;  %v741_v48 = vld [vmem:[%s1431_s0 + $0x28] sm:$0xf]  ;;  %v734_v52 = vor.u32 %v977_v45, %v733_v44 }
  0x10   :  { %567 = vmatpush.bf16.msra.mxu2 %v1023_v14  ;;  %v978_v49 = vld [vmem:[%s1431_s0 + $0x34] sm:$0xf0]  ;;  %v976_v50 = vld [vmem:[%s1431_s0 + $0x2c] sm:$0xf]  ;;  %v743_v51 = vld [vmem:[%s1431_s0 + $0x38] sm:$0xf0]  ;;  %v738_v53 = vor.u32 %v975_v46, %v735_v47 }
  0x11   :  { %616 = vmatpush.bf16.msra.mxu3 %v1031_v15  ;;  %v742_v54 = vor.u32 %v978_v49, %v741_v48  ;;  %v746_v55 = vor.u32 %v976_v50, %v743_v51  ;;  %v749_v56 = vld [vmem:[%s1431_s0 + $0x40] sm:$0xf]  ;;  %v981_v57 = vld [vmem:[%s1431_s0 + $0x4c] sm:$0xf0]  ;;  %v979_v58 = vld [vmem:[%s1431_s0 + $0x44] sm:$0xf] }
  0x12   :  { %470 = vmatpush.bf16.msra.mxu0 %v1006_v16  ;;  %v751_v59 = vld [vmem:[%s1431_s0 + $0x50] sm:$0xf0]  ;;  %v757_v60 = vld [vmem:[%s1431_s0 + $0x48] sm:$0xf]  ;;  %v982_v61 = vld [vmem:[%s1431_s0 + $0x54] sm:$0xf0]  ;;  %v750_v0 = vor.u32 %v981_v57, %v749_v56 }
  0x13   :  { %519 = vmatpush.bf16.msra.mxu1 %v1014_v17  ;;  %v980_v62 = vld [vmem:[%s1431_s0 + $0x4c] sm:$0xf]  ;;  %v759_v63 = vld [vmem:[%s1431_s0 + $0x58] sm:$0xf0]  ;;  %v754_v1 = vor.u32 %v979_v58, %v751_v59  ;;  %v758_v2 = vor.u32 %v982_v61, %v757_v60  ;;  %v765_v4 = vld [vmem:[%s1431_s0 + $0x60] sm:$0xf] }
  0x14   :  { %568 = vmatpush.bf16.msra.mxu2 %v1022_v18  ;;  %v762_v3 = vor.u32 %v980_v62, %v759_v63  ;;  %v985_v5 = vld [vmem:[%s1431_s0 + $0x6c] sm:$0xf0]  ;;  %v983_v6 = vld [vmem:[%s1431_s0 + $0x64] sm:$0xf]  ;;  %v767_v7 = vld [vmem:[%s1431_s0 + $0x70] sm:$0xf0] }
  0x15   :  { %617 = vmatpush.bf16.msra.mxu3 %v1030_v19  ;;  %v773_v8 = vld [vmem:[%s1431_s0 + $0x68] sm:$0xf]  ;;  %v986_v9 = vld [vmem:[%s1431_s0 + $0x74] sm:$0xf0]  ;;  %v984_v10 = vld [vmem:[%s1431_s0 + $0x6c] sm:$0xf]  ;;  %v766_v12 = vor.u32 %v985_v5, %v765_v4  ;;  %v770_v13 = vor.u32 %v983_v6, %v767_v7 }
  0x16   :  { %471 = vmatpush.bf16.msra.mxu0 %v1005_v20  ;;  %v775_v11 = vld [vmem:[%s1431_s0 + $0x78] sm:$0xf0]  ;;  %v774_v14 = vor.u32 %v986_v9, %v773_v8  ;;  %v781_v16 = vld [vmem:[%s1431_s0 + $0x80] sm:$0xf]  ;;  %v989_v17 = vld [vmem:[%s1431_s0 + $0x8c] sm:$0xf0] }
  0x17   :  { %520 = vmatpush.bf16.msra.mxu1 %v1013_v21  ;;  %v778_v15 = vor.u32 %v984_v10, %v775_v11  ;;  %v987_v18 = vld [vmem:[%s1431_s0 + $0x84] sm:$0xf]  ;;  %v783_v19 = vld [vmem:[%s1431_s0 + $0x90] sm:$0xf0]  ;;  %v789_v20 = vld [vmem:[%s1431_s0 + $0x88] sm:$0xf] }
  0x18   :  { %569 = vmatpush.bf16.msra.mxu2 %v1021_v22  ;;  %v990_v21 = vld [vmem:[%s1431_s0 + $0x94] sm:$0xf0]  ;;  %v988_v22 = vld [vmem:[%s1431_s0 + $0x8c] sm:$0xf]  ;;  %v805_v32 = vld [vmem:[%s1431_s0 + $0xa8] sm:$0xf] }
  0x19   :  { %618 = vmatpush.bf16.msra.mxu3 %v1029_v23  ;;  %v791_v23 = vld [vmem:[%s1431_s0 + $0x98] sm:$0xf0]  ;;  %v994_v33 = vld [vmem:[%s1431_s0 + $0xb4] sm:$0xf0]  ;;  %v992_v34 = vld [vmem:[%s1431_s0 + $0xac] sm:$0xf] }
  0x1a   :  { %472 = vmatpush.bf16.msra.mxu0 %v1004_v24  ;;  %v782_v24 = vor.u32 %v989_v17, %v781_v16  ;;  %v807_v35 = vld [vmem:[%s1431_s0 + $0xb8] sm:$0xf0]  ;;  %v806_v38 = vor.u32 %v994_v33, %v805_v32  ;;  %v821_v44 = vld [vmem:[%s1431_s0 + $0xc8] sm:$0xf]  ;;  %v998_v45 = vld [vmem:[%s1431_s0 + $0xd4] sm:$0xf0] }
  0x1b   :  { %521 = vmatpush.bf16.msra.mxu1 %v1012_v25  ;;  %v786_v25 = vor.u32 %v987_v18, %v783_v19  ;;  %v810_v39 = vor.u32 %v992_v34, %v807_v35  ;;  %v996_v46 = vld [vmem:[%s1431_s0 + $0xcc] sm:$0xf]  ;;  %v823_v47 = vld [vmem:[%s1431_s0 + $0xd8] sm:$0xf0]  ;;  %v822_v50 = vor.u32 %v998_v45, %v821_v44  ;;  %v837_v56 = vld [vmem:[%s1431_s0 + $0xe8] sm:$0xf] }
  0x1c   :  { %570 = vmatpush.bf16.msra.mxu2 %v1020_v26  ;;  %v790_v26 = vor.u32 %v990_v21, %v789_v20  ;;  %v826_v51 = vor.u32 %v996_v46, %v823_v47  ;;  %v1002_v57 = vld [vmem:[%s1431_s0 + $0xf4] sm:$0xf0]  ;;  %v1000_v58 = vld [vmem:[%s1431_s0 + $0xec] sm:$0xf]  ;;  %v839_v59 = vld [vmem:[%s1431_s0 + $0xf8] sm:$0xf0] }
  0x1d   :  { %619 = vmatpush.bf16.msra.mxu3 %v1028_v27  ;;  %v794_v27 = vor.u32 %v988_v22, %v791_v23  ;;  %v838_v62 = vor.u32 %v1002_v57, %v837_v56  ;;  %v842_v63 = vor.u32 %v1000_v58, %v839_v59 }
  0x1e   :  { %473 = vmatpush.bf16.msra.mxu0 %v1003_v28  ;;  %v797_v28 = vld [vmem:[%s1431_s0 + $0xa0] sm:$0xf] }
  0x1f   :  { %522 = vmatpush.bf16.msra.mxu1 %v1011_v29  ;;  %v993_v29 = vld [vmem:[%s1431_s0 + $0xac] sm:$0xf0] }
  0x20   :  { %571 = vmatpush.bf16.msra.mxu2 %v1019_v30  ;;  %v991_v30 = vld [vmem:[%s1431_s0 + $0xa4] sm:$0xf]  ;;  %v798_v36 = vor.u32 %v993_v29, %v797_v28 }
  0x21   :  { %620 = vmatpush.bf16.msra.mxu3 %v1027_v31  ;;  %474 = vmatmul.bf16.vlgmr.msra.gmra.mxu0 %v718_v40  ;;  %v799_v31 = vld [vmem:[%s1431_s0 + $0xb0] sm:$0xf0]  ;;  %v813_v40 = vld [vmem:[%s1431_s0 + $0xc0] sm:$0xf] }
  0x22   :  { %523 = vmatmul.bf16.vlgmr.msra.gmra.mxu1 %v722_v41  ;;  %v802_v37 = vor.u32 %v991_v30, %v799_v31  ;;  %v997_v41 = vld [vmem:[%s1431_s0 + $0xcc] sm:$0xf0] }
  0x23   :  { %572 = vmatmul.bf16.vlgmr.msra.gmra.mxu2 %v726_v42  ;;  %v995_v42 = vld [vmem:[%s1431_s0 + $0xc4] sm:$0xf]  ;;  %v814_v48 = vor.u32 %v997_v41, %v813_v40 }
  0x24   :  { %621 = vmatmul.bf16.vlgmr.msra.gmra.mxu3 %v730_v43  ;;  %v815_v43 = vld [vmem:[%s1431_s0 + $0xd0] sm:$0xf0] }
  0x25   :  { %v818_v49 = vor.u32 %v995_v42, %v815_v43 }
  0x31   :  { %479 = vmatmul.bf16.gmra.mxu0 %v734_v52  ;;  %v829_v52 = vld [vmem:[%s1431_s0 + $0xe0] sm:$0xf] }
  0x32   :  { %528 = vmatmul.bf16.gmra.mxu1 %v738_v53  ;;  %v1001_v53 = vld [vmem:[%s1431_s0 + $0xec] sm:$0xf0] }
  0x33   :  { %577 = vmatmul.bf16.gmra.mxu2 %v742_v54  ;;  %v999_v54 = vld [vmem:[%s1431_s0 + $0xe4] sm:$0xf]  ;;  %v830_v60 = vor.u32 %v1001_v53, %v829_v52 }
  0x34   :  { %626 = vmatmul.bf16.gmra.mxu3 %v746_v55  ;;  %v831_v55 = vld [vmem:[%s1431_s0 + $0xf0] sm:$0xf0] }
  0x35   :  { %v834_v61 = vor.u32 %v999_v54, %v831_v55 }
  0x41   :  { %484 = vmatmul.bf16.gmra.mxu0 %v750_v0  ;;  %v1347_v0 = vld [vmem:[%s1430_s2] ss:$0 sm:$0xff] }
  0x42   :  { %533 = vmatmul.bf16.gmra.mxu1 %v754_v1 }
  0x43   :  { %582 = vmatmul.bf16.gmra.mxu2 %v758_v2 }
  0x44   :  { %631 = vmatmul.bf16.gmra.mxu3 %v762_v3 }
  0x51   :  { %489 = vmatmul.bf16.gmra.mxu0 %v766_v12 }
  0x52   :  { %538 = vmatmul.bf16.gmra.mxu1 %v770_v13 }
  0x53   :  { %587 = vmatmul.bf16.gmra.mxu2 %v774_v14 }
  0x54   :  { %636 = vmatmul.bf16.gmra.mxu3 %v778_v15 }
  0x61   :  { %494 = vmatmul.bf16.gmra.mxu0 %v782_v24 }
  0x62   :  { %543 = vmatmul.bf16.gmra.mxu1 %v786_v25 }
  0x63   :  { %592 = vmatmul.bf16.gmra.mxu2 %v790_v26 }
  0x64   :  { %641 = vmatmul.bf16.gmra.mxu3 %v794_v27 }
  0x71   :  { %499 = vmatmul.bf16.gmra.mxu0 %v798_v36 }
  0x72   :  { %548 = vmatmul.bf16.gmra.mxu1 %v802_v37 }
  0x73   :  { %597 = vmatmul.bf16.gmra.mxu2 %v806_v38 }
  0x74   :  { %646 = vmatmul.bf16.gmra.mxu3 %v810_v39 }
  0x81   :  { %504 = vmatmul.bf16.gmra.mxu0 %v814_v48 }
  0x82   :  { %553 = vmatmul.bf16.gmra.mxu1 %v818_v49 }
  0x83   :  { %602 = vmatmul.bf16.gmra.mxu2 %v822_v50 }
  0x84   :  { %651 = vmatmul.bf16.gmra.mxu3 %v826_v51 }
  0x91   :  { %509 = vmatmul.bf16.gmra.mxu0 %v830_v60 }
  0x92   :  { %558 = vmatmul.bf16.gmra.mxu1 %v834_v61 }
  0x93   :  { %607 = vmatmul.bf16.gmra.mxu2 %v838_v62 }
  0x94   :  { %656 = vmatmul.bf16.gmra.mxu3 %v842_v63 }
  0x9e   :  { %v475_v1 = vpop.f32.mrf.mxu0 }
  0x9f   :  { %v524_v2 = vpop.f32.mrf.mxu1  ;;  %v476_v3 = vadd.f32 %v1347_v0, %v475_v1 }
  0xa1   :  { %v525_v4 = vadd.f32 %v524_v2, %v476_v3 }
  0xa6   :  { %v573_v5 = vpop.f32.mrf.mxu2  ;;  %v477_v8 = vpop.f32.mrf.mxu0 }
  0xa7   :  { %v622_v6 = vpop.f32.mrf.mxu3  ;;  %v574_v7 = vadd.f32 %v573_v5, %v525_v4  ;;  %v526_v9 = vpop.f32.mrf.mxu1  ;;  %v478_v11 = vadd.f32 %v1347_v0, %v477_v8 }
  0xa9   :  { %v623_v10 = vadd.f32 %v622_v6, %v574_v7  ;;  %v527_v14 = vadd.f32 %v526_v9, %v478_v11 }
  0xab   :  { %v662_v12 = vmax.f32 %v623_v10, 0.0 }
  0xad   :  { %v678_v13 = vmin.f32 %v662_v12, 1.0 }
  0xae   :  { %v575_v15 = vpop.f32.mrf.mxu2  ;;  %v480_v18 = vpop.f32.mrf.mxu0 }
  0xaf   :  { %v624_v16 = vpop.f32.mrf.mxu3  ;;  %695 = vst.msk [vmem:[%s1432_s3] sm:$0xff] %vm694_vm0, %v678_v13  ;;  %v576_v17 = vadd.f32 %v575_v15, %v527_v14  ;;  %v529_v19 = vpop.f32.mrf.mxu1  ;;  %v481_v20 = vadd.f32 %v1347_v0, %v480_v18 }
  0xb1   :  { %v625_v21 = vadd.f32 %v624_v16, %v576_v17  ;;  %v530_v23 = vadd.f32 %v529_v19, %v481_v20 }
  0xb3   :  { %v663_v22 = vmax.f32 %v625_v21, 0.0 }
  0xb5   :  { %v679_v24 = vmin.f32 %v663_v22, 1.0 }
  0xb6   :  { %v578_v25 = vpop.f32.mrf.mxu2  ;;  %v482_v28 = vpop.f32.mrf.mxu0 }
  0xb7   :  { %v627_v26 = vpop.f32.mrf.mxu3  ;;  %696 = vst.msk [vmem:[%s1432_s3 + $0x8] sm:$0xff] %vm694_vm0, %v679_v24  ;;  %v579_v27 = vadd.f32 %v578_v25, %v530_v23  ;;  %v531_v29 = vpop.f32.mrf.mxu1  ;;  %v483_v31 = vadd.f32 %v1347_v0, %v482_v28 }
  0xb9   :  { %v628_v30 = vadd.f32 %v627_v26, %v579_v27  ;;  %v532_v34 = vadd.f32 %v531_v29, %v483_v31 }
  0xbb   :  { %v664_v32 = vmax.f32 %v628_v30, 0.0 }
  0xbd   :  { %v680_v33 = vmin.f32 %v664_v32, 1.0 }
  0xbe   :  { %v580_v35 = vpop.f32.mrf.mxu2  ;;  %v485_v38 = vpop.f32.mrf.mxu0 }
  0xbf   :  { %v629_v36 = vpop.f32.mrf.mxu3  ;;  %697 = vst.msk [vmem:[%s1432_s3 + $0x10] sm:$0xff] %vm694_vm0, %v680_v33  ;;  %v581_v37 = vadd.f32 %v580_v35, %v532_v34  ;;  %v534_v39 = vpop.f32.mrf.mxu1  ;;  %v486_v40 = vadd.f32 %v1347_v0, %v485_v38 }
  0xc1   :  { %v630_v41 = vadd.f32 %v629_v36, %v581_v37  ;;  %v535_v43 = vadd.f32 %v534_v39, %v486_v40 }
  0xc3   :  { %v665_v42 = vmax.f32 %v630_v41, 0.0 }
  0xc5   :  { %v681_v44 = vmin.f32 %v665_v42, 1.0 }
  0xc6   :  { %v583_v45 = vpop.f32.mrf.mxu2  ;;  %v487_v48 = vpop.f32.mrf.mxu0 }
  0xc7   :  { %v632_v46 = vpop.f32.mrf.mxu3  ;;  %698 = vst.msk [vmem:[%s1432_s3 + $0x18] sm:$0xff] %vm694_vm0, %v681_v44  ;;  %v584_v47 = vadd.f32 %v583_v45, %v535_v43  ;;  %v536_v49 = vpop.f32.mrf.mxu1  ;;  %v488_v51 = vadd.f32 %v1347_v0, %v487_v48 }
  0xc9   :  { %v633_v50 = vadd.f32 %v632_v46, %v584_v47  ;;  %v537_v54 = vadd.f32 %v536_v49, %v488_v51 }
  0xcb   :  { %v666_v52 = vmax.f32 %v633_v50, 0.0 }
  0xcd   :  { %v682_v53 = vmin.f32 %v666_v52, 1.0 }
  0xce   :  { %v585_v55 = vpop.f32.mrf.mxu2  ;;  %v490_v58 = vpop.f32.mrf.mxu0 }
  0xcf   :  { %v634_v56 = vpop.f32.mrf.mxu3  ;;  %699 = vst.msk [vmem:[%s1432_s3 + $0x20] sm:$0xff] %vm694_vm0, %v682_v53  ;;  %v586_v57 = vadd.f32 %v585_v55, %v537_v54  ;;  %v539_v59 = vpop.f32.mrf.mxu1  ;;  %v491_v60 = vadd.f32 %v1347_v0, %v490_v58 }
  0xd1   :  { %v635_v61 = vadd.f32 %v634_v56, %v586_v57  ;;  %v540_v63 = vadd.f32 %v539_v59, %v491_v60 }
  0xd3   :  { %v667_v62 = vmax.f32 %v635_v61, 0.0 }
  0xd5   :  { %v683_v1 = vmin.f32 %v667_v62, 1.0 }
  0xd6   :  { %v588_v2 = vpop.f32.mrf.mxu2  ;;  %v492_v5 = vpop.f32.mrf.mxu0 }
  0xd7   :  { %v637_v3 = vpop.f32.mrf.mxu3  ;;  %700 = vst.msk [vmem:[%s1432_s3 + $0x28] sm:$0xff] %vm694_vm0, %v683_v1  ;;  %v589_v4 = vadd.f32 %v588_v2, %v540_v63  ;;  %v541_v6 = vpop.f32.mrf.mxu1  ;;  %v493_v8 = vadd.f32 %v1347_v0, %v492_v5 }
  0xd9   :  { %v638_v7 = vadd.f32 %v637_v3, %v589_v4  ;;  %v542_v11 = vadd.f32 %v541_v6, %v493_v8 }
  0xdb   :  { %v668_v9 = vmax.f32 %v638_v7, 0.0 }
  0xdd   :  { %v684_v10 = vmin.f32 %v668_v9, 1.0 }
  0xde   :  { %v590_v12 = vpop.f32.mrf.mxu2  ;;  %v495_v15 = vpop.f32.mrf.mxu0 }
  0xdf   :  { %v639_v13 = vpop.f32.mrf.mxu3  ;;  %701 = vst.msk [vmem:[%s1432_s3 + $0x30] sm:$0xff] %vm694_vm0, %v684_v10  ;;  %v591_v14 = vadd.f32 %v590_v12, %v542_v11  ;;  %v544_v16 = vpop.f32.mrf.mxu1  ;;  %v496_v17 = vadd.f32 %v1347_v0, %v495_v15 }
  0xe1   :  { %v640_v18 = vadd.f32 %v639_v13, %v591_v14  ;;  %v545_v20 = vadd.f32 %v544_v16, %v496_v17 }
  0xe3   :  { %v669_v19 = vmax.f32 %v640_v18, 0.0 }
  0xe5   :  { %v685_v21 = vmin.f32 %v669_v19, 1.0 }
  0xe6   :  { %v593_v22 = vpop.f32.mrf.mxu2  ;;  %v497_v25 = vpop.f32.mrf.mxu0 }
  0xe7   :  { %v642_v23 = vpop.f32.mrf.mxu3  ;;  %702 = vst.msk [vmem:[%s1432_s3 + $0x38] sm:$0xff] %vm694_vm0, %v685_v21  ;;  %v594_v24 = vadd.f32 %v593_v22, %v545_v20  ;;  %v546_v26 = vpop.f32.mrf.mxu1  ;;  %v498_v28 = vadd.f32 %v1347_v0, %v497_v25 }
  0xe9   :  { %v643_v27 = vadd.f32 %v642_v23, %v594_v24  ;;  %v547_v31 = vadd.f32 %v546_v26, %v498_v28 }
  0xeb   :  { %v670_v29 = vmax.f32 %v643_v27, 0.0 }
  0xed   :  { %v686_v30 = vmin.f32 %v670_v29, 1.0 }
  0xee   :  { %v595_v32 = vpop.f32.mrf.mxu2  ;;  %v500_v35 = vpop.f32.mrf.mxu0 }
  0xef   :  { %v644_v33 = vpop.f32.mrf.mxu3  ;;  %703 = vst.msk [vmem:[%s1432_s3 + $0x40] sm:$0xff] %vm694_vm0, %v686_v30  ;;  %v596_v34 = vadd.f32 %v595_v32, %v547_v31  ;;  %v549_v36 = vpop.f32.mrf.mxu1  ;;  %v501_v37 = vadd.f32 %v1347_v0, %v500_v35 }
  0xf1   :  { %v645_v38 = vadd.f32 %v644_v33, %v596_v34  ;;  %v550_v40 = vadd.f32 %v549_v36, %v501_v37 }
  0xf3   :  { %v671_v39 = vmax.f32 %v645_v38, 0.0 }
  0xf5   :  { %v687_v41 = vmin.f32 %v671_v39, 1.0 }
  0xf6   :  { %v598_v42 = vpop.f32.mrf.mxu2  ;;  %v502_v45 = vpop.f32.mrf.mxu0 }
  0xf7   :  { %v647_v43 = vpop.f32.mrf.mxu3  ;;  %704 = vst.msk [vmem:[%s1432_s3 + $0x48] sm:$0xff] %vm694_vm0, %v687_v41  ;;  %v599_v44 = vadd.f32 %v598_v42, %v550_v40  ;;  %v551_v46 = vpop.f32.mrf.mxu1  ;;  %v503_v48 = vadd.f32 %v1347_v0, %v502_v45 }
  0xf9   :  { %v648_v47 = vadd.f32 %v647_v43, %v599_v44  ;;  %v552_v51 = vadd.f32 %v551_v46, %v503_v48 }
  0xfb   :  { %v672_v49 = vmax.f32 %v648_v47, 0.0 }
  0xfd   :  { %v688_v50 = vmin.f32 %v672_v49, 1.0 }
  0xfe   :  { %v600_v52 = vpop.f32.mrf.mxu2  ;;  %v505_v55 = vpop.f32.mrf.mxu0 }
  0xff   :  { %v649_v53 = vpop.f32.mrf.mxu3  ;;  %705 = vst.msk [vmem:[%s1432_s3 + $0x50] sm:$0xff] %vm694_vm0, %v688_v50  ;;  %v601_v54 = vadd.f32 %v600_v52, %v552_v51  ;;  %v554_v56 = vpop.f32.mrf.mxu1  ;;  %v506_v57 = vadd.f32 %v1347_v0, %v505_v55 }
 0x101   :  { %v650_v58 = vadd.f32 %v649_v53, %v601_v54  ;;  %v555_v60 = vadd.f32 %v554_v56, %v506_v57 }
 0x103   :  { %v673_v59 = vmax.f32 %v650_v58, 0.0 }
 0x105   :  { %v689_v61 = vmin.f32 %v673_v59, 1.0 }
 0x106   :  { %v603_v62 = vpop.f32.mrf.mxu2  ;;  %v507_v2 = vpop.f32.mrf.mxu0 }
 0x107   :  { %v652_v63 = vpop.f32.mrf.mxu3  ;;  %706 = vst.msk [vmem:[%s1432_s3 + $0x58] sm:$0xff] %vm694_vm0, %v689_v61  ;;  %v604_v1 = vadd.f32 %v603_v62, %v555_v60  ;;  %v556_v3 = vpop.f32.mrf.mxu1  ;;  %v508_v5 = vadd.f32 %v1347_v0, %v507_v2 }
 0x109   :  { %v653_v4 = vadd.f32 %v652_v63, %v604_v1  ;;  %v557_v8 = vadd.f32 %v556_v3, %v508_v5 }
 0x10b   :  { %v674_v6 = vmax.f32 %v653_v4, 0.0 }
 0x10d   :  { %v690_v7 = vmin.f32 %v674_v6, 1.0 }
 0x10e   :  { %v605_v9 = vpop.f32.mrf.mxu2  ;;  %v510_v12 = vpop.f32.mrf.mxu0 }
 0x10f   :  { %v654_v10 = vpop.f32.mrf.mxu3  ;;  %707 = vst.msk [vmem:[%s1432_s3 + $0x60] sm:$0xff] %vm694_vm0, %v690_v7  ;;  %v606_v11 = vadd.f32 %v605_v9, %v557_v8  ;;  %v511_v13 = vadd.f32 %v1347_v0, %v510_v12  ;;  %v559_v15 = vpop.f32.mrf.mxu1 }
 0x111   :  { %v655_v14 = vadd.f32 %v654_v10, %v606_v11  ;;  %v560_v17 = vadd.f32 %v559_v15, %v511_v13 }
 0x113   :  { %v675_v16 = vmax.f32 %v655_v14, 0.0 }
 0x115   :  { %v691_v18 = vmin.f32 %v675_v16, 1.0 }
 0x116   :  { %v608_v19 = vpop.f32.mrf.mxu2  ;;  %v512_v22 = vpop.f32.mrf.mxu0 }
 0x117   :  { %v657_v20 = vpop.f32.mrf.mxu3  ;;  %708 = vst.msk [vmem:[%s1432_s3 + $0x68] sm:$0xff] %vm694_vm0, %v691_v18  ;;  %v609_v21 = vadd.f32 %v608_v19, %v560_v17  ;;  %v513_v24 = vadd.f32 %v1347_v0, %v512_v22  ;;  %v561_v26 = vpop.f32.mrf.mxu1 }
 0x119   :  { %v658_v23 = vadd.f32 %v657_v20, %v609_v21  ;;  %v562_v28 = vadd.f32 %v561_v26, %v513_v24 }
 0x11b   :  { %v676_v25 = vmax.f32 %v658_v23, 0.0 }
 0x11d   :  { %v692_v27 = vmin.f32 %v676_v25, 1.0 }
 0x11e   :  { %v610_v29 = vpop.f32.mrf.mxu2 }
 0x11f   :  { %709 = vst.msk [vmem:[%s1432_s3 + $0x70] sm:$0xff] %vm694_vm0, %v692_v27  ;;  %v611_v30 = vadd.f32 %v610_v29, %v562_v28  ;;  %v659_v31 = vpop.f32.mrf.mxu3 }
 0x121   :  { %v660_v32 = vadd.f32 %v659_v31, %v611_v30 }
 0x123   :  { %v677_v33 = vmax.f32 %v660_v32, 0.0 }
 0x125   :  { %v693_v34 = vmin.f32 %v677_v33, 1.0 }
 0x127   :  { %710 = vst.msk [vmem:[%s1432_s3 + $0x78] sm:$0xff] %vm694_vm0, %v693_v34 }

// kernel: image_compressor_forward.40
= control target key start
LH: loop header
LB: loop body
LE: loop exit
PB: predicated region body
PF: predicated region fallthrough
CT: control target
= control target key end

     0   :  { %vm1515_vm0 = vcmask 23552   ;;  %s3118_s1 = inlined_call_operand.vmem [shape: bf16[1152,3], index: 1, kind: input, shape index: {}]   ;;  %s3119_s2 = inlined_call_operand.vmem [shape: f32[1,3], index: 2, kind: input, shape index: {}]   ;;  %s3120_s0 = inlined_call_operand.vmem [shape: bf16[128,1152], index: 0, kind: input, shape index: {}]   ;;  %s3121_s3 = inlined_call_operand.vmem [shape: f32[128,3], index: 3, kind: output, shape index: {}]  }
   0x1   :  { %v2191_v0 = vld [vmem:[%s3118_s1 + $0x38] sm:$0xff]  ;;  %v2190_v1 = vld [vmem:[%s3118_s1 + $0x30] sm:$0xff]  ;;  %v2189_v2 = vld [vmem:[%s3118_s1 + $0x28] sm:$0xff] }
   0x2   :  { %2256 = vmatpush.bf16.msra.mxu1 %v2191_v0  ;;  %2257 = vmatpush.bf16.msra.mxu2 %v2191_v0  ;;  %v2188_v3 = vld [vmem:[%s3118_s1 + $0x20] sm:$0xff]  ;;  %v2187_v4 = vld [vmem:[%s3118_s1 + $0x18] sm:$0xff]  ;;  %v2186_v5 = vld [vmem:[%s3118_s1 + $0x10] sm:$0xff] }
   0x3   :  { %2258 = vmatpush.bf16.msra.mxu3 %v2191_v0  ;;  %1042 = vmatpush.bf16.msra.mxu0 %v2191_v0  ;;  %v2185_v6 = vld [vmem:[%s3118_s1 + $0x8] sm:$0xff]  ;;  %v2184_v7 = vld [vmem:[%s3118_s1] sm:$0xff]  ;;  %v1610_v8 = vld [vmem:[%s3120_s0 + $0x90] sm:$0xf] }
   0x4   :  { %v2134_v9 = vld [vmem:[%s3120_s0 + $0xb0] sm:$0xf0]  ;;  %v1682_v10 = vld [vmem:[%s3120_s0 + $0x120] sm:$0xf]  ;;  %v2152_v11 = vld [vmem:[%s3120_s0 + $0x140] sm:$0xf0] }
   0x5   :  { %v1754_v12 = vld [vmem:[%s3120_s0 + $0x1b0] sm:$0xf]  ;;  %v2170_v13 = vld [vmem:[%s3120_s0 + $0x1d0] sm:$0xf0]  ;;  %v1538_v14 = vld [vmem:[%s3120_s0] sm:$0xf]  ;;  %v1611_v18 = vor.u32 %v2134_v9, %v1610_v8  ;;  %v1683_v19 = vor.u32 %v2152_v11, %v1682_v10 }
   0x6   :  { %2259 = vmatpush.bf16.msra.mxu1 %v2190_v1  ;;  %2260 = vmatpush.bf16.msra.mxu2 %v2190_v1  ;;  %v2116_v15 = vld [vmem:[%s3120_s0 + $0x20] sm:$0xf0]  ;;  %v2207_v16 = vld [vmem:[%s3118_s1 + $0xb8] sm:$0xff]  ;;  %v1755_v20 = vor.u32 %v2170_v13, %v1754_v12  ;;  %v2206_v24 = vld [vmem:[%s3118_s1 + $0xb0] sm:$0xff] }
   0x7   :  { %2261 = vmatpush.bf16.msra.mxu3 %v2190_v1  ;;  %1043 = vmatpush.bf16.msra.mxu0 %v2190_v1  ;;  %v2199_v17 = vld [vmem:[%s3118_s1 + $0x78] sm:$0xff]  ;;  %v1539_v21 = vor.u32 %v2116_v15, %v1538_v14  ;;  %v2198_v25 = vld [vmem:[%s3118_s1 + $0x70] sm:$0xff]  ;;  %v2205_v28 = vld [vmem:[%s3118_s1 + $0xa8] sm:$0xff] }
   0x8   :  { %v2215_v22 = vld [vmem:[%s3118_s1 + $0xf8] sm:$0xff]  ;;  %v2214_v26 = vld [vmem:[%s3118_s1 + $0xf0] sm:$0xff]  ;;  %v2197_v29 = vld [vmem:[%s3118_s1 + $0x68] sm:$0xff] }
   0x9   :  { %v2223_v23 = vld [vmem:[%s3118_s1 + $0x138] sm:$0xff]  ;;  %v2222_v27 = vld [vmem:[%s3118_s1 + $0x130] sm:$0xff]  ;;  %v2213_v30 = vld [vmem:[%s3118_s1 + $0xe8] sm:$0xff] }
   0xa   :  { %2262 = vmatpush.bf16.msra.mxu1 %v2189_v2  ;;  %2263 = vmatpush.bf16.msra.mxu2 %v2189_v2  ;;  %v2221_v31 = vld [vmem:[%s3118_s1 + $0x128] sm:$0xff]  ;;  %v2204_v32 = vld [vmem:[%s3118_s1 + $0xa0] sm:$0xff]  ;;  %v1646_v36 = vld [vmem:[%s3120_s0 + $0xd8] sm:$0xf] }
   0xb   :  { %2264 = vmatpush.bf16.msra.mxu3 %v2189_v2  ;;  %1044 = vmatpush.bf16.msra.mxu0 %v2189_v2  ;;  %v2196_v33 = vld [vmem:[%s3118_s1 + $0x60] sm:$0xff]  ;;  %v2143_v37 = vld [vmem:[%s3120_s0 + $0xf8] sm:$0xf0]  ;;  %v1718_v38 = vld [vmem:[%s3120_s0 + $0x168] sm:$0xf] }
   0xc   :  { %v2212_v34 = vld [vmem:[%s3118_s1 + $0xe0] sm:$0xff]  ;;  %v2161_v39 = vld [vmem:[%s3120_s0 + $0x188] sm:$0xf0]  ;;  %v1790_v40 = vld [vmem:[%s3120_s0 + $0x1f8] sm:$0xf]  ;;  %v1647_v46 = vor.u32 %v2143_v37, %v1646_v36 }
   0xd   :  { %v2220_v35 = vld [vmem:[%s3118_s1 + $0x120] sm:$0xff]  ;;  %v2179_v41 = vld [vmem:[%s3120_s0 + $0x218] sm:$0xf0]  ;;  %v1574_v42 = vld [vmem:[%s3120_s0 + $0x48] sm:$0xf]  ;;  %v1719_v47 = vor.u32 %v2161_v39, %v1718_v38 }
   0xe   :  { %2265 = vmatpush.bf16.msra.mxu1 %v2188_v3  ;;  %2266 = vmatpush.bf16.msra.mxu2 %v2188_v3  ;;  %v2125_v43 = vld [vmem:[%s3120_s0 + $0x68] sm:$0xf0]  ;;  %v2203_v44 = vld [vmem:[%s3118_s1 + $0x98] sm:$0xff]  ;;  %v1791_v48 = vor.u32 %v2179_v41, %v1790_v40  ;;  %v2202_v52 = vld [vmem:[%s3118_s1 + $0x90] sm:$0xff] }
   0xf   :  { %2267 = vmatpush.bf16.msra.mxu3 %v2188_v3  ;;  %1045 = vmatpush.bf16.msra.mxu0 %v2188_v3  ;;  %v2195_v45 = vld [vmem:[%s3118_s1 + $0x58] sm:$0xff]  ;;  %v1575_v49 = vor.u32 %v2125_v43, %v1574_v42  ;;  %v2194_v53 = vld [vmem:[%s3118_s1 + $0x50] sm:$0xff]  ;;  %v2201_v56 = vld [vmem:[%s3118_s1 + $0x88] sm:$0xff] }
  0x10   :  { %v2211_v50 = vld [vmem:[%s3118_s1 + $0xd8] sm:$0xff]  ;;  %v2210_v54 = vld [vmem:[%s3118_s1 + $0xd0] sm:$0xff]  ;;  %v2193_v57 = vld [vmem:[%s3118_s1 + $0x48] sm:$0xff] }
  0x11   :  { %v2219_v51 = vld [vmem:[%s3118_s1 + $0x118] sm:$0xff]  ;;  %v2218_v55 = vld [vmem:[%s3118_s1 + $0x110] sm:$0xff]  ;;  %v2209_v58 = vld [vmem:[%s3118_s1 + $0xc8] sm:$0xff] }
  0x12   :  { %2268 = vmatpush.bf16.msra.mxu1 %v2187_v4  ;;  %2269 = vmatpush.bf16.msra.mxu2 %v2187_v4  ;;  %v2217_v59 = vld [vmem:[%s3118_s1 + $0x108] sm:$0xff]  ;;  %v2200_v60 = vld [vmem:[%s3118_s1 + $0x80] sm:$0xff]  ;;  %v2239_v2 = vld [vmem:[%s3118_s1 + $0x1b8] sm:$0xff] }
  0x13   :  { %2270 = vmatpush.bf16.msra.mxu3 %v2187_v4  ;;  %1046 = vmatpush.bf16.msra.mxu0 %v2187_v4  ;;  %v2192_v61 = vld [vmem:[%s3118_s1 + $0x40] sm:$0xff]  ;;  %v1540_v1 = vld [vmem:[%s3120_s0 + $0x24] sm:$0xf0]  ;;  %v2231_v3 = vld [vmem:[%s3118_s1 + $0x178] sm:$0xff] }
  0x14   :  { %v2112_v62 = vld [vmem:[%s3120_s0 + $0x4] sm:$0xf]  ;;  %v1546_v4 = vld [vmem:[%s3120_s0 + $0x8] sm:$0xf]  ;;  %v1554_v8 = vld [vmem:[%s3120_s0 + $0x10] sm:$0xf] }
  0x15   :  { %v2208_v63 = vld [vmem:[%s3118_s1 + $0xc0] sm:$0xff]  ;;  %v2118_v9 = vld [vmem:[%s3120_s0 + $0x30] sm:$0xf0]  ;;  %v2247_v10 = vld [vmem:[%s3118_s1 + $0x1f8] sm:$0xff]  ;;  %v1543_v12 = vor.u32 %v2112_v62, %v1540_v1 }
  0x16   :  { %2271 = vmatpush.bf16.msra.mxu1 %v2186_v5  ;;  %2272 = vmatpush.bf16.msra.mxu2 %v2186_v5  ;;  %v2216_v0 = vld [vmem:[%s3118_s1 + $0x100] sm:$0xff]  ;;  %v2255_v11 = vld [vmem:[%s3118_s1 + $0x238] sm:$0xff]  ;;  %v1555_v15 = vor.u32 %v2118_v9, %v1554_v8  ;;  %v2130_v40 = vld [vmem:[%s3120_s0 + $0x94] sm:$0xf] }
  0x17   :  { %2273 = vmatpush.bf16.msra.mxu3 %v2186_v5  ;;  %1047 = vmatpush.bf16.msra.mxu0 %v2186_v5  ;;  %v2117_v5 = vld [vmem:[%s3120_s0 + $0x28] sm:$0xf0]  ;;  %v2236_v36 = vld [vmem:[%s3118_s1 + $0x1a0] sm:$0xff]  ;;  %v1612_v41 = vld [vmem:[%s3120_s0 + $0xb4] sm:$0xf0] }
  0x18   :  { %v1547_v13 = vor.u32 %v2117_v5, %v1546_v4  ;;  %v2244_v37 = vld [vmem:[%s3118_s1 + $0x1e0] sm:$0xff]  ;;  %v1618_v42 = vld [vmem:[%s3120_s0 + $0x98] sm:$0xf]  ;;  %v2135_v43 = vld [vmem:[%s3120_s0 + $0xb8] sm:$0xf0] }
  0x19   :  { %v2228_v38 = vld [vmem:[%s3118_s1 + $0x160] sm:$0xff]  ;;  %v1662_v62 = vld [vmem:[%s3120_s0 + $0xe8] sm:$0xf]  ;;  %v2234_v4 = vld [vmem:[%s3118_s1 + $0x190] sm:$0xff] }
  0x1a   :  { %2274 = vmatpush.bf16.msra.mxu1 %v2185_v6  ;;  %2275 = vmatpush.bf16.msra.mxu2 %v2185_v6  ;;  %v2252_v39 = vld [vmem:[%s3118_s1 + $0x220] sm:$0xff]  ;;  %v2242_v5 = vld [vmem:[%s3118_s1 + $0x1d0] sm:$0xff]  ;;  %v1684_v9 = vld [vmem:[%s3120_s0 + $0x144] sm:$0xf0] }
  0x1b   :  { %2276 = vmatpush.bf16.msra.mxu3 %v2185_v6  ;;  %1048 = vmatpush.bf16.msra.mxu0 %v2185_v6  ;;  %v2113_v6 = vld [vmem:[%s3120_s0 + $0xc] sm:$0xf]  ;;  %v2148_v8 = vld [vmem:[%s3120_s0 + $0x124] sm:$0xf] }
  0x1e   :  { %2277 = vmatpush.bf16.msra.mxu1 %v2184_v7  ;;  %2278 = vmatpush.bf16.msra.mxu2 %v2184_v7 }
  0x1f   :  { %2279 = vmatpush.bf16.msra.mxu3 %v2184_v7  ;;  %1049 = vmatpush.bf16.msra.mxu0 %v2184_v7  ;;  %v1548_v7 = vld [vmem:[%s3120_s0 + $0x2c] sm:$0xf0] }
  0x20   :  { %v1551_v14 = vor.u32 %v2113_v6, %v1548_v7  ;;  %v2226_v6 = vld [vmem:[%s3118_s1 + $0x150] sm:$0xff] }
  0x21   :  { %1060 = vmatmul.bf16.vlgmr.msra.gmra.mxu1 %v1611_v18  ;;  %1070 = vmatmul.bf16.vlgmr.msra.gmra.mxu2 %v1683_v19  ;;  %v2246_v18 = vld [vmem:[%s3118_s1 + $0x1f0] sm:$0xff] }
  0x22   :  { %1140 = vmatpush.bf16.msrb.mxu2 %v2207_v16  ;;  %1091 = vmatpush.bf16.msrb.mxu1 %v2199_v17  ;;  %v2238_v16 = vld [vmem:[%s3118_s1 + $0x1b0] sm:$0xff] }
  0x23   :  { %1080 = vmatmul.bf16.vlgmr.msra.gmra.mxu3 %v1755_v20  ;;  %1050 = vmatmul.bf16.vlgmr.msra.gmra.mxu0 %v1539_v21  ;;  %v2230_v17 = vld [vmem:[%s3118_s1 + $0x170] sm:$0xff]  ;;  %v2237_v20 = vld [vmem:[%s3118_s1 + $0x1a8] sm:$0xff] }
  0x24   :  { %1189 = vmatpush.bf16.msrb.mxu3 %v2215_v22  ;;  %1238 = vmatpush.bf16.msrb.mxu0 %v2223_v23  ;;  %v2254_v19 = vld [vmem:[%s3118_s1 + $0x230] sm:$0xff]  ;;  %v2229_v21 = vld [vmem:[%s3118_s1 + $0x168] sm:$0xff] }
  0x25   :  { %v2245_v22 = vld [vmem:[%s3118_s1 + $0x1e8] sm:$0xff]  ;;  %v2250_v7 = vld [vmem:[%s3118_s1 + $0x210] sm:$0xff] }
  0x26   :  { %1141 = vmatpush.bf16.msrb.mxu2 %v2206_v24  ;;  %1092 = vmatpush.bf16.msrb.mxu1 %v2198_v25  ;;  %v2253_v23 = vld [vmem:[%s3118_s1 + $0x228] sm:$0xff]  ;;  %v1576_v25 = vld [vmem:[%s3120_s0 + $0x6c] sm:$0xf0] }
  0x27   :  { %v2121_v24 = vld [vmem:[%s3120_s0 + $0x4c] sm:$0xf] }
  0x28   :  { %1190 = vmatpush.bf16.msrb.mxu3 %v2214_v26  ;;  %1239 = vmatpush.bf16.msrb.mxu0 %v2222_v27  ;;  %v1582_v26 = vld [vmem:[%s3120_s0 + $0x50] sm:$0xf]  ;;  %v2126_v27 = vld [vmem:[%s3120_s0 + $0x70] sm:$0xf0] }
  0x2a   :  { %1142 = vmatpush.bf16.msrb.mxu2 %v2205_v28  ;;  %1093 = vmatpush.bf16.msrb.mxu1 %v2197_v29  ;;  %v2122_v28 = vld [vmem:[%s3120_s0 + $0x54] sm:$0xf]  ;;  %v1584_v29 = vld [vmem:[%s3120_s0 + $0x74] sm:$0xf0] }
  0x2c   :  { %1191 = vmatpush.bf16.msrb.mxu3 %v2213_v30  ;;  %1240 = vmatpush.bf16.msrb.mxu0 %v2221_v31  ;;  %v1590_v30 = vld [vmem:[%s3120_s0 + $0x58] sm:$0xf]  ;;  %v2127_v31 = vld [vmem:[%s3120_s0 + $0x78] sm:$0xf0] }
  0x2e   :  { %1143 = vmatpush.bf16.msrb.mxu2 %v2204_v32  ;;  %1094 = vmatpush.bf16.msrb.mxu1 %v2196_v33  ;;  %v1579_v32 = vor.u32 %v2121_v24, %v1576_v25  ;;  %v1583_v33 = vor.u32 %v2126_v27, %v1582_v26  ;;  %v2157_v24 = vld [vmem:[%s3120_s0 + $0x16c] sm:$0xf]  ;;  %v1720_v25 = vld [vmem:[%s3120_s0 + $0x18c] sm:$0xf0]  ;;  %v2162_v27 = vld [vmem:[%s3120_s0 + $0x190] sm:$0xf0] }
  0x2f   :  { %v1726_v26 = vld [vmem:[%s3120_s0 + $0x170] sm:$0xf] }
  0x30   :  { %1192 = vmatpush.bf16.msrb.mxu3 %v2212_v34  ;;  %1241 = vmatpush.bf16.msrb.mxu0 %v2220_v35  ;;  %v1587_v34 = vor.u32 %v2122_v28, %v1584_v29  ;;  %v1591_v35 = vor.u32 %v2127_v31, %v1590_v30  ;;  %v2158_v28 = vld [vmem:[%s3120_s0 + $0x174] sm:$0xf]  ;;  %v1728_v29 = vld [vmem:[%s3120_s0 + $0x194] sm:$0xf0]  ;;  %v2163_v31 = vld [vmem:[%s3120_s0 + $0x198] sm:$0xf0] }
  0x31   :  { %1065 = vmatmul.bf16.gmra.mxu1 %v1647_v46  ;;  %1075 = vmatmul.bf16.gmra.mxu2 %v1719_v47  ;;  %v1626_v46 = vld [vmem:[%s3120_s0 + $0xa0] sm:$0xf]  ;;  %v2136_v47 = vld [vmem:[%s3120_s0 + $0xc0] sm:$0xf0]  ;;  %v1734_v30 = vld [vmem:[%s3120_s0 + $0x178] sm:$0xf] }
  0x32   :  { %1144 = vmatpush.bf16.msrb.mxu2 %v2203_v44  ;;  %1095 = vmatpush.bf16.msrb.mxu1 %v2195_v45  ;;  %v2131_v44 = vld [vmem:[%s3120_s0 + $0x9c] sm:$0xf]  ;;  %v1620_v45 = vld [vmem:[%s3120_s0 + $0xbc] sm:$0xf0] }
  0x33   :  { %1085 = vmatmul.bf16.gmra.mxu3 %v1791_v48  ;;  %1055 = vmatmul.bf16.gmra.mxu0 %v1575_v49  ;;  %v1615_v48 = vor.u32 %v2130_v40, %v1612_v41  ;;  %v1619_v49 = vor.u32 %v2135_v43, %v1618_v42  ;;  %v2166_v40 = vld [vmem:[%s3120_s0 + $0x1b4] sm:$0xf]  ;;  %v1756_v41 = vld [vmem:[%s3120_s0 + $0x1d4] sm:$0xf0]  ;;  %v2171_v43 = vld [vmem:[%s3120_s0 + $0x1d8] sm:$0xf0] }
  0x34   :  { %1193 = vmatpush.bf16.msrb.mxu3 %v2211_v50  ;;  %1242 = vmatpush.bf16.msrb.mxu0 %v2219_v51  ;;  %v1623_v50 = vor.u32 %v2131_v44, %v1620_v45  ;;  %v1627_v51 = vor.u32 %v2136_v47, %v1626_v46  ;;  %v1762_v42 = vld [vmem:[%s3120_s0 + $0x1b8] sm:$0xf]  ;;  %v2167_v44 = vld [vmem:[%s3120_s0 + $0x1bc] sm:$0xf]  ;;  %v1764_v45 = vld [vmem:[%s3120_s0 + $0x1dc] sm:$0xf0] }
  0x35   :  { %v1770_v46 = vld [vmem:[%s3120_s0 + $0x1c0] sm:$0xf]  ;;  %v2172_v47 = vld [vmem:[%s3120_s0 + $0x1e0] sm:$0xf0] }
  0x36   :  { %1145 = vmatpush.bf16.msrb.mxu2 %v2202_v52  ;;  %1096 = vmatpush.bf16.msrb.mxu1 %v2194_v53  ;;  %v2235_v52 = vld [vmem:[%s3118_s1 + $0x198] sm:$0xff] }
  0x37   :  { %v2243_v53 = vld [vmem:[%s3118_s1 + $0x1d8] sm:$0xff] }
  0x38   :  { %1194 = vmatpush.bf16.msrb.mxu3 %v2210_v54  ;;  %1243 = vmatpush.bf16.msrb.mxu0 %v2218_v55  ;;  %v2227_v54 = vld [vmem:[%s3118_s1 + $0x158] sm:$0xff] }
  0x39   :  { %v2251_v55 = vld [vmem:[%s3118_s1 + $0x218] sm:$0xff] }
  0x3a   :  { %1146 = vmatpush.bf16.msrb.mxu2 %v2201_v56  ;;  %1097 = vmatpush.bf16.msrb.mxu1 %v2193_v57  ;;  %v2139_v56 = vld [vmem:[%s3120_s0 + $0xdc] sm:$0xf]  ;;  %v1648_v57 = vld [vmem:[%s3120_s0 + $0xfc] sm:$0xf0] }
  0x3c   :  { %1195 = vmatpush.bf16.msrb.mxu3 %v2209_v58  ;;  %1244 = vmatpush.bf16.msrb.mxu0 %v2217_v59  ;;  %v1654_v58 = vld [vmem:[%s3120_s0 + $0xe0] sm:$0xf]  ;;  %v2144_v59 = vld [vmem:[%s3120_s0 + $0x100] sm:$0xf0] }
  0x3d   :  { %v1655_v1 = vor.u32 %v2144_v59, %v1654_v58 }
  0x3e   :  { %1147 = vmatpush.bf16.msrb.mxu2 %v2200_v60  ;;  %1098 = vmatpush.bf16.msrb.mxu1 %v2192_v61  ;;  %v2140_v60 = vld [vmem:[%s3120_s0 + $0xe4] sm:$0xf]  ;;  %v1656_v61 = vld [vmem:[%s3120_s0 + $0x104] sm:$0xf0] }
  0x40   :  { %1196 = vmatpush.bf16.msrb.mxu3 %v2208_v63  ;;  %1245 = vmatpush.bf16.msrb.mxu0 %v2216_v0  ;;  %v2145_v63 = vld [vmem:[%s3120_s0 + $0x108] sm:$0xf0]  ;;  %v1651_v0 = vor.u32 %v2139_v56, %v1648_v57 }
  0x41   :  { %1099 = vmatmul.bf16.vlgmr.msrb.gmra.mxu1 %v1543_v12  ;;  %1148 = vmatmul.bf16.vlgmr.msrb.gmra.mxu2 %v1547_v13  ;;  %v2149_v12 = vld [vmem:[%s3120_s0 + $0x12c] sm:$0xf]  ;;  %v1692_v13 = vld [vmem:[%s3120_s0 + $0x14c] sm:$0xf0] }
  0x42   :  { %1336 = vmatpush.bf16.msra.mxu2 %v2239_v2  ;;  %1287 = vmatpush.bf16.msra.mxu1 %v2231_v3  ;;  %v1659_v2 = vor.u32 %v2140_v60, %v1656_v61  ;;  %v1663_v3 = vor.u32 %v2145_v63, %v1662_v62  ;;  %v2175_v61 = vld [vmem:[%s3120_s0 + $0x1fc] sm:$0xf]  ;;  %v1792_v62 = vld [vmem:[%s3120_s0 + $0x21c] sm:$0xf0] }
  0x43   :  { %1197 = vmatmul.bf16.vlgmr.msrb.gmra.mxu3 %v1551_v14  ;;  %1246 = vmatmul.bf16.vlgmr.msrb.gmra.mxu0 %v1555_v15  ;;  %v1698_v14 = vld [vmem:[%s3120_s0 + $0x130] sm:$0xf]  ;;  %v2154_v15 = vld [vmem:[%s3120_s0 + $0x150] sm:$0xf0]  ;;  %v1798_v63 = vld [vmem:[%s3120_s0 + $0x200] sm:$0xf] }
  0x44   :  { %1385 = vmatpush.bf16.msra.mxu3 %v2247_v10  ;;  %1434 = vmatpush.bf16.msra.mxu0 %v2255_v11  ;;  %v1690_v10 = vld [vmem:[%s3120_s0 + $0x128] sm:$0xf]  ;;  %v2153_v11 = vld [vmem:[%s3120_s0 + $0x148] sm:$0xf0] }
  0x46   :  { %1337 = vmatpush.bf16.msra.mxu2 %v2238_v16  ;;  %1288 = vmatpush.bf16.msra.mxu1 %v2230_v17  ;;  %v1687_v16 = vor.u32 %v2148_v8, %v1684_v9  ;;  %v1691_v17 = vor.u32 %v2153_v11, %v1690_v10  ;;  %v1795_v8 = vor.u32 %v2175_v61, %v1792_v62  ;;  %v1606_v61 = vld [vmem:[%s3120_s0 + $0x68] sm:$0xf]  ;;  %v2129_v62 = vld [vmem:[%s3120_s0 + $0x88] sm:$0xf0] }
  0x48   :  { %1386 = vmatpush.bf16.msra.mxu3 %v2246_v18  ;;  %1435 = vmatpush.bf16.msra.mxu0 %v2254_v19  ;;  %v1695_v18 = vor.u32 %v2149_v12, %v1692_v13  ;;  %v1699_v19 = vor.u32 %v2154_v15, %v1698_v14 }
  0x4a   :  { %1338 = vmatpush.bf16.msra.mxu2 %v2237_v20  ;;  %1289 = vmatpush.bf16.msra.mxu1 %v2229_v21  ;;  %v2233_v20 = vld [vmem:[%s3118_s1 + $0x188] sm:$0xff] }
  0x4b   :  { %v2241_v21 = vld [vmem:[%s3118_s1 + $0x1c8] sm:$0xff] }
  0x4c   :  { %1387 = vmatpush.bf16.msra.mxu3 %v2245_v22  ;;  %1436 = vmatpush.bf16.msra.mxu0 %v2253_v23  ;;  %v2225_v22 = vld [vmem:[%s3118_s1 + $0x148] sm:$0xff] }
  0x4d   :  { %v2249_v23 = vld [vmem:[%s3118_s1 + $0x208] sm:$0xff] }
  0x4e   :  { %1339 = vmatpush.bf16.msra.mxu2 %v2236_v36  ;;  %1290 = vmatpush.bf16.msra.mxu1 %v2228_v38  ;;  %v2232_v36 = vld [vmem:[%s3118_s1 + $0x180] sm:$0xff] }
  0x4f   :  { %v2224_v38 = vld [vmem:[%s3118_s1 + $0x140] sm:$0xff] }
  0x50   :  { %1388 = vmatpush.bf16.msra.mxu3 %v2244_v37  ;;  %1437 = vmatpush.bf16.msra.mxu0 %v2252_v39  ;;  %v2240_v37 = vld [vmem:[%s3118_s1 + $0x1c0] sm:$0xff] }
  0x51   :  { %1104 = vmatmul.bf16.gmra.mxu1 %v1579_v32  ;;  %1153 = vmatmul.bf16.gmra.mxu2 %v1583_v33  ;;  %v1723_v32 = vor.u32 %v2157_v24, %v1720_v25  ;;  %v1727_v33 = vor.u32 %v2162_v27, %v1726_v26  ;;  %v2248_v39 = vld [vmem:[%s3118_s1 + $0x200] sm:$0xff]  ;;  %v2119_v24 = vld [vmem:[%s3120_s0 + $0x38] sm:$0xf0] }
  0x52   :  { %1340 = vmatpush.bf16.msra.mxu2 %v2235_v52  ;;  %1291 = vmatpush.bf16.msra.mxu1 %v2227_v54  ;;  %v1771_v52 = vor.u32 %v2172_v47, %v1770_v46  ;;  %v2738_v54 = vld [vmem:[%s3119_s2] ss:$0 sm:$0xff]  ;;  %v2115_v25 = vld [vmem:[%s3120_s0 + $0x1c] sm:$0xf] }
  0x53   :  { %1202 = vmatmul.bf16.gmra.mxu3 %v1587_v34  ;;  %1251 = vmatmul.bf16.gmra.mxu0 %v1591_v35  ;;  %v1731_v34 = vor.u32 %v2158_v28, %v1728_v29  ;;  %v1735_v35 = vor.u32 %v2163_v31, %v1734_v30  ;;  %v1564_v26 = vld [vmem:[%s3120_s0 + $0x3c] sm:$0xf0]  ;;  %v2120_v28 = vld [vmem:[%s3120_s0 + $0x40] sm:$0xf0] }
  0x54   :  { %1389 = vmatpush.bf16.msra.mxu3 %v2243_v53  ;;  %1438 = vmatpush.bf16.msra.mxu0 %v2251_v55  ;;  %v1570_v27 = vld [vmem:[%s3120_s0 + $0x20] sm:$0xf] }
  0x56   :  { %1341 = vmatpush.bf16.msra.mxu2 %v2234_v4  ;;  %1292 = vmatpush.bf16.msra.mxu1 %v2226_v6  ;;  %v2181_v4 = vld [vmem:[%s3120_s0 + $0x228] sm:$0xf0] }
  0x58   :  { %1390 = vmatpush.bf16.msra.mxu3 %v2242_v5  ;;  %1439 = vmatpush.bf16.msra.mxu0 %v2250_v7 }
  0x5a   :  { %1342 = vmatpush.bf16.msra.mxu2 %v2233_v20  ;;  %1293 = vmatpush.bf16.msra.mxu1 %v2225_v22  ;;  %v1556_v22 = vld [vmem:[%s3120_s0 + $0x34] sm:$0xf0] }
  0x5c   :  { %1391 = vmatpush.bf16.msra.mxu3 %v2241_v21  ;;  %1440 = vmatpush.bf16.msra.mxu0 %v2249_v23  ;;  %v2114_v21 = vld [vmem:[%s3120_s0 + $0x14] sm:$0xf]  ;;  %v1562_v23 = vld [vmem:[%s3120_s0 + $0x18] sm:$0xf] }
  0x5e   :  { %1343 = vmatpush.bf16.msra.mxu2 %v2232_v36  ;;  %1294 = vmatpush.bf16.msra.mxu1 %v2224_v38  ;;  %v1571_v38 = vor.u32 %v2120_v28, %v1570_v27  ;;  %v2132_v27 = vld [vmem:[%s3120_s0 + $0xa4] sm:$0xf]  ;;  %v1628_v28 = vld [vmem:[%s3120_s0 + $0xc4] sm:$0xf0] }
  0x60   :  { %1392 = vmatpush.bf16.msra.mxu3 %v2240_v37  ;;  %1441 = vmatpush.bf16.msra.mxu0 %v2248_v39  ;;  %v1567_v37 = vor.u32 %v2115_v25, %v1564_v26 }
  0x61   :  { %1109 = vmatmul.bf16.gmra.mxu1 %v1615_v48  ;;  %1158 = vmatmul.bf16.gmra.mxu2 %v1619_v49  ;;  %v1759_v48 = vor.u32 %v2166_v40, %v1756_v41  ;;  %v1763_v49 = vor.u32 %v2171_v43, %v1762_v42 }
  0x63   :  { %1207 = vmatmul.bf16.gmra.mxu3 %v1623_v50  ;;  %1256 = vmatmul.bf16.gmra.mxu0 %v1627_v51  ;;  %v1767_v51 = vor.u32 %v2167_v44, %v1764_v45 }
  0x71   :  { %1114 = vmatmul.bf16.gmra.mxu1 %v1651_v0  ;;  %1163 = vmatmul.bf16.gmra.mxu2 %v1655_v1  ;;  %v2180_v0 = vld [vmem:[%s3120_s0 + $0x220] sm:$0xf0] }
  0x72   :  { %v2176_v1 = vld [vmem:[%s3120_s0 + $0x204] sm:$0xf]  ;;  %v1799_v9 = vor.u32 %v2180_v0, %v1798_v63 }
  0x73   :  { %1212 = vmatmul.bf16.gmra.mxu3 %v1659_v2  ;;  %1261 = vmatmul.bf16.gmra.mxu0 %v1663_v3  ;;  %v1800_v2 = vld [vmem:[%s3120_s0 + $0x224] sm:$0xf0] }
  0x74   :  { %v1806_v3 = vld [vmem:[%s3120_s0 + $0x208] sm:$0xf]  ;;  %v1803_v12 = vor.u32 %v2176_v1, %v1800_v2 }
  0x75   :  { %v1807_v13 = vor.u32 %v2181_v4, %v1806_v3 }
  0x81   :  { %1119 = vmatmul.bf16.gmra.mxu1 %v1687_v16  ;;  %1168 = vmatmul.bf16.gmra.mxu2 %v1691_v17 }
  0x83   :  { %1217 = vmatmul.bf16.gmra.mxu3 %v1695_v18  ;;  %1266 = vmatmul.bf16.gmra.mxu0 %v1699_v19 }
  0x91   :  { %1124 = vmatmul.bf16.gmra.mxu1 %v1723_v32  ;;  %1173 = vmatmul.bf16.gmra.mxu2 %v1727_v33  ;;  %v1559_v33 = vor.u32 %v2114_v21, %v1556_v22 }
  0x93   :  { %1222 = vmatmul.bf16.gmra.mxu3 %v1731_v34  ;;  %1271 = vmatmul.bf16.gmra.mxu0 %v1735_v35  ;;  %v1563_v34 = vor.u32 %v2119_v24, %v1562_v23 }
  0x9e   :  { %v2733_v50 = vpop.f32.mrf.mxu1 }
  0xa0   :  { %v1051_v53 = vpop.f32.mrf.mxu0 }
  0xa1   :  { %1129 = vmatmul.bf16.gmra.mxu1 %v1759_v48  ;;  %1178 = vmatmul.bf16.gmra.mxu2 %v1763_v49  ;;  %v1052_v30 = vadd.f32 %v2738_v54, %v1051_v53  ;;  %v2123_v49 = vld [vmem:[%s3120_s0 + $0x5c] sm:$0xf]  ;;  %v1598_v53 = vld [vmem:[%s3120_s0 + $0x60] sm:$0xf] }
  0xa3   :  { %1227 = vmatmul.bf16.gmra.mxu3 %v1767_v51  ;;  %1276 = vmatmul.bf16.gmra.mxu0 %v1771_v52  ;;  %v1592_v51 = vld [vmem:[%s3120_s0 + $0x7c] sm:$0xf0] }
  0xa4   :  { %v1071_v55 = vpop.f32.mrf.mxu2  ;;  %v1595_v3 = vor.u32 %v2123_v49, %v1592_v51 }
  0xa5   :  { %v2741_v56 = vadd.f32 %v2738_v54, %v1071_v55  ;;  %v2128_v55 = vld [vmem:[%s3120_s0 + $0x80] sm:$0xf0] }
  0xa6   :  { %v1081_v57 = vpop.f32.mrf.mxu3  ;;  %v2746_v59 = vpop.f32.mrf.mxu1  ;;  %v1599_v4 = vor.u32 %v2128_v55, %v1598_v53 }
  0xa7   :  { %v2744_v58 = vadd.f32 %v2738_v54, %v1081_v57  ;;  %v2124_v57 = vld [vmem:[%s3120_s0 + $0x64] sm:$0xf] }
  0xa8   :  { %v1053_v60 = vpop.f32.mrf.mxu0 }
  0xa9   :  { %v1054_v42 = vadd.f32 %v2738_v54, %v1053_v60  ;;  %v1600_v60 = vld [vmem:[%s3120_s0 + $0x84] sm:$0xf0] }
  0xac   :  { %v1073_v5 = vpop.f32.mrf.mxu2 }
  0xad   :  { %v2773_v6 = vadd.f32 %v2738_v54, %v1073_v5 }
  0xae   :  { %v1083_v7 = vpop.f32.mrf.mxu3  ;;  %v2778_v11 = vpop.f32.mrf.mxu1 }
  0xaf   :  { %v2776_v10 = vadd.f32 %v2738_v54, %v1083_v7  ;;  %v1603_v7 = vor.u32 %v2124_v57, %v1600_v60 }
  0xb0   :  { %v1056_v14 = vpop.f32.mrf.mxu0 }
  0xb1   :  { %1134 = vmatmul.bf16.gmra.mxu1 %v1795_v8  ;;  %1183 = vmatmul.bf16.gmra.mxu2 %v1799_v9  ;;  %v1057_v0 = vadd.f32 %v2738_v54, %v1056_v14  ;;  %v1607_v8 = vor.u32 %v2129_v62, %v1606_v61 }
  0xb3   :  { %1232 = vmatmul.bf16.gmra.mxu3 %v1803_v12  ;;  %1281 = vmatmul.bf16.gmra.mxu0 %v1807_v13 }
  0xb4   :  { %v1076_v15 = vpop.f32.mrf.mxu2 }
  0xb5   :  { %v2781_v16 = vadd.f32 %v2738_v54, %v1076_v15 }
  0xb6   :  { %v1086_v17 = vpop.f32.mrf.mxu3  ;;  %v2786_v19 = vpop.f32.mrf.mxu1 }
  0xb7   :  { %v2784_v18 = vadd.f32 %v2738_v54, %v1086_v17 }
  0xb8   :  { %v1058_v20 = vpop.f32.mrf.mxu0 }
  0xb9   :  { %v1059_v21 = vadd.f32 %v2738_v54, %v1058_v20  ;;  %v1634_v20 = vld [vmem:[%s3120_s0 + $0xa8] sm:$0xf] }
  0xbc   :  { %v1078_v29 = vpop.f32.mrf.mxu2 }
  0xbd   :  { %v2814_v31 = vadd.f32 %v2738_v54, %v1078_v29 }
  0xbe   :  { %v1088_v32 = vpop.f32.mrf.mxu3  ;;  %v1100_v36 = vpop.f32.mrf.mxu1 }
  0xbf   :  { %v2817_v35 = vadd.f32 %v2738_v54, %v1088_v32  ;;  %v1101_v39 = vadd.f32 %v1100_v36, %v1052_v30  ;;  %v2137_v30 = vld [vmem:[%s3120_s0 + $0xc8] sm:$0xf0]  ;;  %v2138_v36 = vld [vmem:[%s3120_s0 + $0xd0] sm:$0xf0] }
  0xc0   :  { %v1247_v40 = vpop.f32.mrf.mxu0  ;;  %v2133_v32 = vld [vmem:[%s3120_s0 + $0xac] sm:$0xf] }
  0xc1   :  { %1295 = vmatmul.bf16.vlgmr.msra.gmra.mxu1 %v1559_v33  ;;  %1344 = vmatmul.bf16.vlgmr.msra.gmra.mxu2 %v1563_v34  ;;  %v1636_v33 = vld [vmem:[%s3120_s0 + $0xcc] sm:$0xf0] }
  0xc2   :  { %v1642_v34 = vld [vmem:[%s3120_s0 + $0xb0] sm:$0xf] }
  0xc3   :  { %1393 = vmatmul.bf16.vlgmr.msra.gmra.mxu3 %v1567_v37  ;;  %1442 = vmatmul.bf16.vlgmr.msra.gmra.mxu0 %v1571_v38  ;;  %v1062_v38 = vadd.f32 %v2738_v54, %v2733_v50  ;;  %v1064_v50 = vadd.f32 %v2738_v54, %v2746_v59  ;;  %v1670_v59 = vld [vmem:[%s3120_s0 + $0xf0] sm:$0xf] }
  0xc4   :  { %v1149_v41 = vpop.f32.mrf.mxu2 }
  0xc5   :  { %v1150_v43 = vadd.f32 %v1149_v41, %v1101_v39  ;;  %v1631_v41 = vor.u32 %v2132_v27, %v1628_v28 }
  0xc6   :  { %v1198_v44 = vpop.f32.mrf.mxu3  ;;  %v1102_v45 = vpop.f32.mrf.mxu1 }
  0xc7   :  { %v1199_v46 = vadd.f32 %v1198_v44, %v1150_v43  ;;  %v1103_v47 = vadd.f32 %v1102_v45, %v1054_v42  ;;  %v1635_v42 = vor.u32 %v2137_v30, %v1634_v20  ;;  %v1639_v44 = vor.u32 %v2133_v32, %v1636_v33 }
  0xc8   :  { %v1249_v48 = vpop.f32.mrf.mxu0  ;;  %v1643_v45 = vor.u32 %v2138_v36, %v1642_v34 }
  0xc9   :  { %v2826_v52 = vadd.f32 %v1247_v40, %v1199_v46 }
  0xcc   :  { %v1151_v63 = vpop.f32.mrf.mxu2 }
  0xcd   :  { %v1152_v1 = vadd.f32 %v1151_v63, %v1103_v47  ;;  %v2141_v63 = vld [vmem:[%s3120_s0 + $0xec] sm:$0xf] }
  0xce   :  { %v1200_v2 = vpop.f32.mrf.mxu3  ;;  %v1105_v5 = vpop.f32.mrf.mxu1 }
  0xcf   :  { %v1201_v9 = vadd.f32 %v1200_v2, %v1152_v1  ;;  %v1106_v12 = vadd.f32 %v1105_v5, %v1057_v0  ;;  %v1664_v0 = vld [vmem:[%s3120_s0 + $0x10c] sm:$0xf0]  ;;  %v2146_v2 = vld [vmem:[%s3120_s0 + $0x110] sm:$0xf0]  ;;  %v1678_v5 = vld [vmem:[%s3120_s0 + $0xf8] sm:$0xf] }
  0xd0   :  { %v1252_v13 = vpop.f32.mrf.mxu0 }
  0xd1   :  { %1300 = vmatmul.bf16.gmra.mxu1 %v1595_v3  ;;  %1349 = vmatmul.bf16.gmra.mxu2 %v1599_v4  ;;  %v2847_v15 = vadd.f32 %v1249_v48, %v1201_v9  ;;  %v2142_v3 = vld [vmem:[%s3120_s0 + $0xf4] sm:$0xf]  ;;  %v1672_v4 = vld [vmem:[%s3120_s0 + $0x114] sm:$0xf0]  ;;  %v1067_v9 = vadd.f32 %v2738_v54, %v2778_v11  ;;  %v1069_v11 = vadd.f32 %v2738_v54, %v2786_v19  ;;  %v2155_v19 = vld [vmem:[%s3120_s0 + $0x158] sm:$0xf0] }
  0xd2   :  { %v1706_v54 = vld [vmem:[%s3120_s0 + $0x138] sm:$0xf] }
  0xd3   :  { %1398 = vmatmul.bf16.gmra.mxu3 %v1603_v7  ;;  %1447 = vmatmul.bf16.gmra.mxu0 %v1607_v8  ;;  %v2147_v7 = vld [vmem:[%s3120_s0 + $0x118] sm:$0xf0] }
  0xd4   :  { %v1154_v17 = vpop.f32.mrf.mxu2 }
  0xd5   :  { %v1155_v14 = vadd.f32 %v1154_v17, %v1106_v12  ;;  %v1667_v17 = vor.u32 %v2141_v63, %v1664_v0 }
  0xd6   :  { %v1203_v22 = vpop.f32.mrf.mxu3  ;;  %v1107_v23 = vpop.f32.mrf.mxu1 }
  0xd7   :  { %v1204_v24 = vadd.f32 %v1203_v22, %v1155_v14  ;;  %v1108_v25 = vadd.f32 %v1107_v23, %v1059_v21  ;;  %v1671_v21 = vor.u32 %v2146_v2, %v1670_v59  ;;  %v1675_v22 = vor.u32 %v2142_v3, %v1672_v4 }
  0xd8   :  { %v1254_v26 = vpop.f32.mrf.mxu0  ;;  %v1679_v23 = vor.u32 %v2147_v7, %v1678_v5  ;;  %v2159_v5 = vld [vmem:[%s3120_s0 + $0x17c] sm:$0xf] }
  0xd9   :  { %v2856_v29 = vadd.f32 %v1252_v13, %v1204_v24 }
  0xdc   :  { %v1156_v37 = vpop.f32.mrf.mxu2 }
  0xdd   :  { %v1157_v39 = vadd.f32 %v1156_v37, %v1108_v25  ;;  %v2150_v37 = vld [vmem:[%s3120_s0 + $0x134] sm:$0xf] }
  0xde   :  { %v1205_v40 = vpop.f32.mrf.mxu3  ;;  %v1110_v43 = vpop.f32.mrf.mxu1 }
  0xdf   :  { %v1206_v46 = vadd.f32 %v1205_v40, %v1157_v39  ;;  %v1111_v47 = vadd.f32 %v1110_v43, %v1062_v38  ;;  %v1700_v38 = vld [vmem:[%s3120_s0 + $0x154] sm:$0xf0]  ;;  %v2151_v40 = vld [vmem:[%s3120_s0 + $0x13c] sm:$0xf]  ;;  %v2156_v43 = vld [vmem:[%s3120_s0 + $0x160] sm:$0xf0] }
  0xe0   :  { %v1257_v48 = vpop.f32.mrf.mxu0 }
  0xe1   :  { %1305 = vmatmul.bf16.gmra.mxu1 %v1631_v41  ;;  %1354 = vmatmul.bf16.gmra.mxu2 %v1635_v42  ;;  %v2878_v49 = vadd.f32 %v1254_v26, %v1206_v46  ;;  %v1708_v41 = vld [vmem:[%s3120_s0 + $0x15c] sm:$0xf0] }
  0xe2   :  { %v1714_v42 = vld [vmem:[%s3120_s0 + $0x140] sm:$0xf] }
  0xe3   :  { %1403 = vmatmul.bf16.gmra.mxu3 %v1639_v44  ;;  %1452 = vmatmul.bf16.gmra.mxu0 %v1643_v45 }
  0xe4   :  { %v1159_v51 = vpop.f32.mrf.mxu2 }
  0xe5   :  { %v1160_v53 = vadd.f32 %v1159_v51, %v1111_v47  ;;  %v1703_v47 = vor.u32 %v2150_v37, %v1700_v38 }
  0xe6   :  { %v1208_v55 = vpop.f32.mrf.mxu3  ;;  %v1112_v57 = vpop.f32.mrf.mxu1 }
  0xe7   :  { %v1209_v60 = vadd.f32 %v1208_v55, %v1160_v53  ;;  %v1113_v61 = vadd.f32 %v1112_v57, %v1064_v50  ;;  %v1711_v50 = vor.u32 %v2151_v40, %v1708_v41  ;;  %v1715_v53 = vor.u32 %v2156_v43, %v1714_v42  ;;  %v2168_v40 = vld [vmem:[%s3120_s0 + $0x1c4] sm:$0xf]  ;;  %v1778_v42 = vld [vmem:[%s3120_s0 + $0x1c8] sm:$0xf]  ;;  %v2173_v43 = vld [vmem:[%s3120_s0 + $0x1e8] sm:$0xf0] }
  0xe8   :  { %v1259_v62 = vpop.f32.mrf.mxu0 }
  0xe9   :  { %v2888_v1 = vadd.f32 %v1257_v48, %v1209_v60  ;;  %v1707_v48 = vor.u32 %v2155_v19, %v1706_v54 }
  0xec   :  { %v1161_v8 = vpop.f32.mrf.mxu2 }
  0xed   :  { %v1162_v12 = vadd.f32 %v1161_v8, %v1113_v61  ;;  %v1742_v8 = vld [vmem:[%s3120_s0 + $0x180] sm:$0xf] }
  0xee   :  { %v1210_v13 = vpop.f32.mrf.mxu3  ;;  %v1115_v14 = vpop.f32.mrf.mxu1 }
  0xef   :  { %v1211_v24 = vadd.f32 %v1210_v13, %v1162_v12  ;;  %v1116_v25 = vadd.f32 %v1115_v14, %v1067_v9  ;;  %v2164_v9 = vld [vmem:[%s3120_s0 + $0x1a0] sm:$0xf0]  ;;  %v1744_v12 = vld [vmem:[%s3120_s0 + $0x1a4] sm:$0xf0] }
  0xf0   :  { %v1262_v26 = vpop.f32.mrf.mxu0  ;;  %v1750_v13 = vld [vmem:[%s3120_s0 + $0x188] sm:$0xf] }
  0xf1   :  { %1310 = vmatmul.bf16.gmra.mxu1 %v1667_v17  ;;  %1359 = vmatmul.bf16.gmra.mxu2 %v1671_v21  ;;  %v2910_v27 = vadd.f32 %v1259_v62, %v1211_v24  ;;  %v2165_v17 = vld [vmem:[%s3120_s0 + $0x1a8] sm:$0xf0]  ;;  %v1743_v24 = vor.u32 %v2164_v9, %v1742_v8 }
  0xf3   :  { %1408 = vmatmul.bf16.gmra.mxu3 %v1675_v22  ;;  %1457 = vmatmul.bf16.gmra.mxu0 %v1679_v23 }
  0xf4   :  { %v1164_v28 = vpop.f32.mrf.mxu2 }
  0xf5   :  { %v1165_v20 = vadd.f32 %v1164_v28, %v1116_v25  ;;  %v1751_v28 = vor.u32 %v2165_v17, %v1750_v13  ;;  %v1814_v13 = vld [vmem:[%s3120_s0 + $0x210] sm:$0xf]  ;;  %v2182_v17 = vld [vmem:[%s3120_s0 + $0x230] sm:$0xf0] }
  0xf6   :  { %v1213_v30 = vpop.f32.mrf.mxu3  ;;  %v1117_v32 = vpop.f32.mrf.mxu1 }
  0xf7   :  { %v1214_v33 = vadd.f32 %v1213_v30, %v1165_v20  ;;  %v1118_v34 = vadd.f32 %v1117_v32, %v1069_v11 }
  0xf8   :  { %v1264_v36 = vpop.f32.mrf.mxu0 }
  0xf9   :  { %v2920_v39 = vadd.f32 %v1262_v26, %v1214_v33 }
  0xfc   :  { %v1166_v44 = vpop.f32.mrf.mxu2 }
  0xfd   :  { %v1167_v45 = vadd.f32 %v1166_v44, %v1118_v34  ;;  %v1780_v44 = vld [vmem:[%s3120_s0 + $0x1ec] sm:$0xf0] }
  0xfe   :  { %v1215_v46 = vpop.f32.mrf.mxu3  ;;  %v1120_v51 = vpop.f32.mrf.mxu1 }
  0xff   :  { %v1216_v55 = vadd.f32 %v1215_v46, %v1167_v45  ;;  %v1121_v57 = vadd.f32 %v1120_v51, %v2741_v56  ;;  %v1736_v56 = vld [vmem:[%s3120_s0 + $0x19c] sm:$0xf0]  ;;  %v1786_v45 = vld [vmem:[%s3120_s0 + $0x1d0] sm:$0xf]  ;;  %v2174_v46 = vld [vmem:[%s3120_s0 + $0x1f0] sm:$0xf0] }
 0x100   :  { %v1267_v60 = vpop.f32.mrf.mxu0  ;;  %v1739_v23 = vor.u32 %v2159_v5, %v1736_v56 }
 0x101   :  { %1315 = vmatmul.bf16.gmra.mxu1 %v1703_v47  ;;  %1364 = vmatmul.bf16.gmra.mxu2 %v1707_v48  ;;  %v2941_v61 = vadd.f32 %v1264_v36, %v1216_v55 }
 0x103   :  { %1413 = vmatmul.bf16.gmra.mxu3 %v1711_v50  ;;  %1462 = vmatmul.bf16.gmra.mxu0 %v1715_v53  ;;  %v1779_v53 = vor.u32 %v2173_v43, %v1778_v42 }
 0x104   :  { %v1169_v62 = vpop.f32.mrf.mxu2 }
 0x105   :  { %v1170_v63 = vadd.f32 %v1169_v62, %v1121_v57 }
 0x106   :  { %v1218_v0 = vpop.f32.mrf.mxu3  ;;  %v1122_v59 = vpop.f32.mrf.mxu1 }
 0x107   :  { %v1219_v2 = vadd.f32 %v1218_v0, %v1170_v63  ;;  %v1123_v3 = vadd.f32 %v1122_v59, %v2773_v6  ;;  %v2160_v6 = vld [vmem:[%s3120_s0 + $0x184] sm:$0xf] }
 0x108   :  { %v1269_v4 = vpop.f32.mrf.mxu0  ;;  %v1747_v26 = vor.u32 %v2160_v6, %v1744_v12  ;;  %v2177_v6 = vld [vmem:[%s3120_s0 + $0x20c] sm:$0xf] }
 0x109   :  { %v2950_v7 = vadd.f32 %v1267_v60, %v1219_v2  ;;  %v1787_v60 = vor.u32 %v2174_v46, %v1786_v45 }
 0x10c   :  { %v1171_v21 = vpop.f32.mrf.mxu2 }
 0x10d   :  { %v1172_v14 = vadd.f32 %v1171_v21, %v1123_v3  ;;  %v1816_v21 = vld [vmem:[%s3120_s0 + $0x234] sm:$0xf0] }
 0x10e   :  { %v1220_v22 = vpop.f32.mrf.mxu3  ;;  %v1125_v25 = vpop.f32.mrf.mxu1 }
 0x10f   :  { %v1221_v11 = vadd.f32 %v1220_v22, %v1172_v14  ;;  %v1126_v20 = vadd.f32 %v1125_v25, %v2781_v16  ;;  %v1772_v16 = vld [vmem:[%s3120_s0 + $0x1e4] sm:$0xf0]  ;;  %v1822_v14 = vld [vmem:[%s3120_s0 + $0x218] sm:$0xf]  ;;  %v2183_v22 = vld [vmem:[%s3120_s0 + $0x238] sm:$0xf0] }
 0x110   :  { %v1272_v30 = vpop.f32.mrf.mxu0  ;;  %v1775_v50 = vor.u32 %v2168_v40, %v1772_v16 }
 0x111   :  { %1320 = vmatmul.bf16.gmra.mxu1 %v1739_v23  ;;  %1369 = vmatmul.bf16.gmra.mxu2 %v1743_v24  ;;  %v2971_v32 = vadd.f32 %v1269_v4, %v1221_v11 }
 0x113   :  { %1418 = vmatmul.bf16.gmra.mxu3 %v1747_v26  ;;  %1467 = vmatmul.bf16.gmra.mxu0 %v1751_v28  ;;  %v1815_v28 = vor.u32 %v2182_v17, %v1814_v13 }
 0x114   :  { %v1174_v33 = vpop.f32.mrf.mxu2 }
 0x115   :  { %v1175_v34 = vadd.f32 %v1174_v33, %v1126_v20 }
 0x116   :  { %v1223_v36 = vpop.f32.mrf.mxu3  ;;  %v1127_v37 = vpop.f32.mrf.mxu1 }
 0x117   :  { %v1224_v38 = vadd.f32 %v1223_v36, %v1175_v34  ;;  %v1128_v54 = vadd.f32 %v1127_v37, %v2814_v31  ;;  %v2169_v31 = vld [vmem:[%s3120_s0 + $0x1cc] sm:$0xf] }
 0x118   :  { %v1274_v19 = vpop.f32.mrf.mxu0  ;;  %v1783_v57 = vor.u32 %v2169_v31, %v1780_v44 }
 0x119   :  { %v2980_v41 = vadd.f32 %v1272_v30, %v1224_v38  ;;  %v1823_v30 = vor.u32 %v2183_v22, %v1822_v14 }
 0x11c   :  { %v1176_v47 = vpop.f32.mrf.mxu2 }
 0x11d   :  { %v1177_v48 = vadd.f32 %v1176_v47, %v1128_v54 }
 0x11e   :  { %v1225_v51 = vpop.f32.mrf.mxu3  ;;  %v1130_v55 = vpop.f32.mrf.mxu1 }
 0x11f   :  { %v1226_v62 = vadd.f32 %v1225_v51, %v1177_v48  ;;  %v1131_v63 = vadd.f32 %v1130_v55, %v2744_v58  ;;  %v1808_v58 = vld [vmem:[%s3120_s0 + $0x22c] sm:$0xf0] }
 0x120   :  { %v1277_v0 = vpop.f32.mrf.mxu0  ;;  %v1811_v26 = vor.u32 %v2177_v6, %v1808_v58 }
 0x121   :  { %1325 = vmatmul.bf16.gmra.mxu1 %v1775_v50  ;;  %1374 = vmatmul.bf16.gmra.mxu2 %v1779_v53  ;;  %v3001_v59 = vadd.f32 %v1274_v19, %v1226_v62 }
 0x123   :  { %1423 = vmatmul.bf16.gmra.mxu3 %v1783_v57  ;;  %1472 = vmatmul.bf16.gmra.mxu0 %v1787_v60 }
 0x124   :  { %v1179_v2 = vpop.f32.mrf.mxu2 }
 0x125   :  { %v1180_v3 = vadd.f32 %v1179_v2, %v1131_v63 }
 0x126   :  { %v1228_v4 = vpop.f32.mrf.mxu3  ;;  %v1132_v5 = vpop.f32.mrf.mxu1 }
 0x127   :  { %v1229_v56 = vadd.f32 %v1228_v4, %v1180_v3  ;;  %v1133_v8 = vadd.f32 %v1132_v5, %v2776_v10  ;;  %v2178_v10 = vld [vmem:[%s3120_s0 + $0x214] sm:$0xf] }
 0x128   :  { %v1279_v9 = vpop.f32.mrf.mxu0  ;;  %v1819_v20 = vor.u32 %v2178_v10, %v1816_v21 }
 0x129   :  { %v3010_v12 = vadd.f32 %v1277_v0, %v1229_v56 }
 0x12c   :  { %v1181_v23 = vpop.f32.mrf.mxu2 }
 0x12d   :  { %v1182_v24 = vadd.f32 %v1181_v23, %v1133_v8 }
 0x12e   :  { %v1230_v25 = vpop.f32.mrf.mxu3  ;;  %v1135_v11 = vpop.f32.mrf.mxu1 }
 0x12f   :  { %v1231_v33 = vadd.f32 %v1230_v25, %v1182_v24  ;;  %v1136_v34 = vadd.f32 %v1135_v11, %v2784_v18 }
 0x130   :  { %v1282_v36 = vpop.f32.mrf.mxu0 }
 0x131   :  { %1330 = vmatmul.bf16.gmra.mxu1 %v1811_v26  ;;  %1379 = vmatmul.bf16.gmra.mxu2 %v1815_v28  ;;  %v3031_v37 = vadd.f32 %v1279_v9, %v1231_v33 }
 0x133   :  { %1428 = vmatmul.bf16.gmra.mxu3 %v1819_v20  ;;  %1477 = vmatmul.bf16.gmra.mxu0 %v1823_v30 }
 0x134   :  { %v1184_v38 = vpop.f32.mrf.mxu2 }
 0x135   :  { %v1185_v54 = vadd.f32 %v1184_v38, %v1136_v34 }
 0x136   :  { %v1233_v19 = vpop.f32.mrf.mxu3  ;;  %v1137_v40 = vpop.f32.mrf.mxu1 }
 0x137   :  { %v1234_v16 = vadd.f32 %v1233_v19, %v1185_v54  ;;  %v1138_v42 = vadd.f32 %v1137_v40, %v2817_v35 }
 0x138   :  { %v1284_v43 = vpop.f32.mrf.mxu0 }
 0x139   :  { %v3034_v31 = vadd.f32 %v1282_v36, %v1234_v16 }
 0x13c   :  { %v1186_v44 = vpop.f32.mrf.mxu2 }
 0x13d   :  { %v1187_v45 = vadd.f32 %v1186_v44, %v1138_v42 }
 0x13e   :  { %v1235_v18 = vpop.f32.mrf.mxu3  ;;  %v1296_v46 = vpop.f32.mrf.mxu1 }
 0x13f   :  { %v1236_v47 = vadd.f32 %v1235_v18, %v1187_v45  ;;  %v1297_v50 = vadd.f32 %v1296_v46, %v2826_v52 }
 0x140   :  { %v1443_v48 = vpop.f32.mrf.mxu0 }
 0x141   :  { %v3036_v51 = vadd.f32 %v1284_v43, %v1236_v47 }
 0x144   :  { %v1345_v53 = vpop.f32.mrf.mxu2 }
 0x145   :  { %v1346_v55 = vadd.f32 %v1345_v53, %v1297_v50 }
 0x146   :  { %v1394_v57 = vpop.f32.mrf.mxu3  ;;  %v1298_v60 = vpop.f32.mrf.mxu1 }
 0x147   :  { %v1395_v62 = vadd.f32 %v1394_v57, %v1346_v55  ;;  %v1299_v2 = vadd.f32 %v1298_v60, %v2847_v15 }
 0x148   :  { %v1445_v63 = vpop.f32.mrf.mxu0 }
 0x149   :  { %v1444_v35 = vadd.f32 %v1443_v48, %v1395_v62 }
 0x14b   :  { %v1483_v0 = vmax.f32 %v1444_v35, 0.0 }
 0x14c   :  { %v1347_v3 = vpop.f32.mrf.mxu2 }
 0x14d   :  { %v1499_v4 = vmin.f32 %v1483_v0, 1.0  ;;  %v1348_v5 = vadd.f32 %v1347_v3, %v1299_v2 }
 0x14e   :  { %v1396_v56 = vpop.f32.mrf.mxu3  ;;  %v1301_v8 = vpop.f32.mrf.mxu1 }
 0x14f   :  { %1516 = vst.msk [vmem:[%s3121_s3] sm:$0xff] %vm1515_vm0, %v1499_v4  ;;  %v1397_v52 = vadd.f32 %v1396_v56, %v1348_v5  ;;  %v1302_v13 = vadd.f32 %v1301_v8, %v2856_v29 }
 0x150   :  { %v1448_v9 = vpop.f32.mrf.mxu0 }
 0x151   :  { %v1446_v6 = vadd.f32 %v1445_v63, %v1397_v52 }
 0x153   :  { %v1484_v58 = vmax.f32 %v1446_v6, 0.0 }
 0x154   :  { %v1350_v17 = vpop.f32.mrf.mxu2 }
 0x155   :  { %v1500_v10 = vmin.f32 %v1484_v58, 1.0  ;;  %v1351_v15 = vadd.f32 %v1350_v17, %v1302_v13 }
 0x156   :  { %v1399_v21 = vpop.f32.mrf.mxu3  ;;  %v1303_v14 = vpop.f32.mrf.mxu1 }
 0x157   :  { %1517 = vst.msk [vmem:[%s3121_s3 + $0x8] sm:$0xff] %vm1515_vm0, %v1500_v10  ;;  %v1400_v22 = vadd.f32 %v1399_v21, %v1351_v15  ;;  %v1304_v26 = vadd.f32 %v1303_v14, %v2878_v49 }
 0x158   :  { %v1450_v23 = vpop.f32.mrf.mxu0 }
 0x159   :  { %v1449_v24 = vadd.f32 %v1448_v9, %v1400_v22 }
 0x15b   :  { %v1485_v25 = vmax.f32 %v1449_v24, 0.0 }
 0x15c   :  { %v1352_v28 = vpop.f32.mrf.mxu2 }
 0x15d   :  { %v1501_v11 = vmin.f32 %v1485_v25, 1.0  ;;  %v1353_v20 = vadd.f32 %v1352_v28, %v1304_v26 }
 0x15e   :  { %v1401_v29 = vpop.f32.mrf.mxu3  ;;  %v1306_v30 = vpop.f32.mrf.mxu1 }
 0x15f   :  { %1518 = vst.msk [vmem:[%s3121_s3 + $0x10] sm:$0xff] %vm1515_vm0, %v1501_v11  ;;  %v1402_v33 = vadd.f32 %v1401_v29, %v1353_v20  ;;  %v1307_v54 = vadd.f32 %v1306_v30, %v2888_v1 }
 0x160   :  { %v1453_v34 = vpop.f32.mrf.mxu0 }
 0x161   :  { %v1451_v36 = vadd.f32 %v1450_v23, %v1402_v33 }
 0x163   :  { %v1486_v38 = vmax.f32 %v1451_v36, 0.0 }
 0x164   :  { %v1355_v19 = vpop.f32.mrf.mxu2 }
 0x165   :  { %v1502_v40 = vmin.f32 %v1486_v38, 1.0  ;;  %v1356_v16 = vadd.f32 %v1355_v19, %v1307_v54 }
 0x166   :  { %v1404_v49 = vpop.f32.mrf.mxu3  ;;  %v1308_v42 = vpop.f32.mrf.mxu1 }
 0x167   :  { %1519 = vst.msk [vmem:[%s3121_s3 + $0x18] sm:$0xff] %vm1515_vm0, %v1502_v40  ;;  %v1405_v43 = vadd.f32 %v1404_v49, %v1356_v16  ;;  %v1309_v46 = vadd.f32 %v1308_v42, %v2910_v27 }
 0x168   :  { %v1455_v44 = vpop.f32.mrf.mxu0 }
 0x169   :  { %v1454_v45 = vadd.f32 %v1453_v34, %v1405_v43 }
 0x16b   :  { %v1487_v18 = vmax.f32 %v1454_v45, 0.0 }
 0x16c   :  { %v1357_v47 = vpop.f32.mrf.mxu2 }
 0x16d   :  { %v1503_v48 = vmin.f32 %v1487_v18, 1.0  ;;  %v1358_v50 = vadd.f32 %v1357_v47, %v1309_v46 }
 0x16e   :  { %v1406_v1 = vpop.f32.mrf.mxu3  ;;  %v1311_v53 = vpop.f32.mrf.mxu1 }
 0x16f   :  { %1520 = vst.msk [vmem:[%s3121_s3 + $0x20] sm:$0xff] %vm1515_vm0, %v1503_v48  ;;  %v1407_v55 = vadd.f32 %v1406_v1, %v1358_v50  ;;  %v1312_v63 = vadd.f32 %v1311_v53, %v2920_v39 }
 0x170   :  { %v1458_v57 = vpop.f32.mrf.mxu0 }
 0x171   :  { %v1456_v60 = vadd.f32 %v1455_v44, %v1407_v55 }
 0x173   :  { %v1488_v62 = vmax.f32 %v1456_v60, 0.0 }
 0x174   :  { %v1360_v35 = vpop.f32.mrf.mxu2 }
 0x175   :  { %v1504_v0 = vmin.f32 %v1488_v62, 1.0  ;;  %v1361_v2 = vadd.f32 %v1360_v35, %v1312_v63 }
 0x176   :  { %v1409_v27 = vpop.f32.mrf.mxu3  ;;  %v1313_v3 = vpop.f32.mrf.mxu1 }
 0x177   :  { %1521 = vst.msk [vmem:[%s3121_s3 + $0x28] sm:$0xff] %vm1515_vm0, %v1504_v0  ;;  %v1410_v4 = vadd.f32 %v1409_v27, %v1361_v2  ;;  %v1314_v52 = vadd.f32 %v1313_v3, %v2941_v61 }
 0x178   :  { %v1460_v5 = vpop.f32.mrf.mxu0 }
 0x179   :  { %v1459_v56 = vadd.f32 %v1458_v57, %v1410_v4 }
 0x17b   :  { %v1489_v8 = vmax.f32 %v1459_v56, 0.0 }
 0x17c   :  { %v1362_v9 = vpop.f32.mrf.mxu2 }
 0x17d   :  { %v1505_v6 = vmin.f32 %v1489_v8, 1.0  ;;  %v1363_v58 = vadd.f32 %v1362_v9, %v1314_v52 }
 0x17e   :  { %v1411_v39 = vpop.f32.mrf.mxu3  ;;  %v1316_v13 = vpop.f32.mrf.mxu1 }
 0x17f   :  { %1522 = vst.msk [vmem:[%s3121_s3 + $0x30] sm:$0xff] %vm1515_vm0, %v1505_v6  ;;  %v1412_v17 = vadd.f32 %v1411_v39, %v1363_v58  ;;  %v1317_v14 = vadd.f32 %v1316_v13, %v2950_v7 }
 0x180   :  { %v1463_v10 = vpop.f32.mrf.mxu0 }
 0x181   :  { %v1461_v15 = vadd.f32 %v1460_v5, %v1412_v17 }
 0x183   :  { %v1490_v21 = vmax.f32 %v1461_v15, 0.0 }
 0x184   :  { %v1365_v22 = vpop.f32.mrf.mxu2 }
 0x185   :  { %v1506_v23 = vmin.f32 %v1490_v21, 1.0  ;;  %v1366_v24 = vadd.f32 %v1365_v22, %v1317_v14 }
 0x186   :  { %v1414_v61 = vpop.f32.mrf.mxu3  ;;  %v1318_v25 = vpop.f32.mrf.mxu1 }
 0x187   :  { %1523 = vst.msk [vmem:[%s3121_s3 + $0x38] sm:$0xff] %vm1515_vm0, %v1506_v23  ;;  %v1415_v26 = vadd.f32 %v1414_v61, %v1366_v24  ;;  %v1319_v29 = vadd.f32 %v1318_v25, %v2971_v32 }
 0x188   :  { %v1465_v28 = vpop.f32.mrf.mxu0 }
 0x189   :  { %v1464_v11 = vadd.f32 %v1463_v10, %v1415_v26 }
 0x18b   :  { %v1491_v20 = vmax.f32 %v1464_v11, 0.0 }
 0x18c   :  { %v1367_v30 = vpop.f32.mrf.mxu2 }
 0x18d   :  { %v1507_v33 = vmin.f32 %v1491_v20, 1.0  ;;  %v1368_v34 = vadd.f32 %v1367_v30, %v1319_v29 }
 0x18e   :  { %v1416_v7 = vpop.f32.mrf.mxu3  ;;  %v1321_v36 = vpop.f32.mrf.mxu1 }
 0x18f   :  { %1524 = vst.msk [vmem:[%s3121_s3 + $0x40] sm:$0xff] %vm1515_vm0, %v1507_v33  ;;  %v1417_v38 = vadd.f32 %v1416_v7, %v1368_v34  ;;  %v1322_v16 = vadd.f32 %v1321_v36, %v2980_v41 }
 0x190   :  { %v1468_v54 = vpop.f32.mrf.mxu0 }
 0x191   :  { %v1466_v19 = vadd.f32 %v1465_v28, %v1417_v38 }
 0x193   :  { %v1492_v40 = vmax.f32 %v1466_v19, 0.0 }
 0x194   :  { %v1370_v49 = vpop.f32.mrf.mxu2 }
 0x195   :  { %v1508_v42 = vmin.f32 %v1492_v40, 1.0  ;;  %v1371_v43 = vadd.f32 %v1370_v49, %v1322_v16 }
 0x196   :  { %v1419_v32 = vpop.f32.mrf.mxu3  ;;  %v1323_v44 = vpop.f32.mrf.mxu1 }
 0x197   :  { %1525 = vst.msk [vmem:[%s3121_s3 + $0x48] sm:$0xff] %vm1515_vm0, %v1508_v42  ;;  %v1420_v45 = vadd.f32 %v1419_v32, %v1371_v43  ;;  %v1324_v48 = vadd.f32 %v1323_v44, %v3001_v59 }
 0x198   :  { %v1470_v18 = vpop.f32.mrf.mxu0 }
 0x199   :  { %v1469_v46 = vadd.f32 %v1468_v54, %v1420_v45 }
 0x19b   :  { %v1493_v47 = vmax.f32 %v1469_v46, 0.0 }
 0x19c   :  { %v1372_v50 = vpop.f32.mrf.mxu2 }
 0x19d   :  { %v1509_v1 = vmin.f32 %v1493_v47, 1.0  ;;  %v1373_v53 = vadd.f32 %v1372_v50, %v1324_v48 }
 0x19e   :  { %v1421_v41 = vpop.f32.mrf.mxu3  ;;  %v1326_v55 = vpop.f32.mrf.mxu1 }
 0x19f   :  { %1526 = vst.msk [vmem:[%s3121_s3 + $0x50] sm:$0xff] %vm1515_vm0, %v1509_v1  ;;  %v1422_v57 = vadd.f32 %v1421_v41, %v1373_v53  ;;  %v1327_v35 = vadd.f32 %v1326_v55, %v3010_v12 }
 0x1a0   :  { %v1473_v62 = vpop.f32.mrf.mxu0 }
 0x1a1   :  { %v1471_v60 = vadd.f32 %v1470_v18, %v1422_v57 }
 0x1a3   :  { %v1494_v63 = vmax.f32 %v1471_v60, 0.0 }
 0x1a4   :  { %v1375_v0 = vpop.f32.mrf.mxu2 }
 0x1a5   :  { %v1510_v2 = vmin.f32 %v1494_v63, 1.0  ;;  %v1376_v27 = vadd.f32 %v1375_v0, %v1327_v35 }
 0x1a6   :  { %v1424_v59 = vpop.f32.mrf.mxu3  ;;  %v1328_v3 = vpop.f32.mrf.mxu1 }
 0x1a7   :  { %1527 = vst.msk [vmem:[%s3121_s3 + $0x58] sm:$0xff] %vm1515_vm0, %v1510_v2  ;;  %v1425_v4 = vadd.f32 %v1424_v59, %v1376_v27  ;;  %v1329_v8 = vadd.f32 %v1328_v3, %v3031_v37 }
 0x1a8   :  { %v1475_v52 = vpop.f32.mrf.mxu0 }
 0x1a9   :  { %v1474_v5 = vadd.f32 %v1473_v62, %v1425_v4 }
 0x1ab   :  { %v1495_v56 = vmax.f32 %v1474_v5, 0.0 }
 0x1ac   :  { %v1377_v9 = vpop.f32.mrf.mxu2 }
 0x1ad   :  { %v1511_v6 = vmin.f32 %v1495_v56, 1.0  ;;  %v1378_v58 = vadd.f32 %v1377_v9, %v1329_v8 }
 0x1ae   :  { %v1426_v12 = vpop.f32.mrf.mxu3  ;;  %v1331_v39 = vpop.f32.mrf.mxu1 }
 0x1af   :  { %1528 = vst.msk [vmem:[%s3121_s3 + $0x60] sm:$0xff] %vm1515_vm0, %v1511_v6  ;;  %v1427_v13 = vadd.f32 %v1426_v12, %v1378_v58  ;;  %v1332_v15 = vadd.f32 %v1331_v39, %v3034_v31 }
 0x1b0   :  { %v1478_v23 = vpop.f32.mrf.mxu0 }
 0x1b1   :  { %v1476_v17 = vadd.f32 %v1475_v52, %v1427_v13 }
 0x1b3   :  { %v1496_v10 = vmax.f32 %v1476_v17, 0.0 }
 0x1b4   :  { %v1380_v21 = vpop.f32.mrf.mxu2 }
 0x1b5   :  { %v1512_v14 = vmin.f32 %v1496_v10, 1.0  ;;  %v1381_v22 = vadd.f32 %v1380_v21, %v1332_v15 }
 0x1b6   :  { %v1429_v37 = vpop.f32.mrf.mxu3  ;;  %v1333_v61 = vpop.f32.mrf.mxu1 }
 0x1b7   :  { %1529 = vst.msk [vmem:[%s3121_s3 + $0x68] sm:$0xff] %vm1515_vm0, %v1512_v14  ;;  %v1430_v24 = vadd.f32 %v1429_v37, %v1381_v22  ;;  %v1334_v28 = vadd.f32 %v1333_v61, %v3036_v51 }
 0x1b8   :  { %v1480_v33 = vpop.f32.mrf.mxu0 }
 0x1b9   :  { %v1479_v25 = vadd.f32 %v1478_v23, %v1430_v24 }
 0x1bb   :  { %v1497_v26 = vmax.f32 %v1479_v25, 0.0 }
 0x1bc   :  { %v1382_v11 = vpop.f32.mrf.mxu2 }
 0x1bd   :  { %v1513_v20 = vmin.f32 %v1497_v26, 1.0  ;;  %v1383_v29 = vadd.f32 %v1382_v11, %v1334_v28 }
 0x1be   :  { %v1431_v31 = vpop.f32.mrf.mxu3 }
 0x1bf   :  { %1530 = vst.msk [vmem:[%s3121_s3 + $0x70] sm:$0xff] %vm1515_vm0, %v1513_v20  ;;  %v1432_v30 = vadd.f32 %v1431_v31, %v1383_v29 }
 0x1c1   :  { %v1481_v34 = vadd.f32 %v1480_v33, %v1432_v30 }
 0x1c3   :  { %v1498_v7 = vmax.f32 %v1481_v34, 0.0 }
 0x1c5   :  { %v1514_v36 = vmin.f32 %v1498_v7, 1.0 }
 0x1c7   :  { %1531 = vst.msk [vmem:[%s3121_s3 + $0x78] sm:$0xff] %vm1515_vm0, %v1514_v36 }

// kernel: image_compressor_forward.41
= control target key start
LH: loop header
LB: loop body
LE: loop exit
PB: predicated region body
PF: predicated region fallthrough
CT: control target
= control target key end

     0   :  { %vm1016_vm0 = vcmask 23552   ;;  %s2143_s1 = inlined_call_operand.vmem [shape: bf16[768,3], index: 1, kind: input, shape index: {}]   ;;  %s2144_s2 = inlined_call_operand.vmem [shape: f32[1,3], index: 2, kind: input, shape index: {}]   ;;  %s2145_s0 = inlined_call_operand.vmem [shape: bf16[128,768], index: 0, kind: input, shape index: {}]   ;;  %s2146_s3 = inlined_call_operand.vmem [shape: f32[128,3], index: 3, kind: output, shape index: {}]  }
   0x1   :  { %v1476_v0 = vld [vmem:[%s2143_s1 + $0x38] sm:$0xff]  ;;  %v1475_v2 = vld [vmem:[%s2143_s1 + $0x30] sm:$0xff]  ;;  %v1474_v4 = vld [vmem:[%s2143_s1 + $0x28] sm:$0xff] }
   0x2   :  { %v1484_v1 = vld [vmem:[%s2143_s1 + $0x78] sm:$0xff]  ;;  %1517 = vmatpush.bf16.msra.mxu2 %v1476_v0  ;;  %v1483_v3 = vld [vmem:[%s2143_s1 + $0x70] sm:$0xff]  ;;  %690 = vmatpush.bf16.msra.mxu0 %v1476_v0  ;;  %v1482_v5 = vld [vmem:[%s2143_s1 + $0x68] sm:$0xff] }
   0x3   :  { %1525 = vmatpush.bf16.msra.mxu3 %v1484_v1  ;;  %739 = vmatpush.bf16.msra.mxu1 %v1484_v1  ;;  %v1473_v6 = vld [vmem:[%s2143_s1 + $0x20] sm:$0xff]  ;;  %v1472_v8 = vld [vmem:[%s2143_s1 + $0x18] sm:$0xff]  ;;  %v1471_v10 = vld [vmem:[%s2143_s1 + $0x10] sm:$0xff] }
   0x4   :  { %v1481_v7 = vld [vmem:[%s2143_s1 + $0x60] sm:$0xff]  ;;  %v1480_v9 = vld [vmem:[%s2143_s1 + $0x58] sm:$0xff]  ;;  %v1479_v11 = vld [vmem:[%s2143_s1 + $0x50] sm:$0xff] }
   0x5   :  { %v1470_v12 = vld [vmem:[%s2143_s1 + $0x8] sm:$0xff]  ;;  %v1469_v14 = vld [vmem:[%s2143_s1] sm:$0xff]  ;;  %v1448_v17 = vld [vmem:[%s2145_s0 + $0xd4] sm:$0xf0] }
   0x6   :  { %1518 = vmatpush.bf16.msra.mxu2 %v1475_v2  ;;  %691 = vmatpush.bf16.msra.mxu0 %v1475_v2  ;;  %v1478_v13 = vld [vmem:[%s2143_s1 + $0x48] sm:$0xff]  ;;  %v1477_v15 = vld [vmem:[%s2143_s1 + $0x40] sm:$0xff]  ;;  %v1137_v19 = vld [vmem:[%s2145_s0 + $0xd8] sm:$0xf0] }
   0x7   :  { %1526 = vmatpush.bf16.msra.mxu3 %v1483_v3  ;;  %740 = vmatpush.bf16.msra.mxu1 %v1483_v3  ;;  %v1135_v16 = vld [vmem:[%s2145_s0 + $0xc0] sm:$0xf]  ;;  %v1445_v18 = vld [vmem:[%s2145_s0 + $0xc4] sm:$0xf]  ;;  %v1492_v20 = vld [vmem:[%s2143_s1 + $0xb8] sm:$0xff] }
   0x8   :  { %v1039_v21 = vld [vmem:[%s2145_s0] sm:$0xf]  ;;  %v1424_v22 = vld [vmem:[%s2145_s0 + $0x14] sm:$0xf0]  ;;  %v1421_v24 = vld [vmem:[%s2145_s0 + $0x4] sm:$0xf]  ;;  %v1136_v26 = vor.u32 %v1448_v17, %v1135_v16  ;;  %v1140_v27 = vor.u32 %v1445_v18, %v1137_v19 }
   0x9   :  { %v1500_v23 = vld [vmem:[%s2143_s1 + $0xf8] sm:$0xff]  ;;  %v1040_v28 = vor.u32 %v1424_v22, %v1039_v21  ;;  %v1491_v31 = vld [vmem:[%s2143_s1 + $0xb0] sm:$0xff]  ;;  %v1490_v35 = vld [vmem:[%s2143_s1 + $0xa8] sm:$0xff] }
   0xa   :  { %1519 = vmatpush.bf16.msra.mxu2 %v1474_v4  ;;  %692 = vmatpush.bf16.msra.mxu0 %v1474_v4  ;;  %v1041_v25 = vld [vmem:[%s2145_s0 + $0x18] sm:$0xf0]  ;;  %v1499_v32 = vld [vmem:[%s2143_s1 + $0xf0] sm:$0xff]  ;;  %v1498_v36 = vld [vmem:[%s2143_s1 + $0xe8] sm:$0xff] }
   0xb   :  { %1527 = vmatpush.bf16.msra.mxu3 %v1482_v5  ;;  %741 = vmatpush.bf16.msra.mxu1 %v1482_v5  ;;  %v1516_v29 = vld [vmem:[%s2143_s1 + $0x178] sm:$0xff]  ;;  %v1044_v30 = vor.u32 %v1421_v24, %v1041_v25  ;;  %v1515_v34 = vld [vmem:[%s2143_s1 + $0x170] sm:$0xff]  ;;  %v1514_v38 = vld [vmem:[%s2143_s1 + $0x168] sm:$0xff] }
   0xc   :  { %v1508_v33 = vld [vmem:[%s2143_s1 + $0x138] sm:$0xff]  ;;  %v1507_v37 = vld [vmem:[%s2143_s1 + $0x130] sm:$0xff]  ;;  %v1489_v39 = vld [vmem:[%s2143_s1 + $0xa0] sm:$0xff] }
   0xd   :  { %v1497_v40 = vld [vmem:[%s2143_s1 + $0xe0] sm:$0xff]  ;;  %v1506_v41 = vld [vmem:[%s2143_s1 + $0x128] sm:$0xff]  ;;  %v1159_v42 = vld [vmem:[%s2145_s0 + $0xf0] sm:$0xf] }
   0xe   :  { %1520 = vmatpush.bf16.msra.mxu2 %v1473_v6  ;;  %693 = vmatpush.bf16.msra.mxu0 %v1473_v6  ;;  %v1454_v43 = vld [vmem:[%s2145_s0 + $0x104] sm:$0xf0]  ;;  %v1451_v44 = vld [vmem:[%s2145_s0 + $0xf4] sm:$0xf]  ;;  %v1161_v45 = vld [vmem:[%s2145_s0 + $0x108] sm:$0xf0] }
   0xf   :  { %1528 = vmatpush.bf16.msra.mxu3 %v1481_v7  ;;  %742 = vmatpush.bf16.msra.mxu1 %v1481_v7  ;;  %v1063_v46 = vld [vmem:[%s2145_s0 + $0x30] sm:$0xf]  ;;  %v1513_v47 = vld [vmem:[%s2143_s1 + $0x160] sm:$0xff]  ;;  %v1430_v48 = vld [vmem:[%s2145_s0 + $0x44] sm:$0xf0]  ;;  %v1160_v54 = vor.u32 %v1454_v43, %v1159_v42  ;;  %v1164_v55 = vor.u32 %v1451_v44, %v1161_v45 }
  0x10   :  { %v1427_v49 = vld [vmem:[%s2145_s0 + $0x34] sm:$0xf]  ;;  %v1488_v50 = vld [vmem:[%s2143_s1 + $0x98] sm:$0xff]  ;;  %v1065_v51 = vld [vmem:[%s2145_s0 + $0x48] sm:$0xf0]  ;;  %v1064_v56 = vor.u32 %v1430_v48, %v1063_v46 }
  0x11   :  { %v1496_v52 = vld [vmem:[%s2143_s1 + $0xd8] sm:$0xff]  ;;  %v1505_v53 = vld [vmem:[%s2143_s1 + $0x120] sm:$0xff]  ;;  %v1068_v58 = vor.u32 %v1427_v49, %v1065_v51  ;;  %v1487_v59 = vld [vmem:[%s2143_s1 + $0x90] sm:$0xff] }
  0x12   :  { %1521 = vmatpush.bf16.msra.mxu2 %v1472_v8  ;;  %694 = vmatpush.bf16.msra.mxu0 %v1472_v8  ;;  %v1512_v57 = vld [vmem:[%s2143_s1 + $0x158] sm:$0xff]  ;;  %v1495_v60 = vld [vmem:[%s2143_s1 + $0xd0] sm:$0xff]  ;;  %v1486_v62 = vld [vmem:[%s2143_s1 + $0x88] sm:$0xff] }
  0x13   :  { %1529 = vmatpush.bf16.msra.mxu3 %v1480_v9  ;;  %743 = vmatpush.bf16.msra.mxu1 %v1480_v9  ;;  %v1504_v61 = vld [vmem:[%s2143_s1 + $0x118] sm:$0xff]  ;;  %v1511_v63 = vld [vmem:[%s2143_s1 + $0x150] sm:$0xff]  ;;  %v1494_v0 = vld [vmem:[%s2143_s1 + $0xc8] sm:$0xff] }
  0x14   :  { %v1503_v1 = vld [vmem:[%s2143_s1 + $0x110] sm:$0xff]  ;;  %v1510_v2 = vld [vmem:[%s2143_s1 + $0x148] sm:$0xff]  ;;  %v1485_v3 = vld [vmem:[%s2143_s1 + $0x80] sm:$0xff] }
  0x15   :  { %v1493_v4 = vld [vmem:[%s2143_s1 + $0xc0] sm:$0xff]  ;;  %v1502_v5 = vld [vmem:[%s2143_s1 + $0x108] sm:$0xff]  ;;  %v1460_v7 = vld [vmem:[%s2145_s0 + $0x134] sm:$0xf0] }
  0x16   :  { %1522 = vmatpush.bf16.msra.mxu2 %v1471_v10  ;;  %695 = vmatpush.bf16.msra.mxu0 %v1471_v10  ;;  %v1183_v6 = vld [vmem:[%s2145_s0 + $0x120] sm:$0xf]  ;;  %v1457_v8 = vld [vmem:[%s2145_s0 + $0x124] sm:$0xf]  ;;  %v1185_v9 = vld [vmem:[%s2145_s0 + $0x138] sm:$0xf0] }
  0x17   :  { %1530 = vmatpush.bf16.msra.mxu3 %v1479_v11  ;;  %744 = vmatpush.bf16.msra.mxu1 %v1479_v11  ;;  %v1087_v10 = vld [vmem:[%s2145_s0 + $0x60] sm:$0xf]  ;;  %v1436_v11 = vld [vmem:[%s2145_s0 + $0x74] sm:$0xf0]  ;;  %v1188_v16 = vor.u32 %v1457_v8, %v1185_v9  ;;  %v1466_v21 = vld [vmem:[%s2145_s0 + $0x164] sm:$0xf0] }
  0x18   :  { %v1088_v17 = vor.u32 %v1436_v11, %v1087_v10  ;;  %v1509_v19 = vld [vmem:[%s2143_s1 + $0x140] sm:$0xff]  ;;  %v1463_v22 = vld [vmem:[%s2145_s0 + $0x154] sm:$0xf]  ;;  %v1111_v24 = vld [vmem:[%s2145_s0 + $0x90] sm:$0xf] }
  0x19   :  { %v1442_v25 = vld [vmem:[%s2145_s0 + $0xa4] sm:$0xf0]  ;;  %v1071_v44 = vld [vmem:[%s2145_s0 + $0x38] sm:$0xf]  ;;  %v1431_v45 = vld [vmem:[%s2145_s0 + $0x4c] sm:$0xf0] }
  0x1a   :  { %1523 = vmatpush.bf16.msra.mxu2 %v1470_v12  ;;  %696 = vmatpush.bf16.msra.mxu0 %v1470_v12  ;;  %v1433_v12 = vld [vmem:[%s2145_s0 + $0x64] sm:$0xf]  ;;  %v1428_v46 = vld [vmem:[%s2145_s0 + $0x3c] sm:$0xf]  ;;  %v1079_v48 = vld [vmem:[%s2145_s0 + $0x40] sm:$0xf] }
  0x1b   :  { %1531 = vmatpush.bf16.msra.mxu3 %v1478_v13  ;;  %745 = vmatpush.bf16.msra.mxu1 %v1478_v13  ;;  %v1089_v13 = vld [vmem:[%s2145_s0 + $0x78] sm:$0xf0]  ;;  %v1432_v49 = vld [vmem:[%s2145_s0 + $0x54] sm:$0xf0]  ;;  %v1127_v8 = vld [vmem:[%s2145_s0 + $0xa0] sm:$0xf] }
  0x1c   :  { %v1092_v18 = vor.u32 %v1433_v12, %v1089_v13  ;;  %v1081_v51 = vld [vmem:[%s2145_s0 + $0x58] sm:$0xf0]  ;;  %v1444_v9 = vld [vmem:[%s2145_s0 + $0xb4] sm:$0xf0]  ;;  %v1441_v10 = vld [vmem:[%s2145_s0 + $0xa4] sm:$0xf] }
  0x1d   :  { %v1129_v11 = vld [vmem:[%s2145_s0 + $0xb8] sm:$0xf0] }
  0x1e   :  { %1524 = vmatpush.bf16.msra.mxu2 %v1469_v14  ;;  %697 = vmatpush.bf16.msra.mxu0 %v1469_v14  ;;  %v1501_v14 = vld [vmem:[%s2143_s1 + $0x100] sm:$0xff] }
  0x1f   :  { %1532 = vmatpush.bf16.msra.mxu3 %v1477_v15  ;;  %746 = vmatpush.bf16.msra.mxu1 %v1477_v15  ;;  %v1184_v15 = vor.u32 %v1460_v7, %v1183_v6  ;;  %v1440_v6 = vld [vmem:[%s2145_s0 + $0x9c] sm:$0xf]  ;;  %v1121_v7 = vld [vmem:[%s2145_s0 + $0xb0] sm:$0xf0] }
  0x20   :  { %v1124_v13 = vor.u32 %v1440_v6, %v1121_v7  ;;  %v1201_v6 = vld [vmem:[%s2145_s0 + $0x148] sm:$0xf0] }
  0x21   :  { %718 = vmatmul.bf16.vlgmr.msra.gmra.mxu2 %v1136_v26  ;;  %698 = vmatmul.bf16.vlgmr.msra.gmra.mxu0 %v1040_v28  ;;  %v1439_v26 = vld [vmem:[%s2145_s0 + $0x94] sm:$0xf] }
  0x22   :  { %788 = vmatpush.bf16.msrb.mxu2 %v1492_v20  ;;  %767 = vmatmul.bf16.vlgmr.msra.gmra.mxu3 %v1140_v27  ;;  %v1207_v20 = vld [vmem:[%s2145_s0 + $0x150] sm:$0xf]  ;;  %v1113_v27 = vld [vmem:[%s2145_s0 + $0xa8] sm:$0xf0] }
  0x23   :  { %837 = vmatpush.bf16.msrb.mxu3 %v1500_v23  ;;  %935 = vmatpush.bf16.msrb.mxu1 %v1516_v29  ;;  %v1209_v23 = vld [vmem:[%s2145_s0 + $0x168] sm:$0xf0]  ;;  %v1208_v28 = vor.u32 %v1466_v21, %v1207_v20  ;;  %v1151_v20 = vld [vmem:[%s2145_s0 + $0xd0] sm:$0xf]  ;;  %v1450_v21 = vld [vmem:[%s2145_s0 + $0xe4] sm:$0xf0] }
  0x24   :  { %747 = vmatmul.bf16.vlgmr.msra.gmra.mxu1 %v1044_v30  ;;  %886 = vmatpush.bf16.msrb.mxu0 %v1508_v33  ;;  %v1212_v29 = vor.u32 %v1463_v22, %v1209_v23  ;;  %v1112_v30 = vor.u32 %v1442_v25, %v1111_v24  ;;  %v1425_v33 = vld [vmem:[%s2145_s0 + $0x1c] sm:$0xf0]  ;;  %v1447_v22 = vld [vmem:[%s2145_s0 + $0xd4] sm:$0xf]  ;;  %v1153_v23 = vld [vmem:[%s2145_s0 + $0xe8] sm:$0xf0] }
  0x26   :  { %789 = vmatpush.bf16.msrb.mxu2 %v1491_v31  ;;  %v1116_v31 = vor.u32 %v1439_v26, %v1113_v27  ;;  %v1152_v26 = vor.u32 %v1450_v21, %v1151_v20  ;;  %v1215_v21 = vld [vmem:[%s2145_s0 + $0x158] sm:$0xf] }
  0x27   :  { %838 = vmatpush.bf16.msrb.mxu3 %v1499_v32  ;;  %936 = vmatpush.bf16.msrb.mxu1 %v1515_v34  ;;  %v1047_v32 = vld [vmem:[%s2145_s0 + $0x8] sm:$0xf]  ;;  %v1422_v34 = vld [vmem:[%s2145_s0 + $0xc] sm:$0xf] }
  0x28   :  { %887 = vmatpush.bf16.msrb.mxu0 %v1507_v37  ;;  %v1426_v37 = vld [vmem:[%s2145_s0 + $0x24] sm:$0xf0] }
  0x2a   :  { %790 = vmatpush.bf16.msrb.mxu2 %v1490_v35  ;;  %v1049_v35 = vld [vmem:[%s2145_s0 + $0x20] sm:$0xf0] }
  0x2b   :  { %839 = vmatpush.bf16.msrb.mxu3 %v1498_v36  ;;  %937 = vmatpush.bf16.msrb.mxu1 %v1514_v38  ;;  %v1055_v36 = vld [vmem:[%s2145_s0 + $0x10] sm:$0xf]  ;;  %v1423_v38 = vld [vmem:[%s2145_s0 + $0x14] sm:$0xf] }
  0x2c   :  { %888 = vmatpush.bf16.msrb.mxu0 %v1506_v41  ;;  %v1052_v41 = vor.u32 %v1422_v34, %v1049_v35  ;;  %v1056_v42 = vor.u32 %v1426_v37, %v1055_v36  ;;  %v1167_v37 = vld [vmem:[%s2145_s0 + $0xf8] sm:$0xf] }
  0x2e   :  { %791 = vmatpush.bf16.msrb.mxu2 %v1489_v39  ;;  %v1057_v39 = vld [vmem:[%s2145_s0 + $0x28] sm:$0xf0] }
  0x2f   :  { %840 = vmatpush.bf16.msrb.mxu3 %v1497_v40  ;;  %938 = vmatpush.bf16.msrb.mxu1 %v1513_v47  ;;  %v1048_v40 = vor.u32 %v1425_v33, %v1047_v32  ;;  %v1060_v43 = vor.u32 %v1423_v38, %v1057_v39  ;;  %v1073_v47 = vld [vmem:[%s2145_s0 + $0x50] sm:$0xf0]  ;;  %v1455_v38 = vld [vmem:[%s2145_s0 + $0x10c] sm:$0xf0]  ;;  %v1452_v39 = vld [vmem:[%s2145_s0 + $0xfc] sm:$0xf] }
  0x30   :  { %889 = vmatpush.bf16.msrb.mxu0 %v1505_v53  ;;  %v1076_v53 = vor.u32 %v1428_v46, %v1073_v47  ;;  %v1177_v46 = vld [vmem:[%s2145_s0 + $0x118] sm:$0xf0] }
  0x31   :  { %723 = vmatmul.bf16.gmra.mxu2 %v1160_v54  ;;  %703 = vmatmul.bf16.gmra.mxu0 %v1064_v56  ;;  %v1080_v54 = vor.u32 %v1432_v49, %v1079_v48  ;;  %v1095_v56 = vld [vmem:[%s2145_s0 + $0x68] sm:$0xf]  ;;  %v1168_v48 = vor.u32 %v1455_v38, %v1167_v37 }
  0x32   :  { %792 = vmatpush.bf16.msrb.mxu2 %v1488_v50  ;;  %772 = vmatmul.bf16.gmra.mxu3 %v1164_v55  ;;  %v1429_v50 = vld [vmem:[%s2145_s0 + $0x44] sm:$0xf] }
  0x33   :  { %841 = vmatpush.bf16.msrb.mxu3 %v1496_v52  ;;  %939 = vmatpush.bf16.msrb.mxu1 %v1512_v57  ;;  %v1072_v52 = vor.u32 %v1431_v45, %v1071_v44  ;;  %v1084_v55 = vor.u32 %v1429_v50, %v1081_v51  ;;  %v1437_v57 = vld [vmem:[%s2145_s0 + $0x7c] sm:$0xf0]  ;;  %v1453_v45 = vld [vmem:[%s2145_s0 + $0x104] sm:$0xf] }
  0x34   :  { %752 = vmatmul.bf16.gmra.mxu1 %v1068_v58  ;;  %890 = vmatpush.bf16.msrb.mxu0 %v1504_v61  ;;  %v1434_v58 = vld [vmem:[%s2145_s0 + $0x6c] sm:$0xf]  ;;  %v1438_v61 = vld [vmem:[%s2145_s0 + $0x84] sm:$0xf0] }
  0x36   :  { %793 = vmatpush.bf16.msrb.mxu2 %v1487_v59  ;;  %v1097_v59 = vld [vmem:[%s2145_s0 + $0x80] sm:$0xf0] }
  0x37   :  { %842 = vmatpush.bf16.msrb.mxu3 %v1495_v60  ;;  %940 = vmatpush.bf16.msrb.mxu1 %v1511_v63  ;;  %v1103_v60 = vld [vmem:[%s2145_s0 + $0x70] sm:$0xf]  ;;  %v1105_v63 = vld [vmem:[%s2145_s0 + $0x88] sm:$0xf0] }
  0x38   :  { %891 = vmatpush.bf16.msrb.mxu0 %v1503_v1  ;;  %v1100_v1 = vor.u32 %v1434_v58, %v1097_v59 }
  0x3a   :  { %794 = vmatpush.bf16.msrb.mxu2 %v1486_v62  ;;  %v1435_v62 = vld [vmem:[%s2145_s0 + $0x74] sm:$0xf] }
  0x3b   :  { %843 = vmatpush.bf16.msrb.mxu3 %v1494_v0  ;;  %941 = vmatpush.bf16.msrb.mxu1 %v1510_v2  ;;  %v1096_v0 = vor.u32 %v1437_v57, %v1095_v56  ;;  %v1104_v2 = vor.u32 %v1438_v61, %v1103_v60  ;;  %v1191_v61 = vld [vmem:[%s2145_s0 + $0x128] sm:$0xf] }
  0x3c   :  { %892 = vmatpush.bf16.msrb.mxu0 %v1502_v5  ;;  %v1443_v5 = vld [vmem:[%s2145_s0 + $0xac] sm:$0xf0] }
  0x3e   :  { %795 = vmatpush.bf16.msrb.mxu2 %v1485_v3  ;;  %v1108_v3 = vor.u32 %v1435_v62, %v1105_v63  ;;  %v1461_v62 = vld [vmem:[%s2145_s0 + $0x13c] sm:$0xf0]  ;;  %v1458_v63 = vld [vmem:[%s2145_s0 + $0x12c] sm:$0xf] }
  0x3f   :  { %844 = vmatpush.bf16.msrb.mxu3 %v1493_v4  ;;  %942 = vmatpush.bf16.msrb.mxu1 %v1509_v19  ;;  %v1119_v4 = vld [vmem:[%s2145_s0 + $0x98] sm:$0xf]  ;;  %v1145_v19 = vld [vmem:[%s2145_s0 + $0xe0] sm:$0xf0] }
  0x40   :  { %893 = vmatpush.bf16.msrb.mxu0 %v1501_v14  ;;  %v1120_v12 = vor.u32 %v1443_v5, %v1119_v4  ;;  %v1128_v14 = vor.u32 %v1444_v9, %v1127_v8  ;;  %v1459_v5 = vld [vmem:[%s2145_s0 + $0x134] sm:$0xf]  ;;  %v1192_v8 = vor.u32 %v1461_v62, %v1191_v61 }
  0x41   :  { %728 = vmatmul.bf16.gmra.mxu2 %v1184_v15  ;;  %708 = vmatmul.bf16.gmra.mxu0 %v1088_v17  ;;  %v1132_v15 = vor.u32 %v1441_v10, %v1129_v11  ;;  %v1449_v17 = vld [vmem:[%s2145_s0 + $0xdc] sm:$0xf0] }
  0x42   :  { %777 = vmatmul.bf16.gmra.mxu3 %v1188_v16  ;;  %v1143_v16 = vld [vmem:[%s2145_s0 + $0xc8] sm:$0xf] }
  0x43   :  { %v1144_v24 = vor.u32 %v1449_v17, %v1143_v16 }
  0x44   :  { %757 = vmatmul.bf16.gmra.mxu1 %v1092_v18  ;;  %v1446_v18 = vld [vmem:[%s2145_s0 + $0xcc] sm:$0xf] }
  0x45   :  { %v1148_v25 = vor.u32 %v1446_v18, %v1145_v19 }
  0x51   :  { %733 = vmatmul.bf16.gmra.mxu2 %v1208_v28  ;;  %713 = vmatmul.bf16.gmra.mxu0 %v1112_v30  ;;  %v1156_v28 = vor.u32 %v1447_v22, %v1153_v23  ;;  %v1921_v30 = vld [vmem:[%s2144_s2] ss:$0 sm:$0xff]  ;;  %v1467_v22 = vld [vmem:[%s2145_s0 + $0x16c] sm:$0xf0]  ;;  %v1464_v23 = vld [vmem:[%s2145_s0 + $0x15c] sm:$0xf] }
  0x52   :  { %782 = vmatmul.bf16.gmra.mxu3 %v1212_v29  ;;  %v1216_v38 = vor.u32 %v1467_v22, %v1215_v21 }
  0x54   :  { %762 = vmatmul.bf16.gmra.mxu1 %v1116_v31 }
  0x61   :  { %796 = vmatmul.bf16.vlgmr.msrb.gmra.mxu2 %v1048_v40  ;;  %894 = vmatmul.bf16.vlgmr.msrb.gmra.mxu0 %v1056_v42  ;;  %v1169_v40 = vld [vmem:[%s2145_s0 + $0x110] sm:$0xf0]  ;;  %v1456_v42 = vld [vmem:[%s2145_s0 + $0x114] sm:$0xf0] }
  0x62   :  { %845 = vmatmul.bf16.vlgmr.msrb.gmra.mxu3 %v1052_v41  ;;  %v1175_v41 = vld [vmem:[%s2145_s0 + $0x100] sm:$0xf]  ;;  %v1172_v49 = vor.u32 %v1452_v39, %v1169_v40 }
  0x63   :  { %v1176_v50 = vor.u32 %v1456_v42, %v1175_v41 }
  0x64   :  { %943 = vmatmul.bf16.vlgmr.msrb.gmra.mxu1 %v1060_v43 }
  0x71   :  { %801 = vmatmul.bf16.gmra.mxu2 %v1072_v52  ;;  %899 = vmatmul.bf16.gmra.mxu0 %v1080_v54 }
  0x72   :  { %850 = vmatmul.bf16.gmra.mxu3 %v1076_v53  ;;  %v1180_v53 = vor.u32 %v1453_v45, %v1177_v46 }
  0x74   :  { %948 = vmatmul.bf16.gmra.mxu1 %v1084_v55 }
  0x81   :  { %806 = vmatmul.bf16.gmra.mxu2 %v1096_v0  ;;  %904 = vmatmul.bf16.gmra.mxu0 %v1104_v2  ;;  %v1193_v0 = vld [vmem:[%s2145_s0 + $0x140] sm:$0xf0]  ;;  %v1462_v2 = vld [vmem:[%s2145_s0 + $0x144] sm:$0xf0] }
  0x82   :  { %855 = vmatmul.bf16.gmra.mxu3 %v1100_v1  ;;  %v1199_v1 = vld [vmem:[%s2145_s0 + $0x130] sm:$0xf]  ;;  %v1196_v9 = vor.u32 %v1458_v63, %v1193_v0 }
  0x83   :  { %v1200_v10 = vor.u32 %v1462_v2, %v1199_v1 }
  0x84   :  { %953 = vmatmul.bf16.gmra.mxu1 %v1108_v3 }
  0x91   :  { %811 = vmatmul.bf16.gmra.mxu2 %v1120_v12  ;;  %909 = vmatmul.bf16.gmra.mxu0 %v1128_v14 }
  0x92   :  { %860 = vmatmul.bf16.gmra.mxu3 %v1124_v13  ;;  %v1204_v13 = vor.u32 %v1459_v5, %v1201_v6 }
  0x94   :  { %958 = vmatmul.bf16.gmra.mxu1 %v1132_v15 }
  0x9e   :  { %v1914_v27 = vpop.f32.mrf.mxu0 }
  0xa1   :  { %v1916_v29 = vpop.f32.mrf.mxu1  ;;  %816 = vmatmul.bf16.gmra.mxu2 %v1144_v24  ;;  %914 = vmatmul.bf16.gmra.mxu0 %v1152_v26  ;;  %v1217_v24 = vld [vmem:[%s2145_s0 + $0x170] sm:$0xf0]  ;;  %v1468_v26 = vld [vmem:[%s2145_s0 + $0x174] sm:$0xf0] }
  0xa2   :  { %865 = vmatmul.bf16.gmra.mxu3 %v1148_v25  ;;  %v1223_v25 = vld [vmem:[%s2145_s0 + $0x160] sm:$0xf]  ;;  %v1220_v39 = vor.u32 %v1464_v23, %v1217_v24 }
  0xa3   :  { %v1224_v40 = vor.u32 %v1468_v26, %v1223_v25 }
  0xa4   :  { %963 = vmatmul.bf16.gmra.mxu1 %v1156_v28  ;;  %v719_v31 = vpop.f32.mrf.mxu2 }
  0xa5   :  { %v768_v32 = vpop.f32.mrf.mxu3  ;;  %v720_v33 = vadd.f32 %v1921_v30, %v719_v31 }
  0xa6   :  { %v1926_v35 = vpop.f32.mrf.mxu0 }
  0xa7   :  { %v1924_v34 = vadd.f32 %v768_v32, %v720_v33  ;;  %v1465_v32 = vld [vmem:[%s2145_s0 + $0x164] sm:$0xf]  ;;  %v1225_v33 = vld [vmem:[%s2145_s0 + $0x178] sm:$0xf0] }
  0xa9   :  { %v1928_v36 = vpop.f32.mrf.mxu1 }
  0xac   :  { %v721_v43 = vpop.f32.mrf.mxu2 }
  0xad   :  { %v770_v44 = vpop.f32.mrf.mxu3  ;;  %v722_v47 = vadd.f32 %v1921_v30, %v721_v43  ;;  %v1228_v43 = vor.u32 %v1465_v32, %v1225_v33 }
  0xae   :  { %v1957_v52 = vpop.f32.mrf.mxu0 }
  0xaf   :  { %v1955_v51 = vadd.f32 %v770_v44, %v722_v47 }
  0xb1   :  { %v1959_v54 = vpop.f32.mrf.mxu1  ;;  %821 = vmatmul.bf16.gmra.mxu2 %v1168_v48  ;;  %919 = vmatmul.bf16.gmra.mxu0 %v1176_v50 }
  0xb2   :  { %870 = vmatmul.bf16.gmra.mxu3 %v1172_v49 }
  0xb4   :  { %968 = vmatmul.bf16.gmra.mxu1 %v1180_v53  ;;  %v724_v55 = vpop.f32.mrf.mxu2 }
  0xb5   :  { %v773_v56 = vpop.f32.mrf.mxu3  ;;  %v725_v57 = vadd.f32 %v1921_v30, %v724_v55 }
  0xb6   :  { %v1964_v59 = vpop.f32.mrf.mxu0 }
  0xb7   :  { %v1962_v58 = vadd.f32 %v773_v56, %v725_v57  ;;  %v700_v57 = vadd.f32 %v1921_v30, %v1914_v27 }
  0xb9   :  { %v1966_v60 = vpop.f32.mrf.mxu1  ;;  %v749_v0 = vadd.f32 %v1916_v29, %v700_v57  ;;  %v705_v29 = vadd.f32 %v1921_v30, %v1957_v52  ;;  %v707_v52 = vadd.f32 %v1921_v30, %v1964_v59 }
  0xbc   :  { %v726_v3 = vpop.f32.mrf.mxu2 }
  0xbd   :  { %v775_v4 = vpop.f32.mrf.mxu3  ;;  %v727_v7 = vadd.f32 %v1921_v30, %v726_v3 }
  0xbe   :  { %v1995_v12 = vpop.f32.mrf.mxu0 }
  0xbf   :  { %v1993_v11 = vadd.f32 %v775_v4, %v727_v7  ;;  %v702_v4 = vadd.f32 %v1921_v30, %v1926_v35  ;;  %v710_v59 = vadd.f32 %v1921_v30, %v1995_v12 }
  0xc1   :  { %v1997_v14 = vpop.f32.mrf.mxu1  ;;  %826 = vmatmul.bf16.gmra.mxu2 %v1192_v8  ;;  %924 = vmatmul.bf16.gmra.mxu0 %v1200_v10 }
  0xc2   :  { %875 = vmatmul.bf16.gmra.mxu3 %v1196_v9  ;;  %v751_v9 = vadd.f32 %v1928_v36, %v702_v4  ;;  %v754_v36 = vadd.f32 %v1959_v54, %v705_v29  ;;  %v756_v54 = vadd.f32 %v1966_v60, %v707_v52  ;;  %v759_v60 = vadd.f32 %v1997_v14, %v710_v59 }
  0xc4   :  { %973 = vmatmul.bf16.gmra.mxu1 %v1204_v13  ;;  %v729_v15 = vpop.f32.mrf.mxu2 }
  0xc5   :  { %v778_v16 = vpop.f32.mrf.mxu3  ;;  %v730_v17 = vadd.f32 %v1921_v30, %v729_v15 }
  0xc6   :  { %v2002_v19 = vpop.f32.mrf.mxu0 }
  0xc7   :  { %v2000_v18 = vadd.f32 %v778_v16, %v730_v17  ;;  %v712_v12 = vadd.f32 %v1921_v30, %v2002_v19 }
  0xc9   :  { %v2004_v20 = vpop.f32.mrf.mxu1 }
  0xca   :  { %v761_v14 = vadd.f32 %v2004_v20, %v712_v12 }
  0xcc   :  { %v731_v28 = vpop.f32.mrf.mxu2 }
  0xcd   :  { %v780_v31 = vpop.f32.mrf.mxu3  ;;  %v732_v37 = vadd.f32 %v1921_v30, %v731_v28 }
  0xce   :  { %v2033_v42 = vpop.f32.mrf.mxu0 }
  0xcf   :  { %v2031_v41 = vadd.f32 %v780_v31, %v732_v37  ;;  %v715_v19 = vadd.f32 %v1921_v30, %v2033_v42 }
  0xd1   :  { %v2035_v44 = vpop.f32.mrf.mxu1  ;;  %831 = vmatmul.bf16.gmra.mxu2 %v1216_v38  ;;  %929 = vmatmul.bf16.gmra.mxu0 %v1224_v40 }
  0xd2   :  { %880 = vmatmul.bf16.gmra.mxu3 %v1220_v39  ;;  %v764_v20 = vadd.f32 %v2035_v44, %v715_v19 }
  0xd4   :  { %978 = vmatmul.bf16.gmra.mxu1 %v1228_v43  ;;  %v734_v45 = vpop.f32.mrf.mxu2 }
  0xd5   :  { %v783_v46 = vpop.f32.mrf.mxu3  ;;  %v735_v47 = vadd.f32 %v1921_v30, %v734_v45 }
  0xd6   :  { %v2040_v49 = vpop.f32.mrf.mxu0 }
  0xd7   :  { %v2038_v48 = vadd.f32 %v783_v46, %v735_v47  ;;  %v717_v42 = vadd.f32 %v1921_v30, %v2040_v49 }
  0xd9   :  { %v2042_v50 = vpop.f32.mrf.mxu1 }
  0xda   :  { %v766_v44 = vadd.f32 %v2042_v50, %v717_v42 }
  0xdc   :  { %v736_v53 = vpop.f32.mrf.mxu2 }
  0xdd   :  { %v785_v55 = vpop.f32.mrf.mxu3  ;;  %v737_v56 = vadd.f32 %v1921_v30, %v736_v53 }
  0xde   :  { %v895_v62 = vpop.f32.mrf.mxu0 }
  0xdf   :  { %v2047_v61 = vadd.f32 %v785_v55, %v737_v56 }
  0xe1   :  { %v944_v63 = vpop.f32.mrf.mxu1 }
  0xe4   :  { %v797_v1 = vpop.f32.mrf.mxu2 }
  0xe5   :  { %v846_v2 = vpop.f32.mrf.mxu3  ;;  %v798_v3 = vadd.f32 %v797_v1, %v749_v0 }
  0xe6   :  { %v897_v6 = vpop.f32.mrf.mxu0 }
  0xe7   :  { %v847_v5 = vadd.f32 %v846_v2, %v798_v3 }
  0xe9   :  { %v946_v7 = vpop.f32.mrf.mxu1  ;;  %v896_v8 = vadd.f32 %v895_v62, %v847_v5 }
  0xeb   :  { %v945_v10 = vadd.f32 %v944_v63, %v896_v8 }
  0xec   :  { %v799_v27 = vpop.f32.mrf.mxu2 }
  0xed   :  { %v848_v13 = vpop.f32.mrf.mxu3  ;;  %v984_v15 = vmax.f32 %v945_v10, 0.0  ;;  %v800_v16 = vadd.f32 %v799_v27, %v751_v9 }
  0xee   :  { %v900_v22 = vpop.f32.mrf.mxu0 }
  0xef   :  { %v1000_v17 = vmin.f32 %v984_v15, 1.0  ;;  %v849_v21 = vadd.f32 %v848_v13, %v800_v16 }
  0xf1   :  { %v949_v23 = vpop.f32.mrf.mxu1  ;;  %1017 = vst.msk [vmem:[%s2146_s3] sm:$0xff] %vm1016_vm0, %v1000_v17  ;;  %v898_v35 = vadd.f32 %v897_v6, %v849_v21 }
  0xf3   :  { %v947_v24 = vadd.f32 %v946_v7, %v898_v35 }
  0xf4   :  { %v802_v25 = vpop.f32.mrf.mxu2 }
  0xf5   :  { %v851_v26 = vpop.f32.mrf.mxu3  ;;  %v985_v28 = vmax.f32 %v947_v24, 0.0  ;;  %v803_v31 = vadd.f32 %v802_v25, %v754_v36 }
  0xf6   :  { %v902_v37 = vpop.f32.mrf.mxu0 }
  0xf7   :  { %v1001_v32 = vmin.f32 %v985_v28, 1.0  ;;  %v852_v33 = vadd.f32 %v851_v26, %v803_v31 }
  0xf9   :  { %v951_v38 = vpop.f32.mrf.mxu1  ;;  %1018 = vst.msk [vmem:[%s2146_s3 + $0x8] sm:$0xff] %vm1016_vm0, %v1001_v32  ;;  %v901_v39 = vadd.f32 %v900_v22, %v852_v33 }
  0xfb   :  { %v950_v40 = vadd.f32 %v949_v23, %v901_v39 }
  0xfc   :  { %v804_v43 = vpop.f32.mrf.mxu2 }
  0xfd   :  { %v853_v45 = vpop.f32.mrf.mxu3  ;;  %v986_v46 = vmax.f32 %v950_v40, 0.0  ;;  %v805_v47 = vadd.f32 %v804_v43, %v756_v54 }
  0xfe   :  { %v905_v56 = vpop.f32.mrf.mxu0 }
  0xff   :  { %v1002_v53 = vmin.f32 %v986_v46, 1.0  ;;  %v854_v55 = vadd.f32 %v853_v45, %v805_v47 }
 0x101   :  { %v954_v57 = vpop.f32.mrf.mxu1  ;;  %1019 = vst.msk [vmem:[%s2146_s3 + $0x10] sm:$0xff] %vm1016_vm0, %v1002_v53  ;;  %v903_v62 = vadd.f32 %v902_v37, %v854_v55 }
 0x103   :  { %v952_v63 = vadd.f32 %v951_v38, %v903_v62 }
 0x104   :  { %v807_v0 = vpop.f32.mrf.mxu2 }
 0x105   :  { %v856_v1 = vpop.f32.mrf.mxu3  ;;  %v987_v2 = vmax.f32 %v952_v63, 0.0  ;;  %v808_v3 = vadd.f32 %v807_v0, %v759_v60 }
 0x106   :  { %v907_v6 = vpop.f32.mrf.mxu0 }
 0x107   :  { %v1003_v4 = vmin.f32 %v987_v2, 1.0  ;;  %v857_v5 = vadd.f32 %v856_v1, %v808_v3 }
 0x109   :  { %v956_v7 = vpop.f32.mrf.mxu1  ;;  %1020 = vst.msk [vmem:[%s2146_s3 + $0x18] sm:$0xff] %vm1016_vm0, %v1003_v4  ;;  %v906_v8 = vadd.f32 %v905_v56, %v857_v5 }
 0x10b   :  { %v955_v9 = vadd.f32 %v954_v57, %v906_v8 }
 0x10c   :  { %v809_v10 = vpop.f32.mrf.mxu2 }
 0x10d   :  { %v858_v27 = vpop.f32.mrf.mxu3  ;;  %v988_v13 = vmax.f32 %v955_v9, 0.0  ;;  %v810_v15 = vadd.f32 %v809_v10, %v761_v14 }
 0x10e   :  { %v910_v17 = vpop.f32.mrf.mxu0 }
 0x10f   :  { %v1004_v16 = vmin.f32 %v988_v13, 1.0  ;;  %v859_v29 = vadd.f32 %v858_v27, %v810_v15 }
 0x111   :  { %v959_v21 = vpop.f32.mrf.mxu1  ;;  %1021 = vst.msk [vmem:[%s2146_s3 + $0x20] sm:$0xff] %vm1016_vm0, %v1004_v16  ;;  %v908_v22 = vadd.f32 %v907_v6, %v859_v29 }
 0x113   :  { %v957_v23 = vadd.f32 %v956_v7, %v908_v22 }
 0x114   :  { %v812_v35 = vpop.f32.mrf.mxu2 }
 0x115   :  { %v861_v36 = vpop.f32.mrf.mxu3  ;;  %v989_v24 = vmax.f32 %v957_v23, 0.0  ;;  %v813_v25 = vadd.f32 %v812_v35, %v764_v20 }
 0x116   :  { %v912_v31 = vpop.f32.mrf.mxu0 }
 0x117   :  { %v1005_v26 = vmin.f32 %v989_v24, 1.0  ;;  %v862_v28 = vadd.f32 %v861_v36, %v813_v25 }
 0x119   :  { %v961_v52 = vpop.f32.mrf.mxu1  ;;  %1022 = vst.msk [vmem:[%s2146_s3 + $0x28] sm:$0xff] %vm1016_vm0, %v1005_v26  ;;  %v911_v32 = vadd.f32 %v910_v17, %v862_v28 }
 0x11b   :  { %v960_v33 = vadd.f32 %v959_v21, %v911_v32 }
 0x11c   :  { %v814_v37 = vpop.f32.mrf.mxu2 }
 0x11d   :  { %v863_v38 = vpop.f32.mrf.mxu3  ;;  %v990_v39 = vmax.f32 %v960_v33, 0.0  ;;  %v815_v54 = vadd.f32 %v814_v37, %v766_v44 }
 0x11e   :  { %v915_v30 = vpop.f32.mrf.mxu0 }
 0x11f   :  { %v1006_v40 = vmin.f32 %v990_v39, 1.0  ;;  %v864_v43 = vadd.f32 %v863_v38, %v815_v54 }
 0x121   :  { %v964_v49 = vpop.f32.mrf.mxu1  ;;  %1023 = vst.msk [vmem:[%s2146_s3 + $0x30] sm:$0xff] %vm1016_vm0, %v1006_v40  ;;  %v913_v45 = vadd.f32 %v912_v31, %v864_v43 }
 0x123   :  { %v962_v46 = vadd.f32 %v961_v52, %v913_v45 }
 0x124   :  { %v817_v47 = vpop.f32.mrf.mxu2 }
 0x125   :  { %v866_v59 = vpop.f32.mrf.mxu3  ;;  %v991_v53 = vmax.f32 %v962_v46, 0.0  ;;  %v818_v50 = vadd.f32 %v817_v47, %v1924_v34 }
 0x126   :  { %v917_v57 = vpop.f32.mrf.mxu0 }
 0x127   :  { %v1007_v55 = vmin.f32 %v991_v53, 1.0  ;;  %v867_v56 = vadd.f32 %v866_v59, %v818_v50 }
 0x129   :  { %v966_v62 = vpop.f32.mrf.mxu1  ;;  %1024 = vst.msk [vmem:[%s2146_s3 + $0x38] sm:$0xff] %vm1016_vm0, %v1007_v55  ;;  %v916_v60 = vadd.f32 %v915_v30, %v867_v56 }
 0x12b   :  { %v965_v63 = vadd.f32 %v964_v49, %v916_v60 }
 0x12c   :  { %v819_v0 = vpop.f32.mrf.mxu2 }
 0x12d   :  { %v868_v1 = vpop.f32.mrf.mxu3  ;;  %v992_v2 = vmax.f32 %v965_v63, 0.0  ;;  %v820_v3 = vadd.f32 %v819_v0, %v1955_v51 }
 0x12e   :  { %v920_v5 = vpop.f32.mrf.mxu0 }
 0x12f   :  { %v1008_v12 = vmin.f32 %v992_v2, 1.0  ;;  %v869_v4 = vadd.f32 %v868_v1, %v820_v3 }
 0x131   :  { %v969_v34 = vpop.f32.mrf.mxu1  ;;  %1025 = vst.msk [vmem:[%s2146_s3 + $0x40] sm:$0xff] %vm1016_vm0, %v1008_v12  ;;  %v918_v6 = vadd.f32 %v917_v57, %v869_v4 }
 0x133   :  { %v967_v7 = vadd.f32 %v966_v62, %v918_v6 }
 0x134   :  { %v822_v8 = vpop.f32.mrf.mxu2 }
 0x135   :  { %v871_v14 = vpop.f32.mrf.mxu3  ;;  %v993_v9 = vmax.f32 %v967_v7, 0.0  ;;  %v823_v10 = vadd.f32 %v822_v8, %v1962_v58 }
 0x136   :  { %v922_v15 = vpop.f32.mrf.mxu0 }
 0x137   :  { %v1009_v27 = vmin.f32 %v993_v9, 1.0  ;;  %v872_v13 = vadd.f32 %v871_v14, %v823_v10 }
 0x139   :  { %1026 = vst.msk [vmem:[%s2146_s3 + $0x48] sm:$0xff] %vm1016_vm0, %v1009_v27  ;;  %v921_v51 = vadd.f32 %v920_v5, %v872_v13  ;;  %v971_v19 = vpop.f32.mrf.mxu1 }
 0x13b   :  { %v970_v16 = vadd.f32 %v969_v34, %v921_v51 }
 0x13c   :  { %v824_v29 = vpop.f32.mrf.mxu2 }
 0x13d   :  { %v873_v17 = vpop.f32.mrf.mxu3  ;;  %v994_v21 = vmax.f32 %v970_v16, 0.0  ;;  %v825_v22 = vadd.f32 %v824_v29, %v1993_v11 }
 0x13e   :  { %v925_v35 = vpop.f32.mrf.mxu0 }
 0x13f   :  { %v1010_v20 = vmin.f32 %v994_v21, 1.0  ;;  %v874_v23 = vadd.f32 %v873_v17, %v825_v22 }
 0x141   :  { %1027 = vst.msk [vmem:[%s2146_s3 + $0x50] sm:$0xff] %vm1016_vm0, %v1010_v20  ;;  %v923_v58 = vadd.f32 %v922_v15, %v874_v23  ;;  %v974_v24 = vpop.f32.mrf.mxu1 }
 0x143   :  { %v972_v36 = vadd.f32 %v971_v19, %v923_v58 }
 0x144   :  { %v827_v25 = vpop.f32.mrf.mxu2 }
 0x145   :  { %v876_v42 = vpop.f32.mrf.mxu3  ;;  %v995_v26 = vmax.f32 %v972_v36, 0.0  ;;  %v828_v28 = vadd.f32 %v827_v25, %v2000_v18 }
 0x146   :  { %v927_v44 = vpop.f32.mrf.mxu0 }
 0x147   :  { %v1011_v31 = vmin.f32 %v995_v26, 1.0  ;;  %v877_v52 = vadd.f32 %v876_v42, %v828_v28 }
 0x149   :  { %1028 = vst.msk [vmem:[%s2146_s3 + $0x58] sm:$0xff] %vm1016_vm0, %v1011_v31  ;;  %v926_v11 = vadd.f32 %v925_v35, %v877_v52  ;;  %v976_v54 = vpop.f32.mrf.mxu1 }
 0x14b   :  { %v975_v32 = vadd.f32 %v974_v24, %v926_v11 }
 0x14c   :  { %v829_v33 = vpop.f32.mrf.mxu2 }
 0x14d   :  { %v878_v37 = vpop.f32.mrf.mxu3  ;;  %v996_v38 = vmax.f32 %v975_v32, 0.0  ;;  %v830_v39 = vadd.f32 %v829_v33, %v2031_v41 }
 0x14e   :  { %v930_v59 = vpop.f32.mrf.mxu0 }
 0x14f   :  { %v1012_v40 = vmin.f32 %v996_v38, 1.0  ;;  %v879_v43 = vadd.f32 %v878_v37, %v830_v39 }
 0x151   :  { %1029 = vst.msk [vmem:[%s2146_s3 + $0x60] sm:$0xff] %vm1016_vm0, %v1012_v40  ;;  %v928_v18 = vadd.f32 %v927_v44, %v879_v43  ;;  %v979_v55 = vpop.f32.mrf.mxu1 }
 0x153   :  { %v977_v30 = vadd.f32 %v976_v54, %v928_v18 }
 0x154   :  { %v832_v49 = vpop.f32.mrf.mxu2 }
 0x155   :  { %v881_v45 = vpop.f32.mrf.mxu3  ;;  %v997_v46 = vmax.f32 %v977_v30, 0.0  ;;  %v833_v47 = vadd.f32 %v832_v49, %v2038_v48 }
 0x156   :  { %v932_v2 = vpop.f32.mrf.mxu0 }
 0x157   :  { %v1013_v53 = vmin.f32 %v997_v46, 1.0  ;;  %v882_v50 = vadd.f32 %v881_v45, %v833_v47 }
 0x159   :  { %1030 = vst.msk [vmem:[%s2146_s3 + $0x68] sm:$0xff] %vm1016_vm0, %v1013_v53  ;;  %v931_v41 = vadd.f32 %v930_v59, %v882_v50  ;;  %v981_v3 = vpop.f32.mrf.mxu1 }
 0x15b   :  { %v980_v56 = vadd.f32 %v979_v55, %v931_v41 }
 0x15c   :  { %v834_v57 = vpop.f32.mrf.mxu2 }
 0x15d   :  { %v998_v62 = vmax.f32 %v980_v56, 0.0  ;;  %v835_v60 = vadd.f32 %v834_v57, %v2047_v61  ;;  %v883_v63 = vpop.f32.mrf.mxu3 }
 0x15f   :  { %v1014_v0 = vmin.f32 %v998_v62, 1.0  ;;  %v884_v1 = vadd.f32 %v883_v63, %v835_v60 }
 0x161   :  { %1031 = vst.msk [vmem:[%s2146_s3 + $0x70] sm:$0xff] %vm1016_vm0, %v1014_v0  ;;  %v933_v48 = vadd.f32 %v932_v2, %v884_v1 }
 0x163   :  { %v982_v12 = vadd.f32 %v981_v3, %v933_v48 }
 0x165   :  { %v999_v4 = vmax.f32 %v982_v12, 0.0 }
 0x167   :  { %v1015_v5 = vmin.f32 %v999_v4, 1.0 }
 0x169   :  { %1032 = vst.msk [vmem:[%s2146_s3 + $0x78] sm:$0xff] %vm1016_vm0, %v1015_v5 }

// kernel: image_compressor_forward.56
= control target key start
LH: loop header
LB: loop body
LE: loop exit
PB: predicated region body
PF: predicated region fallthrough
CT: control target
= control target key end

     0   :  { %s172_s0 = inlined_call_operand.vmem [shape: f32[48,128], index: 0, kind: input, shape index: {}]   ;;  %s173_s1 = inlined_call_operand.vmem [shape: f32[48,128], index: 1, kind: input, shape index: {}]   ;;  %s174_s2 = inlined_call_operand.hbm [shape: f32[1,1], index: 2, kind: output, shape index: {}]  }
   0x1   :  { %v18_v0 = vld [vmem:[%s172_s0] sm:$0xff]  ;;  %v19_v1 = vld [vmem:[%s172_s0 + $0x8] sm:$0xff]  ;;  %v20_v2 = vld [vmem:[%s172_s0 + $0x10] sm:$0xff] }
   0x2   :  { %v21_v3 = vld [vmem:[%s172_s0 + $0x18] sm:$0xff]  ;;  %v22_v4 = vld [vmem:[%s172_s0 + $0x20] sm:$0xff]  ;;  %v25_v6 = vld [vmem:[%s173_s1 + $0x8] sm:$0xff] }
   0x3   :  { %v24_v5 = vld [vmem:[%s173_s1] sm:$0xff]  ;;  %v26_v7 = vld [vmem:[%s173_s1 + $0x10] sm:$0xff]  ;;  %v27_v8 = vld [vmem:[%s173_s1 + $0x18] sm:$0xff]  ;;  %v31_v11 = vsub.f32 %v19_v1, %v25_v6 }
   0x4   :  { %v28_v9 = vld [vmem:[%s173_s1 + $0x20] sm:$0xff]  ;;  %v30_v10 = vsub.f32 %v18_v0, %v24_v5  ;;  %v32_v12 = vsub.f32 %v20_v2, %v26_v7  ;;  %v23_v13 = vld [vmem:[%s172_s0 + $0x28] sm:$0xff]  ;;  %v33_v15 = vsub.f32 %v21_v3, %v27_v8 }
   0x5   :  { %v29_v14 = vld [vmem:[%s173_s1 + $0x28] sm:$0xff] }
   0x6   :  { %7 = vsyncpa [#allocation4], 0  ;;  %v34_v16 = vsub.f32 %v22_v4, %v28_v9  ;;  %v37_v17 = vmul.f32 %v30_v10, %v30_v10  ;;  %v38_v18 = vmul.f32 %v31_v11, %v31_v11  ;;  %v39_v19 = vmul.f32 %v32_v12, %v32_v12  ;;  %s114_s1 = smov [#allocation3]   ;;  %s74_s8 = sshll.u32 %s174_s2, 4  ;;  %s75_s8 = int_to_ptr.hbm [resolvable:$true] %s74_s8 }
   0x7   :  { %v35_v20 = vsub.f32 %v23_v13, %v29_v14  ;;  %v40_v21 = vmul.f32 %v33_v15, %v33_v15  ;;  %vm16_vm0 = vcmask 0   ;;  %v113_v29 = vmov 0.0   ;;  %s72_s5 = sshll.u32 %s114_s1, 4  ;;  %s73_s5 = int_to_ptr.vmem [resolvable:$true] %s72_s5 }
   0x8   :  { %v43_v22 = vadd.f32 %v38_v18, %v37_v17  ;;  %v41_v23 = vmul.f32 %v34_v16, %v34_v16  ;;  %17 = vst.msk [vmem:[#allocation2] sm:$0x1] %vm16_vm0, %v113_v29 }
   0x9   :  { %v42_v25 = vmul.f32 %v35_v20, %v35_v20 }
   0xa   :  { %v44_v24 = vadd.f32 %v43_v22, %v39_v19 }
   0xc   :  { %v45_v26 = vadd.f32 %v44_v24, %v40_v21 }
   0xe   :  { %v46_v27 = vadd.f32 %v45_v26, %v41_v23 }
   0xf   :  { %v36_v37 = vld [vmem:[#allocation2] sm:$0x1] }
  0x10   :  { %v47_v28 = vadd.f32 %v46_v27, %v42_v25 }
  0x12   :  { %48 = vadd.xlane.f32.xlu0 %v47_v28 }
  0x85   :  { %v49_v30 = vpop.xlane.xlu0 %48 }
  0x86   :  { %v50_v31 = vrot.slane %v49_v30, 4 }
  0x88   :  { %v51_v32 = vadd.f32 %v50_v31, %v49_v30 }
  0x8a   :  { %v52_v33 = vrot.slane %v51_v32, 2 }
  0x8c   :  { %v53_v34 = vadd.f32 %v52_v33, %v51_v32 }
  0x8e   :  { %v54_v35 = vrot.slane %v53_v34, 1 }
  0x90   :  { %v55_v36 = vadd.f32 %v54_v35, %v53_v34 }
  0x92   :  { %83 = vpush %v55_v36 }
  0xc3   :  { %s84_s0 = spop %83 }
  0xc4   :  { %v57_v38 = vstv %s84_s0 }
  0xc5   :  { %v58_v39 = vadd.f32 %v57_v38, %v36_v37 }
  0xc7   :  { %60 = vst.msk [vmem:[#allocation2] sm:$0x1] %vm16_vm0, %v58_v39 }
  0xce   :  { %v64_v40 = vld [vmem:[#allocation2] sm:$0x1] }
  0xcf   :  { %v65_v41 = vmul.f32 0.00016276042, %v64_v40 }
  0xd1   :  { %66 = vst.msk [vmem:[#allocation3] sm:$0x1] %vm16_vm0, %v65_v41 }
  0xd2   :  { %77 = dma.vmem_to_hbm [thread:$0]  %s73_s5, 16, %s75_s8, [#allocation4]  }
  0xd3   :  { %111 = dma.done.wait [#allocation4], 16  }
  0xd4   :  { %112 = vsyncadd [#allocation4], 4294967280 }
  0xd5   :  { %82 = vsyncpa [#allocation4], 1 }

// kernel: image_compressor_forward.57
= control target key start
LH: loop header
LB: loop body
LE: loop exit
PB: predicated region body
PF: predicated region fallthrough
CT: control target
= control target key end

     0   :  { %s277_s0 = inlined_call_operand.vmem [shape: f32[8,128], index: 0, kind: input, shape index: {}]   ;;  %s278_s1 = inlined_call_operand.vmem [shape: f32[4,128], index: 1, kind: input, shape index: {}]   ;;  %s279_s2 = inlined_call_operand.vmem [shape: f32[4,128], index: 2, kind: input, shape index: {}]   ;;  %s280_s3 = inlined_call_operand.vmem [shape: f32[3,128], index: 3, kind: input, shape index: {}]   ;;  %s281_s4 = inlined_call_operand.hbm [shape: f32[1,1], index: 4, kind: output, shape index: {}]  }
   0x1   :  { %v25_v0 = vld [vmem:[%s278_s1] sm:$0xf] }
   0x2   :  { %v26_v1 = vmul.f32 1.442695, %v25_v0 }
   0x3   :  { %9 = vsyncpa [#allocation4], 0  ;;  %v24_v4 = vld [vmem:[%s277_s0] sm:$0xff]  ;;  %vm22_vm9 = vcmask 0   ;;  %s233_s1 = smov [#allocation3]   ;;  %s164_s24 = sshll.u32 %s281_s4, 4  ;;  %s165_s24 = int_to_ptr.hbm [resolvable:$true] %s164_s24 }
   0x4   :  { %178 = vpow2.f32 %v26_v1  ;;  %v31_v6 = vld [vmem:[%s279_s2] sm:$0xf]  ;;  %v34_v9 = vadd.f32 0.5, %v24_v4  ;;  %v173_v10 = vadd.f32 -0.5, %v24_v4  ;;  %s162_s2 = sshll.u32 %s233_s1, 4  ;;  %s163_s2 = int_to_ptr.vmem [resolvable:$true] %s162_s2 }
   0x5   :  { %v32_v7 = vld [vmem:[%s280_s3] sm:$0x7]  ;;  %v37_v12 = vperm.slane %v31_v6, 0  ;;  %v45_v25 = vperm.slane %v31_v6, 1  ;;  %v53_v38 = vperm.slane %v31_v6, 2  ;;  %v61_v51 = vperm.slane %v31_v6, 3 }
   0xa   :  { %v179_v2 = vpop.eup %178 }
   0xb   :  { %v28_v3 = vadd.f32 1.0, %v179_v2 }
   0xd   :  { %180 = vlog2.f32 %v28_v3 }
   0xe   :  { %182 = vtanh.f32 %v32_v7 }
  0x13   :  { %v181_v5 = vpop.eup %180 }
  0x14   :  { %v30_v8 = vmul.f32 0.6931472, %v181_v5  ;;  %v183_v17 = vpop.eup %182 }
  0x15   :  { %v40_v18 = vperm.slane %v183_v17, 0  ;;  %v48_v31 = vperm.slane %v183_v17, 1  ;;  %v56_v44 = vperm.slane %v183_v17, 2 }
  0x16   :  { %v35_v11 = vperm.slane %v30_v8, 0  ;;  %v43_v22 = vperm.slane %v30_v8, 1  ;;  %v51_v35 = vperm.slane %v30_v8, 2  ;;  %v59_v48 = vperm.slane %v30_v8, 3 }
  0x18   :  { %v36_v13 = vmul.f32 %v35_v11, %v34_v9  ;;  %v83_v14 = vmul.f32 %v173_v10, %v35_v11 }
  0x1a   :  { %v38_v15 = vadd.f32 %v37_v12, %v36_v13  ;;  %v84_v16 = vadd.f32 %v83_v14, %v37_v12 }
  0x1c   :  { %184 = vtanh.f32 %v38_v15 }
  0x1d   :  { %186 = vtanh.f32 %v84_v16 }
  0x22   :  { %v185_v19 = vpop.eup %184 }
  0x23   :  { %v187_v20 = vpop.eup %186  ;;  %v41_v21 = vmul.f32 %v185_v19, %v40_v18 }
  0x24   :  { %v86_v23 = vmul.f32 %v187_v20, %v40_v18 }
  0x25   :  { %v42_v24 = vadd.f32 %v41_v21, %v38_v15 }
  0x26   :  { %v87_v26 = vadd.f32 %v86_v23, %v84_v16  ;;  %v128_v23 = vlaneseq }
  0x27   :  { %v44_v27 = vmul.f32 %v43_v22, %v42_v24 }
  0x28   :  { %v88_v28 = vmul.f32 %v87_v26, %v43_v22  ;;  %v129_v24 = vshrl.u32 %v128_v23, 7  ;;  %v133_v26 = vand.u32 127, %v128_v23 }
  0x29   :  { %v46_v29 = vadd.f32 %v45_v25, %v44_v27 }
  0x2a   :  { %v89_v30 = vadd.f32 %v88_v28, %v45_v25  ;;  %v134_v27 = vmul.u32 128, %v129_v24 }
  0x2b   :  { %188 = vtanh.f32 %v46_v29 }
  0x2c   :  { %190 = vtanh.f32 %v89_v30 }
  0x31   :  { %v189_v32 = vpop.eup %188 }
  0x32   :  { %v191_v33 = vpop.eup %190  ;;  %v49_v34 = vmul.f32 %v189_v32, %v48_v31 }
  0x33   :  { %v91_v36 = vmul.f32 %v191_v33, %v48_v31 }
  0x34   :  { %v50_v37 = vadd.f32 %v49_v34, %v46_v29 }
  0x35   :  { %v92_v39 = vadd.f32 %v91_v36, %v89_v30  ;;  %v135_v30 = vadd.s32 %v134_v27, %v133_v26 }
  0x36   :  { %v52_v40 = vmul.f32 %v51_v35, %v50_v37 }
  0x37   :  { %v93_v41 = vmul.f32 %v92_v39, %v51_v35  ;;  %vm136_vm8 = vcmp.lt.s32.totalorder %v135_v30, 1024  ;;  %v232_v35 = vmov 0.0  }
  0x38   :  { %v54_v42 = vadd.f32 %v53_v38, %v52_v40  ;;  %23 = vst.msk [vmem:[#allocation2] sm:$0x1] %vm22_vm9, %v232_v35 }
  0x39   :  { %v94_v43 = vadd.f32 %v93_v41, %v53_v38 }
  0x3a   :  { %192 = vtanh.f32 %v54_v42 }
  0x3b   :  { %194 = vtanh.f32 %v94_v43 }
  0x40   :  { %v193_v45 = vpop.eup %192 }
  0x41   :  { %v195_v46 = vpop.eup %194  ;;  %v57_v47 = vmul.f32 %v193_v45, %v56_v44 }
  0x42   :  { %v96_v49 = vmul.f32 %v195_v46, %v56_v44 }
  0x43   :  { %v58_v50 = vadd.f32 %v57_v47, %v54_v42 }
  0x44   :  { %v97_v52 = vadd.f32 %v96_v49, %v94_v43  ;;  %v137_v43 = vld [vmem:[#allocation2] sm:$0x1] }
  0x45   :  { %v60_v53 = vmul.f32 %v59_v48, %v58_v50 }
  0x46   :  { %v98_v54 = vmul.f32 %v97_v52, %v59_v48 }
  0x47   :  { %v62_v55 = vadd.f32 %v61_v51, %v60_v53 }
  0x48   :  { %v99_v56 = vadd.f32 %v98_v54, %v61_v51 }
  0x49   :  { %v63_v57 = vsub.f32 0.0, %v62_v55 }
  0x4a   :  { %v100_v58 = vsub.f32 0.0, %v99_v56 }
  0x4b   :  { %v64_v59 = vmul.f32 1.442695, %v63_v57 }
  0x4c   :  { %v101_v60 = vmul.f32 1.442695, %v100_v58 }
  0x4d   :  { %196 = vpow2.f32 %v64_v59 }
  0x4e   :  { %198 = vpow2.f32 %v101_v60 }
  0x53   :  { %v197_v61 = vpop.eup %196 }
  0x54   :  { %v199_v62 = vpop.eup %198  ;;  %v66_v63 = vadd.f32 1.0, %v197_v61 }
  0x55   :  { %v103_v0 = vadd.f32 1.0, %v199_v62 }
  0x56   :  { %200 = vrcp.f32 %v66_v63  ;;  %vm72_vm0 = vweird.f32 %v66_v63  ;;  %v78_v4 = vand.u32 2147483648, %v66_v63  ;;  %v76_v7 = vand.u32 2147483647, %v66_v63 }
  0x57   :  { %202 = vrcp.f32 %v103_v0  ;;  %v115_v8 = vand.u32 2147483648, %v103_v0  ;;  %vm109_vm2 = vweird.f32 %v103_v0  ;;  %v113_v10 = vand.u32 2147483647, %v103_v0 }
  0x58   :  { %v79_v12 = vor.u32 1.1754944e-38, %v78_v4  ;;  %vm77_vm5 = vcmp.eq.f32.partialorder %v76_v7, 8.507059e+37 }
  0x59   :  { %v116_v15 = vor.u32 1.1754944e-38, %v115_v8  ;;  %vm114_vm7 = vcmp.eq.f32.partialorder %v113_v10, 8.507059e+37 }
  0x5c   :  { %v201_v1 = vpop.eup %200 }
  0x5d   :  { %v203_v2 = vpop.eup %202  ;;  %v68_v3 = vmul.f32 %v201_v1, %v66_v63  ;;  %vm73_vm1 = vweird.f32 %v201_v1 }
  0x5e   :  { %v105_v5 = vmul.f32 %v203_v2, %v103_v0  ;;  %vm110_vm3 = vweird.f32 %v203_v2  ;;  %vm74_vm4 = vmor %vm72_vm0, %vm73_vm1 }
  0x5f   :  { %v69_v6 = vsub.f32 1.0, %v68_v3  ;;  %vm111_vm6 = vmor %vm109_vm2, %vm110_vm3 }
  0x60   :  { %v106_v9 = vsub.f32 1.0, %v105_v5 }
  0x61   :  { %v70_v11 = vmul.f32 %v201_v1, %v69_v6 }
  0x62   :  { %v107_v13 = vmul.f32 %v203_v2, %v106_v9 }
  0x63   :  { %v71_v14 = vadd.f32 %v201_v1, %v70_v11 }
  0x64   :  { %v108_v16 = vadd.f32 %v203_v2, %v107_v13 }
  0x65   :  { %v75_v17 = vsel %vm74_vm4, %v201_v1, %v71_v14 }
  0x66   :  { %v80_v18 = vsel %vm77_vm5, %v79_v12, %v75_v17  ;;  %v112_v19 = vsel %vm111_vm6, %v203_v2, %v108_v16 }
  0x67   :  { %v117_v20 = vsel %vm114_vm7, %v116_v15, %v112_v19 }
  0x68   :  { %v119_v21 = vsub.f32 %v80_v18, %v117_v20 }
  0x6a   :  { %v120_v22 = vadd.f32 1e-10, %v119_v21 }
  0x6c   :  { %204 = vlog2.f32 %v120_v22 }
  0x72   :  { %v205_v25 = vpop.eup %204 }
  0x73   :  { %v122_v28 = vmul.f32 0.6931472, %v205_v25 }
  0x75   :  { %v123_v29 = vsub.f32 0.0, %v122_v28 }
  0x77   :  { %v124_v31 = vmul.f32 1.442695, %v123_v29 }
  0x79   :  { %v125_v32 = vmax.f32 %v124_v31, 0.0 }
  0x7b   :  { %v126_v33 = vmin.f32 %v125_v32, 50.0 }
  0x7d   :  { %v138_v34 = vsel %vm136_vm8, %v126_v33, 0.0 }
  0x7e   :  { %139 = vadd.xlane.f32.xlu0 %v138_v34 }
  0xf1   :  { %v140_v36 = vpop.xlane.xlu0 %139 }
  0xf2   :  { %v141_v37 = vrot.slane %v140_v36, 4 }
  0xf4   :  { %v142_v38 = vadd.f32 %v141_v37, %v140_v36 }
  0xf6   :  { %v143_v39 = vrot.slane %v142_v38, 2 }
  0xf8   :  { %v144_v40 = vadd.f32 %v143_v39, %v142_v38 }
  0xfa   :  { %v145_v41 = vrot.slane %v144_v40, 1 }
  0xfc   :  { %v146_v42 = vadd.f32 %v145_v41, %v144_v40 }
  0xfe   :  { %174 = vpush %v146_v42 }
 0x12f   :  { %s175_s0 = spop %174 }
 0x130   :  { %v148_v44 = vstv %s175_s0 }
 0x131   :  { %v149_v45 = vadd.f32 %v148_v44, %v137_v43 }
 0x133   :  { %151 = vst.msk [vmem:[#allocation2] sm:$0x1] %vm22_vm9, %v149_v45 }
 0x13a   :  { %v155_v46 = vld [vmem:[#allocation2] sm:$0x1] }
 0x13b   :  { %156 = vst.msk [vmem:[#allocation3] sm:$0x1] %vm22_vm9, %v155_v46 }
 0x13c   :  { %167 = dma.vmem_to_hbm [thread:$0]  %s163_s2, 16, %s165_s24, [#allocation4]  }
 0x13d   :  { %230 = dma.done.wait [#allocation4], 16  }
 0x13e   :  { %231 = vsyncadd [#allocation4], 4294967280 }
 0x13f   :  { %172 = vsyncpa [#allocation4], 1 }

</bundles_post_ra>
